<compile_context>
chip_gen: v6e
topology: v6e:2x2x1
jax: 0.10.0
libtpu: 0.0.40
codegen_flags: <defaults>
</compile_context>

<pallas_src>
import functools

import jax
import jax.numpy as jnp
from jax.experimental import pallas as pl
from jax.experimental.pallas import tpu as pltpu

LEAKY_SLOPE = 0.01            # nn.LeakyReLU default
BN_EPS = 1e-5                 # nn.BatchNorm3d default
LANE = 128


def _round_up(x, m):
    return ((x + m - 1) // m) * m


@functools.lru_cache(maxsize=None)
def _vmem_budget_limit():
    """(working-set budget, scoped vmem limit) in bytes, per TensorCore."""
    big_vmem = False
    try:
        kind = jax.devices()[0].device_kind.lower()
        # 128 MiB-VMEM parts (v4 / v5e / v5p / v6e).  v7x has 64 MiB per
        # TensorCore; unknown parts fall back to the conservative bucket.
        big_vmem = any(tag in kind for tag in ("v4", "v5", "v6"))
    except Exception:
        pass
    if big_vmem:
        return 96 * 1024 * 1024, 110 * 1024 * 1024
    return 40 * 1024 * 1024, 48 * 1024 * 1024


# ---------------------------------------------------------------------------
# Pallas kernels: fused  act((A @ B) * scale + shift)
# ---------------------------------------------------------------------------
def _epilogue(y, scale, shift, act):
    y = y * scale + shift
    if act == "leaky_relu":
        y = jnp.where(y >= 0, y, LEAKY_SLOPE * y)
    elif act == "sigmoid":
        # exp + reciprocal both land on the EUP slot; keeps the VPU free.
        y = pl.reciprocal(1.0 + jnp.exp(-y), approx=True)
    return y


def _mm_singlek_kernel(a_ref, b_ref, scale_ref, shift_ref, o_ref, *, act):
    """Whole-K-resident matmul: no accumulator scratch, straight to o_ref."""
    y = jnp.dot(a_ref[...], b_ref[...], preferred_element_type=jnp.float32)
    o_ref[...] = _epilogue(y, scale_ref[...], shift_ref[...], act).astype(o_ref.dtype)


def _mm_multik_kernel(a_ref, b_ref, scale_ref, shift_ref, o_ref, acc_ref, *, act):
    """K-split matmul with VMEM accumulator (fallback for very large K)."""
    k = pl.program_id(2)

    @pl.when(k == 0)
    def _init():
        acc_ref[...] = jnp.zeros_like(acc_ref)

    acc_ref[...] += jnp.dot(a_ref[...], b_ref[...],
                            preferred_element_type=jnp.float32)

    @pl.when(k == pl.num_programs(2) - 1)
    def _fin():
        o_ref[...] = _epilogue(acc_ref[...], scale_ref[...], shift_ref[...],
                               act).astype(o_ref.dtype)


# ---------------------------------------------------------------------------
# Fused matmul wrapper
# ---------------------------------------------------------------------------
def matmul_bn_act(a, b, scale, shift, act="none", out_dtype=jnp.float32):
    """act((A @ B) * scale + shift).  a:(M,K) b:(K,N) scale/shift:(N,) -> (M,N)."""
    M, K = a.shape
    K2, N = b.shape
    assert K == K2
    out_bytes = jnp.dtype(out_dtype).itemsize
    budget, vmem_limit = _vmem_budget_limit()

    # ---- lane-dense output: N always padded to a multiple of 128 ----
    N_pad = _round_up(N, LANE)
    if N_pad <= 2048:
        tn = N_pad
    else:
        tn = LANE
        for cand in (2048, 1024, 512, 256):
            if N_pad % cand == 0:
                tn = cand
                break

    # ---- M tiling: multiples of 16 (bf16 sublane packing) ----
    M16 = _round_up(M, 16)
    if M16 <= 2048:
        tm = M16
        M_pad = M16
    else:
        tm = 256
        for cand in (2048, 1024, 512, 256):
            if M16 % cand == 0:
                tm = cand
                break
        M_pad = _round_up(M16, tm)

    # ---- force >=2 blocks on a parallel axis when grid would be (1,1) so
    #      dimension_semantics=("parallel",...) shards across both v7x cores ----
    if M_pad // tm == 1 and N_pad // tn == 1 and tm >= 32:
        tm = _round_up((tm + 1) // 2, 16)
        M_pad = 2 * tm

    # ---- K: keep whole (128-aligned) K resident if it fits the VMEM budget ----
    K_pad = _round_up(K, LANE)

    def vmem_need(tm_, tk_, tn_, multi):
        bufs = 3 if multi else 2                      # multi-K path = Buffered(3)
        n = bufs * (tm_ * tk_ + tk_ * tn_) * 2        # bf16 A / B
        n += 2 * tm_ * tn_ * out_bytes                # double-buffered output
        n += 4 * tn_ * 4                              # scale / shift
        if multi:
            n += tm_ * tn_ * 4                        # f32 accumulator
        return n

    single_k = vmem_need(tm, K_pad, tn, False) <= budget
    if single_k:
        tk = K_pad
    else:
        tk = min(2048, K_pad)
        while tk > LANE and vmem_need(tm, tk, tn, True) > budget:
            tk = _round_up(tk // 2, LANE)
        while tn > LANE and vmem_need(tm, tk, tn, True) > budget:
            tn = _round_up(max(LANE, tn // 2), LANE)
        while tm > LANE and vmem_need(tm, tk, tn, True) > budget:
            tm = _round_up(max(LANE, tm // 2), 16)
        K_pad = _round_up(K_pad, tk)
        N_pad = _round_up(N_pad, tn)
        M_pad = _round_up(M_pad, tm)

    # ---- pad + cast operands: bf16 A/B, f32 scale/shift/epilogue ----
    a_p = jnp.pad(a.astype(jnp.bfloat16), ((0, M_pad - M), (0, K_pad - K)))
    b_p = jnp.pad(b.astype(jnp.bfloat16), ((0, K_pad - K), (0, N_pad - N)))
    scale_p = jnp.pad(scale.astype(jnp.float32).reshape(1, N),
                      ((0, 0), (0, N_pad - N)))
    shift_p = jnp.pad(shift.astype(jnp.float32).reshape(1, N),
                      ((0, 0), (0, N_pad - N)))

    if single_k:
        grid = (M_pad // tm, N_pad // tn)
        out = pl.pallas_call(
            functools.partial(_mm_singlek_kernel, act=act),
            out_shape=jax.ShapeDtypeStruct((M_pad, N_pad), out_dtype),
            grid_spec=pltpu.PrefetchScalarGridSpec(
                num_scalar_prefetch=0,
                grid=grid,
                in_specs=[
                    pl.BlockSpec((tm, tk), lambda i, j: (i, 0)),
                    pl.BlockSpec((tk, tn), lambda i, j: (0, j)),   # weight resident
                    pl.BlockSpec((1, tn), lambda i, j: (0, j)),
                    pl.BlockSpec((1, tn), lambda i, j: (0, j)),
                ],
                out_specs=pl.BlockSpec((tm, tn), lambda i, j: (i, j)),
            ),
            compiler_params=pltpu.CompilerParams(
                dimension_semantics=("parallel", "parallel"),
                vmem_limit_bytes=vmem_limit),
        )(a_p, b_p, scale_p, shift_p)
    else:
        grid = (M_pad // tm, N_pad // tn, K_pad // tk)
        out = pl.pallas_call(
            functools.partial(_mm_multik_kernel, act=act),
            out_shape=jax.ShapeDtypeStruct((M_pad, N_pad), out_dtype),
            grid_spec=pltpu.PrefetchScalarGridSpec(
                num_scalar_prefetch=0,
                grid=grid,
                in_specs=[
                    pl.BlockSpec((tm, tk), lambda i, j, k: (i, k),
                                 pipeline_mode=pl.Buffered(3)),
                    pl.BlockSpec((tk, tn), lambda i, j, k: (k, j),
                                 pipeline_mode=pl.Buffered(3)),
                    pl.BlockSpec((1, tn), lambda i, j, k: (0, j)),
                    pl.BlockSpec((1, tn), lambda i, j, k: (0, j)),
                ],
                out_specs=pl.BlockSpec((tm, tn), lambda i, j, k: (i, j)),
                scratch_shapes=[pltpu.VMEM((tm, tn), jnp.float32)],
            ),
            compiler_params=pltpu.CompilerParams(
                dimension_semantics=("parallel", "parallel", "arbitrary"),
                vmem_limit_bytes=vmem_limit),
        )(a_p, b_p, scale_p, shift_p)

    return out[:M, :N]


# ---------------------------------------------------------------------------
# BatchNorm folding / small helpers
# ---------------------------------------------------------------------------
def _bn_default(c):
    # eval-mode BatchNorm3d with default running stats (mean=0, var=1)
    return (jnp.ones((c,), jnp.float32), jnp.zeros((c,), jnp.float32),
            jnp.zeros((c,), jnp.float32), jnp.ones((c,), jnp.float32))


def _fold_bn(bias, bn):
    if bn is None:
        return jnp.ones_like(bias), bias
    gamma, beta, mean, var = bn
    scale = gamma * jax.lax.rsqrt(var + BN_EPS)
    shift = (bias - mean) * scale + beta
    return scale, shift


def linear(x, w, b, act="none", out_dtype=jnp.float32):
    return matmul_bn_act(x, w, jnp.ones_like(b), b, act, out_dtype=out_dtype)


def reparameterize(mu, logvar, eps):
    # Plain JAX: mu/logvar are (B, latent); a pallas_call launch here is overhead.
    return mu + jnp.exp(0.5 * logvar) * eps


# ---------------------------------------------------------------------------
# Conv3d (k=3, stride=2, pad=1) + BN + act
# ---------------------------------------------------------------------------
def conv3x3_bn_act(x, w, bias, bn, act, stride=2, out_dtype=jnp.bfloat16):
    """x: NDHWC, w: (3,3,3,Cin,Cout)."""
    B, D, H, W, Cin = x.shape
    Cout = w.shape[4]
    # Cast BEFORE im2col so the 27x patch matrix is built/written in bf16.
    xp = jnp.pad(x.astype(jnp.bfloat16),
                 ((0, 0), (1, 1), (1, 1), (1, 1), (0, 0)))
    Do = (D - 1) // stride + 1
    Ho = (H - 1) // stride + 1
    Wo = (W - 1) // stride + 1
    cols = []
    for kd in range(3):
        for kh in range(3):
            for kw in range(3):
                cols.append(xp[:, kd:kd + stride * (Do - 1) + 1:stride,
                               kh:kh + stride * (Ho - 1) + 1:stride,
                               kw:kw + stride * (Wo - 1) + 1:stride, :])
    a = jnp.concatenate(cols, axis=-1).reshape(B * Do * Ho * Wo, 27 * Cin)
    w2d = w.reshape(27 * Cin, Cout)          # K index = tap*Cin + ci (matches concat)
    scale, shift = _fold_bn(bias, bn)
    y = matmul_bn_act(a, w2d, scale, shift, act, out_dtype=out_dtype)
    return y.reshape(B, Do, Ho, Wo, Cout)


# ---------------------------------------------------------------------------
# ConvTranspose3d (k=3, stride=2, pad=1, output_pad=1) + BN + act
#
# Output t = 2u + p (p in {0,1} per dim):
#   p=0 -> y[2u]   = x[u]   * w[r=1]
#   p=1 -> y[2u+1] = x[u]*w[r=2] + x[u+1]*w[r=0]   (x padded with 0 at the end)
# All 8 phases are fused into ONE matmul:
#   A : (B*D*H*W, 8*Cin)   -- the 8 input offsets (od,oh,ow) in {0,1}^3
#   W : (8*Cin, 8*Cout)    -- per (offset, phase) block = tap weight or zeros
# followed by a single phase->spatial rearrange.
# ---------------------------------------------------------------------------
def convT3x3_bn_act(x, wt, bias, bn, act, out_dtype=jnp.bfloat16):
    """x: NDHWC, wt: PyTorch ConvTranspose3d layout (Cin, Cout, 3, 3, 3)."""
    B, D, H, W, Cin = x.shape
    Cout = wt.shape[1]
    scale, shift = _fold_bn(bias, bn)

    xp = jnp.pad(x.astype(jnp.bfloat16),
                 ((0, 0), (0, 1), (0, 1), (0, 1), (0, 0)))   # high-side halo

    # Patch matrix: offsets ordered (od, oh, ow), K index = offset*Cin + ci.
    cols = []
    for od in (0, 1):
        for oh in (0, 1):
            for ow in (0, 1):
                cols.append(xp[:, od:od + D, oh:oh + H, ow:ow + W, :])
    a = jnp.concatenate(cols, axis=-1).reshape(B * D * H * W, 8 * Cin)

    def tap(phase, off):
        # per-dim transposed-kernel tap index for (output phase, input offset)
        if phase == 0:
            return 1 if off == 0 else None          # offset 1 unused in phase 0
        return 2 if off == 0 else 0

    zeros = jnp.zeros((Cin, Cout), wt.dtype)
    wblocks = []
    for od in (0, 1):
        for oh in (0, 1):
            for ow in (0, 1):
                row = []
                for pd in (0, 1):
                    for ph in (0, 1):
                        for pw in (0, 1):
                            rd, rh, rw = tap(pd, od), tap(ph, oh), tap(pw, ow)
                            if rd is None or rh is None or rw is None:
                                row.append(zeros)
                            else:
                                row.append(wt[:, :, rd, rh, rw])   # (Cin, Cout)
                wblocks.append(jnp.concatenate(row, axis=1))       # (Cin, 8*Cout)
    w2d = jnp.concatenate(wblocks, axis=0)                         # (8*Cin, 8*Cout)

    scale8 = jnp.tile(scale, 8)
    shift8 = jnp.tile(shift, 8)
    y = matmul_bn_act(a, w2d, scale8, shift8, act, out_dtype=out_dtype)

    y = y.reshape(B, D, H, W, 2, 2, 2, Cout)          # (..., pd, ph, pw, C)
    y = jnp.transpose(y, (0, 1, 4, 2, 5, 3, 6, 7))    # (B, D, pd, H, ph, W, pw, C)
    return y.reshape(B, 2 * D, 2 * H, 2 * W, Cout)


# ---------------------------------------------------------------------------
# Parameters (deterministic synthetic init)
# ---------------------------------------------------------------------------
def init_params(key, in_channels, latent_dim, hidden_dims):
    keys = iter(jax.random.split(key, 64))

    def nrm(shape, fan_in, mul=1.0):
        return jax.random.normal(next(keys), shape, jnp.float32) * (mul / jnp.sqrt(fan_in))

    params = {}
    enc = []
    c = in_channels
    for h in hidden_dims:
        enc.append((nrm((3, 3, 3, c, h), 27 * c),
                    nrm((h,), 27 * c, 0.1),
                    _bn_default(h)))
        c = h
    params["enc"] = enc

    h_last = hidden_dims[-1]
    flat = h_last * 4 * 5 * 4
    params["fc"] = (nrm((flat, h_last), flat), nrm((h_last,), flat, 0.1))
    params["fc_mu"] = (nrm((h_last, latent_dim), h_last), nrm((latent_dim,), h_last, 0.1))
    params["fc_var"] = (nrm((h_last, latent_dim), h_last), nrm((latent_dim,), h_last, 0.1))
    params["dec_in"] = (nrm((latent_dim, flat), latent_dim), nrm((flat,), latent_dim, 0.1))

    rev = hidden_dims[::-1]
    dec = []
    for i in range(len(rev) - 1):
        ci, co = rev[i], rev[i + 1]
        dec.append((nrm((ci, co, 3, 3, 3), 27 * ci),
                    nrm((co,), 27 * ci, 0.1),
                    _bn_default(co)))
    params["dec"] = dec

    c_fin = rev[-1]
    params["final_ct"] = (nrm((c_fin, c_fin, 3, 3, 3), 27 * c_fin),
                          nrm((c_fin,), 27 * c_fin, 0.1),
                          _bn_default(c_fin))
    params["final_conv"] = (nrm((c_fin, 64), c_fin), nrm((64,), c_fin, 0.1))
    return params


# ---------------------------------------------------------------------------
# Forward pass (matches VanillaVAE.forward: [recon, input, mu, log_var])
# ---------------------------------------------------------------------------
def vae_forward(params, x_ncdhw, eps):
    x = jnp.transpose(x_ncdhw, (0, 2, 3, 4, 1))        # NCDHW -> NDHWC

    # ---- encoder (intermediates in bf16) ----
    h = x
    for (w, b, bn) in params["enc"]:
        h = conv3x3_bn_act(h, w, b, bn, "leaky_relu", stride=2,
                           out_dtype=jnp.bfloat16)
    B = h.shape[0]
    # torch.flatten(NCDHW, start_dim=1) is channel-major
    h_flat = jnp.transpose(h, (0, 4, 1, 2, 3)).reshape(B, -1)
    h_fc = linear(h_flat, *params["fc"], out_dtype=jnp.bfloat16)

    # ---- fc_mu + fc_var fused into one matmul (N = 2*latent) ----
    w_mu, b_mu = params["fc_mu"]
    w_var, b_var = params["fc_var"]
    latent_dim = w_mu.shape[1]
    w_mv = jnp.concatenate([w_mu, w_var], axis=1)
    b_mv = jnp.concatenate([b_mu, b_var], axis=0)
    mv = linear(h_fc, w_mv, b_mv, "none", out_dtype=jnp.float32)
    mu, log_var = mv[:, :latent_dim], mv[:, latent_dim:]

    # ---- reparameterize ----
    z = reparameterize(mu, log_var, eps)

    # ---- decoder ----
    d = linear(z, *params["dec_in"], out_dtype=jnp.bfloat16)
    c_last = params["enc"][-1][0].shape[-1]
    d = d.reshape(B, c_last, 4, 5, 4)                  # .view(-1, C_last, 4, 5, 4)
    d = jnp.transpose(d, (0, 2, 3, 4, 1))              # -> NDHWC
    for (wt, b, bn) in params["dec"]:
        d = convT3x3_bn_act(d, wt, b, bn, "leaky_relu", out_dtype=jnp.bfloat16)

    # ---- final layer: ConvT + BN + LeakyReLU + 1x1 Conv (no sigmoid branch) ----
    wt, b, bn = params["final_ct"]
    d = convT3x3_bn_act(d, wt, b, bn, "leaky_relu", out_dtype=jnp.bfloat16)
    w1, b1 = params["final_conv"]
    Bn, Dn, Hn, Wn, Cn = d.shape
    y = linear(d.reshape(Bn * Dn * Hn * Wn, Cn), w1, b1, "none",
               out_dtype=jnp.float32)
    y = y.reshape(Bn, Dn, Hn, Wn, 64)
    recon = jnp.transpose(y, (0, 4, 1, 2, 3))          # back to NCDHW
    return recon, x_ncdhw, mu, log_var


# ---------------------------------------------------------------------------
if __name__ == "__main__":
    # Small config consistent with the module: the encoder's stride-2 convs must
    # land on a (4, 5, 4) bottleneck for the fc / view(..., 4, 5, 4) to match.
    # With 2 encoder stages that means input spatial (16, 20, 16).
    B, C_in = 2, 4
    D, H, W = 16, 20, 16
    latent_dim = 16
    hidden_dims = [32, 64]

    key = jax.random.PRNGKey(0)
    kx, kp, ke = jax.random.split(key, 3)
    x = jax.random.normal(kx, (B, C_in, D, H, W), jnp.float32)
    eps = jax.random.normal(ke, (B, latent_dim), jnp.float32)
    params = init_params(kp, C_in, latent_dim, hidden_dims)

    fwd = jax.jit(vae_forward)
    recon, x_out, mu, log_var = fwd(params, x, eps)
    jax.block_until_ready((recon, x_out, mu, log_var))

    assert recon.shape == (B, 64, D, H, W), recon.shape
    assert x_out.shape == (B, C_in, D, H, W)
    assert mu.shape == (B, latent_dim) and log_var.shape == (B, latent_dim)
    assert bool(jnp.all(jnp.isfinite(recon)))
    assert bool(jnp.all(jnp.isfinite(mu))) and bool(jnp.all(jnp.isfinite(log_var)))

    print("KERNEL_OK")
</pallas_src>

<mosaic_0001>
module attributes {stable_mosaic.version = 11 : i64} {
  func.func @_mm_singlek_kernel(%arg0: i32, %arg1: i32, %arg2: memref<640x128xbf16, #tpu.memory_space<vmem>>, %arg3: memref<128x128xbf16, #tpu.memory_space<vmem>>, %arg4: memref<1x128xf32, #tpu.memory_space<vmem>>, %arg5: memref<1x128xf32, #tpu.memory_space<vmem>>, %arg6: memref<640x128xbf16, #tpu.memory_space<vmem>>) attributes {dimension_semantics = [#tpu.dimension_semantics<parallel>, #tpu.dimension_semantics<parallel>], iteration_bounds = array<i64: 2, 1>, scalar_prefetch = 0 : i64, scratch_operands = 0 : i64, tpu.core_type = #tpu.core_type<tc>, window_params = [{transform_indices = @transform_0, window_bounds = array<i64: 640, 128>}, {transform_indices = @transform_1, window_bounds = array<i64: 128, 128>}, {transform_indices = @transform_2, window_bounds = array<i64: 1, 128>}, {transform_indices = @transform_3, window_bounds = array<i64: 1, 128>}, {transform_indices = @transform_4, window_bounds = array<i64: 640, 128>}]} {
    %c0 = arith.constant 0 : index
    %c0_0 = arith.constant 0 : index
    %0 = vector.load %arg2[%c0, %c0_0] : memref<640x128xbf16, #tpu.memory_space<vmem>>, vector<640x128xbf16>
    %c0_1 = arith.constant 0 : index
    %c0_2 = arith.constant 0 : index
    %1 = vector.load %arg3[%c0_1, %c0_2] : memref<128x128xbf16, #tpu.memory_space<vmem>>, vector<128x128xbf16>
    %cst = arith.constant dense<0.000000e+00> : vector<640x128xf32>
    %2 = tpu.matmul %0, %1, %cst {dimension_numbers = #tpu.dot_dimension_numbers<[1], [0], [0], [1], [0, 0, 1, 1], [], []>} : vector<640x128xbf16>, vector<128x128xbf16>, vector<640x128xf32> -> vector<640x128xf32>
    %c0_3 = arith.constant 0 : index
    %c0_4 = arith.constant 0 : index
    %3 = vector.load %arg4[%c0_3, %c0_4] : memref<1x128xf32, #tpu.memory_space<vmem>>, vector<1x128xf32>
    %c0_5 = arith.constant 0 : index
    %c0_6 = arith.constant 0 : index
    %4 = vector.load %arg5[%c0_5, %c0_6] : memref<1x128xf32, #tpu.memory_space<vmem>>, vector<1x128xf32>
    %5 = vector.broadcast %3 : vector<1x128xf32> to vector<640x128xf32>
    %6 = arith.mulf %2, %5 : vector<640x128xf32>
    %7 = vector.broadcast %4 : vector<1x128xf32> to vector<640x128xf32>
    %8 = arith.addf %6, %7 : vector<640x128xf32>
    %cst_7 = arith.constant 0.000000e+00 : f32
    %9 = vector.broadcast %cst_7 : f32 to vector<640x128xf32>
    %10 = arith.cmpf oge, %8, %9 : vector<640x128xf32>
    %cst_8 = arith.constant 0.00999999977 : f32
    %11 = vector.broadcast %cst_8 : f32 to vector<640x128xf32>
    %12 = arith.mulf %11, %8 : vector<640x128xf32>
    %13 = arith.select %10, %8, %12 : vector<640x128xi1>, vector<640x128xf32>
    %14 = arith.truncf %13 : vector<640x128xf32> to vector<640x128xbf16>
    %c0_9 = arith.constant 0 : index
    %c0_10 = arith.constant 0 : index
    %15 = vector.load %arg6[%c0_9, %c0_10] : memref<640x128xbf16, #tpu.memory_space<vmem>>, vector<640x128xbf16>
    tpu.vector_store %arg6[%c0_9, %c0_10], %14 {strides = array<i32>} : memref<640x128xbf16, #tpu.memory_space<vmem>>, vector<640x128xbf16>,
    return
  }
  func.func @transform_0(%arg0: i32, %arg1: i32) -> (i32, i32) {
    %c0_i32 = arith.constant 0 : i32
    %c0_i32_0 = arith.constant 0 : i32
    return %arg0, %c0_i32 : i32, i32
  }
  func.func @transform_1(%arg0: i32, %arg1: i32) -> (i32, i32) {
    %c0_i32 = arith.constant 0 : i32
    %c0_i32_0 = arith.constant 0 : i32
    return %c0_i32, %arg1 : i32, i32
  }
  func.func @transform_2(%arg0: i32, %arg1: i32) -> (i32, i32) {
    %c0_i32 = arith.constant 0 : i32
    %c0_i32_0 = arith.constant 0 : i32
    return %c0_i32, %arg1 : i32, i32
  }
  func.func @transform_3(%arg0: i32, %arg1: i32) -> (i32, i32) {
    %c0_i32 = arith.constant 0 : i32
    %c0_i32_0 = arith.constant 0 : i32
    return %c0_i32, %arg1 : i32, i32
  }
  func.func @transform_4(%arg0: i32, %arg1: i32) -> (i32, i32) {
    %c0_i32 = arith.constant 0 : i32
    return %arg0, %arg1 : i32, i32
  }
}

module attributes {stable_mosaic.version = 11 : i64} {
  func.func @_mm_singlek_kernel(%arg0: i32, %arg1: i32, %arg2: memref<80x896xbf16, #tpu.memory_space<vmem>>, %arg3: memref<896x128xbf16, #tpu.memory_space<vmem>>, %arg4: memref<1x128xf32, #tpu.memory_space<vmem>>, %arg5: memref<1x128xf32, #tpu.memory_space<vmem>>, %arg6: memref<80x128xbf16, #tpu.memory_space<vmem>>) attributes {dimension_semantics = [#tpu.dimension_semantics<parallel>, #tpu.dimension_semantics<parallel>], iteration_bounds = array<i64: 2, 1>, scalar_prefetch = 0 : i64, scratch_operands = 0 : i64, tpu.core_type = #tpu.core_type<tc>, window_params = [{transform_indices = @transform_0, window_bounds = array<i64: 80, 896>}, {transform_indices = @transform_1, window_bounds = array<i64: 896, 128>}, {transform_indices = @transform_2, window_bounds = array<i64: 1, 128>}, {transform_indices = @transform_3, window_bounds = array<i64: 1, 128>}, {transform_indices = @transform_4, window_bounds = array<i64: 80, 128>}]} {
    %c0 = arith.constant 0 : index
    %c0_0 = arith.constant 0 : index
    %0 = vector.load %arg2[%c0, %c0_0] : memref<80x896xbf16, #tpu.memory_space<vmem>>, vector<80x896xbf16>
    %c0_1 = arith.constant 0 : index
    %c0_2 = arith.constant 0 : index
    %1 = vector.load %arg3[%c0_1, %c0_2] : memref<896x128xbf16, #tpu.memory_space<vmem>>, vector<896x128xbf16>
    %cst = arith.constant dense<0.000000e+00> : vector<80x128xf32>
    %2 = tpu.matmul %0, %1, %cst {dimension_numbers = #tpu.dot_dimension_numbers<[1], [0], [0], [1], [0, 0, 1, 1], [], []>} : vector<80x896xbf16>, vector<896x128xbf16>, vector<80x128xf32> -> vector<80x128xf32>
    %c0_3 = arith.constant 0 : index
    %c0_4 = arith.constant 0 : index
    %3 = vector.load %arg4[%c0_3, %c0_4] : memref<1x128xf32, #tpu.memory_space<vmem>>, vector<1x128xf32>
    %c0_5 = arith.constant 0 : index
    %c0_6 = arith.constant 0 : index
    %4 = vector.load %arg5[%c0_5, %c0_6] : memref<1x128xf32, #tpu.memory_space<vmem>>, vector<1x128xf32>
    %5 = vector.broadcast %3 : vector<1x128xf32> to vector<80x128xf32>
    %6 = arith.mulf %2, %5 : vector<80x128xf32>
    %7 = vector.broadcast %4 : vector<1x128xf32> to vector<80x128xf32>
    %8 = arith.addf %6, %7 : vector<80x128xf32>
    %cst_7 = arith.constant 0.000000e+00 : f32
    %9 = vector.broadcast %cst_7 : f32 to vector<80x128xf32>
    %10 = arith.cmpf oge, %8, %9 : vector<80x128xf32>
    %cst_8 = arith.constant 0.00999999977 : f32
    %11 = vector.broadcast %cst_8 : f32 to vector<80x128xf32>
    %12 = arith.mulf %11, %8 : vector<80x128xf32>
    %13 = arith.select %10, %8, %12 : vector<80x128xi1>, vector<80x128xf32>
    %14 = arith.truncf %13 : vector<80x128xf32> to vector<80x128xbf16>
    %c0_9 = arith.constant 0 : index
    %c0_10 = arith.constant 0 : index
    %15 = vector.load %arg6[%c0_9, %c0_10] : memref<80x128xbf16, #tpu.memory_space<vmem>>, vector<80x128xbf16>
    tpu.vector_store %arg6[%c0_9, %c0_10], %14 {strides = array<i32>} : memref<80x128xbf16, #tpu.memory_space<vmem>>, vector<80x128xbf16>,
    return
  }
  func.func @transform_0(%arg0: i32, %arg1: i32) -> (i32, i32) {
    %c0_i32 = arith.constant 0 : i32
    %c0_i32_0 = arith.constant 0 : i32
    return %arg0, %c0_i32 : i32, i32
  }
  func.func @transform_1(%arg0: i32, %arg1: i32) -> (i32, i32) {
    %c0_i32 = arith.constant 0 : i32
    %c0_i32_0 = arith.constant 0 : i32
    return %c0_i32, %arg1 : i32, i32
  }
  func.func @transform_2(%arg0: i32, %arg1: i32) -> (i32, i32) {
    %c0_i32 = arith.constant 0 : i32
    %c0_i32_0 = arith.constant 0 : i32
    return %c0_i32, %arg1 : i32, i32
  }
  func.func @transform_3(%arg0: i32, %arg1: i32) -> (i32, i32) {
    %c0_i32 = arith.constant 0 : i32
    %c0_i32_0 = arith.constant 0 : i32
    return %c0_i32, %arg1 : i32, i32
  }
  func.func @transform_4(%arg0: i32, %arg1: i32) -> (i32, i32) {
    %c0_i32 = arith.constant 0 : i32
    return %arg0, %arg1 : i32, i32
  }
}

module attributes {stable_mosaic.version = 11 : i64} {
  func.func @_mm_singlek_kernel(%arg0: i32, %arg1: i32, %arg2: memref<16x5120xbf16, #tpu.memory_space<vmem>>, %arg3: memref<5120x128xbf16, #tpu.memory_space<vmem>>, %arg4: memref<1x128xf32, #tpu.memory_space<vmem>>, %arg5: memref<1x128xf32, #tpu.memory_space<vmem>>, %arg6: memref<16x128xbf16, #tpu.memory_space<vmem>>) attributes {dimension_semantics = [#tpu.dimension_semantics<parallel>, #tpu.dimension_semantics<parallel>], iteration_bounds = array<i64: 1, 1>, scalar_prefetch = 0 : i64, scratch_operands = 0 : i64, tpu.core_type = #tpu.core_type<tc>, window_params = [{transform_indices = @transform_0, window_bounds = array<i64: 16, 5120>}, {transform_indices = @transform_1, window_bounds = array<i64: 5120, 128>}, {transform_indices = @transform_2, window_bounds = array<i64: 1, 128>}, {transform_indices = @transform_3, window_bounds = array<i64: 1, 128>}, {transform_indices = @transform_4, window_bounds = array<i64: 16, 128>}]} {
    %c0 = arith.constant 0 : index
    %c0_0 = arith.constant 0 : index
    %0 = vector.load %arg2[%c0, %c0_0] : memref<16x5120xbf16, #tpu.memory_space<vmem>>, vector<16x5120xbf16>
    %c0_1 = arith.constant 0 : index
    %c0_2 = arith.constant 0 : index
    %1 = vector.load %arg3[%c0_1, %c0_2] : memref<5120x128xbf16, #tpu.memory_space<vmem>>, vector<5120x128xbf16>
    %cst = arith.constant dense<0.000000e+00> : vector<16x128xf32>
    %2 = tpu.matmul %0, %1, %cst {dimension_numbers = #tpu.dot_dimension_numbers<[1], [0], [0], [1], [0, 0, 1, 1], [], []>} : vector<16x5120xbf16>, vector<5120x128xbf16>, vector<16x128xf32> -> vector<16x128xf32>
    %c0_3 = arith.constant 0 : index
    %c0_4 = arith.constant 0 : index
    %3 = vector.load %arg4[%c0_3, %c0_4] : memref<1x128xf32, #tpu.memory_space<vmem>>, vector<1x128xf32>
    %c0_5 = arith.constant 0 : index
    %c0_6 = arith.constant 0 : index
    %4 = vector.load %arg5[%c0_5, %c0_6] : memref<1x128xf32, #tpu.memory_space<vmem>>, vector<1x128xf32>
    %5 = vector.broadcast %3 : vector<1x128xf32> to vector<16x128xf32>
    %6 = arith.mulf %2, %5 : vector<16x128xf32>
    %7 = vector.broadcast %4 : vector<1x128xf32> to vector<16x128xf32>
    %8 = arith.addf %6, %7 : vector<16x128xf32>
    %9 = arith.truncf %8 : vector<16x128xf32> to vector<16x128xbf16>
    %c0_7 = arith.constant 0 : index
    %c0_8 = arith.constant 0 : index
    %10 = vector.load %arg6[%c0_7, %c0_8] : memref<16x128xbf16, #tpu.memory_space<vmem>>, vector<16x128xbf16>
    tpu.vector_store %arg6[%c0_7, %c0_8], %9 {strides = array<i32>} : memref<16x128xbf16, #tpu.memory_space<vmem>>, vector<16x128xbf16>,
    return
  }
  func.func @transform_0(%arg0: i32, %arg1: i32) -> (i32, i32) {
    %c0_i32 = arith.constant 0 : i32
    %c0_i32_0 = arith.constant 0 : i32
    return %arg0, %c0_i32 : i32, i32
  }
  func.func @transform_1(%arg0: i32, %arg1: i32) -> (i32, i32) {
    %c0_i32 = arith.constant 0 : i32
    %c0_i32_0 = arith.constant 0 : i32
    return %c0_i32, %arg1 : i32, i32
  }
  func.func @transform_2(%arg0: i32, %arg1: i32) -> (i32, i32) {
    %c0_i32 = arith.constant 0 : i32
    %c0_i32_0 = arith.constant 0 : i32
    return %c0_i32, %arg1 : i32, i32
  }
  func.func @transform_3(%arg0: i32, %arg1: i32) -> (i32, i32) {
    %c0_i32 = arith.constant 0 : i32
    %c0_i32_0 = arith.constant 0 : i32
    return %c0_i32, %arg1 : i32, i32
  }
  func.func @transform_4(%arg0: i32, %arg1: i32) -> (i32, i32) {
    %c0_i32 = arith.constant 0 : i32
    return %arg0, %arg1 : i32, i32
  }
}

module attributes {stable_mosaic.version = 11 : i64} {
  func.func @_mm_singlek_kernel(%arg0: i32, %arg1: i32, %arg2: memref<16x128xbf16, #tpu.memory_space<vmem>>, %arg3: memref<128x128xbf16, #tpu.memory_space<vmem>>, %arg4: memref<1x128xf32, #tpu.memory_space<vmem>>, %arg5: memref<1x128xf32, #tpu.memory_space<vmem>>, %arg6: memref<16x128xf32, #tpu.memory_space<vmem>>) attributes {dimension_semantics = [#tpu.dimension_semantics<parallel>, #tpu.dimension_semantics<parallel>], iteration_bounds = array<i64: 1, 1>, scalar_prefetch = 0 : i64, scratch_operands = 0 : i64, tpu.core_type = #tpu.core_type<tc>, window_params = [{transform_indices = @transform_0, window_bounds = array<i64: 16, 128>}, {transform_indices = @transform_1, window_bounds = array<i64: 128, 128>}, {transform_indices = @transform_2, window_bounds = array<i64: 1, 128>}, {transform_indices = @transform_3, window_bounds = array<i64: 1, 128>}, {transform_indices = @transform_4, window_bounds = array<i64: 16, 128>}]} {
    %c0 = arith.constant 0 : index
    %c0_0 = arith.constant 0 : index
    %0 = vector.load %arg2[%c0, %c0_0] : memref<16x128xbf16, #tpu.memory_space<vmem>>, vector<16x128xbf16>
    %c0_1 = arith.constant 0 : index
    %c0_2 = arith.constant 0 : index
    %1 = vector.load %arg3[%c0_1, %c0_2] : memref<128x128xbf16, #tpu.memory_space<vmem>>, vector<128x128xbf16>
    %cst = arith.constant dense<0.000000e+00> : vector<16x128xf32>
    %2 = tpu.matmul %0, %1, %cst {dimension_numbers = #tpu.dot_dimension_numbers<[1], [0], [0], [1], [0, 0, 1, 1], [], []>} : vector<16x128xbf16>, vector<128x128xbf16>, vector<16x128xf32> -> vector<16x128xf32>
    %c0_3 = arith.constant 0 : index
    %c0_4 = arith.constant 0 : index
    %3 = vector.load %arg4[%c0_3, %c0_4] : memref<1x128xf32, #tpu.memory_space<vmem>>, vector<1x128xf32>
    %c0_5 = arith.constant 0 : index
    %c0_6 = arith.constant 0 : index
    %4 = vector.load %arg5[%c0_5, %c0_6] : memref<1x128xf32, #tpu.memory_space<vmem>>, vector<1x128xf32>
    %5 = vector.broadcast %3 : vector<1x128xf32> to vector<16x128xf32>
    %6 = arith.mulf %2, %5 : vector<16x128xf32>
    %7 = vector.broadcast %4 : vector<1x128xf32> to vector<16x128xf32>
    %8 = arith.addf %6, %7 : vector<16x128xf32>
    %c0_7 = arith.constant 0 : index
    %c0_8 = arith.constant 0 : index
    %9 = vector.load %arg6[%c0_7, %c0_8] : memref<16x128xf32, #tpu.memory_space<vmem>>, vector<16x128xf32>
    tpu.vector_store %arg6[%c0_7, %c0_8], %8 {strides = array<i32>} : memref<16x128xf32, #tpu.memory_space<vmem>>, vector<16x128xf32>,
    return
  }
  func.func @transform_0(%arg0: i32, %arg1: i32) -> (i32, i32) {
    %c0_i32 = arith.constant 0 : i32
    %c0_i32_0 = arith.constant 0 : i32
    return %arg0, %c0_i32 : i32, i32
  }
  func.func @transform_1(%arg0: i32, %arg1: i32) -> (i32, i32) {
    %c0_i32 = arith.constant 0 : i32
    %c0_i32_0 = arith.constant 0 : i32
    return %c0_i32, %arg1 : i32, i32
  }
  func.func @transform_2(%arg0: i32, %arg1: i32) -> (i32, i32) {
    %c0_i32 = arith.constant 0 : i32
    %c0_i32_0 = arith.constant 0 : i32
    return %c0_i32, %arg1 : i32, i32
  }
  func.func @transform_3(%arg0: i32, %arg1: i32) -> (i32, i32) {
    %c0_i32 = arith.constant 0 : i32
    %c0_i32_0 = arith.constant 0 : i32
    return %c0_i32, %arg1 : i32, i32
  }
  func.func @transform_4(%arg0: i32, %arg1: i32) -> (i32, i32) {
    %c0_i32 = arith.constant 0 : i32
    return %arg0, %arg1 : i32, i32
  }
}

module attributes {stable_mosaic.version = 11 : i64} {
  func.func @_mm_singlek_kernel(%arg0: i32, %arg1: i32, %arg2: memref<16x128xbf16, #tpu.memory_space<vmem>>, %arg3: memref<128x1024xbf16, #tpu.memory_space<vmem>>, %arg4: memref<1x1024xf32, #tpu.memory_space<vmem>>, %arg5: memref<1x1024xf32, #tpu.memory_space<vmem>>, %arg6: memref<16x1024xbf16, #tpu.memory_space<vmem>>) attributes {dimension_semantics = [#tpu.dimension_semantics<parallel>, #tpu.dimension_semantics<parallel>], iteration_bounds = array<i64: 1, 5>, scalar_prefetch = 0 : i64, scratch_operands = 0 : i64, tpu.core_type = #tpu.core_type<tc>, window_params = [{transform_indices = @transform_0, window_bounds = array<i64: 16, 128>}, {transform_indices = @transform_1, window_bounds = array<i64: 128, 1024>}, {transform_indices = @transform_2, window_bounds = array<i64: 1, 1024>}, {transform_indices = @transform_3, window_bounds = array<i64: 1, 1024>}, {transform_indices = @transform_4, window_bounds = array<i64: 16, 1024>}]} {
    %c0 = arith.constant 0 : index
    %c0_0 = arith.constant 0 : index
    %0 = vector.load %arg2[%c0, %c0_0] : memref<16x128xbf16, #tpu.memory_space<vmem>>, vector<16x128xbf16>
    %c0_1 = arith.constant 0 : index
    %c0_2 = arith.constant 0 : index
    %1 = vector.load %arg3[%c0_1, %c0_2] : memref<128x1024xbf16, #tpu.memory_space<vmem>>, vector<128x1024xbf16>
    %cst = arith.constant dense<0.000000e+00> : vector<16x1024xf32>
    %2 = tpu.matmul %0, %1, %cst {dimension_numbers = #tpu.dot_dimension_numbers<[1], [0], [0], [1], [0, 0, 1, 1], [], []>} : vector<16x128xbf16>, vector<128x1024xbf16>, vector<16x1024xf32> -> vector<16x1024xf32>
    %c0_3 = arith.constant 0 : index
    %c0_4 = arith.constant 0 : index
    %3 = vector.load %arg4[%c0_3, %c0_4] : memref<1x1024xf32, #tpu.memory_space<vmem>>, vector<1x1024xf32>
    %c0_5 = arith.constant 0 : index
    %c0_6 = arith.constant 0 : index
    %4 = vector.load %arg5[%c0_5, %c0_6] : memref<1x1024xf32, #tpu.memory_space<vmem>>, vector<1x1024xf32>
    %5 = vector.broadcast %3 : vector<1x1024xf32> to vector<16x1024xf32>
    %6 = arith.mulf %2, %5 : vector<16x1024xf32>
    %7 = vector.broadcast %4 : vector<1x1024xf32> to vector<16x1024xf32>
    %8 = arith.addf %6, %7 : vector<16x1024xf32>
    %9 = arith.truncf %8 : vector<16x1024xf32> to vector<16x1024xbf16>
    %c0_7 = arith.constant 0 : index
    %c0_8 = arith.constant 0 : index
    %10 = vector.load %arg6[%c0_7, %c0_8] : memref<16x1024xbf16, #tpu.memory_space<vmem>>, vector<16x1024xbf16>
    tpu.vector_store %arg6[%c0_7, %c0_8], %9 {strides = array<i32>} : memref<16x1024xbf16, #tpu.memory_space<vmem>>, vector<16x1024xbf16>,
    return
  }
  func.func @transform_0(%arg0: i32, %arg1: i32) -> (i32, i32) {
    %c0_i32 = arith.constant 0 : i32
    %c0_i32_0 = arith.constant 0 : i32
    return %arg0, %c0_i32 : i32, i32
  }
  func.func @transform_1(%arg0: i32, %arg1: i32) -> (i32, i32) {
    %c0_i32 = arith.constant 0 : i32
    %c0_i32_0 = arith.constant 0 : i32
    return %c0_i32, %arg1 : i32, i32
  }
  func.func @transform_2(%arg0: i32, %arg1: i32) -> (i32, i32) {
    %c0_i32 = arith.constant 0 : i32
    %c0_i32_0 = arith.constant 0 : i32
    return %c0_i32, %arg1 : i32, i32
  }
  func.func @transform_3(%arg0: i32, %arg1: i32) -> (i32, i32) {
    %c0_i32 = arith.constant 0 : i32
    %c0_i32_0 = arith.constant 0 : i32
    return %c0_i32, %arg1 : i32, i32
  }
  func.func @transform_4(%arg0: i32, %arg1: i32) -> (i32, i32) {
    %c0_i32 = arith.constant 0 : i32
    return %arg0, %arg1 : i32, i32
  }
}

module attributes {stable_mosaic.version = 11 : i64} {
  func.func @_mm_singlek_kernel(%arg0: i32, %arg1: i32, %arg2: memref<80x512xbf16, #tpu.memory_space<vmem>>, %arg3: memref<512x256xbf16, #tpu.memory_space<vmem>>, %arg4: memref<1x256xf32, #tpu.memory_space<vmem>>, %arg5: memref<1x256xf32, #tpu.memory_space<vmem>>, %arg6: memref<80x256xbf16, #tpu.memory_space<vmem>>) attributes {dimension_semantics = [#tpu.dimension_semantics<parallel>, #tpu.dimension_semantics<parallel>], iteration_bounds = array<i64: 2, 1>, scalar_prefetch = 0 : i64, scratch_operands = 0 : i64, tpu.core_type = #tpu.core_type<tc>, window_params = [{transform_indices = @transform_0, window_bounds = array<i64: 80, 512>}, {transform_indices = @transform_1, window_bounds = array<i64: 512, 256>}, {transform_indices = @transform_2, window_bounds = array<i64: 1, 256>}, {transform_indices = @transform_3, window_bounds = array<i64: 1, 256>}, {transform_indices = @transform_4, window_bounds = array<i64: 80, 256>}]} {
    %c0 = arith.constant 0 : index
    %c0_0 = arith.constant 0 : index
    %0 = vector.load %arg2[%c0, %c0_0] : memref<80x512xbf16, #tpu.memory_space<vmem>>, vector<80x512xbf16>
    %c0_1 = arith.constant 0 : index
    %c0_2 = arith.constant 0 : index
    %1 = vector.load %arg3[%c0_1, %c0_2] : memref<512x256xbf16, #tpu.memory_space<vmem>>, vector<512x256xbf16>
    %cst = arith.constant dense<0.000000e+00> : vector<80x256xf32>
    %2 = tpu.matmul %0, %1, %cst {dimension_numbers = #tpu.dot_dimension_numbers<[1], [0], [0], [1], [0, 0, 1, 1], [], []>} : vector<80x512xbf16>, vector<512x256xbf16>, vector<80x256xf32> -> vector<80x256xf32>
    %c0_3 = arith.constant 0 : index
    %c0_4 = arith.constant 0 : index
    %3 = vector.load %arg4[%c0_3, %c0_4] : memref<1x256xf32, #tpu.memory_space<vmem>>, vector<1x256xf32>
    %c0_5 = arith.constant 0 : index
    %c0_6 = arith.constant 0 : index
    %4 = vector.load %arg5[%c0_5, %c0_6] : memref<1x256xf32, #tpu.memory_space<vmem>>, vector<1x256xf32>
    %5 = vector.broadcast %3 : vector<1x256xf32> to vector<80x256xf32>
    %6 = arith.mulf %2, %5 : vector<80x256xf32>
    %7 = vector.broadcast %4 : vector<1x256xf32> to vector<80x256xf32>
    %8 = arith.addf %6, %7 : vector<80x256xf32>
    %cst_7 = arith.constant 0.000000e+00 : f32
    %9 = vector.broadcast %cst_7 : f32 to vector<80x256xf32>
    %10 = arith.cmpf oge, %8, %9 : vector<80x256xf32>
    %cst_8 = arith.constant 0.00999999977 : f32
    %11 = vector.broadcast %cst_8 : f32 to vector<80x256xf32>
    %12 = arith.mulf %11, %8 : vector<80x256xf32>
    %13 = arith.select %10, %8, %12 : vector<80x256xi1>, vector<80x256xf32>
    %14 = arith.truncf %13 : vector<80x256xf32> to vector<80x256xbf16>
    %c0_9 = arith.constant 0 : index
    %c0_10 = arith.constant 0 : index
    %15 = vector.load %arg6[%c0_9, %c0_10] : memref<80x256xbf16, #tpu.memory_space<vmem>>, vector<80x256xbf16>
    tpu.vector_store %arg6[%c0_9, %c0_10], %14 {strides = array<i32>} : memref<80x256xbf16, #tpu.memory_space<vmem>>, vector<80x256xbf16>,
    return
  }
  func.func @transform_0(%arg0: i32, %arg1: i32) -> (i32, i32) {
    %c0_i32 = arith.constant 0 : i32
    %c0_i32_0 = arith.constant 0 : i32
    return %arg0, %c0_i32 : i32, i32
  }
  func.func @transform_1(%arg0: i32, %arg1: i32) -> (i32, i32) {
    %c0_i32 = arith.constant 0 : i32
    %c0_i32_0 = arith.constant 0 : i32
    return %c0_i32, %arg1 : i32, i32
  }
  func.func @transform_2(%arg0: i32, %arg1: i32) -> (i32, i32) {
    %c0_i32 = arith.constant 0 : i32
    %c0_i32_0 = arith.constant 0 : i32
    return %c0_i32, %arg1 : i32, i32
  }
  func.func @transform_3(%arg0: i32, %arg1: i32) -> (i32, i32) {
    %c0_i32 = arith.constant 0 : i32
    %c0_i32_0 = arith.constant 0 : i32
    return %c0_i32, %arg1 : i32, i32
  }
  func.func @transform_4(%arg0: i32, %arg1: i32) -> (i32, i32) {
    %c0_i32 = arith.constant 0 : i32
    return %arg0, %arg1 : i32, i32
  }
}

module attributes {stable_mosaic.version = 11 : i64} {
  func.func @_mm_singlek_kernel(%arg0: i32, %arg1: i32, %arg2: memref<640x256xbf16, #tpu.memory_space<vmem>>, %arg3: memref<256x256xbf16, #tpu.memory_space<vmem>>, %arg4: memref<1x256xf32, #tpu.memory_space<vmem>>, %arg5: memref<1x256xf32, #tpu.memory_space<vmem>>, %arg6: memref<640x256xbf16, #tpu.memory_space<vmem>>) attributes {dimension_semantics = [#tpu.dimension_semantics<parallel>, #tpu.dimension_semantics<parallel>], iteration_bounds = array<i64: 2, 1>, scalar_prefetch = 0 : i64, scratch_operands = 0 : i64, tpu.core_type = #tpu.core_type<tc>, window_params = [{transform_indices = @transform_0, window_bounds = array<i64: 640, 256>}, {transform_indices = @transform_1, window_bounds = array<i64: 256, 256>}, {transform_indices = @transform_2, window_bounds = array<i64: 1, 256>}, {transform_indices = @transform_3, window_bounds = array<i64: 1, 256>}, {transform_indices = @transform_4, window_bounds = array<i64: 640, 256>}]} {
    %c0 = arith.constant 0 : index
    %c0_0 = arith.constant 0 : index
    %0 = vector.load %arg2[%c0, %c0_0] : memref<640x256xbf16, #tpu.memory_space<vmem>>, vector<640x256xbf16>
    %c0_1 = arith.constant 0 : index
    %c0_2 = arith.constant 0 : index
    %1 = vector.load %arg3[%c0_1, %c0_2] : memref<256x256xbf16, #tpu.memory_space<vmem>>, vector<256x256xbf16>
    %cst = arith.constant dense<0.000000e+00> : vector<640x256xf32>
    %2 = tpu.matmul %0, %1, %cst {dimension_numbers = #tpu.dot_dimension_numbers<[1], [0], [0], [1], [0, 0, 1, 1], [], []>} : vector<640x256xbf16>, vector<256x256xbf16>, vector<640x256xf32> -> vector<640x256xf32>
    %c0_3 = arith.constant 0 : index
    %c0_4 = arith.constant 0 : index
    %3 = vector.load %arg4[%c0_3, %c0_4] : memref<1x256xf32, #tpu.memory_space<vmem>>, vector<1x256xf32>
    %c0_5 = arith.constant 0 : index
    %c0_6 = arith.constant 0 : index
    %4 = vector.load %arg5[%c0_5, %c0_6] : memref<1x256xf32, #tpu.memory_space<vmem>>, vector<1x256xf32>
    %5 = vector.broadcast %3 : vector<1x256xf32> to vector<640x256xf32>
    %6 = arith.mulf %2, %5 : vector<640x256xf32>
    %7 = vector.broadcast %4 : vector<1x256xf32> to vector<640x256xf32>
    %8 = arith.addf %6, %7 : vector<640x256xf32>
    %cst_7 = arith.constant 0.000000e+00 : f32
    %9 = vector.broadcast %cst_7 : f32 to vector<640x256xf32>
    %10 = arith.cmpf oge, %8, %9 : vector<640x256xf32>
    %cst_8 = arith.constant 0.00999999977 : f32
    %11 = vector.broadcast %cst_8 : f32 to vector<640x256xf32>
    %12 = arith.mulf %11, %8 : vector<640x256xf32>
    %13 = arith.select %10, %8, %12 : vector<640x256xi1>, vector<640x256xf32>
    %14 = arith.truncf %13 : vector<640x256xf32> to vector<640x256xbf16>
    %c0_9 = arith.constant 0 : index
    %c0_10 = arith.constant 0 : index
    %15 = vector.load %arg6[%c0_9, %c0_10] : memref<640x256xbf16, #tpu.memory_space<vmem>>, vector<640x256xbf16>
    tpu.vector_store %arg6[%c0_9, %c0_10], %14 {strides = array<i32>} : memref<640x256xbf16, #tpu.memory_space<vmem>>, vector<640x256xbf16>,
    return
  }
  func.func @transform_0(%arg0: i32, %arg1: i32) -> (i32, i32) {
    %c0_i32 = arith.constant 0 : i32
    %c0_i32_0 = arith.constant 0 : i32
    return %arg0, %c0_i32 : i32, i32
  }
  func.func @transform_1(%arg0: i32, %arg1: i32) -> (i32, i32) {
    %c0_i32 = arith.constant 0 : i32
    %c0_i32_0 = arith.constant 0 : i32
    return %c0_i32, %arg1 : i32, i32
  }
  func.func @transform_2(%arg0: i32, %arg1: i32) -> (i32, i32) {
    %c0_i32 = arith.constant 0 : i32
    %c0_i32_0 = arith.constant 0 : i32
    return %c0_i32, %arg1 : i32, i32
  }
  func.func @transform_3(%arg0: i32, %arg1: i32) -> (i32, i32) {
    %c0_i32 = arith.constant 0 : i32
    %c0_i32_0 = arith.constant 0 : i32
    return %c0_i32, %arg1 : i32, i32
  }
  func.func @transform_4(%arg0: i32, %arg1: i32) -> (i32, i32) {
    %c0_i32 = arith.constant 0 : i32
    return %arg0, %arg1 : i32, i32
  }
}

module attributes {stable_mosaic.version = 11 : i64} {
  func.func @_mm_singlek_kernel(%arg0: i32, %arg1: i32, %arg2: memref<2048x128xbf16, #tpu.memory_space<vmem>>, %arg3: memref<128x128xbf16, #tpu.memory_space<vmem>>, %arg4: memref<1x128xf32, #tpu.memory_space<vmem>>, %arg5: memref<1x128xf32, #tpu.memory_space<vmem>>, %arg6: memref<2048x128xf32, #tpu.memory_space<vmem>>) attributes {dimension_semantics = [#tpu.dimension_semantics<parallel>, #tpu.dimension_semantics<parallel>], iteration_bounds = array<i64: 5, 1>, scalar_prefetch = 0 : i64, scratch_operands = 0 : i64, tpu.core_type = #tpu.core_type<tc>, window_params = [{transform_indices = @transform_0, window_bounds = array<i64: 2048, 128>}, {transform_indices = @transform_1, window_bounds = array<i64: 128, 128>}, {transform_indices = @transform_2, window_bounds = array<i64: 1, 128>}, {transform_indices = @transform_3, window_bounds = array<i64: 1, 128>}, {transform_indices = @transform_4, window_bounds = array<i64: 2048, 128>}]} {
    %c0 = arith.constant 0 : index
    %c0_0 = arith.constant 0 : index
    %0 = vector.load %arg2[%c0, %c0_0] : memref<2048x128xbf16, #tpu.memory_space<vmem>>, vector<2048x128xbf16>
    %c0_1 = arith.constant 0 : index
    %c0_2 = arith.constant 0 : index
    %1 = vector.load %arg3[%c0_1, %c0_2] : memref<128x128xbf16, #tpu.memory_space<vmem>>, vector<128x128xbf16>
    %cst = arith.constant dense<0.000000e+00> : vector<2048x128xf32>
    %2 = tpu.matmul %0, %1, %cst {dimension_numbers = #tpu.dot_dimension_numbers<[1], [0], [0], [1], [0, 0, 1, 1], [], []>} : vector<2048x128xbf16>, vector<128x128xbf16>, vector<2048x128xf32> -> vector<2048x128xf32>
    %c0_3 = arith.constant 0 : index
    %c0_4 = arith.constant 0 : index
    %3 = vector.load %arg4[%c0_3, %c0_4] : memref<1x128xf32, #tpu.memory_space<vmem>>, vector<1x128xf32>
    %c0_5 = arith.constant 0 : index
    %c0_6 = arith.constant 0 : index
    %4 = vector.load %arg5[%c0_5, %c0_6] : memref<1x128xf32, #tpu.memory_space<vmem>>, vector<1x128xf32>
    %5 = vector.broadcast %3 : vector<1x128xf32> to vector<2048x128xf32>
    %6 = arith.mulf %2, %5 : vector<2048x128xf32>
    %7 = vector.broadcast %4 : vector<1x128xf32> to vector<2048x128xf32>
    %8 = arith.addf %6, %7 : vector<2048x128xf32>
    %c0_7 = arith.constant 0 : index
    %c0_8 = arith.constant 0 : index
    %9 = vector.load %arg6[%c0_7, %c0_8] : memref<2048x128xf32, #tpu.memory_space<vmem>>, vector<2048x128xf32>
    tpu.vector_store %arg6[%c0_7, %c0_8], %8 {strides = array<i32>} : memref<2048x128xf32, #tpu.memory_space<vmem>>, vector<2048x128xf32>,
    return
  }
  func.func @transform_0(%arg0: i32, %arg1: i32) -> (i32, i32) {
    %c0_i32 = arith.constant 0 : i32
    %c0_i32_0 = arith.constant 0 : i32
    return %arg0, %c0_i32 : i32, i32
  }
  func.func @transform_1(%arg0: i32, %arg1: i32) -> (i32, i32) {
    %c0_i32 = arith.constant 0 : i32
    %c0_i32_0 = arith.constant 0 : i32
    return %c0_i32, %arg1 : i32, i32
  }
  func.func @transform_2(%arg0: i32, %arg1: i32) -> (i32, i32) {
    %c0_i32 = arith.constant 0 : i32
    %c0_i32_0 = arith.constant 0 : i32
    return %c0_i32, %arg1 : i32, i32
  }
  func.func @transform_3(%arg0: i32, %arg1: i32) -> (i32, i32) {
    %c0_i32 = arith.constant 0 : i32
    %c0_i32_0 = arith.constant 0 : i32
    return %c0_i32, %arg1 : i32, i32
  }
  func.func @transform_4(%arg0: i32, %arg1: i32) -> (i32, i32) {
    %c0_i32 = arith.constant 0 : i32
    return %arg0, %arg1 : i32, i32
  }
}

</mosaic_0001>

<bundles_post_ra>
// kernel: vae_forward.8
= control target key start
LH: loop header
LB: loop body
LE: loop exit
PB: predicated region body
PF: predicated region fallthrough
CT: control target
= control target key end

     0   :  { %s2676_s15 = smov 0   ;;  %s2678_s16 = smov 0   ;;  %s3083_s0 = inlined_call_operand.vmem [shape: bf16[1280,128], index: 0, kind: input, shape index: {}]   ;;  %s3084_s1 = inlined_call_operand.vmem [shape: bf16[128,128], index: 1, kind: input, shape index: {}]   ;;  %s3085_s2 = inlined_call_operand.vmem [shape: f32[1,128], index: 2, kind: input, shape index: {}]   ;;  %s3086_s3 = inlined_call_operand.vmem [shape: f32[1,128], index: 3, kind: input, shape index: {}]   ;;  %s3087_s4 = inlined_call_operand.vmem [shape: bf16[1280,128], index: 4, kind: output, shape index: {}]  }
   0x1   :  { %s2680_s17 = smov 0  }
   0x2 LB: > { %s26_s18 = sadd.s32 1, %s2645_s16  ;;  %p1939_p0 = scmp.ge.s32.totalorder %s2649_s17, 1  ;;  %s2649_s17 = sphi %s2680_s17, %s14_s17   ;;  %s2645_s16 = sphi %s2678_s16, %s3089_s16   ;;  %s2641_s15 = sphi %s2676_s15, %s3088_s15  }
   0x3   : > { %p28_p1 = scmp.ge.s32.totalorder %s26_s18, 2  ;;  %p202_p2 = scmp.lt.s32.totalorder %s2649_s17, 3 }
   0x5   : > { %s3091_s18 = smov (%p28_p1, %s26_s18), 0  ;;  %p203_p3 = pnand %p1939_p0, %p202_p2 }
   0x6   : > { %s241_s21 = smul.u32 (!%p203_p3), 80, %s2641_s15 }
   0x7   : > { %206 = sbr.rel (%p203_p3) target bundleno = 356 (0x164), region = 36 }
   0x8   : > { %p242_p4 = scmp.lt.s32.totalorder (!%p203_p3), %s241_s21, 159 }
   0xc   : > { %v2577_v0 = vld [vmem:[%s3084_s1 + $0x38] sm:$0xff]   ;;  %v2578_v1 = vld [vmem:[%s3084_s1 + $0x30] sm:$0xff]   ;;  %v2579_v2 = vld [vmem:[%s3084_s1 + $0x28] sm:$0xff]   ;;  %s3093_s21 = smov (!%p242_p4, %s241_s21), 159 }
   0xd   : > { %2441 = vmatprep.subr.bf16.mxu0 %v2577_v0  ;;  %2537 = vmatprep.subr.bf16.mxu1 %v2577_v0  ;;  %s1940_s26 = sshll.u32 %s3093_s21, 2  ;;  %v2580_v3 = vld [vmem:[%s3084_s1 + $0x20] sm:$0xff]   ;;  %v2581_v6 = vld [vmem:[%s3084_s1 + $0x18] sm:$0xff]   ;;  %v2582_v7 = vld [vmem:[%s3084_s1 + $0x10] sm:$0xff]  }
   0xe   : > { %2442 = vmatpush3.bf16.msra.mxu0 %v2577_v0  ;;  %2545 = vmatpush3.bf16.msra.mxu1 %v2577_v0  ;;  %s2714_s5 = scalar_lea.vmem %s3083_s0, %s1940_s26  ;;  %v2583_v8 = vld [vmem:[%s3084_s1 + $0x8] sm:$0xff]   ;;  %v2584_v9 = vld [vmem:[%s3084_s1] sm:$0xff]   ;;  %s2801_s24 = scalar_lea.vmem %s3087_s4, %s1940_s26 }
   0xf   : > { %2443 = vmatprep.subr.bf16.mxu0 %v2578_v1  ;;  %2538 = vmatprep.subr.bf16.mxu1 %v2578_v1  ;;  %v2585_v4 = vld [vmem:[%s2714_s5] sm:$0xff]   ;;  %v2587_v10 = vld [vmem:[%s2714_s5 + $0x8] sm:$0xff]   ;;  %v2589_v12 = vld [vmem:[%s2714_s5 + $0x10] sm:$0xff]  }
  0x10   : > { %v2586_v5 = vld [vmem:[%s2714_s5 + $0xa0] sm:$0xff]   ;;  %2457 = vmatprep.mubr.bf16.mxu0 %v2585_v4  ;;  %v2588_v11 = vld [vmem:[%s2714_s5 + $0xa8] sm:$0xff]   ;;  %v2590_v13 = vld [vmem:[%s2714_s5 + $0xb0] sm:$0xff]  }
  0x11   : > { %2497 = vmatprep.mubr.bf16.mxu1 %v2586_v5  ;;  %v2591_v14 = vld [vmem:[%s2714_s5 + $0x18] sm:$0xff]   ;;  %v2593_v16 = vld [vmem:[%s2714_s5 + $0x20] sm:$0xff]   ;;  %v2595_v18 = vld [vmem:[%s2714_s5 + $0x28] sm:$0xff]  }
  0x12   : > { %2444 = vmatpush3.bf16.msra.mxu0 %v2578_v1  ;;  %2546 = vmatpush3.bf16.msra.mxu1 %v2578_v1  ;;  %v2592_v15 = vld [vmem:[%s2714_s5 + $0xb8] sm:$0xff]   ;;  %v2594_v17 = vld [vmem:[%s2714_s5 + $0xc0] sm:$0xff]   ;;  %v2596_v19 = vld [vmem:[%s2714_s5 + $0xc8] sm:$0xff]  }
  0x13   : > { %2445 = vmatprep.subr.bf16.mxu0 %v2579_v2  ;;  %2539 = vmatprep.subr.bf16.mxu1 %v2579_v2  ;;  %v2597_v20 = vld [vmem:[%s2714_s5 + $0x30] sm:$0xff]   ;;  %v2599_v22 = vld [vmem:[%s2714_s5 + $0x38] sm:$0xff]   ;;  %v2601_v24 = vld [vmem:[%s2714_s5 + $0x40] sm:$0xff]  }
  0x14   : > { %v2598_v21 = vld [vmem:[%s2714_s5 + $0xd0] sm:$0xff]   ;;  %v2600_v23 = vld [vmem:[%s2714_s5 + $0xd8] sm:$0xff]   ;;  %v2602_v25 = vld [vmem:[%s2714_s5 + $0xe0] sm:$0xff]  }
  0x15   : > { %v2603_v26 = vld [vmem:[%s2714_s5 + $0x48] sm:$0xff]   ;;  %v2605_v28 = vld [vmem:[%s2714_s5 + $0x50] sm:$0xff]   ;;  %v2607_v30 = vld [vmem:[%s2714_s5 + $0x58] sm:$0xff]  }
  0x16   : > { %2446 = vmatpush3.bf16.msra.mxu0 %v2579_v2  ;;  %2547 = vmatpush3.bf16.msra.mxu1 %v2579_v2  ;;  %v2604_v27 = vld [vmem:[%s2714_s5 + $0xe8] sm:$0xff]   ;;  %v2606_v29 = vld [vmem:[%s2714_s5 + $0xf0] sm:$0xff]   ;;  %v2608_v31 = vld [vmem:[%s2714_s5 + $0xf8] sm:$0xff]  }
  0x17   : > { %2447 = vmatprep.subr.bf16.mxu0 %v2580_v3  ;;  %2540 = vmatprep.subr.bf16.mxu1 %v2580_v3  ;;  %v2609_v32 = vld [vmem:[%s2714_s5 + $0x60] sm:$0xff]   ;;  %v2611_v34 = vld [vmem:[%s2714_s5 + $0x68] sm:$0xff]   ;;  %v2613_v36 = vld [vmem:[%s2714_s5 + $0x70] sm:$0xff]  }
  0x18   : > { %v2610_v33 = vld [vmem:[%s2714_s5 + $0x100] sm:$0xff]   ;;  %v2612_v35 = vld [vmem:[%s2714_s5 + $0x108] sm:$0xff]   ;;  %v2614_v37 = vld [vmem:[%s2714_s5 + $0x110] sm:$0xff]  }
  0x19   : > { %v2615_v38 = vld [vmem:[%s2714_s5 + $0x78] sm:$0xff]   ;;  %v2617_v40 = vld [vmem:[%s2714_s5 + $0x80] sm:$0xff]   ;;  %v2619_v42 = vld [vmem:[%s2714_s5 + $0x88] sm:$0xff]  }
  0x1a   : > { %2448 = vmatpush3.bf16.msra.mxu0 %v2580_v3  ;;  %2548 = vmatpush3.bf16.msra.mxu1 %v2580_v3  ;;  %v2616_v39 = vld [vmem:[%s2714_s5 + $0x118] sm:$0xff]   ;;  %v2618_v41 = vld [vmem:[%s2714_s5 + $0x120] sm:$0xff]   ;;  %v2620_v43 = vld [vmem:[%s2714_s5 + $0x128] sm:$0xff]  }
  0x1b   : > { %2449 = vmatprep.subr.bf16.mxu0 %v2581_v6  ;;  %2541 = vmatprep.subr.bf16.mxu1 %v2581_v6  ;;  %v2621_v44 = vld [vmem:[%s2714_s5 + $0x90] sm:$0xff]   ;;  %v2623_v46 = vld [vmem:[%s2714_s5 + $0x98] sm:$0xff]   ;;  %v2771_v48 = vld [vmem:[%s3085_s2] ss:$0 sm:$0xff] }
  0x1c   : > { %v2622_v45 = vld [vmem:[%s2714_s5 + $0x130] sm:$0xff]   ;;  %v2624_v47 = vld [vmem:[%s2714_s5 + $0x138] sm:$0xff]   ;;  %v2776_v50 = vld [vmem:[%s3086_s3] ss:$0 sm:$0xff] }
  0x1e   : > { %2450 = vmatpush3.bf16.msra.mxu0 %v2581_v6  ;;  %2549 = vmatpush3.bf16.msra.mxu1 %v2581_v6 }
  0x1f   : > { %2451 = vmatprep.subr.bf16.mxu0 %v2582_v7  ;;  %2542 = vmatprep.subr.bf16.mxu1 %v2582_v7 }
  0x22   : > { %2452 = vmatpush3.bf16.msra.mxu0 %v2582_v7  ;;  %2550 = vmatpush3.bf16.msra.mxu1 %v2582_v7 }
  0x23   : > { %2453 = vmatprep.subr.bf16.mxu0 %v2583_v8  ;;  %2543 = vmatprep.subr.bf16.mxu1 %v2583_v8 }
  0x26   : > { %2454 = vmatpush3.bf16.msra.mxu0 %v2583_v8  ;;  %2551 = vmatpush3.bf16.msra.mxu1 %v2583_v8 }
  0x27   : > { %2455 = vmatprep.subr.bf16.mxu0 %v2584_v9  ;;  %2544 = vmatprep.subr.bf16.mxu1 %v2584_v9 }
  0x2a   : > { %2456 = vmatpush3.bf16.msra.mxu0 %v2584_v9  ;;  %2552 = vmatpush3.bf16.msra.mxu1 %v2584_v9 }
  0x2d   : > { %2458 = vmatmul.mubr.bf16.vlgmr.msra.gmra.mxu0 %v2587_v10  ;;  %2498 = vmatmul.mubr.bf16.vlgmr.msra.gmra.mxu1 %v2588_v11 }
  0x2e   : > { %2461 = vmatprep.mubr.bf16.mxu0 %v2589_v12  ;;  %2501 = vmatprep.mubr.bf16.mxu1 %v2590_v13 }
  0x35   : > { %2462 = vmatmul.mubr.bf16.gmra.mxu0 %v2591_v14  ;;  %2502 = vmatmul.mubr.bf16.gmra.mxu1 %v2592_v15 }
  0x36   : > { %2465 = vmatprep.mubr.bf16.mxu0 %v2593_v16  ;;  %2505 = vmatprep.mubr.bf16.mxu1 %v2594_v17 }
  0x3d   : > { %2466 = vmatmul.mubr.bf16.gmra.mxu0 %v2595_v18  ;;  %2506 = vmatmul.mubr.bf16.gmra.mxu1 %v2596_v19 }
  0x3e   : > { %2469 = vmatprep.mubr.bf16.mxu0 %v2597_v20  ;;  %2509 = vmatprep.mubr.bf16.mxu1 %v2598_v21 }
  0x45   : > { %2470 = vmatmul.mubr.bf16.gmra.mxu0 %v2599_v22  ;;  %2510 = vmatmul.mubr.bf16.gmra.mxu1 %v2600_v23 }
  0x46   : > { %2473 = vmatprep.mubr.bf16.mxu0 %v2601_v24  ;;  %2513 = vmatprep.mubr.bf16.mxu1 %v2602_v25 }
  0x4d   : > { %2474 = vmatmul.mubr.bf16.gmra.mxu0 %v2603_v26  ;;  %2514 = vmatmul.mubr.bf16.gmra.mxu1 %v2604_v27 }
  0x4e   : > { %2477 = vmatprep.mubr.bf16.mxu0 %v2605_v28  ;;  %2517 = vmatprep.mubr.bf16.mxu1 %v2606_v29 }
  0x55   : > { %2478 = vmatmul.mubr.bf16.gmra.mxu0 %v2607_v30  ;;  %2518 = vmatmul.mubr.bf16.gmra.mxu1 %v2608_v31 }
  0x56   : > { %2481 = vmatprep.mubr.bf16.mxu0 %v2609_v32  ;;  %2521 = vmatprep.mubr.bf16.mxu1 %v2610_v33 }
  0x5d   : > { %2482 = vmatmul.mubr.bf16.gmra.mxu0 %v2611_v34  ;;  %2522 = vmatmul.mubr.bf16.gmra.mxu1 %v2612_v35 }
  0x5e   : > { %2485 = vmatprep.mubr.bf16.mxu0 %v2613_v36  ;;  %2525 = vmatprep.mubr.bf16.mxu1 %v2614_v37 }
  0x65   : > { %2486 = vmatmul.mubr.bf16.gmra.mxu0 %v2615_v38  ;;  %2526 = vmatmul.mubr.bf16.gmra.mxu1 %v2616_v39 }
  0x66   : > { %2489 = vmatprep.mubr.bf16.mxu0 %v2617_v40  ;;  %2529 = vmatprep.mubr.bf16.mxu1 %v2618_v41 }
  0x6d   : > { %2490 = vmatmul.mubr.bf16.gmra.mxu0 %v2619_v42  ;;  %2530 = vmatmul.mubr.bf16.gmra.mxu1 %v2620_v43 }
  0x6e   : > { %2493 = vmatprep.mubr.bf16.mxu0 %v2621_v44  ;;  %2533 = vmatprep.mubr.bf16.mxu1 %v2622_v45 }
  0x75   : > { %2494 = vmatmul.mubr.bf16.gmra.mxu0 %v2623_v46  ;;  %2534 = vmatmul.mubr.bf16.gmra.mxu1 %v2624_v47 }
  0xed   : > { %v2459_v49 = vpop.f32.mrf.mxu0  ;;  %v2499_v51 = vpop.f32.mrf.mxu1 }
  0xee   : > { %v1014_v52 = vmul.f32 %v2459_v49, %v2771_v48  ;;  %v1054_v53 = vmul.f32 %v2499_v51, %v2771_v48 }
  0xef   : > { %v685_v54 = vpop.f32.mrf.mxu0  ;;  %v845_v55 = vpop.f32.mrf.mxu1 }
  0xf0   : > { %v1100_v56 = vadd.f32 %v2776_v50, %v1014_v52  ;;  %v1140_v57 = vadd.f32 %v2776_v50, %v1054_v53  ;;  %v1012_v58 = vmul.f32 %v2771_v48, %v685_v54  ;;  %v1052_v59 = vmul.f32 %v2771_v48, %v845_v55 }
  0xf1   : > { %v2460_v60 = vpop.f32.mrf.mxu0  ;;  %v2500_v61 = vpop.f32.mrf.mxu1 }
  0xf2   : > { %vm1180_vm0 = vcmp.ge.f32.partialorder %v1100_v56, 0.0  ;;  %v1260_v62 = vmul.f32 0.01, %v1100_v56  ;;  %vm1220_vm1 = vcmp.ge.f32.partialorder %v1140_v57, 0.0  ;;  %v1300_v63 = vmul.f32 0.01, %v1140_v57 }
  0xf3   : > { %v1098_v0 = vadd.f32 %v2776_v50, %v1012_v58  ;;  %v1138_v1 = vadd.f32 %v2776_v50, %v1052_v59  ;;  %v1015_v2 = vmul.f32 %v2460_v60, %v2771_v48  ;;  %v1055_v3 = vmul.f32 %v2500_v61, %v2771_v48  ;;  %v688_v4 = vpop.f32.mrf.mxu0  ;;  %v848_v5 = vpop.f32.mrf.mxu1 }
  0xf4   : > { %v1340_v6 = vsel %vm1180_vm0, %v1100_v56, %v1260_v62  ;;  %v1380_v7 = vsel %vm1220_vm1, %v1140_v57, %v1300_v63  ;;  %v1013_v8 = vmul.f32 %v2771_v48, %v688_v4  ;;  %v1053_v9 = vmul.f32 %v2771_v48, %v848_v5 }
  0xf5   : > { %vm1178_vm2 = vcmp.ge.f32.partialorder %v1098_v0, 0.0  ;;  %v1258_v10 = vmul.f32 0.01, %v1098_v0  ;;  %vm1218_vm3 = vcmp.ge.f32.partialorder %v1138_v1, 0.0  ;;  %v1298_v11 = vmul.f32 0.01, %v1138_v1  ;;  %v2463_v12 = vpop.f32.mrf.mxu0  ;;  %v2503_v13 = vpop.f32.mrf.mxu1 }
  0xf6   : > { %v1101_v14 = vadd.f32 %v2776_v50, %v1015_v2  ;;  %v1141_v15 = vadd.f32 %v2776_v50, %v1055_v3  ;;  %v1099_v16 = vadd.f32 %v2776_v50, %v1013_v8  ;;  %v1139_v17 = vadd.f32 %v2776_v50, %v1053_v9 }
  0xf7   : > { %v1338_v18 = vsel %vm1178_vm2, %v1098_v0, %v1258_v10  ;;  %v1378_v19 = vsel %vm1218_vm3, %v1138_v1, %v1298_v11  ;;  %v1018_v20 = vmul.f32 %v2463_v12, %v2771_v48  ;;  %v1058_v21 = vmul.f32 %v2503_v13, %v2771_v48  ;;  %v701_v22 = vpop.f32.mrf.mxu0  ;;  %v861_v23 = vpop.f32.mrf.mxu1 }
  0xf8   : > { %vm1181_vm4 = vcmp.ge.f32.partialorder %v1101_v14, 0.0  ;;  %v1261_v24 = vmul.f32 0.01, %v1101_v14  ;;  %vm1221_vm5 = vcmp.ge.f32.partialorder %v1141_v15, 0.0  ;;  %v1301_v25 = vmul.f32 0.01, %v1141_v15 }
  0xf9   : > { %vm1179_vm6 = vcmp.ge.f32.partialorder %v1099_v16, 0.0  ;;  %v1259_v26 = vmul.f32 0.01, %v1099_v16  ;;  %vm1219_vm7 = vcmp.ge.f32.partialorder %v1139_v17, 0.0  ;;  %v1299_v27 = vmul.f32 0.01, %v1139_v17  ;;  %v2464_v28 = vpop.f32.mrf.mxu0  ;;  %v2504_v29 = vpop.f32.mrf.mxu1 }
  0xfa   : > { %v1341_v30 = vsel %vm1181_vm4, %v1101_v14, %v1261_v24  ;;  %v1381_v31 = vsel %vm1221_vm5, %v1141_v15, %v1301_v25  ;;  %v1104_v32 = vadd.f32 %v2776_v50, %v1018_v20  ;;  %v1144_v33 = vadd.f32 %v2776_v50, %v1058_v21 }
  0xfb   : > { %v2162_v34 = vpack.c.bf16 %v1341_v30, %v1340_v6  ;;  %v2262_v35 = vpack.c.bf16 %v1381_v31, %v1380_v7  ;;  %v1339_v36 = vsel %vm1179_vm6, %v1099_v16, %v1259_v26  ;;  %v1379_v37 = vsel %vm1219_vm7, %v1139_v17, %v1299_v27  ;;  %v704_v38 = vpop.f32.mrf.mxu0  ;;  %v864_v39 = vpop.f32.mrf.mxu1 }
  0xfc   : > { %v2157_v40 = vpack.c.bf16 %v1339_v36, %v1338_v18  ;;  %v2257_v41 = vpack.c.bf16 %v1379_v37, %v1378_v19  ;;  %vm1184_vm8 = vcmp.ge.f32.partialorder %v1104_v32, 0.0  ;;  %v1264_v42 = vmul.f32 0.01, %v1104_v32 }
  0xfd   : > { %2354 = vst [vmem:[%s2801_s24 + $0x8] sm:$0xff] %v2162_v34   ;;  %2374 = vst [vmem:[%s2801_s24 + $0xa8] sm:$0xff] %v2262_v35   ;;  %vm1224_vm9 = vcmp.ge.f32.partialorder %v1144_v33, 0.0  ;;  %v1304_v43 = vmul.f32 0.01, %v1144_v33  ;;  %v1016_v44 = vmul.f32 %v2771_v48, %v701_v22  ;;  %v1056_v45 = vmul.f32 %v2771_v48, %v861_v23  ;;  %v2467_v46 = vpop.f32.mrf.mxu0  ;;  %v2507_v47 = vpop.f32.mrf.mxu1 }
  0xfe   : > { %2158 = vst [vmem:[%s2801_s24] sm:$0xff] %v2157_v40   ;;  %2373 = vst [vmem:[%s2801_s24 + $0xa0] sm:$0xff] %v2257_v41   ;;  %v1344_v49 = vsel %vm1184_vm8, %v1104_v32, %v1264_v42  ;;  %v1019_v51 = vmul.f32 %v2464_v28, %v2771_v48  ;;  %v1059_v52 = vmul.f32 %v2504_v29, %v2771_v48 }
  0xff   : > { %v1017_v53 = vmul.f32 %v2771_v48, %v704_v38  ;;  %v1384_v54 = vsel %vm1224_vm9, %v1144_v33, %v1304_v43  ;;  %v1102_v55 = vadd.f32 %v2776_v50, %v1016_v44  ;;  %v1142_v56 = vadd.f32 %v2776_v50, %v1056_v45  ;;  %v717_v58 = vpop.f32.mrf.mxu0  ;;  %v877_v59 = vpop.f32.mrf.mxu1 }
 0x100   : > { %v1057_v57 = vmul.f32 %v2771_v48, %v864_v39  ;;  %v1105_v60 = vadd.f32 %v2776_v50, %v1019_v51  ;;  %v1145_v61 = vadd.f32 %v2776_v50, %v1059_v52  ;;  %v1022_v63 = vmul.f32 %v2467_v46, %v2771_v48 }
 0x101   : > { %v1103_v62 = vadd.f32 %v2776_v50, %v1017_v53  ;;  %vm1182_vm10 = vcmp.ge.f32.partialorder %v1102_v55, 0.0  ;;  %v1262_v0 = vmul.f32 0.01, %v1102_v55  ;;  %vm1222_vm11 = vcmp.ge.f32.partialorder %v1142_v56, 0.0  ;;  %v2468_v2 = vpop.f32.mrf.mxu0  ;;  %v2508_v3 = vpop.f32.mrf.mxu1 }
 0x102   : > { %v1302_v1 = vmul.f32 0.01, %v1142_v56  ;;  %vm1185_vm12 = vcmp.ge.f32.partialorder %v1105_v60, 0.0  ;;  %v1265_v4 = vmul.f32 0.01, %v1105_v60  ;;  %vm1225_vm13 = vcmp.ge.f32.partialorder %v1145_v61, 0.0 }
 0x103   : > { %v1305_v5 = vmul.f32 0.01, %v1145_v61  ;;  %v1342_v6 = vsel %vm1182_vm10, %v1102_v55, %v1262_v0  ;;  %vm1183_vm14 = vcmp.ge.f32.partialorder %v1103_v62, 0.0  ;;  %v1263_v8 = vmul.f32 0.01, %v1103_v62  ;;  %v720_v9 = vpop.f32.mrf.mxu0  ;;  %v880_v10 = vpop.f32.mrf.mxu1 }
 0x104   : > { %v1382_v7 = vsel %vm1222_vm11, %v1142_v56, %v1302_v1  ;;  %v1345_v11 = vsel %vm1185_vm12, %v1105_v60, %v1265_v4  ;;  %v1143_v13 = vadd.f32 %v2776_v50, %v1057_v57  ;;  %v1108_v14 = vadd.f32 %v2776_v50, %v1022_v63 }
 0x105   : > { %v1385_v12 = vsel %vm1225_vm13, %v1145_v61, %v1305_v5  ;;  %v2172_v15 = vpack.c.bf16 %v1345_v11, %v1344_v49  ;;  %v1343_v17 = vsel %vm1183_vm14, %v1103_v62, %v1263_v8  ;;  %v1062_v18 = vmul.f32 %v2507_v47, %v2771_v48  ;;  %v2471_v19 = vpop.f32.mrf.mxu0  ;;  %v2511_v20 = vpop.f32.mrf.mxu1 }
 0x106   : > { %v2272_v16 = vpack.c.bf16 %v1385_v12, %v1384_v54  ;;  %v2167_v21 = vpack.c.bf16 %v1343_v17, %v1342_v6  ;;  %vm1223_vm15 = vcmp.ge.f32.partialorder %v1143_v13, 0.0  ;;  %v1303_v22 = vmul.f32 0.01, %v1143_v13 }
 0x107   : > { %vm1188_vm0 = vcmp.ge.f32.partialorder %v1108_v14, 0.0  ;;  %2356 = vst [vmem:[%s2801_s24 + $0x18] sm:$0xff] %v2172_v15   ;;  %v1268_v23 = vmul.f32 0.01, %v1108_v14  ;;  %v1148_v24 = vadd.f32 %v2776_v50, %v1062_v18  ;;  %v1020_v25 = vmul.f32 %v2771_v48, %v717_v58  ;;  %v733_v27 = vpop.f32.mrf.mxu0  ;;  %v893_v28 = vpop.f32.mrf.mxu1 }
 0x108   : > { %2376 = vst [vmem:[%s2801_s24 + $0xb8] sm:$0xff] %v2272_v16   ;;  %v1060_v26 = vmul.f32 %v2771_v48, %v877_v59  ;;  %2355 = vst [vmem:[%s2801_s24 + $0x10] sm:$0xff] %v2167_v21   ;;  %v1383_v29 = vsel %vm1223_vm15, %v1143_v13, %v1303_v22  ;;  %v1023_v30 = vmul.f32 %v2468_v2, %v2771_v48 }
 0x109   : > { %v1063_v31 = vmul.f32 %v2508_v3, %v2771_v48  ;;  %v1021_v32 = vmul.f32 %v2771_v48, %v720_v9  ;;  %v2267_v33 = vpack.c.bf16 %v1383_v29, %v1382_v7  ;;  %v1348_v34 = vsel %vm1188_vm0, %v1108_v14, %v1268_v23  ;;  %v2472_v36 = vpop.f32.mrf.mxu0  ;;  %v2512_v37 = vpop.f32.mrf.mxu1 }
 0x10a   : > { %vm1228_vm1 = vcmp.ge.f32.partialorder %v1148_v24, 0.0  ;;  %v1308_v35 = vmul.f32 0.01, %v1148_v24  ;;  %v1106_v38 = vadd.f32 %v2776_v50, %v1020_v25  ;;  %v1146_v39 = vadd.f32 %v2776_v50, %v1060_v26 }
 0x10b   : > { %v1109_v40 = vadd.f32 %v2776_v50, %v1023_v30  ;;  %v1149_v41 = vadd.f32 %v2776_v50, %v1063_v31  ;;  %2375 = vst [vmem:[%s2801_s24 + $0xb0] sm:$0xff] %v2267_v33   ;;  %v1107_v43 = vadd.f32 %v2776_v50, %v1021_v32  ;;  %v1061_v44 = vmul.f32 %v2771_v48, %v880_v10  ;;  %v736_v46 = vpop.f32.mrf.mxu0  ;;  %v896_v47 = vpop.f32.mrf.mxu1 }
 0x10c   : > { %v1388_v42 = vsel %vm1228_vm1, %v1148_v24, %v1308_v35  ;;  %v1026_v45 = vmul.f32 %v2471_v19, %v2771_v48  ;;  %vm1186_vm2 = vcmp.ge.f32.partialorder %v1106_v38, 0.0  ;;  %v1266_v49 = vmul.f32 0.01, %v1106_v38 }
 0x10d   : > { %vm1226_vm3 = vcmp.ge.f32.partialorder %v1146_v39, 0.0  ;;  %v1306_v51 = vmul.f32 0.01, %v1146_v39  ;;  %vm1189_vm4 = vcmp.ge.f32.partialorder %v1109_v40, 0.0  ;;  %v1269_v52 = vmul.f32 0.01, %v1109_v40  ;;  %v2475_v54 = vpop.f32.mrf.mxu0  ;;  %v2841_v55 = vpop.f32.mrf.mxu1 }
 0x10e   : > { %vm1229_vm5 = vcmp.ge.f32.partialorder %v1149_v41, 0.0  ;;  %v1309_v53 = vmul.f32 0.01, %v1149_v41  ;;  %v1346_v56 = vsel %vm1186_vm2, %v1106_v38, %v1266_v49  ;;  %vm1187_vm6 = vcmp.ge.f32.partialorder %v1107_v43, 0.0 }
 0x10f   : > { %v1386_v57 = vsel %vm1226_vm3, %v1146_v39, %v1306_v51  ;;  %v1267_v58 = vmul.f32 0.01, %v1107_v43  ;;  %v1349_v59 = vsel %vm1189_vm4, %v1109_v40, %v1269_v52  ;;  %v1147_v61 = vadd.f32 %v2776_v50, %v1061_v44  ;;  %v2845_v63 = vpop.f32.mrf.mxu0  ;;  %v2847_v0 = vpop.f32.mrf.mxu1 }
 0x110   : > { %v1389_v60 = vsel %vm1229_vm5, %v1149_v41, %v1309_v53  ;;  %v1112_v62 = vadd.f32 %v2776_v50, %v1026_v45  ;;  %v2182_v1 = vpack.c.bf16 %v1349_v59, %v1348_v34  ;;  %v1066_v4 = vmul.f32 %v2511_v20, %v2771_v48 }
 0x111   : > { %v2282_v2 = vpack.c.bf16 %v1389_v60, %v1388_v42  ;;  %v1347_v3 = vsel %vm1187_vm6, %v1107_v43, %v1267_v58  ;;  %vm1227_vm7 = vcmp.ge.f32.partialorder %v1147_v61, 0.0  ;;  %v1307_v6 = vmul.f32 0.01, %v1147_v61  ;;  %v2850_v7 = vpop.f32.mrf.mxu0  ;;  %v2852_v8 = vpop.f32.mrf.mxu1 }
 0x112   : > { %v2177_v5 = vpack.c.bf16 %v1347_v3, %v1346_v56  ;;  %vm1192_vm8 = vcmp.ge.f32.partialorder %v1112_v62, 0.0  ;;  %2358 = vst [vmem:[%s2801_s24 + $0x28] sm:$0xff] %v2182_v1   ;;  %v1272_v9 = vmul.f32 0.01, %v1112_v62  ;;  %v1152_v10 = vadd.f32 %v2776_v50, %v1066_v4 }
 0x113   : > { %2378 = vst [vmem:[%s2801_s24 + $0xc8] sm:$0xff] %v2282_v2   ;;  %v1024_v11 = vmul.f32 %v2771_v48, %v733_v27  ;;  %v1064_v12 = vmul.f32 %v2771_v48, %v893_v28  ;;  %v1387_v13 = vsel %vm1227_vm7, %v1147_v61, %v1307_v6  ;;  %v1027_v14 = vmul.f32 %v2472_v36, %v2771_v48  ;;  %v752_v17 = vpop.f32.mrf.mxu0  ;;  %v2863_v18 = vpop.f32.mrf.mxu1 }
 0x114   : > { %2357 = vst [vmem:[%s2801_s24 + $0x20] sm:$0xff] %v2177_v5   ;;  %v1067_v15 = vmul.f32 %v2512_v37, %v2771_v48  ;;  %v1025_v16 = vmul.f32 %v2771_v48, %v736_v46  ;;  %v2277_v19 = vpack.c.bf16 %v1387_v13, %v1386_v57  ;;  %v1352_v20 = vsel %vm1192_vm8, %v1112_v62, %v1272_v9 }
 0x115   : > { %vm1232_vm9 = vcmp.ge.f32.partialorder %v1152_v10, 0.0  ;;  %v1312_v21 = vmul.f32 0.01, %v1152_v10  ;;  %v1110_v22 = vadd.f32 %v2776_v50, %v1024_v11  ;;  %v1150_v23 = vadd.f32 %v2776_v50, %v1064_v12  ;;  %v2870_v26 = vpop.f32.mrf.mxu0  ;;  %v2872_v27 = vpop.f32.mrf.mxu1 }
 0x116   : > { %v1113_v24 = vadd.f32 %v2776_v50, %v1027_v14  ;;  %v1153_v25 = vadd.f32 %v2776_v50, %v1067_v15  ;;  %2377 = vst [vmem:[%s2801_s24 + $0xc0] sm:$0xff] %v2277_v19   ;;  %v1111_v29 = vadd.f32 %v2776_v50, %v1025_v16  ;;  %v1065_v30 = vmul.f32 %v2771_v48, %v896_v47 }
 0x117   : > { %v1392_v28 = vsel %vm1232_vm9, %v1152_v10, %v1312_v21  ;;  %v1030_v31 = vmul.f32 %v2475_v54, %v2771_v48  ;;  %vm1190_vm10 = vcmp.ge.f32.partialorder %v1110_v22, 0.0  ;;  %v1270_v32 = vmul.f32 0.01, %v1110_v22  ;;  %v2878_v34 = vpop.f32.mrf.mxu0  ;;  %v2880_v35 = vpop.f32.mrf.mxu1 }
 0x118   : > { %vm1230_vm11 = vcmp.ge.f32.partialorder %v1150_v23, 0.0  ;;  %v1310_v33 = vmul.f32 0.01, %v1150_v23  ;;  %vm1193_vm12 = vcmp.ge.f32.partialorder %v1113_v24, 0.0  ;;  %v1273_v36 = vmul.f32 0.01, %v1113_v24 }
 0x119   : > { %vm1233_vm13 = vcmp.ge.f32.partialorder %v1153_v25, 0.0  ;;  %v1313_v37 = vmul.f32 0.01, %v1153_v25  ;;  %v1350_v38 = vsel %vm1190_vm10, %v1110_v22, %v1270_v32  ;;  %vm1191_vm14 = vcmp.ge.f32.partialorder %v1111_v29, 0.0  ;;  %v2882_v41 = vpop.f32.mrf.mxu0  ;;  %v2884_v42 = vpop.f32.mrf.mxu1 }
 0x11a   : > { %v1390_v39 = vsel %vm1230_vm11, %v1150_v23, %v1310_v33  ;;  %v1271_v40 = vmul.f32 0.01, %v1111_v29  ;;  %v1353_v43 = vsel %vm1193_vm12, %v1113_v24, %v1273_v36  ;;  %v1151_v45 = vadd.f32 %v2776_v50, %v1065_v30 }
 0x11b   : > { %v1393_v44 = vsel %vm1233_vm13, %v1153_v25, %v1313_v37  ;;  %v1116_v46 = vadd.f32 %v2776_v50, %v1030_v31  ;;  %v2192_v47 = vpack.c.bf16 %v1353_v43, %v1352_v20  ;;  %v1070_v52 = vmul.f32 %v2841_v55, %v2771_v48  ;;  %v2890_v53 = vpop.f32.mrf.mxu0  ;;  %v2892_v54 = vpop.f32.mrf.mxu1 }
 0x11c   : > { %v2292_v49 = vpack.c.bf16 %v1393_v44, %v1392_v28  ;;  %v1351_v51 = vsel %vm1191_vm14, %v1111_v29, %v1271_v40  ;;  %vm1231_vm15 = vcmp.ge.f32.partialorder %v1151_v45, 0.0  ;;  %v1311_v57 = vmul.f32 0.01, %v1151_v45 }
 0x11d   : > { %v2187_v56 = vpack.c.bf16 %v1351_v51, %v1350_v38  ;;  %vm1196_vm0 = vcmp.ge.f32.partialorder %v1116_v46, 0.0  ;;  %2360 = vst [vmem:[%s2801_s24 + $0x38] sm:$0xff] %v2192_v47   ;;  %v1276_v58 = vmul.f32 0.01, %v1116_v46  ;;  %v1156_v59 = vadd.f32 %v2776_v50, %v1070_v52  ;;  %v2901_v55 = vpop.f32.mrf.mxu0  ;;  %v2903_v62 = vpop.f32.mrf.mxu1 }
 0x11e   : > { %2380 = vst [vmem:[%s2801_s24 + $0xd8] sm:$0xff] %v2292_v49   ;;  %v1028_v60 = vmul.f32 %v2771_v48, %v2845_v63  ;;  %v1068_v61 = vmul.f32 %v2771_v48, %v2847_v0  ;;  %v1391_v1 = vsel %vm1231_vm15, %v1151_v45, %v1311_v57  ;;  %v1031_v2 = vmul.f32 %v2850_v7, %v2771_v48 }
 0x11f   : > { %2359 = vst [vmem:[%s2801_s24 + $0x30] sm:$0xff] %v2187_v56   ;;  %v1071_v3 = vmul.f32 %v2852_v8, %v2771_v48  ;;  %v1029_v4 = vmul.f32 %v2771_v48, %v752_v17  ;;  %v2287_v5 = vpack.c.bf16 %v1391_v1, %v1390_v39  ;;  %v1356_v63 = vsel %vm1196_vm0, %v1116_v46, %v1276_v58  ;;  %v2911_v0 = vpop.f32.mrf.mxu0  ;;  %v2913_v9 = vpop.f32.mrf.mxu1 }
 0x120   : > { %vm1236_vm1 = vcmp.ge.f32.partialorder %v1156_v59, 0.0  ;;  %v1316_v6 = vmul.f32 0.01, %v1156_v59  ;;  %v1114_v10 = vadd.f32 %v2776_v50, %v1028_v60  ;;  %v1154_v11 = vadd.f32 %v2776_v50, %v1068_v61 }
 0x121   : > { %v1117_v12 = vadd.f32 %v2776_v50, %v1031_v2  ;;  %v1157_v7 = vadd.f32 %v2776_v50, %v1071_v3  ;;  %2379 = vst [vmem:[%s2801_s24 + $0xd0] sm:$0xff] %v2287_v5   ;;  %v1115_v13 = vadd.f32 %v2776_v50, %v1029_v4  ;;  %v1069_v14 = vmul.f32 %v2771_v48, %v2863_v18  ;;  %v2925_v16 = vpop.f32.mrf.mxu0  ;;  %v2927_v17 = vpop.f32.mrf.mxu1 }
 0x122   : > { %v1396_v8 = vsel %vm1236_vm1, %v1156_v59, %v1316_v6  ;;  %v1034_v15 = vmul.f32 %v2870_v26, %v2771_v48  ;;  %vm1194_vm2 = vcmp.ge.f32.partialorder %v1114_v10, 0.0  ;;  %v1274_v19 = vmul.f32 0.01, %v1114_v10 }
 0x123   : > { %vm1234_vm3 = vcmp.ge.f32.partialorder %v1154_v11, 0.0  ;;  %v1314_v20 = vmul.f32 0.01, %v1154_v11  ;;  %vm1197_vm4 = vcmp.ge.f32.partialorder %v1117_v12, 0.0  ;;  %v1277_v21 = vmul.f32 0.01, %v1117_v12  ;;  %v2929_v23 = vpop.f32.mrf.mxu0  ;;  %v2933_v31 = vpop.f32.mrf.mxu1 }
 0x124   : > { %vm1237_vm5 = vcmp.ge.f32.partialorder %v1157_v7, 0.0  ;;  %v1317_v22 = vmul.f32 0.01, %v1157_v7  ;;  %v1354_v24 = vsel %vm1194_vm2, %v1114_v10, %v1274_v19  ;;  %vm1195_vm6 = vcmp.ge.f32.partialorder %v1115_v13, 0.0 }
 0x125   : > { %v1394_v25 = vsel %vm1234_vm3, %v1154_v11, %v1314_v20  ;;  %v1275_v18 = vmul.f32 0.01, %v1115_v13  ;;  %v1357_v26 = vsel %vm1197_vm4, %v1117_v12, %v1277_v21  ;;  %v1155_v29 = vadd.f32 %v2776_v50, %v1069_v14  ;;  %v2937_v38 = vpop.f32.mrf.mxu0  ;;  %v2953_v52 = vpop.f32.mrf.mxu1 }
 0x126   : > { %v1397_v28 = vsel %vm1237_vm5, %v1157_v7, %v1317_v22  ;;  %v1120_v30 = vadd.f32 %v2776_v50, %v1034_v15  ;;  %v2202_v32 = vpack.c.bf16 %v1357_v26, %v1356_v63  ;;  %v1074_v37 = vmul.f32 %v2872_v27, %v2771_v48 }
 0x127   : > { %v2302_v33 = vpack.c.bf16 %v1397_v28, %v1396_v8  ;;  %v1355_v36 = vsel %vm1195_vm6, %v1115_v13, %v1275_v18  ;;  %vm1235_vm7 = vcmp.ge.f32.partialorder %v1155_v29, 0.0  ;;  %v1315_v40 = vmul.f32 0.01, %v1155_v29  ;;  %v2955_v58 = vpop.f32.mrf.mxu0  ;;  %v2967_v4 = vpop.f32.mrf.mxu1 }
 0x128   : > { %v2197_v39 = vpack.c.bf16 %v1355_v36, %v1354_v24  ;;  %vm1200_vm8 = vcmp.ge.f32.partialorder %v1120_v30, 0.0  ;;  %2362 = vst [vmem:[%s2801_s24 + $0x48] sm:$0xff] %v2202_v32   ;;  %v1280_v43 = vmul.f32 0.01, %v1120_v30  ;;  %v1160_v44 = vadd.f32 %v2776_v50, %v1074_v37 }
 0x129   : > { %2382 = vst [vmem:[%s2801_s24 + $0xe8] sm:$0xff] %v2302_v33   ;;  %v1032_v45 = vmul.f32 %v2771_v48, %v2878_v34  ;;  %v1072_v46 = vmul.f32 %v2771_v48, %v2880_v35  ;;  %v1395_v27 = vsel %vm1235_vm7, %v1155_v29, %v1315_v40  ;;  %v1035_v47 = vmul.f32 %v2882_v41, %v2771_v48  ;;  %v2969_v6 = vpop.f32.mrf.mxu0  ;;  %v2975_v20 = vpop.f32.mrf.mxu1 }
 0x12a   : > { %2361 = vst [vmem:[%s2801_s24 + $0x40] sm:$0xff] %v2197_v39   ;;  %v1075_v49 = vmul.f32 %v2884_v42, %v2771_v48  ;;  %v1033_v51 = vmul.f32 %v2771_v48, %v2890_v53  ;;  %v2297_v56 = vpack.c.bf16 %v1395_v27, %v1394_v25  ;;  %v1360_v57 = vsel %vm1200_vm8, %v1120_v30, %v1280_v43 }
 0x12b   : > { %vm1240_vm9 = vcmp.ge.f32.partialorder %v1160_v44, 0.0  ;;  %v1320_v34 = vmul.f32 0.01, %v1160_v44  ;;  %v1118_v35 = vadd.f32 %v2776_v50, %v1032_v45  ;;  %v1158_v59 = vadd.f32 %v2776_v50, %v1072_v46  ;;  %v2977_v24 = vpop.f32.mrf.mxu0 }
 0x12c   : > { %v1121_v41 = vadd.f32 %v2776_v50, %v1035_v47  ;;  %v1161_v60 = vadd.f32 %v2776_v50, %v1075_v49  ;;  %2381 = vst [vmem:[%s2801_s24 + $0xe0] sm:$0xff] %v2297_v56   ;;  %v1119_v53 = vadd.f32 %v2776_v50, %v1033_v51  ;;  %v1073_v61 = vmul.f32 %v2771_v48, %v2892_v54 }
 0x12d   : > { %v1400_v42 = vsel %vm1240_vm9, %v1160_v44, %v1320_v34  ;;  %v1038_v1 = vmul.f32 %v2901_v55, %v2771_v48  ;;  %vm1198_vm10 = vcmp.ge.f32.partialorder %v1118_v35, 0.0  ;;  %v1278_v2 = vmul.f32 0.01, %v1118_v35 }
 0x12e   : > { %vm1238_vm11 = vcmp.ge.f32.partialorder %v1158_v59, 0.0  ;;  %v1318_v3 = vmul.f32 0.01, %v1158_v59  ;;  %vm1201_vm12 = vcmp.ge.f32.partialorder %v1121_v41, 0.0  ;;  %v1281_v5 = vmul.f32 0.01, %v1121_v41 }
 0x12f   : > { %vm1241_vm13 = vcmp.ge.f32.partialorder %v1161_v60, 0.0  ;;  %v1321_v63 = vmul.f32 0.01, %v1161_v60  ;;  %v1358_v10 = vsel %vm1198_vm10, %v1118_v35, %v1278_v2  ;;  %vm1199_vm14 = vcmp.ge.f32.partialorder %v1119_v53, 0.0 }
 0x130   : > { %v1398_v11 = vsel %vm1238_vm11, %v1158_v59, %v1318_v3  ;;  %v1279_v54 = vmul.f32 0.01, %v1119_v53  ;;  %v1361_v12 = vsel %vm1201_vm12, %v1121_v41, %v1281_v5  ;;  %v1159_v7 = vadd.f32 %v2776_v50, %v1073_v61 }
 0x131   : > { %v1401_v55 = vsel %vm1241_vm13, %v1161_v60, %v1321_v63  ;;  %v1124_v8 = vadd.f32 %v2776_v50, %v1038_v1  ;;  %v2212_v13 = vpack.c.bf16 %v1361_v12, %v1360_v57  ;;  %v1078_v19 = vmul.f32 %v2903_v62, %v2771_v48 }
 0x132   : > { %v2312_v14 = vpack.c.bf16 %v1401_v55, %v1400_v42  ;;  %v1359_v15 = vsel %vm1199_vm14, %v1119_v53, %v1279_v54  ;;  %vm1239_vm15 = vcmp.ge.f32.partialorder %v1159_v7, 0.0  ;;  %v1319_v22 = vmul.f32 0.01, %v1159_v7 }
 0x133   : > { %v2207_v21 = vpack.c.bf16 %v1359_v15, %v1358_v10  ;;  %vm1204_vm0 = vcmp.ge.f32.partialorder %v1124_v8, 0.0  ;;  %2364 = vst [vmem:[%s2801_s24 + $0x58] sm:$0xff] %v2212_v13   ;;  %v1284_v25 = vmul.f32 0.01, %v1124_v8  ;;  %v1164_v18 = vadd.f32 %v2776_v50, %v1078_v19 }
 0x134   : > { %2384 = vst [vmem:[%s2801_s24 + $0xf8] sm:$0xff] %v2312_v14   ;;  %v1036_v26 = vmul.f32 %v2771_v48, %v2911_v0  ;;  %v1076_v28 = vmul.f32 %v2771_v48, %v2913_v9  ;;  %v1399_v62 = vsel %vm1239_vm15, %v1159_v7, %v1319_v22  ;;  %v1039_v29 = vmul.f32 %v2925_v16, %v2771_v48  ;;  %v960_v0 = vpop.f32.mrf.mxu1  ;;  %v2491_v16 = vpop.f32.mrf.mxu0 }
 0x135   : > { %2363 = vst [vmem:[%s2801_s24 + $0x50] sm:$0xff] %v2207_v21   ;;  %v1079_v30 = vmul.f32 %v2927_v17, %v2771_v48  ;;  %v1037_v32 = vmul.f32 %v2771_v48, %v2929_v23  ;;  %v2307_v33 = vpack.c.bf16 %v1399_v62, %v1398_v11  ;;  %v1364_v36 = vsel %vm1204_vm0, %v1124_v8, %v1284_v25 }
 0x136   : > { %vm1244_vm1 = vcmp.ge.f32.partialorder %v1164_v18, 0.0  ;;  %v1324_v37 = vmul.f32 0.01, %v1164_v18  ;;  %v1122_v39 = vadd.f32 %v2776_v50, %v1036_v26  ;;  %v1162_v9 = vadd.f32 %v2776_v50, %v1076_v28  ;;  %v3003_v51 = vpop.f32.mrf.mxu1 }
 0x137   : > { %v1125_v40 = vadd.f32 %v2776_v50, %v1039_v29  ;;  %v1165_v43 = vadd.f32 %v2776_v50, %v1079_v30  ;;  %2383 = vst [vmem:[%s2801_s24 + $0xf0] sm:$0xff] %v2307_v33   ;;  %v1123_v17 = vadd.f32 %v2776_v50, %v1037_v32  ;;  %v1077_v23 = vmul.f32 %v2771_v48, %v2933_v31  ;;  %v3005_v31 = vpop.f32.mrf.mxu0 }
 0x138   : > { %v1404_v44 = vsel %vm1244_vm1, %v1164_v18, %v1324_v37  ;;  %v1042_v45 = vmul.f32 %v2937_v38, %v2771_v48  ;;  %vm1202_vm2 = vcmp.ge.f32.partialorder %v1122_v39, 0.0  ;;  %v1282_v46 = vmul.f32 0.01, %v1122_v39  ;;  %v973_v3 = vpop.f32.mrf.mxu1 }
 0x139   : > { %vm1242_vm3 = vcmp.ge.f32.partialorder %v1162_v9, 0.0  ;;  %v1322_v27 = vmul.f32 0.01, %v1162_v9  ;;  %vm1205_vm4 = vcmp.ge.f32.partialorder %v1125_v40, 0.0  ;;  %v1285_v47 = vmul.f32 0.01, %v1125_v40  ;;  %v2492_v54 = vpop.f32.mrf.mxu0 }
 0x13a   : > { %vm1245_vm5 = vcmp.ge.f32.partialorder %v1165_v43, 0.0  ;;  %v1325_v49 = vmul.f32 0.01, %v1165_v43  ;;  %v1362_v56 = vsel %vm1202_vm2, %v1122_v39, %v1282_v46  ;;  %vm1203_vm6 = vcmp.ge.f32.partialorder %v1123_v17, 0.0  ;;  %v2532_v21 = vpop.f32.mrf.mxu1 }
 0x13b   : > { %v1402_v57 = vsel %vm1242_vm3, %v1162_v9, %v1322_v27  ;;  %v1283_v34 = vmul.f32 0.01, %v1123_v17  ;;  %v1365_v35 = vsel %vm1205_vm4, %v1125_v40, %v1285_v47  ;;  %v1163_v59 = vadd.f32 %v2776_v50, %v1077_v23  ;;  %v816_v25 = vpop.f32.mrf.mxu0 }
 0x13c   : > { %v1405_v38 = vsel %vm1245_vm5, %v1165_v43, %v1325_v49  ;;  %v1128_v41 = vadd.f32 %v2776_v50, %v1042_v45  ;;  %v2222_v60 = vpack.c.bf16 %v1365_v35, %v1364_v36  ;;  %v1082_v61 = vmul.f32 %v2953_v52, %v2771_v48  ;;  %v976_v33 = vpop.f32.mrf.mxu1 }
 0x13d   : > { %v2322_v42 = vpack.c.bf16 %v1405_v38, %v1404_v44  ;;  %v1363_v53 = vsel %vm1203_vm6, %v1123_v17, %v1283_v34  ;;  %vm1243_vm7 = vcmp.ge.f32.partialorder %v1163_v59, 0.0  ;;  %v1323_v2 = vmul.f32 0.01, %v1163_v59  ;;  %v2495_v9 = vpop.f32.mrf.mxu0 }
 0x13e   : > { %v2217_v1 = vpack.c.bf16 %v1363_v53, %v1362_v56  ;;  %vm1208_vm8 = vcmp.ge.f32.partialorder %v1128_v41, 0.0  ;;  %2366 = vst [vmem:[%s2801_s24 + $0x68] sm:$0xff] %v2222_v60   ;;  %v1288_v5 = vmul.f32 0.01, %v1128_v41  ;;  %v1168_v63 = vadd.f32 %v2776_v50, %v1082_v61  ;;  %v2535_v49 = vpop.f32.mrf.mxu1 }
 0x13f   : > { %2386 = vst [vmem:[%s2801_s24 + $0x108] sm:$0xff] %v2322_v42   ;;  %v1040_v10 = vmul.f32 %v2771_v48, %v2955_v58  ;;  %v1080_v11 = vmul.f32 %v2771_v48, %v2967_v4  ;;  %v1403_v52 = vsel %vm1243_vm7, %v1163_v59, %v1323_v2  ;;  %v1043_v12 = vmul.f32 %v2969_v6, %v2771_v48  ;;  %v829_v35 = vpop.f32.mrf.mxu0 }
 0x140   : > { %2365 = vst [vmem:[%s2801_s24 + $0x60] sm:$0xff] %v2217_v1   ;;  %v1083_v55 = vmul.f32 %v2975_v20, %v2771_v48  ;;  %v1041_v7 = vmul.f32 %v2771_v48, %v2977_v24  ;;  %v2317_v8 = vpack.c.bf16 %v1403_v52, %v1402_v57  ;;  %v1368_v13 = vsel %vm1208_vm8, %v1128_v41, %v1288_v5 }
 0x141   : > { %vm1248_vm9 = vcmp.ge.f32.partialorder %v1168_v63, 0.0  ;;  %v1328_v58 = vmul.f32 0.01, %v1168_v63  ;;  %v1126_v14 = vadd.f32 %v2776_v50, %v1040_v10  ;;  %v1166_v4 = vadd.f32 %v2776_v50, %v1080_v11  ;;  %v2496_v11 = vpop.f32.mrf.mxu0 }
 0x142   : > { %v1129_v15 = vadd.f32 %v2776_v50, %v1043_v12  ;;  %v1169_v19 = vadd.f32 %v2776_v50, %v1083_v55  ;;  %2385 = vst [vmem:[%s2801_s24 + $0x100] sm:$0xff] %v2317_v8   ;;  %v1127_v20 = vadd.f32 %v2776_v50, %v1041_v7  ;;  %v1081_v22 = vmul.f32 %v2771_v48, %v960_v0 }
 0x143   : > { %v1408_v6 = vsel %vm1248_vm9, %v1168_v63, %v1328_v58  ;;  %v1046_v24 = vmul.f32 %v2491_v16, %v2771_v48  ;;  %vm1206_vm10 = vcmp.ge.f32.partialorder %v1126_v14, 0.0  ;;  %v1286_v18 = vmul.f32 0.01, %v1126_v14 }
 0x144   : > { %vm1246_vm11 = vcmp.ge.f32.partialorder %v1166_v4, 0.0  ;;  %v1326_v26 = vmul.f32 0.01, %v1166_v4  ;;  %vm1209_vm12 = vcmp.ge.f32.partialorder %v1129_v15, 0.0  ;;  %v1289_v28 = vmul.f32 0.01, %v1129_v15 }
 0x145   : > { %vm1249_vm13 = vcmp.ge.f32.partialorder %v1169_v19, 0.0  ;;  %v1329_v62 = vmul.f32 0.01, %v1169_v19  ;;  %v1366_v29 = vsel %vm1206_vm10, %v1126_v14, %v1286_v18  ;;  %vm1207_vm14 = vcmp.ge.f32.partialorder %v1127_v20, 0.0  ;;  %v2625_v18 = vld [vmem:[%s3086_s3] ss:$0 sm:$0xff] }
 0x146   : > { %v1406_v30 = vsel %vm1246_vm11, %v1166_v4, %v1326_v26  ;;  %v1287_v32 = vmul.f32 0.01, %v1127_v20  ;;  %v1369_v36 = vsel %vm1209_vm12, %v1129_v15, %v1289_v28  ;;  %v1167_v0 = vadd.f32 %v2776_v50, %v1081_v22  ;;  %v2626_v26 = vld [vmem:[%s3085_s2] ss:$0 sm:$0xff] }
 0x147   : > { %v1409_v37 = vsel %vm1249_vm13, %v1169_v19, %v1329_v62  ;;  %v1132_v39 = vadd.f32 %v2776_v50, %v1046_v24  ;;  %v2232_v40 = vpack.c.bf16 %v1369_v36, %v1368_v13  ;;  %v1086_v44 = vmul.f32 %v3003_v51, %v2771_v48 }
 0x148   : > { %v2332_v43 = vpack.c.bf16 %v1409_v37, %v1408_v6  ;;  %v1367_v16 = vsel %vm1207_vm14, %v1127_v20, %v1287_v32  ;;  %vm1247_vm15 = vcmp.ge.f32.partialorder %v1167_v0, 0.0  ;;  %v1327_v23 = vmul.f32 0.01, %v1167_v0  ;;  %v832_v6 = vpop.f32.mrf.mxu0 }
 0x149   : > { %v2227_v17 = vpack.c.bf16 %v1367_v16, %v1366_v29  ;;  %vm1212_vm0 = vcmp.ge.f32.partialorder %v1132_v39, 0.0  ;;  %2368 = vst [vmem:[%s2801_s24 + $0x78] sm:$0xff] %v2232_v40   ;;  %v1292_v45 = vmul.f32 0.01, %v1132_v39  ;;  %v1172_v46 = vadd.f32 %v2776_v50, %v1086_v44 }
 0x14a   : > { %2388 = vst [vmem:[%s2801_s24 + $0x118] sm:$0xff] %v2332_v43   ;;  %v1044_v27 = vmul.f32 %v2771_v48, %v3005_v31  ;;  %v1084_v47 = vmul.f32 %v2771_v48, %v973_v3  ;;  %v1407_v56 = vsel %vm1247_vm15, %v1167_v0, %v1327_v23  ;;  %v1047_v51 = vmul.f32 %v2492_v54, %v2771_v48  ;;  %v989_v3 = vpop.f32.mrf.mxu1 }
 0x14b   : > { %2367 = vst [vmem:[%s2801_s24 + $0x70] sm:$0xff] %v2227_v17   ;;  %v1087_v57 = vmul.f32 %v2532_v21, %v2771_v48  ;;  %v1045_v34 = vmul.f32 %v2771_v48, %v816_v25  ;;  %v2327_v38 = vpack.c.bf16 %v1407_v56, %v1406_v30  ;;  %vm1252_vm1 = vcmp.ge.f32.partialorder %v1172_v46, 0.0 }
 0x14c   : > { %v1332_v59 = vmul.f32 0.01, %v1172_v46  ;;  %v1130_v41 = vadd.f32 %v2776_v50, %v1044_v27  ;;  %v1170_v31 = vadd.f32 %v2776_v50, %v1084_v47  ;;  %v1133_v60 = vadd.f32 %v2776_v50, %v1047_v51  ;;  %v2536_v14 = vpop.f32.mrf.mxu1 }
 0x14d   : > { %v1173_v42 = vadd.f32 %v2776_v50, %v1087_v57  ;;  %2387 = vst [vmem:[%s2801_s24 + $0x110] sm:$0xff] %v2327_v38   ;;  %v1372_v53 = vsel %vm1212_vm0, %v1132_v39, %v1292_v45  ;;  %v1131_v61 = vadd.f32 %v2776_v50, %v1045_v34  ;;  %v1085_v1 = vmul.f32 %v2771_v48, %v976_v33 }
 0x14e   : > { %v1050_v2 = vmul.f32 %v2495_v9, %v2771_v48  ;;  %v1412_v5 = vsel %vm1252_vm1, %v1172_v46, %v1332_v59  ;;  %vm1210_vm2 = vcmp.ge.f32.partialorder %v1130_v41, 0.0  ;;  %v1290_v63 = vmul.f32 0.01, %v1130_v41  ;;  %v992_v33 = vpop.f32.mrf.mxu1 }
 0x14f   : > { %v1330_v10 = vmul.f32 0.01, %v1170_v31  ;;  %vm1213_vm3 = vcmp.ge.f32.partialorder %v1133_v60, 0.0  ;;  %v1293_v54 = vmul.f32 0.01, %v1133_v60  ;;  %vm1253_vm4 = vcmp.ge.f32.partialorder %v1173_v42, 0.0 }
 0x150   : > { %v1333_v52 = vmul.f32 0.01, %v1173_v42  ;;  %v1370_v12 = vsel %vm1210_vm2, %v1130_v41, %v1290_v63  ;;  %vm1250_vm5 = vcmp.ge.f32.partialorder %v1170_v31, 0.0  ;;  %vm1211_vm6 = vcmp.ge.f32.partialorder %v1131_v61, 0.0 }
 0x151   : > { %v1291_v55 = vmul.f32 0.01, %v1131_v61  ;;  %v1373_v7 = vsel %vm1213_vm3, %v1133_v60, %v1293_v54  ;;  %v1171_v13 = vadd.f32 %v2776_v50, %v1085_v1  ;;  %v1136_v58 = vadd.f32 %v2776_v50, %v1050_v2 }
 0x152   : > { %v1413_v8 = vsel %vm1253_vm4, %v1173_v42, %v1333_v52  ;;  %v2242_v4 = vpack.c.bf16 %v1373_v7, %v1372_v53  ;;  %v1090_v21 = vmul.f32 %v2535_v49, %v2771_v48  ;;  %v1410_v20 = vsel %vm1250_vm5, %v1170_v31, %v1330_v10 }
 0x153   : > { %v2342_v15 = vpack.c.bf16 %v1413_v8, %v1412_v5  ;;  %v1371_v19 = vsel %vm1211_vm6, %v1131_v61, %v1291_v55  ;;  %vm1251_vm7 = vcmp.ge.f32.partialorder %v1171_v13, 0.0  ;;  %v1331_v24 = vmul.f32 0.01, %v1171_v13 }
 0x154   : > { %v2237_v22 = vpack.c.bf16 %v1371_v19, %v1370_v12  ;;  %2370 = vst [vmem:[%s2801_s24 + $0x88] sm:$0xff] %v2242_v4   ;;  %v1296_v25 = vmul.f32 0.01, %v1136_v58  ;;  %v1176_v50 = vadd.f32 %v2625_v18, %v1090_v21  ;;  %v1048_v28 = vmul.f32 %v2626_v26, %v829_v35 }
 0x155   : > { %2390 = vst [vmem:[%s2801_s24 + $0x128] sm:$0xff] %v2342_v15   ;;  %v1088_v48 = vmul.f32 %v2626_v26, %v989_v3  ;;  %v1411_v62 = vsel %vm1251_vm7, %v1171_v13, %v1331_v24  ;;  %v1051_v29 = vmul.f32 %v2626_v26, %v2496_v11  ;;  %v1091_v30 = vmul.f32 %v2626_v26, %v2536_v14 }
 0x156   : > { %2369 = vst [vmem:[%s2801_s24 + $0x80] sm:$0xff] %v2237_v22   ;;  %v1049_v32 = vmul.f32 %v2626_v26, %v832_v6  ;;  %v2337_v36 = vpack.c.bf16 %v1411_v62, %v1410_v20  ;;  %vm1216_vm8 = vcmp.ge.f32.partialorder %v1136_v58, 0.0  ;;  %v1336_v37 = vmul.f32 0.01, %v1176_v50 }
 0x157   : > { %v1134_v0 = vadd.f32 %v2625_v18, %v1048_v28  ;;  %v1174_v39 = vadd.f32 %v2625_v18, %v1088_v48  ;;  %v1137_v9 = vadd.f32 %v2625_v18, %v1051_v29  ;;  %v1177_v40 = vadd.f32 %v2625_v18, %v1091_v30 }
 0x158   : > { %2389 = vst [vmem:[%s2801_s24 + $0x120] sm:$0xff] %v2337_v36   ;;  %vm1256_vm9 = vcmp.ge.f32.partialorder %v1176_v50, 0.0  ;;  %v1135_v43 = vadd.f32 %v2625_v18, %v1049_v32  ;;  %v1089_v16 = vmul.f32 %v2626_v26, %v992_v33  ;;  %v1376_v44 = vsel %vm1216_vm8, %v1136_v58, %v1296_v25 }
 0x159   : > { %vm1214_vm10 = vcmp.ge.f32.partialorder %v1134_v0, 0.0  ;;  %v1294_v17 = vmul.f32 0.01, %v1134_v0  ;;  %vm1217_vm11 = vcmp.ge.f32.partialorder %v1137_v9, 0.0  ;;  %v1297_v23 = vmul.f32 0.01, %v1137_v9 }
 0x15a   : > { %vm1257_vm12 = vcmp.ge.f32.partialorder %v1177_v40, 0.0  ;;  %v1337_v45 = vmul.f32 0.01, %v1177_v40  ;;  %v1416_v46 = vsel %vm1256_vm9, %v1176_v50, %v1336_v37  ;;  %vm1254_vm13 = vcmp.ge.f32.partialorder %v1174_v39, 0.0 }
 0x15b   : > { %vm1215_vm14 = vcmp.ge.f32.partialorder %v1135_v43, 0.0  ;;  %v1295_v27 = vmul.f32 0.01, %v1135_v43  ;;  %v1334_v47 = vmul.f32 0.01, %v1174_v39  ;;  %v1377_v49 = vsel %vm1217_vm11, %v1137_v9, %v1297_v23 }
 0x15c   : > { %v1417_v56 = vsel %vm1257_vm12, %v1177_v40, %v1337_v45  ;;  %v1175_v51 = vadd.f32 %v2625_v18, %v1089_v16  ;;  %v1374_v57 = vsel %vm1214_vm10, %v1134_v0, %v1294_v17  ;;  %v2252_v34 = vpack.c.bf16 %v1377_v49, %v1376_v44 }
 0x15d   : > { %v2352_v35 = vpack.c.bf16 %v1417_v56, %v1416_v46  ;;  %v1375_v38 = vsel %vm1215_vm14, %v1135_v43, %v1295_v27  ;;  %v1414_v31 = vsel %vm1254_vm13, %v1174_v39, %v1334_v47 }
 0x15e   : > { %v2247_v59 = vpack.c.bf16 %v1375_v38, %v1374_v57  ;;  %vm1255_vm15 = vcmp.ge.f32.partialorder %v1175_v51, 0.0  ;;  %v1335_v41 = vmul.f32 0.01, %v1175_v51  ;;  %2372 = vst [vmem:[%s2801_s24 + $0x98] sm:$0xff] %v2252_v34  }
 0x15f   : > { %2392 = vst [vmem:[%s2801_s24 + $0x138] sm:$0xff] %v2352_v35  }
 0x160   : > { %2371 = vst [vmem:[%s2801_s24 + $0x90] sm:$0xff] %v2247_v59   ;;  %v1415_v60 = vsel %vm1255_vm15, %v1175_v51, %v1335_v41 }
 0x161   : > { %v2347_v42 = vpack.c.bf16 %v1415_v60, %v1414_v31 }
 0x163   : > { %2391 = vst [vmem:[%s2801_s24 + $0x130] sm:$0xff] %v2347_v42  }
 0x164 PF: > { %s14_s17 = sadd.s32 1, %s2649_s17   ;;  %s3088_s15 = smov %s2645_s16 }
 0x165   : > { %p11_p5 = scmp.ge.s32.totalorder %s14_s17, 4   ;;  %s3089_s16 = smov %s3091_s18 }
 0x167   :  { %13 = sbr.rel (!%p11_p5) target bundleno = 2 (0x2), region = 75 }

// kernel: vae_forward.9
= control target key start
LH: loop header
LB: loop body
LE: loop exit
PB: predicated region body
PF: predicated region fallthrough
CT: control target
= control target key end

     0   :  { %s1983_s15 = smov 0   ;;  %s1985_s16 = smov 0   ;;  %s2349_s0 = inlined_call_operand.vmem [shape: bf16[160,896], index: 0, kind: input, shape index: {}]   ;;  %s2350_s1 = inlined_call_operand.vmem [shape: bf16[896,128], index: 1, kind: input, shape index: {}]   ;;  %s2351_s2 = inlined_call_operand.vmem [shape: f32[1,128], index: 2, kind: input, shape index: {}]   ;;  %s2352_s3 = inlined_call_operand.vmem [shape: f32[1,128], index: 3, kind: input, shape index: {}]   ;;  %s2353_s4 = inlined_call_operand.vmem [shape: bf16[160,128], index: 4, kind: output, shape index: {}]  }
   0x1   :  { %s1987_s17 = smov 0  }
   0x2 LB: > { %s26_s18 = sadd.s32 1, %s1950_s16  ;;  %p1465_p0 = scmp.ge.s32.totalorder %s1954_s17, 1  ;;  %s1954_s17 = sphi %s1987_s17, %s14_s17   ;;  %s1950_s16 = sphi %s1985_s16, %s2355_s16   ;;  %s1946_s15 = sphi %s1983_s15, %s2354_s15  }
   0x3   : > { %p28_p1 = scmp.ge.s32.totalorder %s26_s18, 2  ;;  %p203_p2 = scmp.lt.s32.totalorder %s1954_s17, 3 }
   0x5   : > { %s2357_s18 = smov (%p28_p1, %s26_s18), 0  ;;  %p204_p3 = pnand %p1465_p0, %p203_p2 }
   0x6   : > { %s243_s25 = smul.u32 (!%p204_p3), 10, %s1946_s15 }
   0x7   : > { %207 = sbr.rel (%p204_p3) target bundleno = 333 (0x14d), region = 36 }
   0x8   : > { %p244_p4 = scmp.lt.s32.totalorder (!%p204_p3), %s243_s25, 19 }
   0xc   : > { %v1826_v0 = vld [vmem:[%s2350_s1 + $0x78] sm:$0xff]   ;;  %v1830_v4 = vld [vmem:[%s2350_s1 + $0x70] sm:$0xff]   ;;  %v1834_v8 = vld [vmem:[%s2350_s1 + $0x68] sm:$0xff]   ;;  %s2359_s25 = smov (!%p244_p4, %s243_s25), 19  ;;  %v1956_v36 = vmov 0.0   ;;  %vm1957_vm0 = vmmov 0  }
   0xd   : > { %v1827_v1 = vld [vmem:[%s2350_s1 + $0xf8] sm:$0xff]   ;;  %1612 = vmatprep.subr.bf16.mxu0 %v1826_v0  ;;  %v1831_v5 = vld [vmem:[%s2350_s1 + $0xf0] sm:$0xff]   ;;  %v1835_v9 = vld [vmem:[%s2350_s1 + $0xe8] sm:$0xff]   ;;  %s1799_s28 = smul.u32 28, %s2359_s25  ;;  %s1467_s5 = sshll.u32 %s2359_s25, 2 }
   0xe   : > { %v1828_v2 = vld [vmem:[%s2350_s1 + $0x38] sm:$0xff]   ;;  %1658 = vmatprep.subr.bf16.mxu1 %v1827_v1  ;;  %v1832_v6 = vld [vmem:[%s2350_s1 + $0x30] sm:$0xff]   ;;  %v1836_v10 = vld [vmem:[%s2350_s1 + $0x28] sm:$0xff]   ;;  %s2302_s25 = scalar_lea.vmem %s2353_s4, %s1467_s5 }
   0xf   : > { %v1829_v3 = vld [vmem:[%s2350_s1 + $0xb8] sm:$0xff]   ;;  %1613 = vmatpush3.bf16.msra.mxu0 %v1828_v2  ;;  %v1833_v7 = vld [vmem:[%s2350_s1 + $0xb0] sm:$0xff]   ;;  %v1837_v11 = vld [vmem:[%s2350_s1 + $0xa8] sm:$0xff]   ;;  %s2100_s12 = scalar_lea.vmem %s2349_s0, %s1799_s28 }
  0x10   : > { %1659 = vmatpush3.bf16.msra.mxu1 %v1829_v3  ;;  %1614 = vmatprep.subr.bf16.mxu0 %v1830_v4  ;;  %v1838_v12 = vld [vmem:[%s2350_s1 + $0x60] sm:$0xff]   ;;  %v1842_v16 = vld [vmem:[%s2350_s1 + $0x58] sm:$0xff]   ;;  %v1846_v20 = vld [vmem:[%s2350_s1 + $0x50] sm:$0xff]  }
  0x11   : > { %1660 = vmatprep.subr.bf16.mxu1 %v1831_v5  ;;  %v1839_v13 = vld [vmem:[%s2350_s1 + $0xe0] sm:$0xff]   ;;  %v1843_v17 = vld [vmem:[%s2350_s1 + $0xd8] sm:$0xff]   ;;  %v1847_v21 = vld [vmem:[%s2350_s1 + $0xd0] sm:$0xff]  }
  0x12   : > { %v1840_v14 = vld [vmem:[%s2350_s1 + $0x20] sm:$0xff]   ;;  %v1844_v18 = vld [vmem:[%s2350_s1 + $0x18] sm:$0xff]   ;;  %v1848_v22 = vld [vmem:[%s2350_s1 + $0x10] sm:$0xff]  }
  0x13   : > { %1615 = vmatpush3.bf16.msra.mxu0 %v1832_v6  ;;  %v1841_v15 = vld [vmem:[%s2350_s1 + $0xa0] sm:$0xff]   ;;  %v1845_v19 = vld [vmem:[%s2350_s1 + $0x98] sm:$0xff]   ;;  %v1849_v23 = vld [vmem:[%s2350_s1 + $0x90] sm:$0xff]  }
  0x14   : > { %1661 = vmatpush3.bf16.msra.mxu1 %v1833_v7  ;;  %1616 = vmatprep.subr.bf16.mxu0 %v1834_v8  ;;  %v1850_v24 = vld [vmem:[%s2350_s1 + $0x48] sm:$0xff]   ;;  %v1854_v28 = vld [vmem:[%s2350_s1 + $0x40] sm:$0xff]   ;;  %v1864_v37 = vld [vmem:[%s2350_s1 + $0x178] sm:$0xff]  }
  0x15   : > { %1662 = vmatprep.subr.bf16.mxu1 %v1835_v9  ;;  %v1851_v25 = vld [vmem:[%s2350_s1 + $0xc8] sm:$0xff]   ;;  %v1855_v29 = vld [vmem:[%s2350_s1 + $0xc0] sm:$0xff]   ;;  %v1865_v38 = vld [vmem:[%s2350_s1 + $0x138] sm:$0xff]  }
  0x16   : > { %v1852_v26 = vld [vmem:[%s2350_s1 + $0x8] sm:$0xff]   ;;  %v1856_v30 = vld [vmem:[%s2350_s1] sm:$0xff]   ;;  %v1866_v39 = vld [vmem:[%s2350_s1 + $0x170] sm:$0xff]  }
  0x17   : > { %1617 = vmatpush3.bf16.msra.mxu0 %v1836_v10  ;;  %v1853_v27 = vld [vmem:[%s2350_s1 + $0x88] sm:$0xff]   ;;  %v1857_v31 = vld [vmem:[%s2350_s1 + $0x80] sm:$0xff]   ;;  %v1867_v40 = vld [vmem:[%s2350_s1 + $0x130] sm:$0xff]  }
  0x18   : > { %1663 = vmatpush3.bf16.msra.mxu1 %v1837_v11  ;;  %1618 = vmatprep.subr.bf16.mxu0 %v1838_v12  ;;  %v1858_v32 = vld [vmem:[%s2100_s12] ss:$28 sps:$4 sm:$0xff]   ;;  %v1861_v34 = vld [vmem:[%s2100_s12 + $0x8] ss:$28 sps:$4 sm:$0xff]   ;;  %v1873_v44 = vld [vmem:[%s2100_s12 + $0x38] ss:$28 sps:$4 sm:$0xff]  }
  0x19   : > { %1664 = vmatprep.subr.bf16.mxu1 %v1839_v13  ;;  %v1860_v33 = vld [vmem:[%s2100_s12 + $0x4] ss:$28 sps:$4 sm:$0xff]   ;;  %v1863_v35 = vld [vmem:[%s2100_s12 + $0xc] ss:$28 sps:$4 sm:$0xff]   ;;  %v1868_v41 = vld [vmem:[%s2100_s12 + $0x3c] ss:$28 sps:$4 sm:$0xff]  }
  0x1a   : > { %970 = vmatprep.mubr.bf16.mxu0 %v1860_v33  ;;  %1043 = vmatprep.mubr.bf16.mxu1 %v1863_v35  ;;  %v1870_v42 = vld [vmem:[%s2100_s12 + $0x44] ss:$28 sps:$4 sm:$0xff]   ;;  %v1872_v43 = vld [vmem:[%s2350_s1 + $0x1b8] sm:$0xff]   ;;  %v1875_v46 = vld [vmem:[%s2350_s1 + $0x168] sm:$0xff]  }
  0x1b   : > { %1619 = vmatpush3.bf16.msra.mxu0 %v1840_v14  ;;  %v1874_v45 = vld [vmem:[%s2100_s12 + $0x40] ss:$28 sps:$4 sm:$0xff]   ;;  %v1876_v47 = vld [vmem:[%s2350_s1 + $0x128] sm:$0xff]   ;;  %v1877_v48 = vld [vmem:[%s2350_s1 + $0x1b0] sm:$0xff]  }
  0x1c   : > { %1665 = vmatpush3.bf16.msra.mxu1 %v1841_v15  ;;  %1620 = vmatprep.subr.bf16.mxu0 %v1842_v16  ;;  %v1878_v49 = vld [vmem:[%s2100_s12 + $0x74] ss:$28 sps:$4 sm:$0xff]   ;;  %v1880_v50 = vld [vmem:[%s2100_s12 + $0x7c] ss:$28 sps:$4 sm:$0xff]   ;;  %v1882_v51 = vld [vmem:[%s2350_s1 + $0x160] sm:$0xff]  }
  0x1d   : > { %1666 = vmatprep.subr.bf16.mxu1 %v1843_v17  ;;  %v1883_v52 = vld [vmem:[%s2100_s12 + $0x70] ss:$28 sps:$4 sm:$0xff]   ;;  %v1884_v53 = vld [vmem:[%s2100_s12 + $0x78] ss:$28 sps:$4 sm:$0xff]   ;;  %v1885_v54 = vld [vmem:[%s2350_s1 + $0x120] sm:$0xff]  }
  0x1e   : > { %v1886_v55 = vld [vmem:[%s2350_s1 + $0x1a8] sm:$0xff]   ;;  %v1887_v56 = vld [vmem:[%s2350_s1 + $0x158] sm:$0xff]   ;;  %v1889_v58 = vld [vmem:[%s2350_s1 + $0x1a0] sm:$0xff]  }
  0x1f   : > { %1621 = vmatpush3.bf16.msra.mxu0 %v1844_v18  ;;  %v1888_v57 = vld [vmem:[%s2350_s1 + $0x118] sm:$0xff]   ;;  %v1890_v59 = vld [vmem:[%s2100_s12 + $0xac] ss:$28 sps:$4 sm:$0xff]   ;;  %v1892_v60 = vld [vmem:[%s2100_s12 + $0xb4] ss:$28 sps:$4 sm:$0xff]  }
  0x20   : > { %1667 = vmatpush3.bf16.msra.mxu1 %v1845_v19  ;;  %1622 = vmatprep.subr.bf16.mxu0 %v1846_v20  ;;  %v1894_v61 = vld [vmem:[%s2100_s12 + $0xa8] ss:$28 sps:$4 sm:$0xff]   ;;  %v1895_v62 = vld [vmem:[%s2100_s12 + $0xb0] ss:$28 sps:$4 sm:$0xff]   ;;  %v1898_v1 = vld [vmem:[%s2350_s1 + $0x198] sm:$0xff]  }
  0x21   : > { %1668 = vmatprep.subr.bf16.mxu1 %v1847_v21  ;;  %v1896_v63 = vld [vmem:[%s2350_s1 + $0x150] sm:$0xff]   ;;  %v1899_v2 = vld [vmem:[%s2350_s1 + $0x148] sm:$0xff]   ;;  %v1901_v4 = vld [vmem:[%s2100_s12 + $0xe4] ss:$28 sps:$4 sm:$0xff]  }
  0x22   : > { %v1897_v0 = vld [vmem:[%s2350_s1 + $0x110] sm:$0xff]   ;;  %v1903_v5 = vld [vmem:[%s2100_s12 + $0xec] ss:$28 sps:$4 sm:$0xff]   ;;  %v1906_v7 = vld [vmem:[%s2100_s12 + $0xe0] ss:$28 sps:$4 sm:$0xff]  }
  0x23   : > { %1623 = vmatpush3.bf16.msra.mxu0 %v1848_v22  ;;  %v1900_v3 = vld [vmem:[%s2350_s1 + $0x190] sm:$0xff]   ;;  %v1905_v6 = vld [vmem:[%s2350_s1 + $0x108] sm:$0xff]   ;;  %v1909_v10 = vld [vmem:[%s2350_s1 + $0x140] sm:$0xff]  }
  0x24   : > { %1669 = vmatpush3.bf16.msra.mxu1 %v1849_v23  ;;  %1624 = vmatprep.subr.bf16.mxu0 %v1850_v24  ;;  %v1907_v8 = vld [vmem:[%s2100_s12 + $0xe8] ss:$28 sps:$4 sm:$0xff]   ;;  %v1914_v13 = vld [vmem:[%s2100_s12 + $0x14] ss:$28 sps:$4 sm:$0xff]   ;;  %v1922_v20 = vld [vmem:[%s2100_s12 + $0x80] ss:$28 sps:$4 sm:$0xff]  }
  0x25   : > { %1670 = vmatprep.subr.bf16.mxu1 %v1851_v25  ;;  %v1908_v9 = vld [vmem:[%s2350_s1 + $0x188] sm:$0xff]   ;;  %v1910_v11 = vld [vmem:[%s2350_s1 + $0x100] sm:$0xff]   ;;  %v1915_v15 = vld [vmem:[%s2100_s12 + $0x18] ss:$28 sps:$4 sm:$0xff]  }
  0x26   : > { %v1911_v12 = vld [vmem:[%s2350_s1 + $0x180] sm:$0xff]   ;;  %v1912_v14 = vld [vmem:[%s2100_s12 + $0x10] ss:$28 sps:$4 sm:$0xff]   ;;  %v1924_v22 = vld [vmem:[%s2100_s12 + $0xbc] ss:$28 sps:$4 sm:$0xff]  }
  0x27   : > { %1625 = vmatpush3.bf16.msra.mxu0 %v1852_v26  ;;  %v1916_v16 = vld [vmem:[%s2100_s12 + $0x4c] ss:$28 sps:$4 sm:$0xff]   ;;  %v1920_v19 = vld [vmem:[%s2100_s12 + $0x84] ss:$28 sps:$4 sm:$0xff]   ;;  %v1926_v23 = vld [vmem:[%s2100_s12 + $0xb8] ss:$28 sps:$4 sm:$0xff]  }
  0x28   : > { %1671 = vmatpush3.bf16.msra.mxu1 %v1853_v27  ;;  %1626 = vmatprep.subr.bf16.mxu0 %v1854_v28  ;;  %v1918_v17 = vld [vmem:[%s2100_s12 + $0x48] ss:$28 sps:$4 sm:$0xff]   ;;  %v1919_v18 = vld [vmem:[%s2100_s12 + $0x50] ss:$28 sps:$4 sm:$0xff]   ;;  %v1927_v24 = vld [vmem:[%s2100_s12 + $0xc0] ss:$28 sps:$4 sm:$0xff]  }
  0x29   : > { %1672 = vmatprep.subr.bf16.mxu1 %v1855_v29  ;;  %v1923_v21 = vld [vmem:[%s2100_s12 + $0x88] ss:$28 sps:$4 sm:$0xff]   ;;  %v1928_v25 = vld [vmem:[%s2100_s12 + $0xf4] ss:$28 sps:$4 sm:$0xff]  }
  0x2a   : > { %v1930_v26 = vld [vmem:[%s2100_s12 + $0xf0] ss:$28 sps:$4 sm:$0xff]   ;;  %v1931_v27 = vld [vmem:[%s2100_s12 + $0xf8] ss:$28 sps:$4 sm:$0xff]  }
  0x2b   : > { %1627 = vmatpush3.bf16.msra.mxu0 %v1856_v30 }
  0x2c   : > { %1673 = vmatpush3.bf16.msra.mxu1 %v1857_v31  ;;  %1704 = vmatprep.subr.bf16.mxu0 %v1864_v37 }
  0x2d   : > { %1763 = vmatprep.subr.bf16.mxu1 %v1956_v36 }
  0x2e   : > { %971 = vmatmul.mubr.bf16.vlgmr.msra.gmra.mxu0 %v1858_v32 }
  0x2f   : > { %1044 = vmatmul.mubr.bf16.vlgmr.msra.gmra.mxu1 %v1861_v34  ;;  %1705 = vmatpush3.bf16.msra.mxu0 %v1865_v38 }
  0x30   : > { %1706 = vmatprep.subr.bf16.mxu0 %v1866_v39  ;;  %978 = vmatprep.mubr.bf16.mxu0 %v1868_v41 }
  0x31   : > { %1051 = vmatprep.mubr.bf16.mxu1 %v1870_v42  ;;  %1764 = vmatpush3.bf16.msra.mxu1 %v1872_v43 }
  0x32   : > { %1765 = vmatprep.subr.bf16.mxu1 %v1956_v36 }
  0x33   : > { %1707 = vmatpush3.bf16.msra.mxu0 %v1867_v40 }
  0x34   : > { %1708 = vmatprep.subr.bf16.mxu0 %v1875_v46 }
  0x35   : > { %1766 = vmatpush3.bf16.msra.mxu1 %v1877_v48 }
  0x36   : > { %979 = vmatmul.mubr.bf16.gmra.mxu0 %v1873_v44  ;;  %1767 = vmatprep.subr.bf16.mxu1 %v1956_v36 }
  0x37   : > { %1052 = vmatmul.mubr.bf16.gmra.mxu1 %v1874_v45  ;;  %1709 = vmatpush3.bf16.msra.mxu0 %v1876_v47 }
  0x38   : > { %986 = vmatprep.mubr.bf16.mxu0 %v1878_v49  ;;  %1059 = vmatprep.mubr.bf16.mxu1 %v1880_v50 }
  0x39   : > { %1710 = vmatprep.subr.bf16.mxu0 %v1882_v51  ;;  %1768 = vmatpush3.bf16.msra.mxu1 %v1886_v55 }
  0x3a   : > { %1769 = vmatprep.subr.bf16.mxu1 %v1956_v36 }
  0x3b   : > { %1711 = vmatpush3.bf16.msra.mxu0 %v1885_v54 }
  0x3c   : > { %1712 = vmatprep.subr.bf16.mxu0 %v1887_v56 }
  0x3d   : > { %1770 = vmatpush3.bf16.msra.mxu1 %v1889_v58 }
  0x3e   : > { %987 = vmatmul.mubr.bf16.gmra.mxu0 %v1883_v52  ;;  %1771 = vmatprep.subr.bf16.mxu1 %v1956_v36 }
  0x3f   : > { %1060 = vmatmul.mubr.bf16.gmra.mxu1 %v1884_v53  ;;  %1713 = vmatpush3.bf16.msra.mxu0 %v1888_v57 }
  0x40   : > { %994 = vmatprep.mubr.bf16.mxu0 %v1890_v59  ;;  %1067 = vmatprep.mubr.bf16.mxu1 %v1892_v60 }
  0x41   : > { %1714 = vmatprep.subr.bf16.mxu0 %v1896_v63  ;;  %1772 = vmatpush3.bf16.msra.mxu1 %v1898_v1 }
  0x42   : > { %1773 = vmatprep.subr.bf16.mxu1 %v1956_v36 }
  0x43   : > { %1715 = vmatpush3.bf16.msra.mxu0 %v1897_v0 }
  0x44   : > { %1716 = vmatprep.subr.bf16.mxu0 %v1899_v2 }
  0x45   : > { %1774 = vmatpush3.bf16.msra.mxu1 %v1900_v3 }
  0x46   : > { %995 = vmatmul.mubr.bf16.gmra.mxu0 %v1894_v61  ;;  %1775 = vmatprep.subr.bf16.mxu1 %v1956_v36 }
  0x47   : > { %1068 = vmatmul.mubr.bf16.gmra.mxu1 %v1895_v62  ;;  %1002 = vmatprep.mubr.bf16.mxu0 %v1901_v4 }
  0x48   : > { %1075 = vmatprep.mubr.bf16.mxu1 %v1903_v5  ;;  %1717 = vmatpush3.bf16.msra.mxu0 %v1905_v6 }
  0x49   : > { %1718 = vmatprep.subr.bf16.mxu0 %v1909_v10  ;;  %1776 = vmatpush3.bf16.msra.mxu1 %v1908_v9 }
  0x4a   : > { %1777 = vmatprep.subr.bf16.mxu1 %v1956_v36 }
  0x4c   : > { %1719 = vmatpush3.bf16.msra.mxu0 %v1910_v11 }
  0x4d   : > { %1778 = vmatpush3.bf16.msra.mxu1 %v1911_v12 }
  0x4e   : > { %1003 = vmatmul.mubr.bf16.gmra.mxu0 %v1906_v7 }
  0x4f   : > { %1076 = vmatmul.mubr.bf16.gmra.mxu1 %v1907_v8  ;;  %1116 = vmatprep.mubr.bf16.mxu0 %v1914_v13 }
  0x50   : > { %1779 = vmatprep.mubr.msk.bf16.mxu1 %vm1957_vm0, %v1956_v36 }
  0x56   : > { %1117 = vmatmul.mubr.bf16.vlgmr.msra.gmra.mxu0 %v1912_v14 }
  0x57   : > { %1780 = vmatmul.mubr.bf16.vlgmr.msra.gmra.mxu1 %v1915_v15  ;;  %1124 = vmatprep.mubr.bf16.mxu0 %v1916_v16 }
  0x58   : > { %1783 = vmatprep.mubr.msk.bf16.mxu1 %vm1957_vm0, %v1956_v36 }
  0x5e   : > { %1125 = vmatmul.mubr.bf16.gmra.mxu0 %v1918_v17 }
  0x5f   : > { %1784 = vmatmul.mubr.bf16.gmra.mxu1 %v1919_v18  ;;  %1132 = vmatprep.mubr.bf16.mxu0 %v1920_v19  ;;  %v2280_v18 = vld [vmem:[%s2351_s2] ss:$0 sm:$0xff] }
  0x60   : > { %1787 = vmatprep.mubr.msk.bf16.mxu1 %vm1957_vm0, %v1956_v36 }
  0x66   : > { %1133 = vmatmul.mubr.bf16.gmra.mxu0 %v1922_v20 }
  0x67   : > { %1788 = vmatmul.mubr.bf16.gmra.mxu1 %v1923_v21  ;;  %1140 = vmatprep.mubr.bf16.mxu0 %v1924_v22 }
  0x68   : > { %1791 = vmatprep.mubr.msk.bf16.mxu1 %vm1957_vm0, %v1956_v36 }
  0x6e   : > { %1141 = vmatmul.mubr.bf16.gmra.mxu0 %v1926_v23 }
  0x6f   : > { %1792 = vmatmul.mubr.bf16.gmra.mxu1 %v1927_v24  ;;  %1148 = vmatprep.mubr.bf16.mxu0 %v1928_v25  ;;  %v2285_v25 = vld [vmem:[%s2352_s3] ss:$0 sm:$0xff] }
  0x70   : > { %1795 = vmatprep.mubr.msk.bf16.mxu1 %vm1957_vm0, %v1956_v36 }
  0x76   : > { %1149 = vmatmul.mubr.bf16.gmra.mxu0 %v1930_v26 }
  0x77   : > { %1796 = vmatmul.mubr.bf16.gmra.mxu1 %v1931_v27 }
  0xee   : > { %v1628_v28 = vpop.f32.mrf.mxu0 }
  0xef   : > { %v1674_v29 = vpop.f32.mrf.mxu1 }
  0xf0   : > { %v1629_v30 = vpop.f32.mrf.mxu0 }
  0xf1   : > { %v1675_v31 = vpop.f32.mrf.mxu1  ;;  %v1630_v3 = vadd.f32 %v1629_v30, %v1628_v28 }
  0xf2   : > { %v1631_v32 = vpop.f32.mrf.mxu0  ;;  %v1676_v4 = vadd.f32 %v1675_v31, %v1674_v29 }
  0xf3   : > { %v1677_v33 = vpop.f32.mrf.mxu1 }
  0xf4   : > { %v1632_v34 = vpop.f32.mrf.mxu0  ;;  %v1046_v11 = vadd.f32 %v1676_v4, %v1630_v3 }
  0xf5   : > { %v1678_v35 = vpop.f32.mrf.mxu1  ;;  %v1633_v8 = vadd.f32 %v1632_v34, %v1631_v32 }
  0xf6   : > { %v1634_v37 = vpop.f32.mrf.mxu0  ;;  %v1679_v9 = vadd.f32 %v1678_v35, %v1677_v33 }
  0xf7   : > { %v1680_v38 = vpop.f32.mrf.mxu1 }
  0xf8   : > { %v1635_v39 = vpop.f32.mrf.mxu0  ;;  %v1049_v17 = vadd.f32 %v1679_v9, %v1633_v8 }
  0xf9   : > { %v1681_v40 = vpop.f32.mrf.mxu1  ;;  %v1636_v20 = vadd.f32 %v1635_v39, %v1634_v37 }
  0xfa   : > { %v1637_v41 = vpop.f32.mrf.mxu0  ;;  %v1682_v21 = vadd.f32 %v1681_v40, %v1680_v38 }
  0xfb   : > { %v1683_v42 = vpop.f32.mrf.mxu1 }
  0xfc   : > { %v1638_v43 = vpop.f32.mrf.mxu0  ;;  %v1054_v33 = vadd.f32 %v1682_v21, %v1636_v20 }
  0xfd   : > { %v1684_v36 = vpop.f32.mrf.mxu1  ;;  %v1639_v30 = vadd.f32 %v1638_v43, %v1637_v41 }
  0xfe   : > { %v2233_v44 = vpop.f32.mrf.mxu0  ;;  %v1685_v31 = vadd.f32 %v1684_v36, %v1683_v42 }
  0xff   : > { %v2235_v45 = vpop.f32.mrf.mxu1 }
 0x100   : > { %v1641_v46 = vpop.f32.mrf.mxu0 }
 0x101   : > { %v1687_v47 = vpop.f32.mrf.mxu1 }
 0x102   : > { %v2237_v48 = vpop.f32.mrf.mxu0  ;;  %v1688_v8 = vadd.f32 %v1687_v47, %v2235_v45 }
 0x103   : > { %v2239_v49 = vpop.f32.mrf.mxu1 }
 0x104   : > { %v2241_v50 = vpop.f32.mrf.mxu0 }
 0x105   : > { %v2243_v51 = vpop.f32.mrf.mxu1 }
 0x106   : > { %v2245_v52 = vpop.f32.mrf.mxu0  ;;  %v1691_v45 = vadd.f32 %v2243_v51, %v2239_v49 }
 0x107   : > { %v2247_v53 = vpop.f32.mrf.mxu1 }
 0x108   : > { %v2249_v54 = vpop.f32.mrf.mxu0 }
 0x109   : > { %v2251_v55 = vpop.f32.mrf.mxu1 }
 0x10a   : > { %v2253_v56 = vpop.f32.mrf.mxu0 }
 0x10b   : > { %v2255_v57 = vpop.f32.mrf.mxu1 }
 0x10c   : > { %v2257_v58 = vpop.f32.mrf.mxu0 }
 0x10d   : > { %v2259_v59 = vpop.f32.mrf.mxu1 }
 0x10e   : > { %v2261_v60 = vpop.f32.mrf.mxu0 }
 0x10f   : > { %v2263_v61 = vpop.f32.mrf.mxu1 }
 0x110   : > { %v2265_v62 = vpop.f32.mrf.mxu0 }
 0x111   : > { %v2267_v63 = vpop.f32.mrf.mxu1 }
 0x112   : > { %v2269_v0 = vpop.f32.mrf.mxu0 }
 0x113   : > { %v2271_v1 = vpop.f32.mrf.mxu1 }
 0x114   : > { %v2273_v2 = vpop.f32.mrf.mxu0 }
 0x115   : > { %v2275_v5 = vpop.f32.mrf.mxu1 }
 0x116   : > { %v1720_v6 = vpop.f32.mrf.mxu0 }
 0x117   : > { %v1191_v7 = vpop.f32.mrf.mxu1 }
 0x118   : > { %v1721_v10 = vpop.f32.mrf.mxu0 }
 0x119   : > { %v1722_v12 = vadd.f32 %v1721_v10, %v1720_v6  ;;  %v1781_v13 = vpop.f32.mrf.mxu1  ;;  %v1057_v6 = vadd.f32 %v1685_v31, %v1639_v30 }
 0x11a   : > { %v1723_v14 = vpop.f32.mrf.mxu0 }
 0x11b   : > { %v1119_v15 = vadd.f32 %v1722_v12, %v1046_v11  ;;  %v1194_v16 = vpop.f32.mrf.mxu1 }
 0x11c   : > { %v1724_v19 = vpop.f32.mrf.mxu0 }
 0x11d   : > { %v1192_v22 = vadd.f32 %v1191_v7, %v1119_v15  ;;  %v1725_v23 = vadd.f32 %v1724_v19, %v1723_v14  ;;  %v1782_v24 = vpop.f32.mrf.mxu1  ;;  %v1642_v7 = vadd.f32 %v1641_v46, %v2233_v44  ;;  %v1645_v44 = vadd.f32 %v2241_v50, %v2237_v48 }
 0x11e   : > { %v1726_v26 = vpop.f32.mrf.mxu0 }
 0x11f   : > { %v1238_v27 = vmul.f32 %v2280_v18, %v1192_v22  ;;  %v1122_v28 = vadd.f32 %v1725_v23, %v1049_v17  ;;  %v1199_v29 = vpop.f32.mrf.mxu1  ;;  %v1065_v51 = vadd.f32 %v1691_v45, %v1645_v44 }
 0x120   : > { %v1727_v32 = vpop.f32.mrf.mxu0 }
 0x121   : > { %v1254_v34 = vadd.f32 %v2285_v25, %v1238_v27  ;;  %v1195_v35 = vadd.f32 %v1194_v16, %v1122_v28  ;;  %v1728_v37 = vadd.f32 %v1727_v32, %v1726_v26  ;;  %v1785_v38 = vpop.f32.mrf.mxu1  ;;  %v1062_v16 = vadd.f32 %v1688_v8, %v1642_v7 }
 0x122   : > { %v1729_v39 = vpop.f32.mrf.mxu0  ;;  %v1648_v26 = vadd.f32 %v2249_v54, %v2245_v52  ;;  %v1694_v27 = vadd.f32 %v2251_v55, %v2247_v53  ;;  %v1651_v53 = vadd.f32 %v2257_v58, %v2253_v56  ;;  %v1697_v54 = vadd.f32 %v2259_v59, %v2255_v57 }
 0x123   : > { %v1239_v40 = vmul.f32 %v2280_v18, %v1195_v35  ;;  %v1127_v3 = vadd.f32 %v1728_v37, %v1054_v33  ;;  %v1202_v4 = vpop.f32.mrf.mxu1  ;;  %v1274_v41 = vmul.f32 0.01, %v1254_v34  ;;  %vm1264_vm1 = vcmp.ge.f32.partialorder %v1254_v34, 0.0 }
 0x124   : > { %v1730_v42 = vpop.f32.mrf.mxu0  ;;  %v1070_v52 = vadd.f32 %v1694_v27, %v1648_v26  ;;  %v1654_v56 = vadd.f32 %v2265_v62, %v2261_v60  ;;  %v1700_v57 = vadd.f32 %v2267_v63, %v2263_v61  ;;  %v1657_v61 = vadd.f32 %v2273_v2, %v2269_v0 }
 0x125   : > { %v1255_v43 = vadd.f32 %v2285_v25, %v1239_v40  ;;  %v1200_v36 = vadd.f32 %v1199_v29, %v1127_v3  ;;  %v1731_v9 = vadd.f32 %v1730_v42, %v1729_v39  ;;  %v1786_v10 = vpop.f32.mrf.mxu1  ;;  %v1284_v46 = vsel %vm1264_vm1, %v1254_v34, %v1274_v41 }
 0x126   : > { %v1732_v11 = vpop.f32.mrf.mxu0  ;;  %v1073_v10 = vadd.f32 %v1697_v54, %v1651_v53  ;;  %v1078_v60 = vadd.f32 %v1700_v57, %v1654_v56  ;;  %v1703_v62 = vadd.f32 %v2275_v5, %v2271_v1 }
 0x127   : > { %vm1265_vm2 = vcmp.ge.f32.partialorder %v1255_v43, 0.0  ;;  %v1275_v12 = vmul.f32 0.01, %v1255_v43  ;;  %v1240_v13 = vmul.f32 %v2280_v18, %v1200_v36  ;;  %v1130_v14 = vadd.f32 %v1731_v9, %v1057_v6  ;;  %v1207_v15 = vpop.f32.mrf.mxu1 }
 0x128   : > { %v1733_v47 = vpop.f32.mrf.mxu0 }
 0x129   : > { %v1285_v17 = vsel %vm1265_vm2, %v1255_v43, %v1275_v12  ;;  %v1256_v19 = vadd.f32 %v2285_v25, %v1240_v13  ;;  %v1203_v20 = vadd.f32 %v1202_v4, %v1130_v14  ;;  %v1734_v21 = vadd.f32 %v1733_v47, %v1732_v11  ;;  %v1789_v22 = vpop.f32.mrf.mxu1 }
 0x12a   : > { %v1586_v23 = vpack.c.bf16 %v1285_v17, %v1284_v46  ;;  %v1735_v24 = vpop.f32.mrf.mxu0 }
 0x12b   : > { %v1241_v48 = vmul.f32 %v2280_v18, %v1203_v20  ;;  %v1135_v50 = vadd.f32 %v1734_v21, %v1062_v16  ;;  %v1210_v49 = vpop.f32.mrf.mxu1  ;;  %v1276_v28 = vmul.f32 0.01, %v1256_v19  ;;  %vm1266_vm3 = vcmp.ge.f32.partialorder %v1256_v19, 0.0 }
 0x12c   : > { %1587 = vst [vmem:[%s2302_s25] sm:$0xff] %v1586_v23   ;;  %v1736_v29 = vpop.f32.mrf.mxu0 }
 0x12d   : > { %v1257_v30 = vadd.f32 %v2285_v25, %v1241_v48  ;;  %v1208_v31 = vadd.f32 %v1207_v15, %v1135_v50  ;;  %v1737_v32 = vadd.f32 %v1736_v29, %v1735_v24  ;;  %v1790_v33 = vpop.f32.mrf.mxu1  ;;  %v1286_v55 = vsel %vm1266_vm3, %v1256_v19, %v1276_v28 }
 0x12e   : > { %v1738_v34 = vpop.f32.mrf.mxu0 }
 0x12f   : > { %vm1267_vm4 = vcmp.ge.f32.partialorder %v1257_v30, 0.0  ;;  %v1277_v35 = vmul.f32 0.01, %v1257_v30  ;;  %v1242_v37 = vmul.f32 %v2280_v18, %v1208_v31  ;;  %v1138_v38 = vadd.f32 %v1737_v32, %v1065_v51  ;;  %v1215_v39 = vpop.f32.mrf.mxu1 }
 0x130   : > { %v1739_v40 = vpop.f32.mrf.mxu0  ;;  %v1081_v51 = vadd.f32 %v1703_v62, %v1657_v61 }
 0x131   : > { %v1287_v3 = vsel %vm1267_vm4, %v1257_v30, %v1277_v35  ;;  %v1258_v4 = vadd.f32 %v2285_v25, %v1242_v37  ;;  %v1211_v6 = vadd.f32 %v1210_v49, %v1138_v38  ;;  %v1740_v7 = vadd.f32 %v1739_v40, %v1738_v34  ;;  %v1793_v8 = vpop.f32.mrf.mxu1 }
 0x132   : > { %v1591_v41 = vpack.c.bf16 %v1287_v3, %v1286_v55  ;;  %v1741_v42 = vpop.f32.mrf.mxu0 }
 0x133   : > { %v1243_v43 = vmul.f32 %v2280_v18, %v1211_v6  ;;  %v1143_v36 = vadd.f32 %v1740_v7, %v1070_v52  ;;  %v1218_v9 = vpop.f32.mrf.mxu1  ;;  %v1278_v58 = vmul.f32 0.01, %v1258_v4  ;;  %vm1268_vm5 = vcmp.ge.f32.partialorder %v1258_v4, 0.0 }
 0x134   : > { %1608 = vst [vmem:[%s2302_s25 + $0x8] sm:$0xff] %v1591_v41   ;;  %v1742_v59 = vpop.f32.mrf.mxu0 }
 0x135   : > { %v1259_v11 = vadd.f32 %v2285_v25, %v1243_v43  ;;  %v1216_v12 = vadd.f32 %v1215_v39, %v1143_v36  ;;  %v1743_v13 = vadd.f32 %v1742_v59, %v1741_v42  ;;  %v1794_v14 = vpop.f32.mrf.mxu1  ;;  %v1288_v63 = vsel %vm1268_vm5, %v1258_v4, %v1278_v58 }
 0x136   : > { %v1744_v15 = vpop.f32.mrf.mxu0 }
 0x137   : > { %vm1269_vm6 = vcmp.ge.f32.partialorder %v1259_v11, 0.0  ;;  %v1279_v16 = vmul.f32 0.01, %v1259_v11  ;;  %v1244_v44 = vmul.f32 %v2280_v18, %v1216_v12  ;;  %v1146_v45 = vadd.f32 %v1743_v13, %v1073_v10  ;;  %v1223_v46 = vpop.f32.mrf.mxu1 }
 0x138   : > { %v1745_v47 = vpop.f32.mrf.mxu0 }
 0x139   : > { %v1289_v17 = vsel %vm1269_vm6, %v1259_v11, %v1279_v16  ;;  %v1260_v19 = vadd.f32 %v2285_v25, %v1244_v44  ;;  %v1219_v20 = vadd.f32 %v1218_v9, %v1146_v45  ;;  %v1746_v21 = vadd.f32 %v1745_v47, %v1744_v15  ;;  %v1797_v22 = vpop.f32.mrf.mxu1 }
 0x13a   : > { %v1596_v23 = vpack.c.bf16 %v1289_v17, %v1288_v63  ;;  %v1747_v24 = vpop.f32.mrf.mxu0 }
 0x13b   : > { %v1245_v48 = vmul.f32 %v2280_v18, %v1219_v20  ;;  %v1151_v50 = vadd.f32 %v1746_v21, %v1078_v60  ;;  %v1226_v49 = vpop.f32.mrf.mxu1  ;;  %v1280_v2 = vmul.f32 0.01, %v1260_v19  ;;  %vm1270_vm7 = vcmp.ge.f32.partialorder %v1260_v19, 0.0 }
 0x13c   : > { %1609 = vst [vmem:[%s2302_s25 + $0x10] sm:$0xff] %v1596_v23   ;;  %v1748_v0 = vpop.f32.mrf.mxu0 }
 0x13d   : > { %v1261_v1 = vadd.f32 %v2285_v25, %v1245_v48  ;;  %v1224_v5 = vadd.f32 %v1223_v46, %v1151_v50  ;;  %v1749_v26 = vadd.f32 %v1748_v0, %v1747_v24  ;;  %v1798_v27 = vpop.f32.mrf.mxu1  ;;  %v1290_v31 = vsel %vm1270_vm7, %v1260_v19, %v1280_v2 }
 0x13f   : > { %vm1271_vm8 = vcmp.ge.f32.partialorder %v1261_v1, 0.0  ;;  %v1281_v28 = vmul.f32 0.01, %v1261_v1  ;;  %v1246_v29 = vmul.f32 %v2280_v18, %v1224_v5  ;;  %v1154_v30 = vadd.f32 %v1749_v26, %v1081_v51 }
 0x141   : > { %v1291_v32 = vsel %vm1271_vm8, %v1261_v1, %v1281_v28  ;;  %v1262_v33 = vadd.f32 %v2285_v25, %v1246_v29  ;;  %v1227_v34 = vadd.f32 %v1226_v49, %v1154_v30 }
 0x142   : > { %v1601_v35 = vpack.c.bf16 %v1291_v32, %v1290_v31 }
 0x143   : > { %v1247_v37 = vmul.f32 %v2280_v18, %v1227_v34  ;;  %v1282_v38 = vmul.f32 0.01, %v1262_v33  ;;  %vm1272_vm9 = vcmp.ge.f32.partialorder %v1262_v33, 0.0 }
 0x144   : > { %1610 = vst [vmem:[%s2302_s25 + $0x18] sm:$0xff] %v1601_v35  }
 0x145   : > { %v1263_v39 = vadd.f32 %v2285_v25, %v1247_v37  ;;  %v1292_v53 = vsel %vm1272_vm9, %v1262_v33, %v1282_v38 }
 0x147   : > { %vm1273_vm10 = vcmp.ge.f32.partialorder %v1263_v39, 0.0  ;;  %v1283_v52 = vmul.f32 0.01, %v1263_v39 }
 0x149   : > { %v1293_v54 = vsel %vm1273_vm10, %v1263_v39, %v1283_v52 }
 0x14a   : > { %v1606_v55 = vpack.c.bf16 %v1293_v54, %v1292_v53 }
 0x14c   : > { %1611 = vst [vmem:[%s2302_s25 + $0x20] sm:$0xff] %v1606_v55  }
 0x14d PF: > { %s14_s17 = sadd.s32 1, %s1954_s17   ;;  %s2354_s15 = smov %s1950_s16 }
 0x14e   : > { %p11_p5 = scmp.ge.s32.totalorder %s14_s17, 4   ;;  %s2355_s16 = smov %s2357_s18 }
 0x150   :  { %13 = sbr.rel (!%p11_p5) target bundleno = 2 (0x2), region = 75 }

// kernel: vae_forward.10
= control target key start
LH: loop header
LB: loop body
LE: loop exit
PB: predicated region body
PF: predicated region fallthrough
CT: control target
= control target key end

     0   :  { %s5915_s1 = inlined_call_operand.vmem [shape: bf16[5120,128], index: 1, kind: input, shape index: {}]   ;;  %s5916_s0 = inlined_call_operand.vmem [shape: bf16[16,5120], index: 0, kind: input, shape index: {}]   ;;  %s5917_s2 = inlined_call_operand.vmem [shape: f32[1,128], index: 2, kind: input, shape index: {}]   ;;  %s5918_s3 = inlined_call_operand.vmem [shape: f32[1,128], index: 3, kind: input, shape index: {}]   ;;  %s5919_s4 = inlined_call_operand.vmem [shape: bf16[16,128], index: 4, kind: output, shape index: {}]  }
   0x1   :  { %v4481_v0 = vld [vmem:[%s5915_s1 + $0x78] sm:$0xff]   ;;  %v4485_v4 = vld [vmem:[%s5915_s1 + $0x70] sm:$0xff]   ;;  %v4489_v8 = vld [vmem:[%s5915_s1 + $0x68] sm:$0xff]  }
   0x2   :  { %v4482_v1 = vld [vmem:[%s5915_s1 + $0xf8] sm:$0xff]   ;;  %4041 = vmatprep.subr.bf16.mxu0 %v4481_v0  ;;  %v4486_v5 = vld [vmem:[%s5915_s1 + $0xf0] sm:$0xff]   ;;  %v4490_v9 = vld [vmem:[%s5915_s1 + $0xe8] sm:$0xff]  }
   0x3   :  { %v4483_v2 = vld [vmem:[%s5915_s1 + $0x38] sm:$0xff]   ;;  %4063 = vmatprep.subr.bf16.mxu1 %v4482_v1  ;;  %v4487_v6 = vld [vmem:[%s5915_s1 + $0x30] sm:$0xff]   ;;  %v4491_v10 = vld [vmem:[%s5915_s1 + $0x28] sm:$0xff]  }
   0x4   :  { %v4484_v3 = vld [vmem:[%s5915_s1 + $0xb8] sm:$0xff]   ;;  %4042 = vmatpush3.bf16.msra.mxu0 %v4483_v2  ;;  %v4488_v7 = vld [vmem:[%s5915_s1 + $0xb0] sm:$0xff]   ;;  %v4492_v11 = vld [vmem:[%s5915_s1 + $0xa8] sm:$0xff]  }
   0x5   :  { %4064 = vmatpush3.bf16.msra.mxu1 %v4484_v3  ;;  %4043 = vmatprep.subr.bf16.mxu0 %v4485_v4  ;;  %v4493_v12 = vld [vmem:[%s5915_s1 + $0x60] sm:$0xff]   ;;  %v4497_v16 = vld [vmem:[%s5915_s1 + $0x58] sm:$0xff]   ;;  %v4501_v20 = vld [vmem:[%s5915_s1 + $0x50] sm:$0xff]  }
   0x6   :  { %4065 = vmatprep.subr.bf16.mxu1 %v4486_v5  ;;  %v4494_v13 = vld [vmem:[%s5915_s1 + $0xe0] sm:$0xff]   ;;  %v4498_v17 = vld [vmem:[%s5915_s1 + $0xd8] sm:$0xff]   ;;  %v4502_v21 = vld [vmem:[%s5915_s1 + $0xd0] sm:$0xff]  }
   0x7   :  { %v4495_v14 = vld [vmem:[%s5915_s1 + $0x20] sm:$0xff]   ;;  %v4499_v18 = vld [vmem:[%s5915_s1 + $0x18] sm:$0xff]   ;;  %v4503_v22 = vld [vmem:[%s5915_s1 + $0x10] sm:$0xff]  }
   0x8   :  { %4044 = vmatpush3.bf16.msra.mxu0 %v4487_v6  ;;  %v4496_v15 = vld [vmem:[%s5915_s1 + $0xa0] sm:$0xff]   ;;  %v4500_v19 = vld [vmem:[%s5915_s1 + $0x98] sm:$0xff]   ;;  %v4504_v23 = vld [vmem:[%s5915_s1 + $0x90] sm:$0xff]  }
   0x9   :  { %4066 = vmatpush3.bf16.msra.mxu1 %v4488_v7  ;;  %4045 = vmatprep.subr.bf16.mxu0 %v4489_v8  ;;  %v4505_v24 = vld [vmem:[%s5915_s1 + $0x48] sm:$0xff]   ;;  %v4509_v28 = vld [vmem:[%s5915_s1 + $0x40] sm:$0xff]   ;;  %v4513_v40 = vld [vmem:[%s5915_s1 + $0x178] sm:$0xff]  }
   0xa   :  { %4067 = vmatprep.subr.bf16.mxu1 %v4490_v9  ;;  %v4506_v25 = vld [vmem:[%s5915_s1 + $0xc8] sm:$0xff]   ;;  %v4510_v29 = vld [vmem:[%s5915_s1 + $0xc0] sm:$0xff]   ;;  %v4514_v41 = vld [vmem:[%s5915_s1 + $0x1f8] sm:$0xff]  }
   0xb   :  { %v4507_v26 = vld [vmem:[%s5915_s1 + $0x8] sm:$0xff]   ;;  %v4511_v30 = vld [vmem:[%s5915_s1] sm:$0xff]   ;;  %v4515_v42 = vld [vmem:[%s5915_s1 + $0x138] sm:$0xff]  }
   0xc   :  { %4046 = vmatpush3.bf16.msra.mxu0 %v4491_v10  ;;  %v4508_v27 = vld [vmem:[%s5915_s1 + $0x88] sm:$0xff]   ;;  %v4512_v31 = vld [vmem:[%s5915_s1 + $0x80] sm:$0xff]   ;;  %v4516_v43 = vld [vmem:[%s5915_s1 + $0x1b8] sm:$0xff]  }
   0xd   :  { %4068 = vmatpush3.bf16.msra.mxu1 %v4492_v11  ;;  %4047 = vmatprep.subr.bf16.mxu0 %v4493_v12  ;;  %v18_v32 = vld [vmem:[%s5916_s0] sm:$0xff]  ;;  %v19_v34 = vld [vmem:[%s5916_s0 + $0x8] sm:$0xff]  ;;  %v4517_v44 = vld [vmem:[%s5915_s1 + $0x170] sm:$0xff]  }
   0xe   :  { %4069 = vmatprep.subr.bf16.mxu1 %v4494_v13  ;;  %v38_v33 = vld [vmem:[%s5916_s0 + $0xa0] sm:$0xff]  ;;  %v39_v37 = vld [vmem:[%s5916_s0 + $0xa8] sm:$0xff]  ;;  %v4518_v45 = vld [vmem:[%s5915_s1 + $0x1f0] sm:$0xff]  }
   0xf   :  { %v3670_v35 = vcombine.low %v18_v32, %v38_v33  ;;  %v3671_v36 = vcombine.high %v18_v32, %v38_v33  ;;  %v3672_v38 = vcombine.low %v19_v34, %v39_v37  ;;  %v3673_v39 = vcombine.high %v19_v34, %v39_v37  ;;  %v4519_v46 = vld [vmem:[%s5915_s1 + $0x130] sm:$0xff]   ;;  %v4521_v48 = vld [vmem:[%s5915_s1 + $0x168] sm:$0xff]   ;;  %v4525_v52 = vld [vmem:[%s5915_s1 + $0x160] sm:$0xff]  }
  0x10   :  { %4048 = vmatpush3.bf16.msra.mxu0 %v4495_v14  ;;  %v4520_v47 = vld [vmem:[%s5915_s1 + $0x1b0] sm:$0xff]   ;;  %v4522_v49 = vld [vmem:[%s5915_s1 + $0x1e8] sm:$0xff]   ;;  %v4526_v53 = vld [vmem:[%s5915_s1 + $0x1e0] sm:$0xff]  }
  0x11   :  { %4070 = vmatpush3.bf16.msra.mxu1 %v4496_v15  ;;  %4049 = vmatprep.subr.bf16.mxu0 %v4497_v16  ;;  %v4523_v50 = vld [vmem:[%s5915_s1 + $0x128] sm:$0xff]   ;;  %v4527_v54 = vld [vmem:[%s5915_s1 + $0x120] sm:$0xff]   ;;  %v4529_v56 = vld [vmem:[%s5915_s1 + $0x158] sm:$0xff]  }
  0x12   :  { %4071 = vmatprep.subr.bf16.mxu1 %v4498_v17  ;;  %2850 = vmatprep.mubr.bf16.mxu0 %v3671_v36  ;;  %v4524_v51 = vld [vmem:[%s5915_s1 + $0x1a8] sm:$0xff]   ;;  %v4528_v55 = vld [vmem:[%s5915_s1 + $0x1a0] sm:$0xff]   ;;  %v4530_v57 = vld [vmem:[%s5915_s1 + $0x1d8] sm:$0xff]  }
  0x13   :  { %2891 = vmatprep.mubr.bf16.mxu1 %v3673_v39  ;;  %v4531_v58 = vld [vmem:[%s5915_s1 + $0x118] sm:$0xff]   ;;  %v4533_v60 = vld [vmem:[%s5915_s1 + $0x150] sm:$0xff]   ;;  %v4537_v0 = vld [vmem:[%s5915_s1 + $0x148] sm:$0xff]  }
  0x14   :  { %4050 = vmatpush3.bf16.msra.mxu0 %v4499_v18  ;;  %v4532_v59 = vld [vmem:[%s5915_s1 + $0x198] sm:$0xff]   ;;  %v4534_v61 = vld [vmem:[%s5915_s1 + $0x1d0] sm:$0xff]   ;;  %v4538_v1 = vld [vmem:[%s5915_s1 + $0x1c8] sm:$0xff]  }
  0x15   :  { %4072 = vmatpush3.bf16.msra.mxu1 %v4500_v19  ;;  %4051 = vmatprep.subr.bf16.mxu0 %v4501_v20  ;;  %v4535_v62 = vld [vmem:[%s5915_s1 + $0x110] sm:$0xff]   ;;  %v4539_v2 = vld [vmem:[%s5915_s1 + $0x108] sm:$0xff]   ;;  %v4541_v4 = vld [vmem:[%s5915_s1 + $0x140] sm:$0xff]  }
  0x16   :  { %4073 = vmatprep.subr.bf16.mxu1 %v4502_v21  ;;  %v4536_v63 = vld [vmem:[%s5915_s1 + $0x190] sm:$0xff]   ;;  %v4540_v3 = vld [vmem:[%s5915_s1 + $0x188] sm:$0xff]   ;;  %v4542_v5 = vld [vmem:[%s5915_s1 + $0x1c0] sm:$0xff]  }
  0x17   :  { %v4543_v6 = vld [vmem:[%s5915_s1 + $0x100] sm:$0xff]   ;;  %v20_v8 = vld [vmem:[%s5916_s0 + $0x10] sm:$0xff]  ;;  %v21_v12 = vld [vmem:[%s5916_s0 + $0x18] sm:$0xff] }
  0x18   :  { %4052 = vmatpush3.bf16.msra.mxu0 %v4503_v22  ;;  %v4544_v7 = vld [vmem:[%s5915_s1 + $0x180] sm:$0xff]   ;;  %v40_v9 = vld [vmem:[%s5916_s0 + $0xb0] sm:$0xff]  ;;  %v41_v13 = vld [vmem:[%s5916_s0 + $0xb8] sm:$0xff] }
  0x19   :  { %4074 = vmatpush3.bf16.msra.mxu1 %v4504_v23  ;;  %4053 = vmatprep.subr.bf16.mxu0 %v4505_v24  ;;  %v3674_v10 = vcombine.low %v20_v8, %v40_v9  ;;  %v3675_v11 = vcombine.high %v20_v8, %v40_v9  ;;  %v3676_v14 = vcombine.low %v21_v12, %v41_v13  ;;  %v4545_v16 = vld [vmem:[%s5915_s1 + $0x278] sm:$0xff]   ;;  %v4549_v20 = vld [vmem:[%s5915_s1 + $0x270] sm:$0xff]   ;;  %v4553_v24 = vld [vmem:[%s5915_s1 + $0x268] sm:$0xff]  }
  0x1a   :  { %4075 = vmatprep.subr.bf16.mxu1 %v4506_v25  ;;  %v3677_v15 = vcombine.high %v21_v12, %v41_v13  ;;  %v4546_v17 = vld [vmem:[%s5915_s1 + $0x2f8] sm:$0xff]   ;;  %v4550_v21 = vld [vmem:[%s5915_s1 + $0x2f0] sm:$0xff]   ;;  %v4554_v25 = vld [vmem:[%s5915_s1 + $0x2e8] sm:$0xff]  }
  0x1b   :  { %v4547_v18 = vld [vmem:[%s5915_s1 + $0x238] sm:$0xff]   ;;  %v4551_v22 = vld [vmem:[%s5915_s1 + $0x230] sm:$0xff]  }
  0x1c   :  { %4054 = vmatpush3.bf16.msra.mxu0 %v4507_v26  ;;  %v4548_v19 = vld [vmem:[%s5915_s1 + $0x2b8] sm:$0xff]   ;;  %v4552_v23 = vld [vmem:[%s5915_s1 + $0x2b0] sm:$0xff]   ;;  %v4555_v26 = vld [vmem:[%s5915_s1 + $0x228] sm:$0xff]  }
  0x1d   :  { %4076 = vmatpush3.bf16.msra.mxu1 %v4508_v27  ;;  %4055 = vmatprep.subr.bf16.mxu0 %v4509_v28  ;;  %v4556_v27 = vld [vmem:[%s5915_s1 + $0x2a8] sm:$0xff]   ;;  %v4557_v28 = vld [vmem:[%s5915_s1 + $0x260] sm:$0xff]   ;;  %v4561_v32 = vld [vmem:[%s5915_s1 + $0x258] sm:$0xff]  }
  0x1e   :  { %4077 = vmatprep.subr.bf16.mxu1 %v4510_v29  ;;  %v4558_v29 = vld [vmem:[%s5915_s1 + $0x2e0] sm:$0xff]   ;;  %v4562_v33 = vld [vmem:[%s5915_s1 + $0x2d8] sm:$0xff]   ;;  %v4565_v36 = vld [vmem:[%s5915_s1 + $0x250] sm:$0xff]  }
  0x1f   :  { %v4563_v34 = vld [vmem:[%s5915_s1 + $0x218] sm:$0xff]   ;;  %v4566_v37 = vld [vmem:[%s5915_s1 + $0x2d0] sm:$0xff]  }
  0x20   :  { %4056 = vmatpush3.bf16.msra.mxu0 %v4511_v30  ;;  %v4559_v30 = vld [vmem:[%s5915_s1 + $0x220] sm:$0xff]   ;;  %v4568_v39 = vld [vmem:[%s5915_s1 + $0x290] sm:$0xff]   ;;  %v4593_v8 = vld [vmem:[%s5915_s1 + $0x358] sm:$0xff]  }
  0x21   :  { %4078 = vmatpush3.bf16.msra.mxu1 %v4512_v31  ;;  %4085 = vmatprep.subr.bf16.mxu0 %v4513_v40  ;;  %v4560_v31 = vld [vmem:[%s5915_s1 + $0x2a0] sm:$0xff]   ;;  %v4569_v40 = vld [vmem:[%s5915_s1 + $0x248] sm:$0xff]   ;;  %v4594_v9 = vld [vmem:[%s5915_s1 + $0x3d8] sm:$0xff]  }
  0x22   :  { %4107 = vmatprep.subr.bf16.mxu1 %v4514_v41  ;;  %v4570_v41 = vld [vmem:[%s5915_s1 + $0x2c8] sm:$0xff]   ;;  %v4597_v12 = vld [vmem:[%s5915_s1 + $0x350] sm:$0xff]  }
  0x23   :  { %2851 = vmatmul.mubr.bf16.vlgmr.msra.gmra.mxu0 %v3670_v35  ;;  %v4564_v35 = vld [vmem:[%s5915_s1 + $0x298] sm:$0xff]   ;;  %v4598_v13 = vld [vmem:[%s5915_s1 + $0x3d0] sm:$0xff]  }
  0x24   :  { %2892 = vmatmul.mubr.bf16.vlgmr.msra.gmra.mxu1 %v3672_v38  ;;  %4086 = vmatpush3.bf16.msra.mxu0 %v4515_v42  ;;  %v4567_v38 = vld [vmem:[%s5915_s1 + $0x210] sm:$0xff]   ;;  %v4571_v42 = vld [vmem:[%s5915_s1 + $0x208] sm:$0xff]  }
  0x25   :  { %4108 = vmatpush3.bf16.msra.mxu1 %v4516_v43  ;;  %4087 = vmatprep.subr.bf16.mxu0 %v4517_v44  ;;  %v4572_v43 = vld [vmem:[%s5915_s1 + $0x288] sm:$0xff]   ;;  %v4573_v44 = vld [vmem:[%s5915_s1 + $0x240] sm:$0xff]  }
  0x26   :  { %4109 = vmatprep.subr.bf16.mxu1 %v4518_v45  ;;  %2932 = vmatprep.mubr.bf16.mxu0 %v3675_v11  ;;  %v4574_v45 = vld [vmem:[%s5915_s1 + $0x2c0] sm:$0xff]   ;;  %v4596_v11 = vld [vmem:[%s5915_s1 + $0x398] sm:$0xff]  }
  0x27   :  { %2973 = vmatprep.mubr.bf16.mxu1 %v3677_v15  ;;  %v4600_v15 = vld [vmem:[%s5915_s1 + $0x390] sm:$0xff]  }
  0x28   :  { %4088 = vmatpush3.bf16.msra.mxu0 %v4519_v46  ;;  %v4575_v46 = vld [vmem:[%s5915_s1 + $0x200] sm:$0xff]  }
  0x29   :  { %4110 = vmatpush3.bf16.msra.mxu1 %v4520_v47  ;;  %4089 = vmatprep.subr.bf16.mxu0 %v4521_v48  ;;  %v4576_v47 = vld [vmem:[%s5915_s1 + $0x280] sm:$0xff]  }
  0x2a   :  { %4111 = vmatprep.subr.bf16.mxu1 %v4522_v49  ;;  %v22_v48 = vld [vmem:[%s5916_s0 + $0x20] sm:$0xff] }
  0x2b   :  { %v42_v49 = vld [vmem:[%s5916_s0 + $0xc0] sm:$0xff] }
  0x2c   :  { %4090 = vmatpush3.bf16.msra.mxu0 %v4523_v50  ;;  %v23_v50 = vld [vmem:[%s5916_s0 + $0x28] sm:$0xff] }
  0x2d   :  { %4112 = vmatpush3.bf16.msra.mxu1 %v4524_v51  ;;  %4091 = vmatprep.subr.bf16.mxu0 %v4525_v52  ;;  %v43_v51 = vld [vmem:[%s5916_s0 + $0xc8] sm:$0xff]  ;;  %v3678_v52 = vcombine.low %v22_v48, %v42_v49 }
  0x2e   :  { %4113 = vmatprep.subr.bf16.mxu1 %v4526_v53  ;;  %v3679_v53 = vcombine.high %v22_v48, %v42_v49  ;;  %v4625_v48 = vld [vmem:[%s5915_s1 + $0x458] sm:$0xff]  }
  0x2f   :  { %v4626_v49 = vld [vmem:[%s5915_s1 + $0x4d8] sm:$0xff]  }
  0x30   :  { %4092 = vmatpush3.bf16.msra.mxu0 %v4527_v54  ;;  %v3680_v54 = vcombine.low %v23_v50, %v43_v51 }
  0x31   :  { %4114 = vmatpush3.bf16.msra.mxu1 %v4528_v55  ;;  %4093 = vmatprep.subr.bf16.mxu0 %v4529_v56  ;;  %v3681_v55 = vcombine.high %v23_v50, %v43_v51  ;;  %v4577_v56 = vld [vmem:[%s5915_s1 + $0x378] sm:$0xff]  }
  0x32   :  { %4115 = vmatprep.subr.bf16.mxu1 %v4530_v57  ;;  %v4578_v57 = vld [vmem:[%s5915_s1 + $0x3f8] sm:$0xff]  }
  0x33   :  { %v4627_v50 = vld [vmem:[%s5915_s1 + $0x418] sm:$0xff]  }
  0x34   :  { %4094 = vmatpush3.bf16.msra.mxu0 %v4531_v58  ;;  %v4579_v58 = vld [vmem:[%s5915_s1 + $0x338] sm:$0xff]  }
  0x35   :  { %4116 = vmatpush3.bf16.msra.mxu1 %v4532_v59  ;;  %4095 = vmatprep.subr.bf16.mxu0 %v4533_v60  ;;  %v4580_v59 = vld [vmem:[%s5915_s1 + $0x3b8] sm:$0xff]   ;;  %v4581_v60 = vld [vmem:[%s5915_s1 + $0x370] sm:$0xff]  }
  0x36   :  { %4117 = vmatprep.subr.bf16.mxu1 %v4534_v61  ;;  %v4582_v61 = vld [vmem:[%s5915_s1 + $0x3f0] sm:$0xff]   ;;  %v4628_v51 = vld [vmem:[%s5915_s1 + $0x498] sm:$0xff]  }
  0x38   :  { %4096 = vmatpush3.bf16.msra.mxu0 %v4535_v62  ;;  %v4583_v62 = vld [vmem:[%s5915_s1 + $0x330] sm:$0xff]  }
  0x39   :  { %4118 = vmatpush3.bf16.msra.mxu1 %v4536_v63  ;;  %4097 = vmatprep.subr.bf16.mxu0 %v4537_v0  ;;  %v4584_v63 = vld [vmem:[%s5915_s1 + $0x3b0] sm:$0xff]   ;;  %v4585_v0 = vld [vmem:[%s5915_s1 + $0x368] sm:$0xff]  }
  0x3a   :  { %4119 = vmatprep.subr.bf16.mxu1 %v4538_v1  ;;  %v4586_v1 = vld [vmem:[%s5915_s1 + $0x3e8] sm:$0xff]  }
  0x3c   :  { %4098 = vmatpush3.bf16.msra.mxu0 %v4539_v2  ;;  %v4587_v2 = vld [vmem:[%s5915_s1 + $0x328] sm:$0xff]  }
  0x3d   :  { %4120 = vmatpush3.bf16.msra.mxu1 %v4540_v3  ;;  %4099 = vmatprep.subr.bf16.mxu0 %v4541_v4  ;;  %v4588_v3 = vld [vmem:[%s5915_s1 + $0x3a8] sm:$0xff]   ;;  %v4589_v4 = vld [vmem:[%s5915_s1 + $0x360] sm:$0xff]  }
  0x3e   :  { %4121 = vmatprep.subr.bf16.mxu1 %v4542_v5  ;;  %v4590_v5 = vld [vmem:[%s5915_s1 + $0x3e0] sm:$0xff]  }
  0x40   :  { %4100 = vmatpush3.bf16.msra.mxu0 %v4543_v6  ;;  %v4591_v6 = vld [vmem:[%s5915_s1 + $0x320] sm:$0xff]  }
  0x41   :  { %4122 = vmatpush3.bf16.msra.mxu1 %v4544_v7  ;;  %4129 = vmatprep.subr.bf16.mxu0 %v4545_v16  ;;  %v4592_v7 = vld [vmem:[%s5915_s1 + $0x3a0] sm:$0xff]   ;;  %v4601_v16 = vld [vmem:[%s5915_s1 + $0x348] sm:$0xff]  }
  0x42   :  { %4151 = vmatprep.subr.bf16.mxu1 %v4546_v17  ;;  %v4602_v17 = vld [vmem:[%s5915_s1 + $0x3c8] sm:$0xff]  }
  0x43   :  { %2933 = vmatmul.mubr.bf16.vlgmr.msra.gmra.mxu0 %v3674_v10  ;;  %v4595_v10 = vld [vmem:[%s5915_s1 + $0x318] sm:$0xff]  }
  0x44   :  { %2974 = vmatmul.mubr.bf16.vlgmr.msra.gmra.mxu1 %v3676_v14  ;;  %4130 = vmatpush3.bf16.msra.mxu0 %v4547_v18  ;;  %v4599_v14 = vld [vmem:[%s5915_s1 + $0x310] sm:$0xff]   ;;  %v4603_v18 = vld [vmem:[%s5915_s1 + $0x308] sm:$0xff]  }
  0x45   :  { %4152 = vmatpush3.bf16.msra.mxu1 %v4548_v19  ;;  %4131 = vmatprep.subr.bf16.mxu0 %v4549_v20  ;;  %v4604_v19 = vld [vmem:[%s5915_s1 + $0x388] sm:$0xff]   ;;  %v4605_v20 = vld [vmem:[%s5915_s1 + $0x340] sm:$0xff]  }
  0x46   :  { %4153 = vmatprep.subr.bf16.mxu1 %v4550_v21  ;;  %3014 = vmatprep.mubr.bf16.mxu0 %v3679_v53  ;;  %v4606_v21 = vld [vmem:[%s5915_s1 + $0x3c0] sm:$0xff]   ;;  %v4630_v53 = vld [vmem:[%s5915_s1 + $0x4d0] sm:$0xff]  }
  0x47   :  { %3055 = vmatprep.mubr.bf16.mxu1 %v3681_v55  ;;  %v4632_v55 = vld [vmem:[%s5915_s1 + $0x490] sm:$0xff]  }
  0x48   :  { %4132 = vmatpush3.bf16.msra.mxu0 %v4551_v22  ;;  %v4607_v22 = vld [vmem:[%s5915_s1 + $0x300] sm:$0xff]  }
  0x49   :  { %4154 = vmatpush3.bf16.msra.mxu1 %v4552_v23  ;;  %4133 = vmatprep.subr.bf16.mxu0 %v4553_v24  ;;  %v4608_v23 = vld [vmem:[%s5915_s1 + $0x380] sm:$0xff]   ;;  %v24_v24 = vld [vmem:[%s5916_s0 + $0x30] sm:$0xff] }
  0x4a   :  { %4155 = vmatprep.subr.bf16.mxu1 %v4554_v25  ;;  %v44_v25 = vld [vmem:[%s5916_s0 + $0xd0] sm:$0xff] }
  0x4c   :  { %4134 = vmatpush3.bf16.msra.mxu0 %v4555_v26  ;;  %v25_v26 = vld [vmem:[%s5916_s0 + $0x38] sm:$0xff] }
  0x4d   :  { %4156 = vmatpush3.bf16.msra.mxu1 %v4556_v27  ;;  %4135 = vmatprep.subr.bf16.mxu0 %v4557_v28  ;;  %v3682_v27 = vcombine.low %v24_v24, %v44_v25  ;;  %v3683_v28 = vcombine.high %v24_v24, %v44_v25  ;;  %v4657_v24 = vld [vmem:[%s5915_s1 + $0x558] sm:$0xff]  }
  0x4e   :  { %4157 = vmatprep.subr.bf16.mxu1 %v4558_v29  ;;  %v45_v29 = vld [vmem:[%s5916_s0 + $0xd8] sm:$0xff] }
  0x4f   :  { %v4658_v25 = vld [vmem:[%s5915_s1 + $0x5d8] sm:$0xff]  }
  0x50   :  { %4136 = vmatpush3.bf16.msra.mxu0 %v4559_v30  ;;  %v3684_v30 = vcombine.low %v25_v26, %v45_v29 }
  0x51   :  { %4158 = vmatpush3.bf16.msra.mxu1 %v4560_v31  ;;  %4137 = vmatprep.subr.bf16.mxu0 %v4561_v32  ;;  %v3685_v31 = vcombine.high %v25_v26, %v45_v29  ;;  %v4609_v32 = vld [vmem:[%s5915_s1 + $0x478] sm:$0xff]   ;;  %v4662_v29 = vld [vmem:[%s5915_s1 + $0x5d0] sm:$0xff]  }
  0x52   :  { %4159 = vmatprep.subr.bf16.mxu1 %v4562_v33  ;;  %v4610_v33 = vld [vmem:[%s5915_s1 + $0x4f8] sm:$0xff]  }
  0x53   :  { %v4659_v26 = vld [vmem:[%s5915_s1 + $0x518] sm:$0xff]  }
  0x54   :  { %4138 = vmatpush3.bf16.msra.mxu0 %v4563_v34  ;;  %v4611_v34 = vld [vmem:[%s5915_s1 + $0x438] sm:$0xff]  }
  0x55   :  { %4160 = vmatpush3.bf16.msra.mxu1 %v4564_v35  ;;  %4139 = vmatprep.subr.bf16.mxu0 %v4565_v36  ;;  %v4612_v35 = vld [vmem:[%s5915_s1 + $0x4b8] sm:$0xff]   ;;  %v4613_v36 = vld [vmem:[%s5915_s1 + $0x470] sm:$0xff]  }
  0x56   :  { %4161 = vmatprep.subr.bf16.mxu1 %v4566_v37  ;;  %v4614_v37 = vld [vmem:[%s5915_s1 + $0x4f0] sm:$0xff]  }
  0x58   :  { %4140 = vmatpush3.bf16.msra.mxu0 %v4567_v38  ;;  %v4615_v38 = vld [vmem:[%s5915_s1 + $0x430] sm:$0xff]  }
  0x59   :  { %4162 = vmatpush3.bf16.msra.mxu1 %v4568_v39  ;;  %4141 = vmatprep.subr.bf16.mxu0 %v4569_v40  ;;  %v4616_v39 = vld [vmem:[%s5915_s1 + $0x4b0] sm:$0xff]   ;;  %v4617_v40 = vld [vmem:[%s5915_s1 + $0x468] sm:$0xff]  }
  0x5a   :  { %4163 = vmatprep.subr.bf16.mxu1 %v4570_v41  ;;  %v4618_v41 = vld [vmem:[%s5915_s1 + $0x4e8] sm:$0xff]  }
  0x5c   :  { %4142 = vmatpush3.bf16.msra.mxu0 %v4571_v42  ;;  %v4619_v42 = vld [vmem:[%s5915_s1 + $0x428] sm:$0xff]  }
  0x5d   :  { %4164 = vmatpush3.bf16.msra.mxu1 %v4572_v43  ;;  %4143 = vmatprep.subr.bf16.mxu0 %v4573_v44  ;;  %v4620_v43 = vld [vmem:[%s5915_s1 + $0x4a8] sm:$0xff]   ;;  %v4621_v44 = vld [vmem:[%s5915_s1 + $0x460] sm:$0xff]  }
  0x5e   :  { %4165 = vmatprep.subr.bf16.mxu1 %v4574_v45  ;;  %v4622_v45 = vld [vmem:[%s5915_s1 + $0x4e0] sm:$0xff]  }
  0x60   :  { %4144 = vmatpush3.bf16.msra.mxu0 %v4575_v46  ;;  %v4623_v46 = vld [vmem:[%s5915_s1 + $0x420] sm:$0xff]  }
  0x61   :  { %4166 = vmatpush3.bf16.msra.mxu1 %v4576_v47  ;;  %4173 = vmatprep.subr.bf16.mxu0 %v4577_v56  ;;  %v4624_v47 = vld [vmem:[%s5915_s1 + $0x4a0] sm:$0xff]   ;;  %v4633_v56 = vld [vmem:[%s5915_s1 + $0x448] sm:$0xff]  }
  0x62   :  { %4195 = vmatprep.subr.bf16.mxu1 %v4578_v57  ;;  %v4634_v57 = vld [vmem:[%s5915_s1 + $0x4c8] sm:$0xff]  }
  0x63   :  { %3015 = vmatmul.mubr.bf16.vlgmr.msra.gmra.mxu0 %v3678_v52  ;;  %v4629_v52 = vld [vmem:[%s5915_s1 + $0x450] sm:$0xff]  }
  0x64   :  { %3056 = vmatmul.mubr.bf16.vlgmr.msra.gmra.mxu1 %v3680_v54  ;;  %4174 = vmatpush3.bf16.msra.mxu0 %v4579_v58  ;;  %v4631_v54 = vld [vmem:[%s5915_s1 + $0x410] sm:$0xff]   ;;  %v4635_v58 = vld [vmem:[%s5915_s1 + $0x408] sm:$0xff]  }
  0x65   :  { %4196 = vmatpush3.bf16.msra.mxu1 %v4580_v59  ;;  %4175 = vmatprep.subr.bf16.mxu0 %v4581_v60  ;;  %v4636_v59 = vld [vmem:[%s5915_s1 + $0x488] sm:$0xff]   ;;  %v4637_v60 = vld [vmem:[%s5915_s1 + $0x440] sm:$0xff]  }
  0x66   :  { %4197 = vmatprep.subr.bf16.mxu1 %v4582_v61  ;;  %3096 = vmatprep.mubr.bf16.mxu0 %v3683_v28  ;;  %v4638_v61 = vld [vmem:[%s5915_s1 + $0x4c0] sm:$0xff]   ;;  %v4661_v28 = vld [vmem:[%s5915_s1 + $0x550] sm:$0xff]  }
  0x67   :  { %3137 = vmatprep.mubr.bf16.mxu1 %v3685_v31  ;;  %v4664_v31 = vld [vmem:[%s5915_s1 + $0x590] sm:$0xff]  }
  0x68   :  { %4176 = vmatpush3.bf16.msra.mxu0 %v4583_v62  ;;  %v4639_v62 = vld [vmem:[%s5915_s1 + $0x400] sm:$0xff]  }
  0x69   :  { %4198 = vmatpush3.bf16.msra.mxu1 %v4584_v63  ;;  %4177 = vmatprep.subr.bf16.mxu0 %v4585_v0  ;;  %v4640_v63 = vld [vmem:[%s5915_s1 + $0x480] sm:$0xff]  }
  0x6a   :  { %4199 = vmatprep.subr.bf16.mxu1 %v4586_v1  ;;  %v26_v0 = vld [vmem:[%s5916_s0 + $0x40] sm:$0xff] }
  0x6b   :  { %v46_v1 = vld [vmem:[%s5916_s0 + $0xe0] sm:$0xff] }
  0x6c   :  { %4178 = vmatpush3.bf16.msra.mxu0 %v4587_v2  ;;  %v3686_v2 = vcombine.low %v26_v0, %v46_v1 }
  0x6d   :  { %4200 = vmatpush3.bf16.msra.mxu1 %v4588_v3  ;;  %4179 = vmatprep.subr.bf16.mxu0 %v4589_v4  ;;  %v3687_v3 = vcombine.high %v26_v0, %v46_v1  ;;  %v27_v4 = vld [vmem:[%s5916_s0 + $0x48] sm:$0xff]  ;;  %v4689_v0 = vld [vmem:[%s5915_s1 + $0x658] sm:$0xff]  }
  0x6e   :  { %4201 = vmatprep.subr.bf16.mxu1 %v4590_v5  ;;  %v47_v5 = vld [vmem:[%s5916_s0 + $0xe8] sm:$0xff]  ;;  %v4690_v1 = vld [vmem:[%s5915_s1 + $0x6d8] sm:$0xff]  }
  0x70   :  { %4180 = vmatpush3.bf16.msra.mxu0 %v4591_v6  ;;  %v3688_v6 = vcombine.low %v27_v4, %v47_v5 }
  0x71   :  { %4202 = vmatpush3.bf16.msra.mxu1 %v4592_v7  ;;  %4181 = vmatprep.subr.bf16.mxu0 %v4593_v8  ;;  %v3689_v7 = vcombine.high %v27_v4, %v47_v5  ;;  %v4641_v8 = vld [vmem:[%s5915_s1 + $0x578] sm:$0xff]   ;;  %v4693_v4 = vld [vmem:[%s5915_s1 + $0x650] sm:$0xff]  }
  0x72   :  { %4203 = vmatprep.subr.bf16.mxu1 %v4594_v9  ;;  %v4642_v9 = vld [vmem:[%s5915_s1 + $0x5f8] sm:$0xff]   ;;  %v4694_v5 = vld [vmem:[%s5915_s1 + $0x6d0] sm:$0xff]  }
  0x74   :  { %4182 = vmatpush3.bf16.msra.mxu0 %v4595_v10  ;;  %v4643_v10 = vld [vmem:[%s5915_s1 + $0x538] sm:$0xff]  }
  0x75   :  { %4204 = vmatpush3.bf16.msra.mxu1 %v4596_v11  ;;  %4183 = vmatprep.subr.bf16.mxu0 %v4597_v12  ;;  %v4644_v11 = vld [vmem:[%s5915_s1 + $0x5b8] sm:$0xff]   ;;  %v4645_v12 = vld [vmem:[%s5915_s1 + $0x570] sm:$0xff]  }
  0x76   :  { %4205 = vmatprep.subr.bf16.mxu1 %v4598_v13  ;;  %v4646_v13 = vld [vmem:[%s5915_s1 + $0x5f0] sm:$0xff]  }
  0x78   :  { %4184 = vmatpush3.bf16.msra.mxu0 %v4599_v14  ;;  %v4647_v14 = vld [vmem:[%s5915_s1 + $0x530] sm:$0xff]  }
  0x79   :  { %4206 = vmatpush3.bf16.msra.mxu1 %v4600_v15  ;;  %4185 = vmatprep.subr.bf16.mxu0 %v4601_v16  ;;  %v4648_v15 = vld [vmem:[%s5915_s1 + $0x5b0] sm:$0xff]   ;;  %v4649_v16 = vld [vmem:[%s5915_s1 + $0x568] sm:$0xff]  }
  0x7a   :  { %4207 = vmatprep.subr.bf16.mxu1 %v4602_v17  ;;  %v4650_v17 = vld [vmem:[%s5915_s1 + $0x5e8] sm:$0xff]  }
  0x7c   :  { %4186 = vmatpush3.bf16.msra.mxu0 %v4603_v18  ;;  %v4651_v18 = vld [vmem:[%s5915_s1 + $0x528] sm:$0xff]  }
  0x7d   :  { %4208 = vmatpush3.bf16.msra.mxu1 %v4604_v19  ;;  %4187 = vmatprep.subr.bf16.mxu0 %v4605_v20  ;;  %v4652_v19 = vld [vmem:[%s5915_s1 + $0x5a8] sm:$0xff]   ;;  %v4653_v20 = vld [vmem:[%s5915_s1 + $0x560] sm:$0xff]  }
  0x7e   :  { %4209 = vmatprep.subr.bf16.mxu1 %v4606_v21  ;;  %v4654_v21 = vld [vmem:[%s5915_s1 + $0x5e0] sm:$0xff]  }
  0x80   :  { %4188 = vmatpush3.bf16.msra.mxu0 %v4607_v22  ;;  %v4655_v22 = vld [vmem:[%s5915_s1 + $0x520] sm:$0xff]  }
  0x81   :  { %4210 = vmatpush3.bf16.msra.mxu1 %v4608_v23  ;;  %4217 = vmatprep.subr.bf16.mxu0 %v4609_v32  ;;  %v4656_v23 = vld [vmem:[%s5915_s1 + $0x5a0] sm:$0xff]   ;;  %v4665_v32 = vld [vmem:[%s5915_s1 + $0x548] sm:$0xff]  }
  0x82   :  { %4239 = vmatprep.subr.bf16.mxu1 %v4610_v33  ;;  %v4666_v33 = vld [vmem:[%s5915_s1 + $0x5c8] sm:$0xff]  }
  0x83   :  { %3097 = vmatmul.mubr.bf16.vlgmr.msra.gmra.mxu0 %v3682_v27  ;;  %v4660_v27 = vld [vmem:[%s5915_s1 + $0x598] sm:$0xff]  }
  0x84   :  { %3138 = vmatmul.mubr.bf16.vlgmr.msra.gmra.mxu1 %v3684_v30  ;;  %4218 = vmatpush3.bf16.msra.mxu0 %v4611_v34  ;;  %v4663_v30 = vld [vmem:[%s5915_s1 + $0x510] sm:$0xff]   ;;  %v4667_v34 = vld [vmem:[%s5915_s1 + $0x508] sm:$0xff]  }
  0x85   :  { %4240 = vmatpush3.bf16.msra.mxu1 %v4612_v35  ;;  %4219 = vmatprep.subr.bf16.mxu0 %v4613_v36  ;;  %v4668_v35 = vld [vmem:[%s5915_s1 + $0x588] sm:$0xff]   ;;  %v4669_v36 = vld [vmem:[%s5915_s1 + $0x540] sm:$0xff]  }
  0x86   :  { %4241 = vmatprep.subr.bf16.mxu1 %v4614_v37  ;;  %3178 = vmatprep.mubr.bf16.mxu0 %v3687_v3  ;;  %v4670_v37 = vld [vmem:[%s5915_s1 + $0x5c0] sm:$0xff]   ;;  %v4692_v3 = vld [vmem:[%s5915_s1 + $0x698] sm:$0xff]  }
  0x87   :  { %3219 = vmatprep.mubr.bf16.mxu1 %v3689_v7  ;;  %v4696_v7 = vld [vmem:[%s5915_s1 + $0x690] sm:$0xff]  }
  0x88   :  { %4220 = vmatpush3.bf16.msra.mxu0 %v4615_v38  ;;  %v4671_v38 = vld [vmem:[%s5915_s1 + $0x500] sm:$0xff]  }
  0x89   :  { %4242 = vmatpush3.bf16.msra.mxu1 %v4616_v39  ;;  %4221 = vmatprep.subr.bf16.mxu0 %v4617_v40  ;;  %v4672_v39 = vld [vmem:[%s5915_s1 + $0x580] sm:$0xff]   ;;  %v28_v40 = vld [vmem:[%s5916_s0 + $0x50] sm:$0xff] }
  0x8a   :  { %4243 = vmatprep.subr.bf16.mxu1 %v4618_v41  ;;  %v48_v41 = vld [vmem:[%s5916_s0 + $0xf0] sm:$0xff] }
  0x8c   :  { %4222 = vmatpush3.bf16.msra.mxu0 %v4619_v42  ;;  %v29_v42 = vld [vmem:[%s5916_s0 + $0x58] sm:$0xff] }
  0x8d   :  { %4244 = vmatpush3.bf16.msra.mxu1 %v4620_v43  ;;  %4223 = vmatprep.subr.bf16.mxu0 %v4621_v44  ;;  %v49_v43 = vld [vmem:[%s5916_s0 + $0xf8] sm:$0xff]  ;;  %v3690_v44 = vcombine.low %v28_v40, %v48_v41 }
  0x8e   :  { %4245 = vmatprep.subr.bf16.mxu1 %v4622_v45  ;;  %v3691_v45 = vcombine.high %v28_v40, %v48_v41  ;;  %v4721_v40 = vld [vmem:[%s5915_s1 + $0x758] sm:$0xff]  }
  0x8f   :  { %v4722_v41 = vld [vmem:[%s5915_s1 + $0x7d8] sm:$0xff]  }
  0x90   :  { %4224 = vmatpush3.bf16.msra.mxu0 %v4623_v46  ;;  %v3692_v46 = vcombine.low %v29_v42, %v49_v43 }
  0x91   :  { %4246 = vmatpush3.bf16.msra.mxu1 %v4624_v47  ;;  %4225 = vmatprep.subr.bf16.mxu0 %v4625_v48  ;;  %v3693_v47 = vcombine.high %v29_v42, %v49_v43  ;;  %v4673_v48 = vld [vmem:[%s5915_s1 + $0x678] sm:$0xff]  }
  0x92   :  { %4247 = vmatprep.subr.bf16.mxu1 %v4626_v49  ;;  %v4674_v49 = vld [vmem:[%s5915_s1 + $0x6f8] sm:$0xff]  }
  0x93   :  { %v4723_v42 = vld [vmem:[%s5915_s1 + $0x718] sm:$0xff]  }
  0x94   :  { %4226 = vmatpush3.bf16.msra.mxu0 %v4627_v50  ;;  %v4675_v50 = vld [vmem:[%s5915_s1 + $0x638] sm:$0xff]  }
  0x95   :  { %4248 = vmatpush3.bf16.msra.mxu1 %v4628_v51  ;;  %4227 = vmatprep.subr.bf16.mxu0 %v4629_v52  ;;  %v4676_v51 = vld [vmem:[%s5915_s1 + $0x6b8] sm:$0xff]   ;;  %v4677_v52 = vld [vmem:[%s5915_s1 + $0x670] sm:$0xff]  }
  0x96   :  { %4249 = vmatprep.subr.bf16.mxu1 %v4630_v53  ;;  %v4678_v53 = vld [vmem:[%s5915_s1 + $0x6f0] sm:$0xff]   ;;  %v4724_v43 = vld [vmem:[%s5915_s1 + $0x798] sm:$0xff]  }
  0x98   :  { %4228 = vmatpush3.bf16.msra.mxu0 %v4631_v54  ;;  %v4679_v54 = vld [vmem:[%s5915_s1 + $0x630] sm:$0xff]  }
  0x99   :  { %4250 = vmatpush3.bf16.msra.mxu1 %v4632_v55  ;;  %4229 = vmatprep.subr.bf16.mxu0 %v4633_v56  ;;  %v4680_v55 = vld [vmem:[%s5915_s1 + $0x6b0] sm:$0xff]   ;;  %v4681_v56 = vld [vmem:[%s5915_s1 + $0x668] sm:$0xff]  }
  0x9a   :  { %4251 = vmatprep.subr.bf16.mxu1 %v4634_v57  ;;  %v4682_v57 = vld [vmem:[%s5915_s1 + $0x6e8] sm:$0xff]  }
  0x9c   :  { %4230 = vmatpush3.bf16.msra.mxu0 %v4635_v58  ;;  %v4683_v58 = vld [vmem:[%s5915_s1 + $0x628] sm:$0xff]  }
  0x9d   :  { %4252 = vmatpush3.bf16.msra.mxu1 %v4636_v59  ;;  %4231 = vmatprep.subr.bf16.mxu0 %v4637_v60  ;;  %v4684_v59 = vld [vmem:[%s5915_s1 + $0x6a8] sm:$0xff]   ;;  %v4685_v60 = vld [vmem:[%s5915_s1 + $0x660] sm:$0xff]  }
  0x9e   :  { %4253 = vmatprep.subr.bf16.mxu1 %v4638_v61  ;;  %v4686_v61 = vld [vmem:[%s5915_s1 + $0x6e0] sm:$0xff]  }
  0xa0   :  { %4232 = vmatpush3.bf16.msra.mxu0 %v4639_v62  ;;  %v4687_v62 = vld [vmem:[%s5915_s1 + $0x620] sm:$0xff]  }
  0xa1   :  { %4254 = vmatpush3.bf16.msra.mxu1 %v4640_v63  ;;  %4261 = vmatprep.subr.bf16.mxu0 %v4641_v8  ;;  %v4688_v63 = vld [vmem:[%s5915_s1 + $0x6a0] sm:$0xff]   ;;  %v4697_v8 = vld [vmem:[%s5915_s1 + $0x648] sm:$0xff]  }
  0xa2   :  { %4283 = vmatprep.subr.bf16.mxu1 %v4642_v9  ;;  %v4698_v9 = vld [vmem:[%s5915_s1 + $0x6c8] sm:$0xff]  }
  0xa3   :  { %3179 = vmatmul.mubr.bf16.vlgmr.msra.gmra.mxu0 %v3686_v2  ;;  %v4691_v2 = vld [vmem:[%s5915_s1 + $0x618] sm:$0xff]  }
  0xa4   :  { %3220 = vmatmul.mubr.bf16.vlgmr.msra.gmra.mxu1 %v3688_v6  ;;  %4262 = vmatpush3.bf16.msra.mxu0 %v4643_v10  ;;  %v4695_v6 = vld [vmem:[%s5915_s1 + $0x610] sm:$0xff]   ;;  %v4699_v10 = vld [vmem:[%s5915_s1 + $0x608] sm:$0xff]  }
  0xa5   :  { %4284 = vmatpush3.bf16.msra.mxu1 %v4644_v11  ;;  %4263 = vmatprep.subr.bf16.mxu0 %v4645_v12  ;;  %v4700_v11 = vld [vmem:[%s5915_s1 + $0x688] sm:$0xff]   ;;  %v4701_v12 = vld [vmem:[%s5915_s1 + $0x640] sm:$0xff]  }
  0xa6   :  { %4285 = vmatprep.subr.bf16.mxu1 %v4646_v13  ;;  %3260 = vmatprep.mubr.bf16.mxu0 %v3691_v45  ;;  %v4702_v13 = vld [vmem:[%s5915_s1 + $0x6c0] sm:$0xff]   ;;  %v4726_v45 = vld [vmem:[%s5915_s1 + $0x7d0] sm:$0xff]  }
  0xa7   :  { %3301 = vmatprep.mubr.bf16.mxu1 %v3693_v47  ;;  %v4728_v47 = vld [vmem:[%s5915_s1 + $0x790] sm:$0xff]  }
  0xa8   :  { %4264 = vmatpush3.bf16.msra.mxu0 %v4647_v14  ;;  %v4703_v14 = vld [vmem:[%s5915_s1 + $0x600] sm:$0xff]  }
  0xa9   :  { %4286 = vmatpush3.bf16.msra.mxu1 %v4648_v15  ;;  %4265 = vmatprep.subr.bf16.mxu0 %v4649_v16  ;;  %v4704_v15 = vld [vmem:[%s5915_s1 + $0x680] sm:$0xff]  }
  0xaa   :  { %4287 = vmatprep.subr.bf16.mxu1 %v4650_v17  ;;  %v30_v16 = vld [vmem:[%s5916_s0 + $0x60] sm:$0xff] }
  0xab   :  { %v50_v17 = vld [vmem:[%s5916_s0 + $0x100] sm:$0xff] }
  0xac   :  { %4266 = vmatpush3.bf16.msra.mxu0 %v4651_v18  ;;  %v31_v18 = vld [vmem:[%s5916_s0 + $0x68] sm:$0xff] }
  0xad   :  { %4288 = vmatpush3.bf16.msra.mxu1 %v4652_v19  ;;  %4267 = vmatprep.subr.bf16.mxu0 %v4653_v20  ;;  %v3694_v19 = vcombine.low %v30_v16, %v50_v17  ;;  %v3695_v20 = vcombine.high %v30_v16, %v50_v17  ;;  %v4753_v16 = vld [vmem:[%s5915_s1 + $0x858] sm:$0xff]  }
  0xae   :  { %4289 = vmatprep.subr.bf16.mxu1 %v4654_v21  ;;  %v51_v21 = vld [vmem:[%s5916_s0 + $0x108] sm:$0xff]  ;;  %v4754_v17 = vld [vmem:[%s5915_s1 + $0x8d8] sm:$0xff]  }
  0xb0   :  { %4268 = vmatpush3.bf16.msra.mxu0 %v4655_v22  ;;  %v3696_v22 = vcombine.low %v31_v18, %v51_v21 }
  0xb1   :  { %4290 = vmatpush3.bf16.msra.mxu1 %v4656_v23  ;;  %4269 = vmatprep.subr.bf16.mxu0 %v4657_v24  ;;  %v3697_v23 = vcombine.high %v31_v18, %v51_v21  ;;  %v4705_v24 = vld [vmem:[%s5915_s1 + $0x778] sm:$0xff]   ;;  %v4758_v21 = vld [vmem:[%s5915_s1 + $0x8d0] sm:$0xff]  }
  0xb2   :  { %4291 = vmatprep.subr.bf16.mxu1 %v4658_v25  ;;  %v4706_v25 = vld [vmem:[%s5915_s1 + $0x7f8] sm:$0xff]  }
  0xb3   :  { %v4755_v18 = vld [vmem:[%s5915_s1 + $0x818] sm:$0xff]  }
  0xb4   :  { %4270 = vmatpush3.bf16.msra.mxu0 %v4659_v26  ;;  %v4707_v26 = vld [vmem:[%s5915_s1 + $0x738] sm:$0xff]  }
  0xb5   :  { %4292 = vmatpush3.bf16.msra.mxu1 %v4660_v27  ;;  %4271 = vmatprep.subr.bf16.mxu0 %v4661_v28  ;;  %v4708_v27 = vld [vmem:[%s5915_s1 + $0x7b8] sm:$0xff]   ;;  %v4709_v28 = vld [vmem:[%s5915_s1 + $0x770] sm:$0xff]  }
  0xb6   :  { %4293 = vmatprep.subr.bf16.mxu1 %v4662_v29  ;;  %v4710_v29 = vld [vmem:[%s5915_s1 + $0x7f0] sm:$0xff]  }
  0xb8   :  { %4272 = vmatpush3.bf16.msra.mxu0 %v4663_v30  ;;  %v4711_v30 = vld [vmem:[%s5915_s1 + $0x730] sm:$0xff]  }
  0xb9   :  { %4294 = vmatpush3.bf16.msra.mxu1 %v4664_v31  ;;  %4273 = vmatprep.subr.bf16.mxu0 %v4665_v32  ;;  %v4712_v31 = vld [vmem:[%s5915_s1 + $0x7b0] sm:$0xff]   ;;  %v4713_v32 = vld [vmem:[%s5915_s1 + $0x768] sm:$0xff]  }
  0xba   :  { %4295 = vmatprep.subr.bf16.mxu1 %v4666_v33  ;;  %v4714_v33 = vld [vmem:[%s5915_s1 + $0x7e8] sm:$0xff]  }
  0xbc   :  { %4274 = vmatpush3.bf16.msra.mxu0 %v4667_v34  ;;  %v4715_v34 = vld [vmem:[%s5915_s1 + $0x728] sm:$0xff]  }
  0xbd   :  { %4296 = vmatpush3.bf16.msra.mxu1 %v4668_v35  ;;  %4275 = vmatprep.subr.bf16.mxu0 %v4669_v36  ;;  %v4716_v35 = vld [vmem:[%s5915_s1 + $0x7a8] sm:$0xff]   ;;  %v4717_v36 = vld [vmem:[%s5915_s1 + $0x760] sm:$0xff]  }
  0xbe   :  { %4297 = vmatprep.subr.bf16.mxu1 %v4670_v37  ;;  %v4718_v37 = vld [vmem:[%s5915_s1 + $0x7e0] sm:$0xff]  }
  0xc0   :  { %4276 = vmatpush3.bf16.msra.mxu0 %v4671_v38  ;;  %v4719_v38 = vld [vmem:[%s5915_s1 + $0x720] sm:$0xff]  }
  0xc1   :  { %4298 = vmatpush3.bf16.msra.mxu1 %v4672_v39  ;;  %4305 = vmatprep.subr.bf16.mxu0 %v4673_v48  ;;  %v4720_v39 = vld [vmem:[%s5915_s1 + $0x7a0] sm:$0xff]   ;;  %v4729_v48 = vld [vmem:[%s5915_s1 + $0x748] sm:$0xff]  }
  0xc2   :  { %4327 = vmatprep.subr.bf16.mxu1 %v4674_v49  ;;  %v4730_v49 = vld [vmem:[%s5915_s1 + $0x7c8] sm:$0xff]  }
  0xc3   :  { %3261 = vmatmul.mubr.bf16.vlgmr.msra.gmra.mxu0 %v3690_v44  ;;  %v4725_v44 = vld [vmem:[%s5915_s1 + $0x750] sm:$0xff]  }
  0xc4   :  { %3302 = vmatmul.mubr.bf16.vlgmr.msra.gmra.mxu1 %v3692_v46  ;;  %4306 = vmatpush3.bf16.msra.mxu0 %v4675_v50  ;;  %v4727_v46 = vld [vmem:[%s5915_s1 + $0x710] sm:$0xff]   ;;  %v4731_v50 = vld [vmem:[%s5915_s1 + $0x708] sm:$0xff]  }
  0xc5   :  { %4328 = vmatpush3.bf16.msra.mxu1 %v4676_v51  ;;  %4307 = vmatprep.subr.bf16.mxu0 %v4677_v52  ;;  %v4732_v51 = vld [vmem:[%s5915_s1 + $0x788] sm:$0xff]   ;;  %v4733_v52 = vld [vmem:[%s5915_s1 + $0x740] sm:$0xff]  }
  0xc6   :  { %4329 = vmatprep.subr.bf16.mxu1 %v4678_v53  ;;  %3342 = vmatprep.mubr.bf16.mxu0 %v3695_v20  ;;  %v4734_v53 = vld [vmem:[%s5915_s1 + $0x7c0] sm:$0xff]   ;;  %v4757_v20 = vld [vmem:[%s5915_s1 + $0x850] sm:$0xff]  }
  0xc7   :  { %3383 = vmatprep.mubr.bf16.mxu1 %v3697_v23  ;;  %v4760_v23 = vld [vmem:[%s5915_s1 + $0x890] sm:$0xff]  }
  0xc8   :  { %4308 = vmatpush3.bf16.msra.mxu0 %v4679_v54  ;;  %v4735_v54 = vld [vmem:[%s5915_s1 + $0x700] sm:$0xff]  }
  0xc9   :  { %4330 = vmatpush3.bf16.msra.mxu1 %v4680_v55  ;;  %4309 = vmatprep.subr.bf16.mxu0 %v4681_v56  ;;  %v4736_v55 = vld [vmem:[%s5915_s1 + $0x780] sm:$0xff]   ;;  %v32_v56 = vld [vmem:[%s5916_s0 + $0x70] sm:$0xff] }
  0xca   :  { %4331 = vmatprep.subr.bf16.mxu1 %v4682_v57  ;;  %v52_v57 = vld [vmem:[%s5916_s0 + $0x110] sm:$0xff] }
  0xcc   :  { %4310 = vmatpush3.bf16.msra.mxu0 %v4683_v58  ;;  %v3698_v58 = vcombine.low %v32_v56, %v52_v57 }
  0xcd   :  { %4332 = vmatpush3.bf16.msra.mxu1 %v4684_v59  ;;  %4311 = vmatprep.subr.bf16.mxu0 %v4685_v60  ;;  %v3699_v59 = vcombine.high %v32_v56, %v52_v57  ;;  %v33_v60 = vld [vmem:[%s5916_s0 + $0x78] sm:$0xff] }
  0xce   :  { %4333 = vmatprep.subr.bf16.mxu1 %v4686_v61  ;;  %v53_v61 = vld [vmem:[%s5916_s0 + $0x118] sm:$0xff] }
  0xcf   :  { %v4785_v56 = vld [vmem:[%s5915_s1 + $0x958] sm:$0xff]  }
  0xd0   :  { %4312 = vmatpush3.bf16.msra.mxu0 %v4687_v62  ;;  %v3700_v62 = vcombine.low %v33_v60, %v53_v61  ;;  %v4786_v57 = vld [vmem:[%s5915_s1 + $0x9d8] sm:$0xff]  }
  0xd1   :  { %4334 = vmatpush3.bf16.msra.mxu1 %v4688_v63  ;;  %4313 = vmatprep.subr.bf16.mxu0 %v4689_v0  ;;  %v3701_v63 = vcombine.high %v33_v60, %v53_v61  ;;  %v4737_v0 = vld [vmem:[%s5915_s1 + $0x878] sm:$0xff]   ;;  %v4789_v60 = vld [vmem:[%s5915_s1 + $0x950] sm:$0xff]  }
  0xd2   :  { %4335 = vmatprep.subr.bf16.mxu1 %v4690_v1  ;;  %v4738_v1 = vld [vmem:[%s5915_s1 + $0x8f8] sm:$0xff]   ;;  %v4790_v61 = vld [vmem:[%s5915_s1 + $0x9d0] sm:$0xff]  }
  0xd4   :  { %4314 = vmatpush3.bf16.msra.mxu0 %v4691_v2  ;;  %v4739_v2 = vld [vmem:[%s5915_s1 + $0x838] sm:$0xff]  }
  0xd5   :  { %4336 = vmatpush3.bf16.msra.mxu1 %v4692_v3  ;;  %4315 = vmatprep.subr.bf16.mxu0 %v4693_v4  ;;  %v4740_v3 = vld [vmem:[%s5915_s1 + $0x8b8] sm:$0xff]   ;;  %v4741_v4 = vld [vmem:[%s5915_s1 + $0x870] sm:$0xff]  }
  0xd6   :  { %4337 = vmatprep.subr.bf16.mxu1 %v4694_v5  ;;  %v4742_v5 = vld [vmem:[%s5915_s1 + $0x8f0] sm:$0xff]  }
  0xd8   :  { %4316 = vmatpush3.bf16.msra.mxu0 %v4695_v6  ;;  %v4743_v6 = vld [vmem:[%s5915_s1 + $0x830] sm:$0xff]  }
  0xd9   :  { %4338 = vmatpush3.bf16.msra.mxu1 %v4696_v7  ;;  %4317 = vmatprep.subr.bf16.mxu0 %v4697_v8  ;;  %v4744_v7 = vld [vmem:[%s5915_s1 + $0x8b0] sm:$0xff]   ;;  %v4745_v8 = vld [vmem:[%s5915_s1 + $0x868] sm:$0xff]  }
  0xda   :  { %4339 = vmatprep.subr.bf16.mxu1 %v4698_v9  ;;  %v4746_v9 = vld [vmem:[%s5915_s1 + $0x8e8] sm:$0xff]  }
  0xdc   :  { %4318 = vmatpush3.bf16.msra.mxu0 %v4699_v10  ;;  %v4747_v10 = vld [vmem:[%s5915_s1 + $0x828] sm:$0xff]  }
  0xdd   :  { %4340 = vmatpush3.bf16.msra.mxu1 %v4700_v11  ;;  %4319 = vmatprep.subr.bf16.mxu0 %v4701_v12  ;;  %v4748_v11 = vld [vmem:[%s5915_s1 + $0x8a8] sm:$0xff]   ;;  %v4749_v12 = vld [vmem:[%s5915_s1 + $0x860] sm:$0xff]  }
  0xde   :  { %4341 = vmatprep.subr.bf16.mxu1 %v4702_v13  ;;  %v4750_v13 = vld [vmem:[%s5915_s1 + $0x8e0] sm:$0xff]  }
  0xe0   :  { %4320 = vmatpush3.bf16.msra.mxu0 %v4703_v14  ;;  %v4751_v14 = vld [vmem:[%s5915_s1 + $0x820] sm:$0xff]  }
  0xe1   :  { %4342 = vmatpush3.bf16.msra.mxu1 %v4704_v15  ;;  %4349 = vmatprep.subr.bf16.mxu0 %v4705_v24  ;;  %v4752_v15 = vld [vmem:[%s5915_s1 + $0x8a0] sm:$0xff]   ;;  %v4761_v24 = vld [vmem:[%s5915_s1 + $0x848] sm:$0xff]  }
  0xe2   :  { %4371 = vmatprep.subr.bf16.mxu1 %v4706_v25  ;;  %v4762_v25 = vld [vmem:[%s5915_s1 + $0x8c8] sm:$0xff]  }
  0xe3   :  { %3343 = vmatmul.mubr.bf16.vlgmr.msra.gmra.mxu0 %v3694_v19  ;;  %v4756_v19 = vld [vmem:[%s5915_s1 + $0x898] sm:$0xff]  }
  0xe4   :  { %3384 = vmatmul.mubr.bf16.vlgmr.msra.gmra.mxu1 %v3696_v22  ;;  %4350 = vmatpush3.bf16.msra.mxu0 %v4707_v26  ;;  %v4759_v22 = vld [vmem:[%s5915_s1 + $0x810] sm:$0xff]   ;;  %v4763_v26 = vld [vmem:[%s5915_s1 + $0x808] sm:$0xff]  }
  0xe5   :  { %4372 = vmatpush3.bf16.msra.mxu1 %v4708_v27  ;;  %4351 = vmatprep.subr.bf16.mxu0 %v4709_v28  ;;  %v4764_v27 = vld [vmem:[%s5915_s1 + $0x888] sm:$0xff]   ;;  %v4765_v28 = vld [vmem:[%s5915_s1 + $0x840] sm:$0xff]  }
  0xe6   :  { %4373 = vmatprep.subr.bf16.mxu1 %v4710_v29  ;;  %3424 = vmatprep.mubr.bf16.mxu0 %v3699_v59  ;;  %v4766_v29 = vld [vmem:[%s5915_s1 + $0x8c0] sm:$0xff]   ;;  %v4788_v59 = vld [vmem:[%s5915_s1 + $0x998] sm:$0xff]  }
  0xe7   :  { %3465 = vmatprep.mubr.bf16.mxu1 %v3701_v63  ;;  %v4792_v63 = vld [vmem:[%s5915_s1 + $0x990] sm:$0xff]  }
  0xe8   :  { %4352 = vmatpush3.bf16.msra.mxu0 %v4711_v30  ;;  %v4767_v30 = vld [vmem:[%s5915_s1 + $0x800] sm:$0xff]  }
  0xe9   :  { %4374 = vmatpush3.bf16.msra.mxu1 %v4712_v31  ;;  %4353 = vmatprep.subr.bf16.mxu0 %v4713_v32  ;;  %v4768_v31 = vld [vmem:[%s5915_s1 + $0x880] sm:$0xff]  }
  0xea   :  { %4375 = vmatprep.subr.bf16.mxu1 %v4714_v33  ;;  %v34_v32 = vld [vmem:[%s5916_s0 + $0x80] sm:$0xff] }
  0xeb   :  { %v54_v33 = vld [vmem:[%s5916_s0 + $0x120] sm:$0xff] }
  0xec   :  { %4354 = vmatpush3.bf16.msra.mxu0 %v4715_v34  ;;  %v35_v34 = vld [vmem:[%s5916_s0 + $0x88] sm:$0xff] }
  0xed   :  { %4376 = vmatpush3.bf16.msra.mxu1 %v4716_v35  ;;  %4355 = vmatprep.subr.bf16.mxu0 %v4717_v36  ;;  %v55_v35 = vld [vmem:[%s5916_s0 + $0x128] sm:$0xff]  ;;  %v3702_v36 = vcombine.low %v34_v32, %v54_v33 }
  0xee   :  { %4377 = vmatprep.subr.bf16.mxu1 %v4718_v37  ;;  %v3703_v37 = vcombine.high %v34_v32, %v54_v33 }
  0xf0   :  { %4356 = vmatpush3.bf16.msra.mxu0 %v4719_v38  ;;  %v3704_v38 = vcombine.low %v35_v34, %v55_v35 }
  0xf1   :  { %4378 = vmatpush3.bf16.msra.mxu1 %v4720_v39  ;;  %4357 = vmatprep.subr.bf16.mxu0 %v4721_v40  ;;  %v3705_v39 = vcombine.high %v35_v34, %v55_v35  ;;  %v4769_v40 = vld [vmem:[%s5915_s1 + $0x978] sm:$0xff]  }
  0xf2   :  { %4379 = vmatprep.subr.bf16.mxu1 %v4722_v41  ;;  %v4770_v41 = vld [vmem:[%s5915_s1 + $0x9f8] sm:$0xff]  }
  0xf4   :  { %4358 = vmatpush3.bf16.msra.mxu0 %v4723_v42  ;;  %v4771_v42 = vld [vmem:[%s5915_s1 + $0x938] sm:$0xff]  }
  0xf5   :  { %4380 = vmatpush3.bf16.msra.mxu1 %v4724_v43  ;;  %4359 = vmatprep.subr.bf16.mxu0 %v4725_v44  ;;  %v4772_v43 = vld [vmem:[%s5915_s1 + $0x9b8] sm:$0xff]   ;;  %v4773_v44 = vld [vmem:[%s5915_s1 + $0x970] sm:$0xff]  }
  0xf6   :  { %4381 = vmatprep.subr.bf16.mxu1 %v4726_v45  ;;  %v4774_v45 = vld [vmem:[%s5915_s1 + $0x9f0] sm:$0xff]  }
  0xf8   :  { %4360 = vmatpush3.bf16.msra.mxu0 %v4727_v46  ;;  %v4775_v46 = vld [vmem:[%s5915_s1 + $0x930] sm:$0xff]  }
  0xf9   :  { %4382 = vmatpush3.bf16.msra.mxu1 %v4728_v47  ;;  %4361 = vmatprep.subr.bf16.mxu0 %v4729_v48  ;;  %v4776_v47 = vld [vmem:[%s5915_s1 + $0x9b0] sm:$0xff]   ;;  %v4777_v48 = vld [vmem:[%s5915_s1 + $0x968] sm:$0xff]  }
  0xfa   :  { %4383 = vmatprep.subr.bf16.mxu1 %v4730_v49  ;;  %v4778_v49 = vld [vmem:[%s5915_s1 + $0x9e8] sm:$0xff]  }
  0xfc   :  { %4362 = vmatpush3.bf16.msra.mxu0 %v4731_v50  ;;  %v4779_v50 = vld [vmem:[%s5915_s1 + $0x928] sm:$0xff]  }
  0xfd   :  { %4384 = vmatpush3.bf16.msra.mxu1 %v4732_v51  ;;  %4363 = vmatprep.subr.bf16.mxu0 %v4733_v52  ;;  %v4780_v51 = vld [vmem:[%s5915_s1 + $0x9a8] sm:$0xff]   ;;  %v4781_v52 = vld [vmem:[%s5915_s1 + $0x960] sm:$0xff]  }
  0xfe   :  { %4385 = vmatprep.subr.bf16.mxu1 %v4734_v53  ;;  %v4782_v53 = vld [vmem:[%s5915_s1 + $0x9e0] sm:$0xff]  }
 0x100   :  { %4364 = vmatpush3.bf16.msra.mxu0 %v4735_v54  ;;  %v4783_v54 = vld [vmem:[%s5915_s1 + $0x920] sm:$0xff]  }
 0x101   :  { %4386 = vmatpush3.bf16.msra.mxu1 %v4736_v55  ;;  %4393 = vmatprep.subr.bf16.mxu0 %v4737_v0  ;;  %v4784_v55 = vld [vmem:[%s5915_s1 + $0x9a0] sm:$0xff]   ;;  %v4793_v0 = vld [vmem:[%s5915_s1 + $0x948] sm:$0xff]  }
 0x102   :  { %4415 = vmatprep.subr.bf16.mxu1 %v4738_v1  ;;  %v4794_v1 = vld [vmem:[%s5915_s1 + $0x9c8] sm:$0xff]  }
 0x103   :  { %3425 = vmatmul.mubr.bf16.vlgmr.msra.gmra.mxu0 %v3698_v58  ;;  %v4787_v58 = vld [vmem:[%s5915_s1 + $0x918] sm:$0xff]  }
 0x104   :  { %3466 = vmatmul.mubr.bf16.vlgmr.msra.gmra.mxu1 %v3700_v62  ;;  %4394 = vmatpush3.bf16.msra.mxu0 %v4739_v2  ;;  %v4791_v62 = vld [vmem:[%s5915_s1 + $0x910] sm:$0xff]   ;;  %v4795_v2 = vld [vmem:[%s5915_s1 + $0x908] sm:$0xff]  }
 0x105   :  { %4416 = vmatpush3.bf16.msra.mxu1 %v4740_v3  ;;  %4395 = vmatprep.subr.bf16.mxu0 %v4741_v4  ;;  %v4796_v3 = vld [vmem:[%s5915_s1 + $0x988] sm:$0xff]   ;;  %v4797_v4 = vld [vmem:[%s5915_s1 + $0x940] sm:$0xff]  }
 0x106   :  { %4417 = vmatprep.subr.bf16.mxu1 %v4742_v5  ;;  %3506 = vmatprep.mubr.bf16.mxu0 %v3703_v37  ;;  %v4798_v5 = vld [vmem:[%s5915_s1 + $0x9c0] sm:$0xff]  }
 0x107   :  { %3547 = vmatprep.mubr.bf16.mxu1 %v3705_v39 }
 0x108   :  { %4396 = vmatpush3.bf16.msra.mxu0 %v4743_v6  ;;  %v4799_v6 = vld [vmem:[%s5915_s1 + $0x900] sm:$0xff]  }
 0x109   :  { %4418 = vmatpush3.bf16.msra.mxu1 %v4744_v7  ;;  %4397 = vmatprep.subr.bf16.mxu0 %v4745_v8  ;;  %v4800_v7 = vld [vmem:[%s5915_s1 + $0x980] sm:$0xff]   ;;  %v36_v8 = vld [vmem:[%s5916_s0 + $0x90] sm:$0xff] }
 0x10a   :  { %4419 = vmatprep.subr.bf16.mxu1 %v4746_v9  ;;  %v56_v9 = vld [vmem:[%s5916_s0 + $0x130] sm:$0xff] }
 0x10c   :  { %4398 = vmatpush3.bf16.msra.mxu0 %v4747_v10  ;;  %v37_v10 = vld [vmem:[%s5916_s0 + $0x98] sm:$0xff] }
 0x10d   :  { %4420 = vmatpush3.bf16.msra.mxu1 %v4748_v11  ;;  %4399 = vmatprep.subr.bf16.mxu0 %v4749_v12  ;;  %v3706_v11 = vcombine.low %v36_v8, %v56_v9  ;;  %v3707_v12 = vcombine.high %v36_v8, %v56_v9 }
 0x10e   :  { %4421 = vmatprep.subr.bf16.mxu1 %v4750_v13  ;;  %v57_v13 = vld [vmem:[%s5916_s0 + $0x138] sm:$0xff] }
 0x110   :  { %4400 = vmatpush3.bf16.msra.mxu0 %v4751_v14  ;;  %v3708_v14 = vcombine.low %v37_v10, %v57_v13 }
 0x111   :  { %4422 = vmatpush3.bf16.msra.mxu1 %v4752_v15  ;;  %4401 = vmatprep.subr.bf16.mxu0 %v4753_v16  ;;  %v3709_v15 = vcombine.high %v37_v10, %v57_v13  ;;  %v4057_v16 = vpop.f32.mrf.mxu0 }
 0x112   :  { %4423 = vmatprep.subr.bf16.mxu1 %v4754_v17  ;;  %v4079_v17 = vpop.f32.mrf.mxu1 }
 0x114   :  { %4402 = vmatpush3.bf16.msra.mxu0 %v4755_v18  ;;  %v4058_v18 = vpop.f32.mrf.mxu0 }
 0x115   :  { %4424 = vmatpush3.bf16.msra.mxu1 %v4756_v19  ;;  %4403 = vmatprep.subr.bf16.mxu0 %v4757_v20  ;;  %v4080_v19 = vpop.f32.mrf.mxu1 }
 0x116   :  { %4425 = vmatprep.subr.bf16.mxu1 %v4758_v21  ;;  %v4060_v20 = vpop.f32.mrf.mxu0 }
 0x117   :  { %v4082_v21 = vpop.f32.mrf.mxu1 }
 0x118   :  { %4404 = vmatpush3.bf16.msra.mxu0 %v4759_v22  ;;  %v4061_v22 = vpop.f32.mrf.mxu0 }
 0x119   :  { %4426 = vmatpush3.bf16.msra.mxu1 %v4760_v23  ;;  %4405 = vmatprep.subr.bf16.mxu0 %v4761_v24  ;;  %v4083_v24 = vpop.f32.mrf.mxu1 }
 0x11a   :  { %4427 = vmatprep.subr.bf16.mxu1 %v4762_v25  ;;  %v4101_v23 = vpop.f32.mrf.mxu0 }
 0x11b   :  { %v4123_v25 = vpop.f32.mrf.mxu1 }
 0x11c   :  { %4406 = vmatpush3.bf16.msra.mxu0 %v4763_v26  ;;  %v4102_v26 = vpop.f32.mrf.mxu0 }
 0x11d   :  { %4428 = vmatpush3.bf16.msra.mxu1 %v4764_v27  ;;  %4407 = vmatprep.subr.bf16.mxu0 %v4765_v28  ;;  %v4124_v27 = vpop.f32.mrf.mxu1 }
 0x11e   :  { %4429 = vmatprep.subr.bf16.mxu1 %v4766_v29  ;;  %v4104_v28 = vpop.f32.mrf.mxu0 }
 0x11f   :  { %v4126_v29 = vpop.f32.mrf.mxu1 }
 0x120   :  { %4408 = vmatpush3.bf16.msra.mxu0 %v4767_v30  ;;  %v4105_v30 = vpop.f32.mrf.mxu0 }
 0x121   :  { %4430 = vmatpush3.bf16.msra.mxu1 %v4768_v31  ;;  %4437 = vmatprep.subr.bf16.mxu0 %v4769_v40  ;;  %v4127_v32 = vpop.f32.mrf.mxu1  ;;  %v4106_v8 = vadd.f32 %v4105_v30, %v4104_v28 }
 0x122   :  { %4459 = vmatprep.subr.bf16.mxu1 %v4770_v41 }
 0x123   :  { %3507 = vmatmul.mubr.bf16.vlgmr.msra.gmra.mxu0 %v3702_v36  ;;  %v4145_v31 = vpop.f32.mrf.mxu0 }
 0x124   :  { %3548 = vmatmul.mubr.bf16.vlgmr.msra.gmra.mxu1 %v3704_v38  ;;  %4438 = vmatpush3.bf16.msra.mxu0 %v4771_v42  ;;  %v4167_v33 = vpop.f32.mrf.mxu1 }
 0x125   :  { %4460 = vmatpush3.bf16.msra.mxu1 %v4772_v43  ;;  %4439 = vmatprep.subr.bf16.mxu0 %v4773_v44  ;;  %v4146_v34 = vpop.f32.mrf.mxu0 }
 0x126   :  { %4461 = vmatprep.subr.bf16.mxu1 %v4774_v45  ;;  %3588 = vmatprep.mubr.bf16.mxu0 %v3707_v12  ;;  %v4168_v35 = vpop.f32.mrf.mxu1 }
 0x127   :  { %3629 = vmatprep.mubr.bf16.mxu1 %v3709_v15  ;;  %v4148_v36 = vpop.f32.mrf.mxu0 }
 0x128   :  { %4440 = vmatpush3.bf16.msra.mxu0 %v4775_v46  ;;  %v4170_v37 = vpop.f32.mrf.mxu1 }
 0x129   :  { %4462 = vmatpush3.bf16.msra.mxu1 %v4776_v47  ;;  %4441 = vmatprep.subr.bf16.mxu0 %v4777_v48  ;;  %v4149_v38 = vpop.f32.mrf.mxu0 }
 0x12a   :  { %4463 = vmatprep.subr.bf16.mxu1 %v4778_v49  ;;  %v4171_v40 = vpop.f32.mrf.mxu1 }
 0x12c   :  { %4442 = vmatpush3.bf16.msra.mxu0 %v4779_v50 }
 0x12d   :  { %4464 = vmatpush3.bf16.msra.mxu1 %v4780_v51  ;;  %4443 = vmatprep.subr.bf16.mxu0 %v4781_v52 }
 0x12e   :  { %4465 = vmatprep.subr.bf16.mxu1 %v4782_v53 }
 0x130   :  { %4444 = vmatpush3.bf16.msra.mxu0 %v4783_v54 }
 0x131   :  { %4466 = vmatpush3.bf16.msra.mxu1 %v4784_v55  ;;  %4445 = vmatprep.subr.bf16.mxu0 %v4785_v56 }
 0x132   :  { %4467 = vmatprep.subr.bf16.mxu1 %v4786_v57 }
 0x134   :  { %4446 = vmatpush3.bf16.msra.mxu0 %v4787_v58 }
 0x135   :  { %4468 = vmatpush3.bf16.msra.mxu1 %v4788_v59  ;;  %4447 = vmatprep.subr.bf16.mxu0 %v4789_v60 }
 0x136   :  { %4469 = vmatprep.subr.bf16.mxu1 %v4790_v61  ;;  %v4059_v61 = vadd.f32 %v4058_v18, %v4057_v16  ;;  %v4128_v16 = vadd.f32 %v4127_v32, %v4126_v29 }
 0x138   :  { %4448 = vmatpush3.bf16.msra.mxu0 %v4791_v62  ;;  %v4081_v62 = vadd.f32 %v4080_v19, %v4079_v17  ;;  %v4169_v17 = vadd.f32 %v4168_v35, %v4167_v33  ;;  %v4150_v19 = vadd.f32 %v4149_v38, %v4148_v36 }
 0x139   :  { %4470 = vmatpush3.bf16.msra.mxu1 %v4792_v63  ;;  %4449 = vmatprep.subr.bf16.mxu0 %v4793_v0  ;;  %v4103_v63 = vadd.f32 %v4102_v26, %v4101_v23 }
 0x13a   :  { %4471 = vmatprep.subr.bf16.mxu1 %v4794_v1 }
 0x13c   :  { %4450 = vmatpush3.bf16.msra.mxu0 %v4795_v2  ;;  %v2894_v2 = vadd.f32 %v4081_v62, %v4059_v61 }
 0x13d   :  { %4472 = vmatpush3.bf16.msra.mxu1 %v4796_v3  ;;  %4451 = vmatprep.subr.bf16.mxu0 %v4797_v4  ;;  %v4062_v3 = vadd.f32 %v4061_v22, %v4060_v20  ;;  %v4084_v4 = vadd.f32 %v4083_v24, %v4082_v21 }
 0x13e   :  { %4473 = vmatprep.subr.bf16.mxu1 %v4798_v5 }
 0x13f   :  { %v2897_v10 = vadd.f32 %v4084_v4, %v4062_v3 }
 0x140   :  { %4452 = vmatpush3.bf16.msra.mxu0 %v4799_v6  ;;  %v2935_v6 = vadd.f32 %v4103_v63, %v2894_v2 }
 0x141   :  { %4474 = vmatpush3.bf16.msra.mxu1 %v4800_v7  ;;  %v4125_v7 = vadd.f32 %v4124_v27, %v4123_v25  ;;  %v2938_v15 = vadd.f32 %v4106_v8, %v2897_v10  ;;  %v4172_v27 = vadd.f32 %v4171_v40, %v4170_v37 }
 0x143   :  { %3589 = vmatmul.mubr.bf16.vlgmr.msra.gmra.mxu0 %v3706_v11  ;;  %v4189_v39 = vpop.f32.mrf.mxu0  ;;  %v4147_v11 = vadd.f32 %v4146_v34, %v4145_v31  ;;  %v2979_v61 = vadd.f32 %v4128_v16, %v2938_v15 }
 0x144   :  { %3630 = vmatmul.mubr.bf16.vlgmr.msra.gmra.mxu1 %v3708_v14  ;;  %v4211_v41 = vpop.f32.mrf.mxu1  ;;  %v2976_v14 = vadd.f32 %v4125_v7, %v2935_v6 }
 0x145   :  { %v4190_v42 = vpop.f32.mrf.mxu0  ;;  %v3020_v22 = vadd.f32 %v4150_v19, %v2979_v61 }
 0x146   :  { %v4212_v43 = vpop.f32.mrf.mxu1  ;;  %v3017_v18 = vadd.f32 %v4147_v11, %v2976_v14  ;;  %v4191_v20 = vadd.f32 %v4190_v42, %v4189_v39 }
 0x147   :  { %v4192_v44 = vpop.f32.mrf.mxu0  ;;  %v4213_v30 = vadd.f32 %v4212_v43, %v4211_v41  ;;  %v3061_v62 = vadd.f32 %v4172_v27, %v3020_v22 }
 0x148   :  { %v4214_v45 = vpop.f32.mrf.mxu1  ;;  %v3058_v21 = vadd.f32 %v4169_v17, %v3017_v18 }
 0x149   :  { %v4193_v46 = vpop.f32.mrf.mxu0 }
 0x14a   :  { %v4215_v48 = vpop.f32.mrf.mxu1  ;;  %v3099_v28 = vadd.f32 %v4191_v20, %v3058_v21  ;;  %v4194_v31 = vadd.f32 %v4193_v46, %v4192_v44 }
 0x14b   :  { %v4216_v36 = vadd.f32 %v4215_v48, %v4214_v45 }
 0x14c   :  { %v3140_v29 = vadd.f32 %v4213_v30, %v3099_v28  ;;  %v3102_v32 = vadd.f32 %v4194_v31, %v3061_v62 }
 0x14e   :  { %v3143_v42 = vadd.f32 %v4216_v36, %v3102_v32 }
 0x163   :  { %v4233_v47 = vpop.f32.mrf.mxu0 }
 0x164   :  { %v4255_v49 = vpop.f32.mrf.mxu1 }
 0x165   :  { %v4234_v50 = vpop.f32.mrf.mxu0 }
 0x166   :  { %v4256_v51 = vpop.f32.mrf.mxu1  ;;  %v4235_v63 = vadd.f32 %v4234_v50, %v4233_v47 }
 0x167   :  { %v4236_v52 = vpop.f32.mrf.mxu0  ;;  %v4257_v3 = vadd.f32 %v4256_v51, %v4255_v49 }
 0x168   :  { %v4258_v53 = vpop.f32.mrf.mxu1  ;;  %v3181_v38 = vadd.f32 %v4235_v63, %v3140_v29 }
 0x169   :  { %v4237_v54 = vpop.f32.mrf.mxu0 }
 0x16a   :  { %v4259_v56 = vpop.f32.mrf.mxu1  ;;  %v4238_v39 = vadd.f32 %v4237_v54, %v4236_v52  ;;  %v3222_v37 = vadd.f32 %v4257_v3, %v3181_v38 }
 0x16b   :  { %v4260_v41 = vadd.f32 %v4259_v56, %v4258_v53 }
 0x16c   :  { %v3184_v40 = vadd.f32 %v4238_v39, %v3143_v42  ;;  %v4030_v39 = vld [vmem:[%s5917_s2] ss:$0 sm:$0xff] }
 0x16e   :  { %v3225_v8 = vadd.f32 %v4260_v41, %v3184_v40 }
 0x183   :  { %v4277_v55 = vpop.f32.mrf.mxu0 }
 0x184   :  { %v4299_v57 = vpop.f32.mrf.mxu1 }
 0x185   :  { %v4278_v58 = vpop.f32.mrf.mxu0 }
 0x186   :  { %v4300_v59 = vpop.f32.mrf.mxu1  ;;  %v4279_v4 = vadd.f32 %v4278_v58, %v4277_v55 }
 0x187   :  { %v4280_v60 = vpop.f32.mrf.mxu0  ;;  %v4301_v44 = vadd.f32 %v4300_v59, %v4299_v57 }
 0x188   :  { %v4302_v0 = vpop.f32.mrf.mxu1  ;;  %v3263_v43 = vadd.f32 %v4279_v4, %v3222_v37  ;;  %v4031_v37 = vld [vmem:[%s5918_s3] ss:$0 sm:$0xff] }
 0x189   :  { %v4281_v1 = vpop.f32.mrf.mxu0 }
 0x18a   :  { %v4303_v9 = vpop.f32.mrf.mxu1  ;;  %v4282_v46 = vadd.f32 %v4281_v1, %v4280_v60  ;;  %v3304_v14 = vadd.f32 %v4301_v44, %v3263_v43 }
 0x18b   :  { %v4304_v49 = vadd.f32 %v4303_v9, %v4302_v0 }
 0x18c   :  { %v3266_v45 = vadd.f32 %v4282_v46, %v3225_v8 }
 0x18e   :  { %v3307_v15 = vadd.f32 %v4304_v49, %v3266_v45 }
 0x1a3   :  { %v4321_v5 = vpop.f32.mrf.mxu0 }
 0x1a4   :  { %v4343_v12 = vpop.f32.mrf.mxu1 }
 0x1a5   :  { %v4322_v13 = vpop.f32.mrf.mxu0 }
 0x1a6   :  { %v4344_v23 = vpop.f32.mrf.mxu1  ;;  %v4323_v10 = vadd.f32 %v4322_v13, %v4321_v5 }
 0x1a7   :  { %v4324_v26 = vpop.f32.mrf.mxu0  ;;  %v4345_v52 = vadd.f32 %v4344_v23, %v4343_v12 }
 0x1a8   :  { %v4346_v24 = vpop.f32.mrf.mxu1  ;;  %v3345_v51 = vadd.f32 %v4323_v10, %v3304_v14 }
 0x1a9   :  { %v4325_v25 = vpop.f32.mrf.mxu0 }
 0x1aa   :  { %v4347_v2 = vpop.f32.mrf.mxu1  ;;  %v4326_v54 = vadd.f32 %v4325_v25, %v4324_v26  ;;  %v3386_v53 = vadd.f32 %v4345_v52, %v3345_v51 }
 0x1ab   :  { %v4348_v60 = vadd.f32 %v4347_v2, %v4346_v24 }
 0x1ac   :  { %v3348_v56 = vadd.f32 %v4326_v54, %v3307_v15 }
 0x1ae   :  { %v3389_v13 = vadd.f32 %v4348_v60, %v3348_v56 }
 0x1c3   :  { %v4365_v34 = vpop.f32.mrf.mxu0 }
 0x1c4   :  { %v4387_v33 = vpop.f32.mrf.mxu1 }
 0x1c5   :  { %v4366_v35 = vpop.f32.mrf.mxu0 }
 0x1c6   :  { %v4388_v6 = vpop.f32.mrf.mxu1  ;;  %v4367_v16 = vadd.f32 %v4366_v35, %v4365_v34 }
 0x1c7   :  { %v4368_v7 = vpop.f32.mrf.mxu0  ;;  %v4389_v18 = vadd.f32 %v4388_v6, %v4387_v33 }
 0x1c8   :  { %v4390_v47 = vpop.f32.mrf.mxu1  ;;  %v3427_v1 = vadd.f32 %v4367_v16, %v3386_v53 }
 0x1c9   :  { %v4369_v50 = vpop.f32.mrf.mxu0 }
 0x1ca   :  { %v4391_v48 = vpop.f32.mrf.mxu1  ;;  %v4370_v5 = vadd.f32 %v4369_v50, %v4368_v7  ;;  %v3468_v0 = vadd.f32 %v4389_v18, %v3427_v1 }
 0x1cb   :  { %v4392_v12 = vadd.f32 %v4391_v48, %v4390_v47 }
 0x1cc   :  { %v3430_v9 = vadd.f32 %v4370_v5, %v3389_v13 }
 0x1ce   :  { %v3471_v25 = vadd.f32 %v4392_v12, %v3430_v9 }
 0x1e3   :  { %v4409_v11 = vpop.f32.mrf.mxu0 }
 0x1e4   :  { %v4431_v55 = vpop.f32.mrf.mxu1 }
 0x1e5   :  { %v4410_v58 = vpop.f32.mrf.mxu0 }
 0x1e6   :  { %v4432_v57 = vpop.f32.mrf.mxu1  ;;  %v4411_v17 = vadd.f32 %v4410_v58, %v4409_v11 }
 0x1e7   :  { %v4412_v59 = vpop.f32.mrf.mxu0  ;;  %v4433_v26 = vadd.f32 %v4432_v57, %v4431_v55 }
 0x1e8   :  { %v4434_v19 = vpop.f32.mrf.mxu1  ;;  %v3509_v23 = vadd.f32 %v4411_v17, %v3468_v0 }
 0x1e9   :  { %v4413_v61 = vpop.f32.mrf.mxu0 }
 0x1ea   :  { %v4414_v20 = vadd.f32 %v4413_v61, %v4412_v59  ;;  %v4435_v21 = vpop.f32.mrf.mxu1  ;;  %v3550_v30 = vadd.f32 %v4433_v26, %v3509_v23 }
 0x1eb   :  { %v4436_v63 = vadd.f32 %v4435_v21, %v4434_v19 }
 0x1ec   :  { %v3512_v24 = vadd.f32 %v4414_v20, %v3471_v25 }
 0x1ee   :  { %v3553_v35 = vadd.f32 %v4436_v63, %v3512_v24 }
 0x203   :  { %v4453_v22 = vpop.f32.mrf.mxu0 }
 0x204   :  { %v4475_v27 = vpop.f32.mrf.mxu1 }
 0x205   :  { %v4454_v28 = vpop.f32.mrf.mxu0 }
 0x206   :  { %v4455_v31 = vadd.f32 %v4454_v28, %v4453_v22  ;;  %v4476_v34 = vpop.f32.mrf.mxu1 }
 0x207   :  { %v4456_v62 = vpop.f32.mrf.mxu0  ;;  %v4477_v29 = vadd.f32 %v4476_v34, %v4475_v27 }
 0x208   :  { %v3591_v2 = vadd.f32 %v4455_v31, %v3550_v30  ;;  %v4478_v32 = vpop.f32.mrf.mxu1 }
 0x209   :  { %v4457_v33 = vpop.f32.mrf.mxu0 }
 0x20a   :  { %v3632_v36 = vadd.f32 %v4477_v29, %v3591_v2  ;;  %v4458_v38 = vadd.f32 %v4457_v33, %v4456_v62  ;;  %v4479_v3 = vpop.f32.mrf.mxu1 }
 0x20b   :  { %v4480_v4 = vadd.f32 %v4479_v3, %v4478_v32 }
 0x20c   :  { %v3594_v42 = vadd.f32 %v4458_v38, %v3553_v35  ;;  %v3646_v6 = vmul.f32 %v4030_v39, %v3632_v36 }
 0x20e   :  { %v3635_v7 = vadd.f32 %v4480_v4, %v3594_v42  ;;  %v3654_v41 = vadd.f32 %v4031_v37, %v3646_v6 }
 0x210   :  { %v3647_v40 = vmul.f32 %v4030_v39, %v3635_v7 }
 0x212   :  { %v3655_v43 = vadd.f32 %v4031_v37, %v3647_v40 }
 0x214   :  { %v4039_v44 = vpack.c.bf16 %v3655_v43, %v3654_v41 }
 0x216   :  { %4040 = vst [vmem:[%s5919_s4] sm:$0xff] %v4039_v44  }

// kernel: vae_forward.11
= control target key start
LH: loop header
LB: loop body
LE: loop exit
PB: predicated region body
PF: predicated region fallthrough
CT: control target
= control target key end

     0   :  { %v206_v0 = vmov 0.0   ;;  %vm207_vm0 = vmmov 0   ;;  %s272_s1 = inlined_call_operand.vmem [shape: bf16[128,128], index: 1, kind: input, shape index: {}]   ;;  %s273_s0 = inlined_call_operand.vmem [shape: bf16[16,128], index: 0, kind: input, shape index: {}]   ;;  %s274_s2 = inlined_call_operand.vmem [shape: f32[1,128], index: 2, kind: input, shape index: {}]   ;;  %s275_s3 = inlined_call_operand.vmem [shape: f32[1,128], index: 3, kind: input, shape index: {}]   ;;  %s276_s4 = inlined_call_operand.vmem [shape: f32[16,128], index: 4, kind: output, shape index: {}]  }
   0x1   :  { %175 = vmatprep.subr.bf16.mxu0 %v206_v0  ;;  %v197_v1 = vld [vmem:[%s272_s1 + $0x38] sm:$0xff]   ;;  %191 = vmatprep.mubr.msk.bf16.mxu0 %vm207_vm0, %v206_v0  ;;  %v198_v2 = vld [vmem:[%s272_s1 + $0x30] sm:$0xff]   ;;  %v199_v3 = vld [vmem:[%s272_s1 + $0x28] sm:$0xff]  }
   0x2   :  { %176 = vmatpush3.bf16.msra.mxu0 %v197_v1  ;;  %v200_v4 = vld [vmem:[%s272_s1 + $0x20] sm:$0xff]   ;;  %v201_v5 = vld [vmem:[%s272_s1 + $0x18] sm:$0xff]   ;;  %v202_v6 = vld [vmem:[%s272_s1 + $0x10] sm:$0xff]  }
   0x3   :  { %177 = vmatprep.subr.bf16.mxu0 %v206_v0  ;;  %v203_v7 = vld [vmem:[%s272_s1 + $0x8] sm:$0xff]   ;;  %v204_v8 = vld [vmem:[%s272_s1] sm:$0xff]  }
   0x4   :  { %v205_v9 = vld [vmem:[%s273_s0] sm:$0xff]  }
   0x5   :  { %v164_v10 = vld [vmem:[%s274_s2] ss:$0 sm:$0xff] }
   0x6   :  { %178 = vmatpush3.bf16.msra.mxu0 %v198_v2  ;;  %v165_v12 = vld [vmem:[%s275_s3] ss:$0 sm:$0xff] }
   0x7   :  { %179 = vmatprep.subr.bf16.mxu0 %v206_v0 }
   0xa   :  { %180 = vmatpush3.bf16.msra.mxu0 %v199_v3 }
   0xb   :  { %181 = vmatprep.subr.bf16.mxu0 %v206_v0 }
   0xe   :  { %182 = vmatpush3.bf16.msra.mxu0 %v200_v4 }
   0xf   :  { %183 = vmatprep.subr.bf16.mxu0 %v206_v0 }
  0x12   :  { %184 = vmatpush3.bf16.msra.mxu0 %v201_v5 }
  0x13   :  { %185 = vmatprep.subr.bf16.mxu0 %v206_v0 }
  0x16   :  { %186 = vmatpush3.bf16.msra.mxu0 %v202_v6 }
  0x17   :  { %187 = vmatprep.subr.bf16.mxu0 %v206_v0 }
  0x1a   :  { %188 = vmatpush3.bf16.msra.mxu0 %v203_v7 }
  0x1b   :  { %189 = vmatprep.subr.bf16.mxu0 %v206_v0 }
  0x1e   :  { %190 = vmatpush3.bf16.msra.mxu0 %v204_v8 }
  0x21   :  { %192 = vmatmul.mubr.bf16.vlgmr.msra.gmra.mxu0 %v205_v9 }
  0xe1   :  { %v124_v11 = vpop.f32.mrf.mxu0 }
  0xe2   :  { %v139_v13 = vmul.f32 %v164_v10, %v124_v11 }
  0xe3   :  { %v193_v14 = vpop.f32.mrf.mxu0 }
  0xe4   :  { %v147_v15 = vadd.f32 %v165_v12, %v139_v13 }
  0xe5   :  { %v127_v16 = vpop.f32.mrf.mxu0 }
  0xe6   :  { %149 = vst [vmem:[%s276_s4] sm:$0xff] %v147_v15  ;;  %v140_v17 = vmul.f32 %v164_v10, %v127_v16 }
  0xe7   :  { %v194_v18 = vpop.f32.mrf.mxu0 }
  0xe8   :  { %v148_v19 = vadd.f32 %v165_v12, %v140_v17 }
  0xea   :  { %150 = vst [vmem:[%s276_s4 + $0x8] sm:$0xff] %v148_v19 }

// kernel: vae_forward.12
= control target key start
LH: loop header
LB: loop body
LE: loop exit
PB: predicated region body
PF: predicated region fallthrough
CT: control target
= control target key end

     0   :  { %s1506_s15 = smov 0   ;;  %s1508_s16 = smov 0   ;;  %s1828_s0 = inlined_call_operand.vmem [shape: bf16[16,128], index: 0, kind: input, shape index: {}]   ;;  %s1829_s1 = inlined_call_operand.vmem [shape: bf16[128,5120], index: 1, kind: input, shape index: {}]   ;;  %s1830_s2 = inlined_call_operand.vmem [shape: f32[1,5120], index: 2, kind: input, shape index: {}]   ;;  %s1831_s3 = inlined_call_operand.vmem [shape: f32[1,5120], index: 3, kind: input, shape index: {}]   ;;  %s1832_s4 = inlined_call_operand.vmem [shape: bf16[16,5120], index: 4, kind: output, shape index: {}]  }
   0x1   :  { %s1510_s17 = smov 0   ;;  %s1512_s18 = smov 0  }
   0x2   :  { %s1514_s19 = smov 0  }
   0x3 LB: > { %s23_s20 = sadd.s32 1, %s1474_s18  ;;  %s1297_s21 = sadd.s32 4294967295, %s1478_s19   ;;  %s1478_s19 = sphi %s1514_s19, %s14_s19   ;;  %s1474_s18 = sphi %s1512_s18, %s1837_s18   ;;  %s1470_s17 = sphi %s1510_s17, %s1836_s17   ;;  %s1466_s16 = sphi %s1508_s16, %s1835_s16   ;;  %s1462_s15 = sphi %s1506_s15, %s1834_s15  }
   0x4   : > { %p24_p0 = scmp.ge.s32.totalorder %s23_s20, 5  ;;  %p66_p1 = scmp.ne.s32.totalorder %s1466_s16, %s1462_s15 }
   0x5   : > { %p67_p2 = scmp.eq.s32.totalorder %s1478_s19, 0  ;;  %p150_p4 = scmp.eq.s32.totalorder %s1297_s21, 4 }
   0x6   : > { %s1839_s20 = smov (%p24_p0, %s23_s20), 0  ;;  %s59_s23 = sadd.s32 1, %s1466_s16 }
   0x7   : > { %p68_p3 = por %p67_p2, %p66_p1  ;;  %s56_s22 = ssub.s32 %s1474_s18, %s1839_s20 }
   0x8   : > { %p57_p5 = scmp.eq.s32.totalorder %s56_s22, 0  ;;  %p1541_p6 = por %p150_p4, %p66_p1 }
   0x9   : > { %p1301_p7 = scmp.ge.s32.totalorder %s1478_s19, 5 }
   0xa   : > { %s1546_s25 = scalar_select %p57_p5, %s1466_s16, %s59_s23  }
   0xb   : > { %181 = sbr.rel (%p1301_p7) target bundleno = 52 (0x34), region = 20 }
  0x10   : > { %184 = sbr.rel (!%p68_p3) target bundleno = 52 (0x34), region = 24  ;;  %s186_s26 = sand.u32 (%p68_p3), 1, %s1466_s16  }
  0x11   : > { %s1388_s27 = sshll.u32 (%p68_p3), %s1474_s18, 5  ;;  %s1302_s28 = sshll.u32 (%p68_p3), %s186_s26, 9 }
  0x12   : > { %s1554_s5 = scalar_lea.vmem (%p68_p3), %s1829_s1, %s1388_s27  ;;  %s1559_s6 = scalar_lea.vmem (%p68_p3), [#allocation2], %s1302_s28 }
  0x13   : > { %v204_v0 = vld [vmem:[%s1554_s5] sm:$0xff] (%p68_p3)  ;;  %v206_v1 = vld [vmem:[%s1554_s5 + $0x8] sm:$0xff] (%p68_p3)  ;;  %v208_v2 = vld [vmem:[%s1554_s5 + $0x10] sm:$0xff] (%p68_p3) }
  0x14   : > { %205 = vst [vmem:[%s1559_s6] sm:$0xff] (%p68_p3), %v204_v0  ;;  %207 = vst [vmem:[%s1559_s6 + $0x8] sm:$0xff] (%p68_p3), %v206_v1  ;;  %v210_v3 = vld [vmem:[%s1554_s5 + $0x18] sm:$0xff] (%p68_p3)  ;;  %v212_v4 = vld [vmem:[%s1554_s5 + $0xa0] sm:$0xff] (%p68_p3) }
  0x15   : > { %209 = vst [vmem:[%s1559_s6 + $0x10] sm:$0xff] %v208_v2  ;;  %v214_v5 = vld [vmem:[%s1554_s5 + $0xa8] sm:$0xff]  ;;  %211 = vst [vmem:[%s1559_s6 + $0x18] sm:$0xff] %v210_v3  ;;  %v216_v6 = vld [vmem:[%s1554_s5 + $0xb0] sm:$0xff] }
  0x16   : > { %213 = vst [vmem:[%s1559_s6 + $0x20] sm:$0xff] %v212_v4  ;;  %215 = vst [vmem:[%s1559_s6 + $0x28] sm:$0xff] %v214_v5  ;;  %v218_v7 = vld [vmem:[%s1554_s5 + $0xb8] sm:$0xff]  ;;  %v220_v8 = vld [vmem:[%s1554_s5 + $0x140] sm:$0xff] }
  0x17   : > { %217 = vst [vmem:[%s1559_s6 + $0x30] sm:$0xff] %v216_v6  ;;  %219 = vst [vmem:[%s1559_s6 + $0x38] sm:$0xff] %v218_v7  ;;  %v222_v9 = vld [vmem:[%s1554_s5 + $0x148] sm:$0xff]  ;;  %v224_v10 = vld [vmem:[%s1554_s5 + $0x150] sm:$0xff] }
  0x18   : > { %221 = vst [vmem:[%s1559_s6 + $0x40] sm:$0xff] %v220_v8  ;;  %v226_v11 = vld [vmem:[%s1554_s5 + $0x158] sm:$0xff]  ;;  %223 = vst [vmem:[%s1559_s6 + $0x48] sm:$0xff] %v222_v9  ;;  %v228_v12 = vld [vmem:[%s1554_s5 + $0x1e0] sm:$0xff] }
  0x19   : > { %225 = vst [vmem:[%s1559_s6 + $0x50] sm:$0xff] %v224_v10  ;;  %227 = vst [vmem:[%s1559_s6 + $0x58] sm:$0xff] %v226_v11  ;;  %v230_v13 = vld [vmem:[%s1554_s5 + $0x1e8] sm:$0xff]  ;;  %v232_v14 = vld [vmem:[%s1554_s5 + $0x1f0] sm:$0xff] }
  0x1a   : > { %229 = vst [vmem:[%s1559_s6 + $0x60] sm:$0xff] %v228_v12  ;;  %231 = vst [vmem:[%s1559_s6 + $0x68] sm:$0xff] %v230_v13  ;;  %v234_v15 = vld [vmem:[%s1554_s5 + $0x1f8] sm:$0xff]  ;;  %v236_v16 = vld [vmem:[%s1554_s5 + $0x280] sm:$0xff] }
  0x1b   : > { %233 = vst [vmem:[%s1559_s6 + $0x70] sm:$0xff] %v232_v14  ;;  %v238_v17 = vld [vmem:[%s1554_s5 + $0x288] sm:$0xff]  ;;  %235 = vst [vmem:[%s1559_s6 + $0x78] sm:$0xff] %v234_v15  ;;  %v240_v18 = vld [vmem:[%s1554_s5 + $0x290] sm:$0xff] }
  0x1c   : > { %237 = vst [vmem:[%s1559_s6 + $0x80] sm:$0xff] %v236_v16  ;;  %239 = vst [vmem:[%s1559_s6 + $0x88] sm:$0xff] %v238_v17  ;;  %v242_v19 = vld [vmem:[%s1554_s5 + $0x298] sm:$0xff]  ;;  %v244_v20 = vld [vmem:[%s1554_s5 + $0x320] sm:$0xff] }
  0x1d   : > { %241 = vst [vmem:[%s1559_s6 + $0x90] sm:$0xff] %v240_v18  ;;  %243 = vst [vmem:[%s1559_s6 + $0x98] sm:$0xff] %v242_v19  ;;  %v246_v21 = vld [vmem:[%s1554_s5 + $0x328] sm:$0xff]  ;;  %v248_v22 = vld [vmem:[%s1554_s5 + $0x330] sm:$0xff] }
  0x1e   : > { %245 = vst [vmem:[%s1559_s6 + $0xa0] sm:$0xff] %v244_v20  ;;  %v250_v23 = vld [vmem:[%s1554_s5 + $0x338] sm:$0xff]  ;;  %247 = vst [vmem:[%s1559_s6 + $0xa8] sm:$0xff] %v246_v21  ;;  %v252_v24 = vld [vmem:[%s1554_s5 + $0x3c0] sm:$0xff] }
  0x1f   : > { %249 = vst [vmem:[%s1559_s6 + $0xb0] sm:$0xff] %v248_v22  ;;  %251 = vst [vmem:[%s1559_s6 + $0xb8] sm:$0xff] %v250_v23  ;;  %v254_v25 = vld [vmem:[%s1554_s5 + $0x3c8] sm:$0xff]  ;;  %v256_v26 = vld [vmem:[%s1554_s5 + $0x3d0] sm:$0xff] }
  0x20   : > { %253 = vst [vmem:[%s1559_s6 + $0xc0] sm:$0xff] %v252_v24  ;;  %255 = vst [vmem:[%s1559_s6 + $0xc8] sm:$0xff] %v254_v25  ;;  %v258_v27 = vld [vmem:[%s1554_s5 + $0x3d8] sm:$0xff]  ;;  %v260_v28 = vld [vmem:[%s1554_s5 + $0x460] sm:$0xff] }
  0x21   : > { %257 = vst [vmem:[%s1559_s6 + $0xd0] sm:$0xff] %v256_v26  ;;  %v262_v29 = vld [vmem:[%s1554_s5 + $0x468] sm:$0xff]  ;;  %259 = vst [vmem:[%s1559_s6 + $0xd8] sm:$0xff] %v258_v27  ;;  %v264_v30 = vld [vmem:[%s1554_s5 + $0x470] sm:$0xff] }
  0x22   : > { %261 = vst [vmem:[%s1559_s6 + $0xe0] sm:$0xff] %v260_v28  ;;  %263 = vst [vmem:[%s1559_s6 + $0xe8] sm:$0xff] %v262_v29  ;;  %v266_v31 = vld [vmem:[%s1554_s5 + $0x478] sm:$0xff]  ;;  %v268_v32 = vld [vmem:[%s1554_s5 + $0x500] sm:$0xff] }
  0x23   : > { %265 = vst [vmem:[%s1559_s6 + $0xf0] sm:$0xff] %v264_v30  ;;  %267 = vst [vmem:[%s1559_s6 + $0xf8] sm:$0xff] %v266_v31  ;;  %v270_v33 = vld [vmem:[%s1554_s5 + $0x508] sm:$0xff]  ;;  %v272_v34 = vld [vmem:[%s1554_s5 + $0x510] sm:$0xff] }
  0x24   : > { %269 = vst [vmem:[%s1559_s6 + $0x100] sm:$0xff] %v268_v32  ;;  %v274_v35 = vld [vmem:[%s1554_s5 + $0x518] sm:$0xff]  ;;  %271 = vst [vmem:[%s1559_s6 + $0x108] sm:$0xff] %v270_v33  ;;  %v276_v36 = vld [vmem:[%s1554_s5 + $0x5a0] sm:$0xff] }
  0x25   : > { %273 = vst [vmem:[%s1559_s6 + $0x110] sm:$0xff] %v272_v34  ;;  %275 = vst [vmem:[%s1559_s6 + $0x118] sm:$0xff] %v274_v35  ;;  %v278_v37 = vld [vmem:[%s1554_s5 + $0x5a8] sm:$0xff]  ;;  %v280_v38 = vld [vmem:[%s1554_s5 + $0x5b0] sm:$0xff] }
  0x26   : > { %277 = vst [vmem:[%s1559_s6 + $0x120] sm:$0xff] %v276_v36  ;;  %279 = vst [vmem:[%s1559_s6 + $0x128] sm:$0xff] %v278_v37  ;;  %v282_v39 = vld [vmem:[%s1554_s5 + $0x5b8] sm:$0xff]  ;;  %v284_v40 = vld [vmem:[%s1554_s5 + $0x640] sm:$0xff] }
  0x27   : > { %281 = vst [vmem:[%s1559_s6 + $0x130] sm:$0xff] %v280_v38  ;;  %v286_v41 = vld [vmem:[%s1554_s5 + $0x648] sm:$0xff]  ;;  %283 = vst [vmem:[%s1559_s6 + $0x138] sm:$0xff] %v282_v39  ;;  %v288_v42 = vld [vmem:[%s1554_s5 + $0x650] sm:$0xff] }
  0x28   : > { %285 = vst [vmem:[%s1559_s6 + $0x140] sm:$0xff] %v284_v40  ;;  %287 = vst [vmem:[%s1559_s6 + $0x148] sm:$0xff] %v286_v41  ;;  %v290_v43 = vld [vmem:[%s1554_s5 + $0x658] sm:$0xff]  ;;  %v292_v44 = vld [vmem:[%s1554_s5 + $0x6e0] sm:$0xff] }
  0x29   : > { %289 = vst [vmem:[%s1559_s6 + $0x150] sm:$0xff] %v288_v42  ;;  %291 = vst [vmem:[%s1559_s6 + $0x158] sm:$0xff] %v290_v43  ;;  %v294_v45 = vld [vmem:[%s1554_s5 + $0x6e8] sm:$0xff]  ;;  %v296_v46 = vld [vmem:[%s1554_s5 + $0x6f0] sm:$0xff] }
  0x2a   : > { %293 = vst [vmem:[%s1559_s6 + $0x160] sm:$0xff] %v292_v44  ;;  %v298_v47 = vld [vmem:[%s1554_s5 + $0x6f8] sm:$0xff]  ;;  %295 = vst [vmem:[%s1559_s6 + $0x168] sm:$0xff] %v294_v45  ;;  %v300_v48 = vld [vmem:[%s1554_s5 + $0x780] sm:$0xff] }
  0x2b   : > { %297 = vst [vmem:[%s1559_s6 + $0x170] sm:$0xff] %v296_v46  ;;  %299 = vst [vmem:[%s1559_s6 + $0x178] sm:$0xff] %v298_v47  ;;  %v302_v49 = vld [vmem:[%s1554_s5 + $0x788] sm:$0xff]  ;;  %v304_v50 = vld [vmem:[%s1554_s5 + $0x790] sm:$0xff] }
  0x2c   : > { %301 = vst [vmem:[%s1559_s6 + $0x180] sm:$0xff] %v300_v48  ;;  %303 = vst [vmem:[%s1559_s6 + $0x188] sm:$0xff] %v302_v49  ;;  %v306_v51 = vld [vmem:[%s1554_s5 + $0x798] sm:$0xff]  ;;  %v308_v52 = vld [vmem:[%s1554_s5 + $0x820] sm:$0xff] }
  0x2d   : > { %305 = vst [vmem:[%s1559_s6 + $0x190] sm:$0xff] %v304_v50  ;;  %v310_v53 = vld [vmem:[%s1554_s5 + $0x828] sm:$0xff]  ;;  %307 = vst [vmem:[%s1559_s6 + $0x198] sm:$0xff] %v306_v51  ;;  %v312_v54 = vld [vmem:[%s1554_s5 + $0x830] sm:$0xff] }
  0x2e   : > { %309 = vst [vmem:[%s1559_s6 + $0x1a0] sm:$0xff] %v308_v52  ;;  %311 = vst [vmem:[%s1559_s6 + $0x1a8] sm:$0xff] %v310_v53  ;;  %v314_v55 = vld [vmem:[%s1554_s5 + $0x838] sm:$0xff]  ;;  %v316_v56 = vld [vmem:[%s1554_s5 + $0x8c0] sm:$0xff] }
  0x2f   : > { %313 = vst [vmem:[%s1559_s6 + $0x1b0] sm:$0xff] %v312_v54  ;;  %315 = vst [vmem:[%s1559_s6 + $0x1b8] sm:$0xff] %v314_v55  ;;  %v318_v57 = vld [vmem:[%s1554_s5 + $0x8c8] sm:$0xff]  ;;  %v320_v58 = vld [vmem:[%s1554_s5 + $0x8d0] sm:$0xff] }
  0x30   : > { %317 = vst [vmem:[%s1559_s6 + $0x1c0] sm:$0xff] %v316_v56  ;;  %v322_v59 = vld [vmem:[%s1554_s5 + $0x8d8] sm:$0xff]  ;;  %319 = vst [vmem:[%s1559_s6 + $0x1c8] sm:$0xff] %v318_v57  ;;  %v324_v60 = vld [vmem:[%s1554_s5 + $0x960] sm:$0xff] }
  0x31   : > { %321 = vst [vmem:[%s1559_s6 + $0x1d0] sm:$0xff] %v320_v58  ;;  %323 = vst [vmem:[%s1559_s6 + $0x1d8] sm:$0xff] %v322_v59  ;;  %v326_v61 = vld [vmem:[%s1554_s5 + $0x968] sm:$0xff]  ;;  %v328_v62 = vld [vmem:[%s1554_s5 + $0x970] sm:$0xff] }
  0x32   : > { %325 = vst [vmem:[%s1559_s6 + $0x1e0] sm:$0xff] %v324_v60  ;;  %327 = vst [vmem:[%s1559_s6 + $0x1e8] sm:$0xff] %v326_v61  ;;  %v330_v63 = vld [vmem:[%s1554_s5 + $0x978] sm:$0xff] }
  0x33   : > { %329 = vst [vmem:[%s1559_s6 + $0x1f0] sm:$0xff] %v328_v62  ;;  %331 = vst [vmem:[%s1559_s6 + $0x1f8] sm:$0xff] %v330_v63 }
  0x34 PF: > { %p1305_p8 = scmp.ge.s32.totalorder %s1478_s19, 1  ;;  %p352_p9 = scmp.lt.s32.totalorder %s1478_s19, 6 }
  0x36   : > { %p353_p10 = pnand %p1305_p8, %p352_p9 }
  0x37   : > { %s359_s7 = sand.u32 (!%p353_p10), 1, %s1462_s15   ;;  %s1308_s12 = sshll.u32 (!%p353_p10), %s1470_s17, 3 }
  0x38   : > { %356 = sbr.rel (%p353_p10) target bundleno = 343 (0x157), region = 55  ;;  %s1306_s8 = sshll.u32 (!%p353_p10), %s359_s7, 9 }
  0x39   : > { %s1693_s9 = scalar_lea.vmem (!%p353_p10), [#allocation2], %s1306_s8  ;;  %p404_p11 = scmp.lt.s32.totalorder (!%p353_p10), %s1308_s12, 39 }
  0x3a   : > { %s1307_s27 = sshll.u32 (!%p353_p10), %s359_s7, 6 }
  0x3b   : > { %s1785_s28 = scalar_lea.vmem (!%p353_p10), [#allocation3], %s1307_s27 }
  0x3d   : > { %v1480_v0 = vmov 0   ;;  %v474_v1 = vld [vmem:[%s1693_s9 + $0x1c0] sm:$0xff]  ;;  %v475_v3 = vld [vmem:[%s1693_s9 + $0x1c8] sm:$0xff]  ;;  %v476_v63 = vld [vmem:[%s1693_s9 + $0x1d0] sm:$0xff]  ;;  %s1841_s12 = smov (!%p404_p11, %s1308_s12), 39  ;;  %s1397_s15 = sshll.u32 (%p1541_p6), %s1470_s17, 5 }
  0x3e   : > { %840 = vmatprep.mubr.bf16.mxu0 %v1480_v0  ;;  %883 = vmatprep.mubr.bf16.mxu1 %v1480_v0  ;;  %v478_v2 = vld [vmem:[%s1693_s9 + $0x1e0] sm:$0xff]  ;;  %v479_v5 = vld [vmem:[%s1693_s9 + $0x1e8] sm:$0xff]  ;;  %s406_s21 = scalar_lea.vmem %s1830_s2, %s1841_s12  ;;  %s411_s26 = scalar_lea.vmem %s1831_s3, %s1841_s12 }
  0x3f   : > { %v1368_v4 = vcombine.high %v474_v1, %v478_v2  ;;  %v1367_v6 = vcombine.low %v474_v1, %v478_v2  ;;  %v466_v7 = vld [vmem:[%s1693_s9 + $0x180] sm:$0xff]  ;;  %v1370_v9 = vcombine.high %v475_v3, %v479_v5  ;;  %v1369_v10 = vcombine.low %v475_v3, %v479_v5  ;;  %v467_v12 = vld [vmem:[%s1693_s9 + $0x188] sm:$0xff]  ;;  %v480_v1 = vld [vmem:[%s1693_s9 + $0x1f0] sm:$0xff]  ;;  %s1164_s5 = scalar_lea.vmem (%p1541_p6), %s1832_s4, %s1397_s15 }
  0x40   : > { %v470_v8 = vld [vmem:[%s1693_s9 + $0x1a0] sm:$0xff]  ;;  %v471_v13 = vld [vmem:[%s1693_s9 + $0x1a8] sm:$0xff]  ;;  %v477_v2 = vld [vmem:[%s1693_s9 + $0x1d8] sm:$0xff] }
  0x41   : > { %v1360_v11 = vcombine.high %v466_v7, %v470_v8  ;;  %v458_v14 = vld [vmem:[%s1693_s9 + $0x140] sm:$0xff]  ;;  %808 = vmatprep.subr.bf16.mxu0 %v1368_v4  ;;  %v1362_v15 = vcombine.high %v467_v12, %v471_v13  ;;  %v459_v17 = vld [vmem:[%s1693_s9 + $0x148] sm:$0xff]  ;;  %851 = vmatprep.subr.bf16.mxu1 %v1370_v9  ;;  %v1359_v19 = vcombine.low %v466_v7, %v470_v8  ;;  %v481_v3 = vld [vmem:[%s1693_s9 + $0x1f8] sm:$0xff] }
  0x42   : > { %v462_v16 = vld [vmem:[%s1693_s9 + $0x160] sm:$0xff]  ;;  %v463_v18 = vld [vmem:[%s1693_s9 + $0x168] sm:$0xff]  ;;  %809 = vmatpush1.bf16.msra.mxu0 %v1367_v6  ;;  %852 = vmatpush1.bf16.msra.mxu1 %v1369_v10  ;;  %v1361_v20 = vcombine.low %v467_v12, %v471_v13  ;;  %v1372_v6 = vcombine.high %v476_v63, %v480_v1  ;;  %v1374_v7 = vcombine.high %v477_v2, %v481_v3  ;;  %v468_v8 = vld [vmem:[%s1693_s9 + $0x190] sm:$0xff] }
  0x43   : > { %810 = vmatprep.subr.bf16.mxu0 %v1360_v11  ;;  %v1352_v21 = vcombine.high %v458_v14, %v462_v16  ;;  %853 = vmatprep.subr.bf16.mxu1 %v1362_v15  ;;  %v1354_v22 = vcombine.high %v459_v17, %v463_v18  ;;  %v450_v23 = vld [vmem:[%s1693_s9 + $0x100] sm:$0xff]  ;;  %v451_v25 = vld [vmem:[%s1693_s9 + $0x108] sm:$0xff]  ;;  %v1351_v27 = vcombine.low %v458_v14, %v462_v16  ;;  %v472_v9 = vld [vmem:[%s1693_s9 + $0x1b0] sm:$0xff] }
  0x44   : > { %v454_v24 = vld [vmem:[%s1693_s9 + $0x120] sm:$0xff]  ;;  %v455_v26 = vld [vmem:[%s1693_s9 + $0x128] sm:$0xff]  ;;  %v1353_v28 = vcombine.low %v459_v17, %v463_v18  ;;  %v469_v11 = vld [vmem:[%s1693_s9 + $0x198] sm:$0xff]  ;;  %v1371_v13 = vcombine.low %v476_v63, %v480_v1  ;;  %v1373_v14 = vcombine.low %v477_v2, %v481_v3  ;;  %v1364_v15 = vcombine.high %v468_v8, %v472_v9 }
  0x45   : > { %v1344_v29 = vcombine.high %v450_v23, %v454_v24  ;;  %v1346_v30 = vcombine.high %v451_v25, %v455_v26  ;;  %v442_v31 = vld [vmem:[%s1693_s9 + $0xc0] sm:$0xff]  ;;  %v443_v33 = vld [vmem:[%s1693_s9 + $0xc8] sm:$0xff]  ;;  %v1343_v35 = vcombine.low %v450_v23, %v454_v24  ;;  %v1345_v36 = vcombine.low %v451_v25, %v455_v26  ;;  %v473_v12 = vld [vmem:[%s1693_s9 + $0x1b8] sm:$0xff] }
  0x46   : > { %811 = vmatpush1.bf16.msra.mxu0 %v1359_v19  ;;  %854 = vmatpush1.bf16.msra.mxu1 %v1361_v20  ;;  %v446_v32 = vld [vmem:[%s1693_s9 + $0xe0] sm:$0xff]  ;;  %v447_v34 = vld [vmem:[%s1693_s9 + $0xe8] sm:$0xff]  ;;  %v1366_v16 = vcombine.high %v469_v11, %v473_v12  ;;  %v460_v17 = vld [vmem:[%s1693_s9 + $0x150] sm:$0xff]  ;;  %v983_v3 = vlaneseq }
  0x47   : > { %812 = vmatprep.subr.bf16.mxu0 %v1352_v21  ;;  %855 = vmatprep.subr.bf16.mxu1 %v1354_v22  ;;  %v1336_v37 = vcombine.high %v442_v31, %v446_v32  ;;  %v1338_v38 = vcombine.high %v443_v33, %v447_v34  ;;  %v434_v39 = vld [vmem:[%s1693_s9 + $0x80] sm:$0xff]  ;;  %v435_v41 = vld [vmem:[%s1693_s9 + $0x88] sm:$0xff]  ;;  %v1335_v43 = vcombine.low %v442_v31, %v446_v32  ;;  %v464_v18 = vld [vmem:[%s1693_s9 + $0x170] sm:$0xff] }
  0x48   : > { %v438_v40 = vld [vmem:[%s1693_s9 + $0xa0] sm:$0xff]  ;;  %v439_v42 = vld [vmem:[%s1693_s9 + $0xa8] sm:$0xff]  ;;  %v1337_v44 = vcombine.low %v443_v33, %v447_v34  ;;  %v461_v19 = vld [vmem:[%s1693_s9 + $0x158] sm:$0xff]  ;;  %v1363_v21 = vcombine.low %v468_v8, %v472_v9  ;;  %v1365_v22 = vcombine.low %v469_v11, %v473_v12  ;;  %v1356_v23 = vcombine.high %v460_v17, %v464_v18 }
  0x49   : > { %v1328_v45 = vcombine.high %v434_v39, %v438_v40  ;;  %v1330_v46 = vcombine.high %v435_v41, %v439_v42  ;;  %v426_v47 = vld [vmem:[%s1693_s9 + $0x40] sm:$0xff]  ;;  %v427_v49 = vld [vmem:[%s1693_s9 + $0x48] sm:$0xff]  ;;  %v1327_v51 = vcombine.low %v434_v39, %v438_v40  ;;  %v1329_v52 = vcombine.low %v435_v41, %v439_v42  ;;  %v465_v20 = vld [vmem:[%s1693_s9 + $0x178] sm:$0xff] }
  0x4a   : > { %813 = vmatpush1.bf16.msra.mxu0 %v1351_v27  ;;  %856 = vmatpush1.bf16.msra.mxu1 %v1353_v28  ;;  %v430_v48 = vld [vmem:[%s1693_s9 + $0x60] sm:$0xff]  ;;  %v431_v50 = vld [vmem:[%s1693_s9 + $0x68] sm:$0xff]  ;;  %v1358_v24 = vcombine.high %v461_v19, %v465_v20  ;;  %v452_v25 = vld [vmem:[%s1693_s9 + $0x110] sm:$0xff] }
  0x4b   : > { %814 = vmatprep.subr.bf16.mxu0 %v1344_v29  ;;  %857 = vmatprep.subr.bf16.mxu1 %v1346_v30  ;;  %v1320_v53 = vcombine.high %v426_v47, %v430_v48  ;;  %v1322_v54 = vcombine.high %v427_v49, %v431_v50  ;;  %v418_v55 = vld [vmem:[%s1693_s9] sm:$0xff]  ;;  %v419_v57 = vld [vmem:[%s1693_s9 + $0x8] sm:$0xff]  ;;  %v1319_v59 = vcombine.low %v426_v47, %v430_v48  ;;  %v456_v26 = vld [vmem:[%s1693_s9 + $0x130] sm:$0xff] }
  0x4c   : > { %v422_v56 = vld [vmem:[%s1693_s9 + $0x20] sm:$0xff]  ;;  %v423_v58 = vld [vmem:[%s1693_s9 + $0x28] sm:$0xff]  ;;  %v1321_v60 = vcombine.low %v427_v49, %v431_v50  ;;  %v453_v27 = vld [vmem:[%s1693_s9 + $0x118] sm:$0xff]  ;;  %v1355_v29 = vcombine.low %v460_v17, %v464_v18  ;;  %v1357_v30 = vcombine.low %v461_v19, %v465_v20  ;;  %v1348_v31 = vcombine.high %v452_v25, %v456_v26 }
  0x4d   : > { %v1312_v61 = vcombine.high %v418_v55, %v422_v56  ;;  %v1314_v62 = vcombine.high %v419_v57, %v423_v58  ;;  %v1311_v4 = vcombine.low %v418_v55, %v422_v56  ;;  %v1313_v5 = vcombine.low %v419_v57, %v423_v58  ;;  %v1736_v10 = vld [vmem:[%s1828_s0] sm:$0xff]   ;;  %v457_v28 = vld [vmem:[%s1693_s9 + $0x138] sm:$0xff]  ;;  %v444_v33 = vld [vmem:[%s1693_s9 + $0xd0] sm:$0xff] }
  0x4e   : > { %815 = vmatpush1.bf16.msra.mxu0 %v1343_v35  ;;  %858 = vmatpush1.bf16.msra.mxu1 %v1345_v36  ;;  %v1350_v32 = vcombine.high %v453_v27, %v457_v28  ;;  %v448_v34 = vld [vmem:[%s1693_s9 + $0xf0] sm:$0xff]  ;;  %v445_v35 = vld [vmem:[%s1693_s9 + $0xd8] sm:$0xff]  ;;  %v981_v9 = vld [vmem:[%s411_s26] sm:$0xff] }
  0x4f   : > { %816 = vmatprep.subr.bf16.mxu0 %v1336_v37  ;;  %859 = vmatprep.subr.bf16.mxu1 %v1338_v38  ;;  %v449_v36 = vld [vmem:[%s1693_s9 + $0xf8] sm:$0xff]  ;;  %v1347_v37 = vcombine.low %v452_v25, %v456_v26  ;;  %v1340_v38 = vcombine.high %v444_v33, %v448_v34  ;;  %v436_v40 = vld [vmem:[%s1693_s9 + $0x90] sm:$0xff] }
  0x50   : > { %v1342_v39 = vcombine.high %v445_v35, %v449_v36  ;;  %v440_v41 = vld [vmem:[%s1693_s9 + $0xb0] sm:$0xff]  ;;  %v437_v42 = vld [vmem:[%s1693_s9 + $0x98] sm:$0xff] }
  0x51   : > { %v428_v48 = vld [vmem:[%s1693_s9 + $0x50] sm:$0xff]  ;;  %v429_v50 = vld [vmem:[%s1693_s9 + $0x58] sm:$0xff] }
  0x52   : > { %817 = vmatpush1.bf16.msra.mxu0 %v1335_v43  ;;  %860 = vmatpush1.bf16.msra.mxu1 %v1337_v44  ;;  %v441_v43 = vld [vmem:[%s1693_s9 + $0xb8] sm:$0xff]  ;;  %v1339_v44 = vcombine.low %v444_v33, %v448_v34  ;;  %v432_v49 = vld [vmem:[%s1693_s9 + $0x70] sm:$0xff] }
  0x53   : > { %818 = vmatprep.subr.bf16.mxu0 %v1328_v45  ;;  %861 = vmatprep.subr.bf16.mxu1 %v1330_v46  ;;  %v1341_v45 = vcombine.low %v445_v35, %v449_v36  ;;  %v1332_v46 = vcombine.high %v436_v40, %v440_v41  ;;  %v1334_v47 = vcombine.high %v437_v42, %v441_v43  ;;  %v420_v56 = vld [vmem:[%s1693_s9 + $0x10] sm:$0xff]  ;;  %v421_v58 = vld [vmem:[%s1693_s9 + $0x18] sm:$0xff] }
  0x54   : > { %v424_v57 = vld [vmem:[%s1693_s9 + $0x30] sm:$0xff] }
  0x55   : > { %v1315_v1 = vcombine.low %v420_v56, %v424_v57 }
  0x56   : > { %819 = vmatpush1.bf16.msra.mxu0 %v1327_v51  ;;  %862 = vmatpush1.bf16.msra.mxu1 %v1329_v52  ;;  %v433_v51 = vld [vmem:[%s1693_s9 + $0x78] sm:$0xff]  ;;  %v1331_v52 = vcombine.low %v436_v40, %v440_v41 }
  0x57   : > { %820 = vmatprep.subr.bf16.mxu0 %v1320_v53  ;;  %863 = vmatprep.subr.bf16.mxu1 %v1322_v54  ;;  %v1333_v53 = vcombine.low %v437_v42, %v441_v43  ;;  %v1324_v54 = vcombine.high %v428_v48, %v432_v49  ;;  %v1326_v55 = vcombine.high %v429_v50, %v433_v51 }
  0x5a   : > { %821 = vmatpush1.bf16.msra.mxu0 %v1319_v59  ;;  %864 = vmatpush1.bf16.msra.mxu1 %v1321_v60  ;;  %v425_v59 = vld [vmem:[%s1693_s9 + $0x38] sm:$0xff]  ;;  %v1323_v60 = vcombine.low %v428_v48, %v432_v49 }
  0x5b   : > { %822 = vmatprep.subr.bf16.mxu0 %v1312_v61  ;;  %865 = vmatprep.subr.bf16.mxu1 %v1314_v62  ;;  %v1325_v61 = vcombine.low %v429_v50, %v433_v51  ;;  %v1316_v62 = vcombine.high %v420_v56, %v424_v57  ;;  %v1318_v63 = vcombine.high %v421_v58, %v425_v59 }
  0x5c   : > { %v1317_v2 = vcombine.low %v421_v58, %v425_v59 }
  0x5e   : > { %823 = vmatpush1.bf16.msra.mxu0 %v1311_v4  ;;  %866 = vmatpush1.bf16.msra.mxu1 %v1313_v5  ;;  %v1771_v4 = vshrl.u32 %v983_v3, 7 }
  0x5f   : > { %894 = vmatprep.subr.bf16.mxu0 %v1372_v6  ;;  %937 = vmatprep.subr.bf16.mxu1 %v1374_v7  ;;  %v980_v6 = vld [vmem:[%s406_s21] sm:$0xff] }
  0x60   : > { %v985_v5 = vsub.s32 0, %v1771_v4  ;;  %v993_v7 = vsub.s32 2, %v1771_v4  ;;  %v989_v8 = vsub.s32 1, %v1771_v4  ;;  %v1005_v48 = vsub.s32 5, %v1771_v4 }
  0x61   : > { %841 = vmatmul.mubr.bf16.vlgmr.msra.gmra.mxu0 %v1736_v10  ;;  %884 = vmatmul.mubr.bf16.vlgmr.msra.gmra.mxu1 %v1736_v10  ;;  %v1013_v49 = vsub.s32 7, %v1771_v4 }
  0x62   : > { %895 = vmatpush1.bf16.msra.mxu0 %v1371_v13  ;;  %938 = vmatpush1.bf16.msra.mxu1 %v1373_v14  ;;  %v986_v11 = vrot.slane %v980_v6, %v985_v5  ;;  %v994_v12 = vrot.slane %v980_v6, %v993_v7  ;;  %v1043_v13 = vrot.slane %v981_v9, %v985_v5 }
  0x63   : > { %896 = vmatprep.subr.bf16.mxu0 %v1364_v15  ;;  %939 = vmatprep.subr.bf16.mxu1 %v1366_v16  ;;  %v990_v14 = vrot.slane %v980_v6, %v989_v8  ;;  %v1051_v16 = vrot.slane %v981_v9, %v993_v7  ;;  %v1047_v20 = vrot.slane %v981_v9, %v989_v8 }
  0x64   : > { %926 = vmatprep.mubr.bf16.mxu0 %v1480_v0  ;;  %969 = vmatprep.mubr.bf16.mxu1 %v1480_v0  ;;  %v1349_v0 = vcombine.low %v453_v27, %v457_v28  ;;  %v1063_v58 = vrot.slane %v981_v9, %v1005_v48 }
  0x66   : > { %897 = vmatpush1.bf16.msra.mxu0 %v1363_v21  ;;  %940 = vmatpush1.bf16.msra.mxu1 %v1365_v22 }
  0x67   : > { %898 = vmatprep.subr.bf16.mxu0 %v1356_v23  ;;  %941 = vmatprep.subr.bf16.mxu1 %v1358_v24 }
  0x6a   : > { %899 = vmatpush1.bf16.msra.mxu0 %v1355_v29  ;;  %942 = vmatpush1.bf16.msra.mxu1 %v1357_v30 }
  0x6b   : > { %900 = vmatprep.subr.bf16.mxu0 %v1348_v31  ;;  %943 = vmatprep.subr.bf16.mxu1 %v1350_v32 }
  0x6e   : > { %901 = vmatpush1.bf16.msra.mxu0 %v1347_v37  ;;  %944 = vmatpush1.bf16.msra.mxu1 %v1349_v0 }
  0x6f   : > { %902 = vmatprep.subr.bf16.mxu0 %v1340_v38  ;;  %945 = vmatprep.subr.bf16.mxu1 %v1342_v39 }
  0x72   : > { %903 = vmatpush1.bf16.msra.mxu0 %v1339_v44  ;;  %946 = vmatpush1.bf16.msra.mxu1 %v1341_v45 }
  0x73   : > { %904 = vmatprep.subr.bf16.mxu0 %v1332_v46  ;;  %947 = vmatprep.subr.bf16.mxu1 %v1334_v47  ;;  %v1001_v46 = vsub.s32 4, %v1771_v4  ;;  %v1009_v47 = vsub.s32 6, %v1771_v4 }
  0x75   : > { %v1002_v50 = vrot.slane %v980_v6, %v1001_v46  ;;  %v1010_v51 = vrot.slane %v980_v6, %v1009_v47  ;;  %v1059_v56 = vrot.slane %v981_v9, %v1001_v46 }
  0x76   : > { %905 = vmatpush1.bf16.msra.mxu0 %v1331_v52  ;;  %948 = vmatpush1.bf16.msra.mxu1 %v1333_v53  ;;  %v1006_v52 = vrot.slane %v980_v6, %v1005_v48 }
  0x77   : > { %906 = vmatprep.subr.bf16.mxu0 %v1324_v54  ;;  %949 = vmatprep.subr.bf16.mxu1 %v1326_v55  ;;  %v1014_v54 = vrot.slane %v980_v6, %v1013_v49 }
  0x7a   : > { %907 = vmatpush1.bf16.msra.mxu0 %v1323_v60  ;;  %950 = vmatpush1.bf16.msra.mxu1 %v1325_v61  ;;  %v1067_v60 = vrot.slane %v981_v9, %v1009_v47 }
  0x7b   : > { %908 = vmatprep.subr.bf16.mxu0 %v1316_v62  ;;  %951 = vmatprep.subr.bf16.mxu1 %v1318_v63  ;;  %v1071_v62 = vrot.slane %v981_v9, %v1013_v49 }
  0x7e   : > { %909 = vmatpush1.bf16.msra.mxu0 %v1315_v1  ;;  %952 = vmatpush1.bf16.msra.mxu1 %v1317_v2 }
  0x81   : > { %927 = vmatmul.mubr.bf16.vlgmr.msra.gmra.mxu0 %v1736_v10  ;;  %970 = vmatmul.mubr.bf16.vlgmr.msra.gmra.mxu1 %v1736_v10  ;;  %v997_v10 = vsub.s32 3, %v1771_v4 }
  0x83   : > { %v998_v17 = vrot.slane %v980_v6, %v997_v10  ;;  %v1055_v23 = vrot.slane %v981_v9, %v997_v10 }
 0x121   : > { %v842_v15 = vpop.f32.mrf.mxu0  ;;  %v885_v19 = vpop.f32.mrf.mxu1 }
 0x122   : > { %v1023_v18 = vmul.f32 %v986_v11, %v842_v15  ;;  %v1025_v21 = vmul.f32 %v994_v12, %v885_v19 }
 0x123   : > { %v844_v22 = vpop.f32.mrf.mxu0  ;;  %v887_v26 = vpop.f32.mrf.mxu1 }
 0x124   : > { %v1080_v24 = vadd.f32 %v1043_v13, %v1023_v18  ;;  %v1024_v25 = vmul.f32 %v990_v14, %v844_v22  ;;  %v1082_v27 = vadd.f32 %v1051_v16, %v1025_v21  ;;  %v1026_v28 = vmul.f32 %v998_v17, %v887_v26 }
 0x125   : > { %v846_v29 = vpop.f32.mrf.mxu0  ;;  %v889_v32 = vpop.f32.mrf.mxu1 }
 0x126   : > { %v1081_v30 = vadd.f32 %v1047_v20, %v1024_v25  ;;  %v1031_v31 = vmul.f32 %v986_v11, %v846_v29  ;;  %v1083_v33 = vadd.f32 %v1055_v23, %v1026_v28  ;;  %v1033_v34 = vmul.f32 %v994_v12, %v889_v32 }
 0x127   : > { %v848_v35 = vpop.f32.mrf.mxu0  ;;  %v891_v0 = vpop.f32.mrf.mxu1 }
 0x128   : > { %v1389_v36 = vpack.c.bf16 %v1081_v30, %v1080_v24  ;;  %v1032_v37 = vmul.f32 %v990_v14, %v848_v35  ;;  %v1390_v38 = vpack.c.bf16 %v1083_v33, %v1082_v27  ;;  %v1034_v39 = vmul.f32 %v998_v17, %v891_v0 }
 0x129   : > { %v1088_v40 = vadd.f32 %v1043_v13, %v1031_v31  ;;  %v1090_v42 = vadd.f32 %v1051_v16, %v1033_v34 }
 0x12a   : > { %1144 = vst [vmem:[%s1785_s28] sm:$0xff] %v1389_v36  ;;  %v1089_v41 = vadd.f32 %v1047_v20, %v1032_v37  ;;  %1145 = vst [vmem:[%s1785_s28 + $0x8] sm:$0xff] %v1390_v38  ;;  %v1091_v43 = vadd.f32 %v1055_v23, %v1034_v39 }
 0x12c   : > { %v1393_v44 = vpack.c.bf16 %v1089_v41, %v1088_v40  ;;  %v1394_v45 = vpack.c.bf16 %v1091_v43, %v1090_v42 }
 0x12e   : > { %1148 = vst [vmem:[%s1785_s28 + $0x20] sm:$0xff] %v1393_v44  ;;  %1149 = vst [vmem:[%s1785_s28 + $0x28] sm:$0xff] %v1394_v45 }
 0x131   : > { %v1177_v23 = vld [vmem:[%s1785_s28] sm:$0xff] (%p1541_p6)  ;;  %v1179_v24 = vld [vmem:[%s1785_s28 + $0x8] sm:$0xff] (%p1541_p6) }
 0x132   : > { %1178 = vst [vmem:[%s1164_s5] sm:$0xff] (%p1541_p6), %v1177_v23  ;;  %1180 = vst [vmem:[%s1164_s5 + $0x8] sm:$0xff] (%p1541_p6), %v1179_v24 }
 0x135   : > { %v1185_v27 = vld [vmem:[%s1785_s28 + $0x20] sm:$0xff] (%p1541_p6)  ;;  %v1187_v28 = vld [vmem:[%s1785_s28 + $0x28] sm:$0xff] (%p1541_p6) }
 0x136   : > { %1186 = vst [vmem:[%s1164_s5 + $0xa0] sm:$0xff] (%p1541_p6), %v1185_v27  ;;  %1188 = vst [vmem:[%s1164_s5 + $0xa8] sm:$0xff] (%p1541_p6), %v1187_v28 }
 0x141   : > { %v928_v53 = vpop.f32.mrf.mxu0  ;;  %v971_v57 = vpop.f32.mrf.mxu1 }
 0x142   : > { %v1027_v55 = vmul.f32 %v1002_v50, %v928_v53  ;;  %v1029_v59 = vmul.f32 %v1010_v51, %v971_v57 }
 0x143   : > { %v930_v61 = vpop.f32.mrf.mxu0  ;;  %v973_v1 = vpop.f32.mrf.mxu1 }
 0x144   : > { %v1028_v63 = vmul.f32 %v1006_v52, %v930_v61  ;;  %v1030_v2 = vmul.f32 %v1014_v54, %v973_v1  ;;  %v1084_v5 = vadd.f32 %v1059_v56, %v1027_v55  ;;  %v1086_v10 = vadd.f32 %v1067_v60, %v1029_v59 }
 0x145   : > { %v932_v3 = vpop.f32.mrf.mxu0  ;;  %v975_v8 = vpop.f32.mrf.mxu1 }
 0x146   : > { %v1085_v4 = vadd.f32 %v1063_v58, %v1028_v63  ;;  %v1035_v7 = vmul.f32 %v1002_v50, %v932_v3  ;;  %v1087_v6 = vadd.f32 %v1071_v62, %v1030_v2  ;;  %v1037_v11 = vmul.f32 %v1010_v51, %v975_v8 }
 0x147   : > { %v934_v12 = vpop.f32.mrf.mxu0  ;;  %v977_v15 = vpop.f32.mrf.mxu1 }
 0x148   : > { %v1391_v13 = vpack.c.bf16 %v1085_v4, %v1084_v5  ;;  %v1036_v14 = vmul.f32 %v1006_v52, %v934_v12  ;;  %v1392_v9 = vpack.c.bf16 %v1087_v6, %v1086_v10  ;;  %v1038_v16 = vmul.f32 %v1014_v54, %v977_v15 }
 0x149   : > { %v1092_v17 = vadd.f32 %v1059_v56, %v1035_v7  ;;  %v1094_v19 = vadd.f32 %v1067_v60, %v1037_v11 }
 0x14a   : > { %1146 = vst [vmem:[%s1785_s28 + $0x10] sm:$0xff] %v1391_v13  ;;  %v1093_v18 = vadd.f32 %v1063_v58, %v1036_v14  ;;  %1147 = vst [vmem:[%s1785_s28 + $0x18] sm:$0xff] %v1392_v9  ;;  %v1095_v20 = vadd.f32 %v1071_v62, %v1038_v16  ;;  %1158 = sbr.rel (!%p1541_p6) target bundleno = 343 (0x157), region = 63 }
 0x14c   : > { %v1395_v21 = vpack.c.bf16 %v1093_v18, %v1092_v17  ;;  %v1396_v22 = vpack.c.bf16 %v1095_v20, %v1094_v19 }
 0x14e   : > { %1150 = vst [vmem:[%s1785_s28 + $0x30] sm:$0xff] %v1395_v21  ;;  %1151 = vst [vmem:[%s1785_s28 + $0x38] sm:$0xff] %v1396_v22 }
 0x151   : > { %v1181_v25 = vld [vmem:[%s1785_s28 + $0x10] sm:$0xff]  ;;  %v1183_v26 = vld [vmem:[%s1785_s28 + $0x18] sm:$0xff] }
 0x152   : > { %1182 = vst [vmem:[%s1164_s5 + $0x10] sm:$0xff] %v1181_v25  ;;  %1184 = vst [vmem:[%s1164_s5 + $0x18] sm:$0xff] %v1183_v26 }
 0x155   : > { %v1189_v29 = vld [vmem:[%s1785_s28 + $0x30] sm:$0xff]  ;;  %v1191_v30 = vld [vmem:[%s1785_s28 + $0x38] sm:$0xff] }
 0x156   : > { %1190 = vst [vmem:[%s1164_s5 + $0xb0] sm:$0xff] %v1189_v29  ;;  %1192 = vst [vmem:[%s1164_s5 + $0xb8] sm:$0xff] %v1191_v30 }
 0x157 PF: > { %s14_s19 = sadd.s32 1, %s1478_s19   ;;  %s1834_s15 = smov %s1466_s16 }
 0x158   : > { %p11_p12 = scmp.ge.s32.totalorder %s14_s19, 7   ;;  %s1835_s16 = smov %s1546_s25 }
 0x159   : > { %s1836_s17 = smov %s1474_s18  ;;  %s1837_s18 = smov %s1839_s20 }
 0x15a   :  { %13 = sbr.rel (!%p11_p12) target bundleno = 3 (0x3), region = 126 }

// kernel: tile.23
= control target key start
LH: loop header
LB: loop body
LE: loop exit
PB: predicated region body
PF: predicated region fallthrough
CT: control target
= control target key end

     0   :  { %s22_s0 = inlined_call_operand.vmem [shape: f32[32], index: 0, kind: input, shape index: {}]   ;;  %s23_s1 = inlined_call_operand.vmem [shape: f32[8,32], index: 1, kind: output, shape index: {}]  }
   0x1   :  { %v4_v0 = vld [vmem:[%s22_s0] ss:$0 sm:$0xff] }
   0x2   :  { %5 = vst [vmem:[%s23_s1] sm:$0xff] %v4_v0 }

// kernel: tile.28
= control target key start
LH: loop header
LB: loop body
LE: loop exit
PB: predicated region body
PF: predicated region fallthrough
CT: control target
= control target key end

     0   :  { %s7_s6 = smov 3  ;;  %s14_s9 = smov 3  ;;  %vm4_vm0 = vcmask 261120   ;;  %vm11_vm1 = vcmask 1048320   ;;  %vm18_vm2 = vcmask 785920   ;;  %vm25_vm3 = vcmask 523520   ;;  %s79_s0 = inlined_call_operand.vmem [shape: f32[8,32], index: 0, kind: input, shape index: {}]   ;;  %s80_s1 = inlined_call_operand.vmem [shape: f32[1,256], index: 1, kind: output, shape index: {}]  }
   0x1   :  { %v41_v0 = vld [vmem:[%s79_s0 + $0x3] ss:$4 sm:%s7_s6]   ;;  %s48_s10 = smov 96   ;;  %s21_s11 = smov 3  ;;  %v42_v1 = vld [vmem:[%s79_s0 + $0x2] ss:$4 sm:%s14_s9]  }
   0x2   :  { %9 = vrot.lane.b32.xlu0 %v41_v0, %s48_s10  ;;  %v43_v2 = vld [vmem:[%s79_s0 + $0x1] ss:$4 sm:%s21_s11]   ;;  %s2_s16 = smov 3  ;;  %s49_s17 = smov 32  }
   0x3   :  { %23 = vrot.lane.b32.xlu1 %v43_v2, %s49_s17  ;;  %v3_v3 = vld [vmem:[%s79_s0] ss:$4 sm:%s2_s16]   ;;  %s50_s0 = smov 64  }
   0x4   :  { %5 = vst.msk [vmem:[#allocation0] ss:$8 sm:$0x3] %vm4_vm0, %v3_v3  }
   0x6   :  { %16 = vrot.lane.b32.xlu0 %v42_v1, %s50_s0 }
  0x74   :  { %v10_v4 = vpop.permute.xlu0 %9  }
  0x75   :  { %12 = vst.msk [vmem:[#allocation0] ss:$8 sm:$0x3] %vm11_vm1, %v10_v4   ;;  %v24_v5 = vpop.permute.xlu1 %23  }
  0x78   :  { %v17_v6 = vpop.permute.xlu0 %16  }
  0x79   :  { %19 = vst.msk [vmem:[#allocation0] ss:$8 sm:$0x3] %vm18_vm2, %v17_v6  }
  0x7a   :  { %26 = vst.msk [vmem:[#allocation0] ss:$8 sm:$0x3] %vm25_vm3, %v24_v5  }
  0x81   :  { %v31_v7 = vld [vmem:[#allocation0] sm:$0x1]  ;;  %v36_v8 = vld [vmem:[#allocation0 + $0x8] sm:$0x1] }
  0x82   :  { %34 = vst [vmem:[%s80_s1] sm:$0x1] %v31_v7  ;;  %44 = vst [vmem:[%s80_s1 + $0x1] sm:$0x1] %v36_v8 }

// kernel: vae_forward.13
= control target key start
LH: loop header
LB: loop body
LE: loop exit
PB: predicated region body
PF: predicated region fallthrough
CT: control target
= control target key end

     0   :  { %s1595_s15 = smov 0   ;;  %s1597_s16 = smov 0   ;;  %s1915_s0 = inlined_call_operand.vmem [shape: bf16[160,512], index: 0, kind: input, shape index: {}]   ;;  %s1916_s1 = inlined_call_operand.vmem [shape: bf16[512,256], index: 1, kind: input, shape index: {}]   ;;  %s1917_s2 = inlined_call_operand.vmem [shape: f32[1,256], index: 2, kind: input, shape index: {}]   ;;  %s1918_s3 = inlined_call_operand.vmem [shape: f32[1,256], index: 3, kind: input, shape index: {}]   ;;  %s1919_s4 = inlined_call_operand.vmem [shape: bf16[160,256], index: 4, kind: output, shape index: {}]  }
   0x1   :  { %s1599_s17 = smov 0  }
   0x2 LB: > { %s26_s18 = sadd.s32 1, %s1564_s16  ;;  %p1283_p0 = scmp.ge.s32.totalorder %s1568_s17, 1  ;;  %s1568_s17 = sphi %s1599_s17, %s14_s17   ;;  %s1564_s16 = sphi %s1597_s16, %s1921_s16   ;;  %s1560_s15 = sphi %s1595_s15, %s1920_s15  }
   0x3   : > { %p28_p1 = scmp.ge.s32.totalorder %s26_s18, 2  ;;  %p209_p2 = scmp.lt.s32.totalorder %s1568_s17, 3 }
   0x5   : > { %s1923_s18 = smov (%p28_p1, %s26_s18), 0  ;;  %p210_p3 = pnand %p1283_p0, %p209_p2 }
   0x6   : > { %s254_s9 = smul.u32 (!%p210_p3), 10, %s1560_s15 }
   0x7   : > { %213 = sbr.rel (%p210_p3) target bundleno = 322 (0x142), region = 36 }
   0x8   : > { %p255_p4 = scmp.lt.s32.totalorder (!%p210_p3), %s254_s9, 19 }
   0xc   : > { %v1420_v0 = vld [vmem:[%s1916_s1 + $0x74] ss:$8 sps:$4 sm:$0xff]   ;;  %v1424_v2 = vld [vmem:[%s1916_s1 + $0x70] ss:$8 sps:$4 sm:$0xff]   ;;  %v1426_v4 = vld [vmem:[%s1916_s1 + $0x64] ss:$8 sps:$4 sm:$0xff]  }
   0xd   : > { %v1422_v1 = vld [vmem:[%s1916_s1 + $0x174] ss:$8 sps:$4 sm:$0xff]   ;;  %793 = vmatprep.subr.bf16.mxu0 %v1420_v0  ;;  %v1425_v3 = vld [vmem:[%s1916_s1 + $0x170] ss:$8 sps:$4 sm:$0xff]   ;;  %v1428_v5 = vld [vmem:[%s1916_s1 + $0x164] ss:$8 sps:$4 sm:$0xff]  }
   0xe   : > { %876 = vmatprep.subr.bf16.mxu1 %v1422_v1  ;;  %794 = vmatpush1.bf16.msra.mxu0 %v1424_v2  ;;  %v1430_v6 = vld [vmem:[%s1916_s1 + $0x60] ss:$8 sps:$4 sm:$0xff]   ;;  %v1432_v8 = vld [vmem:[%s1916_s1 + $0x54] ss:$8 sps:$4 sm:$0xff]   ;;  %v1436_v10 = vld [vmem:[%s1916_s1 + $0x50] ss:$8 sps:$4 sm:$0xff]  }
   0xf   : > { %877 = vmatpush1.bf16.msra.mxu1 %v1425_v3  ;;  %795 = vmatprep.subr.bf16.mxu0 %v1426_v4  ;;  %v1431_v7 = vld [vmem:[%s1916_s1 + $0x160] ss:$8 sps:$4 sm:$0xff]   ;;  %v1434_v9 = vld [vmem:[%s1916_s1 + $0x154] ss:$8 sps:$4 sm:$0xff]   ;;  %v1437_v11 = vld [vmem:[%s1916_s1 + $0x150] ss:$8 sps:$4 sm:$0xff]  }
  0x10   : > { %878 = vmatprep.subr.bf16.mxu1 %v1428_v5  ;;  %v1438_v12 = vld [vmem:[%s1916_s1 + $0x44] ss:$8 sps:$4 sm:$0xff]   ;;  %v1442_v14 = vld [vmem:[%s1916_s1 + $0x40] ss:$8 sps:$4 sm:$0xff]   ;;  %v1444_v16 = vld [vmem:[%s1916_s1 + $0x34] ss:$8 sps:$4 sm:$0xff]  }
  0x11   : > { %v1440_v13 = vld [vmem:[%s1916_s1 + $0x144] ss:$8 sps:$4 sm:$0xff]   ;;  %v1443_v15 = vld [vmem:[%s1916_s1 + $0x140] ss:$8 sps:$4 sm:$0xff]   ;;  %v1446_v17 = vld [vmem:[%s1916_s1 + $0x134] ss:$8 sps:$4 sm:$0xff]  }
  0x12   : > { %796 = vmatpush1.bf16.msra.mxu0 %v1430_v6  ;;  %v1448_v18 = vld [vmem:[%s1916_s1 + $0x30] ss:$8 sps:$4 sm:$0xff]   ;;  %v1450_v20 = vld [vmem:[%s1916_s1 + $0x24] ss:$8 sps:$4 sm:$0xff]   ;;  %v1454_v22 = vld [vmem:[%s1916_s1 + $0x20] ss:$8 sps:$4 sm:$0xff]  }
  0x13   : > { %879 = vmatpush1.bf16.msra.mxu1 %v1431_v7  ;;  %797 = vmatprep.subr.bf16.mxu0 %v1432_v8  ;;  %v1449_v19 = vld [vmem:[%s1916_s1 + $0x130] ss:$8 sps:$4 sm:$0xff]   ;;  %v1452_v21 = vld [vmem:[%s1916_s1 + $0x124] ss:$8 sps:$4 sm:$0xff]   ;;  %v1455_v23 = vld [vmem:[%s1916_s1 + $0x120] ss:$8 sps:$4 sm:$0xff]  }
  0x14   : > { %880 = vmatprep.subr.bf16.mxu1 %v1434_v9  ;;  %v1456_v24 = vld [vmem:[%s1916_s1 + $0x14] ss:$8 sps:$4 sm:$0xff]   ;;  %v1460_v26 = vld [vmem:[%s1916_s1 + $0x10] ss:$8 sps:$4 sm:$0xff]   ;;  %v1462_v28 = vld [vmem:[%s1916_s1 + $0x4] ss:$8 sps:$4 sm:$0xff]  }
  0x15   : > { %v1458_v25 = vld [vmem:[%s1916_s1 + $0x114] ss:$8 sps:$4 sm:$0xff]   ;;  %v1461_v27 = vld [vmem:[%s1916_s1 + $0x110] ss:$8 sps:$4 sm:$0xff]   ;;  %v1464_v29 = vld [vmem:[%s1916_s1 + $0x104] ss:$8 sps:$4 sm:$0xff]  }
  0x16   : > { %798 = vmatpush1.bf16.msra.mxu0 %v1436_v10  ;;  %v1466_v30 = vld [vmem:[%s1916_s1] ss:$8 sps:$4 sm:$0xff]   ;;  %v1468_v32 = vld [vmem:[%s1916_s1 + $0xf4] ss:$8 sps:$4 sm:$0xff]   ;;  %v1472_v34 = vld [vmem:[%s1916_s1 + $0xf0] ss:$8 sps:$4 sm:$0xff]  }
  0x17   : > { %881 = vmatpush1.bf16.msra.mxu1 %v1437_v11  ;;  %799 = vmatprep.subr.bf16.mxu0 %v1438_v12  ;;  %v1467_v31 = vld [vmem:[%s1916_s1 + $0x100] ss:$8 sps:$4 sm:$0xff]   ;;  %v1470_v33 = vld [vmem:[%s1916_s1 + $0x1f4] ss:$8 sps:$4 sm:$0xff]   ;;  %v1473_v35 = vld [vmem:[%s1916_s1 + $0x1f0] ss:$8 sps:$4 sm:$0xff]  }
  0x18   : > { %882 = vmatprep.subr.bf16.mxu1 %v1440_v13  ;;  %v1474_v36 = vld [vmem:[%s1916_s1 + $0xe4] ss:$8 sps:$4 sm:$0xff]   ;;  %s1925_s9 = smov (!%p255_p4, %s254_s9), 19  ;;  %v1478_v38 = vld [vmem:[%s1916_s1 + $0xe0] ss:$8 sps:$4 sm:$0xff]  }
  0x19   : > { %v1476_v37 = vld [vmem:[%s1916_s1 + $0x1e4] ss:$8 sps:$4 sm:$0xff]   ;;  %v1479_v39 = vld [vmem:[%s1916_s1 + $0x1e0] ss:$8 sps:$4 sm:$0xff]   ;;  %v1480_v40 = vld [vmem:[%s1916_s1 + $0xd4] ss:$8 sps:$4 sm:$0xff]  }
  0x1a   : > { %800 = vmatpush1.bf16.msra.mxu0 %v1442_v14  ;;  %v1482_v41 = vld [vmem:[%s1916_s1 + $0x1d4] ss:$8 sps:$4 sm:$0xff]   ;;  %s1384_s12 = sshll.u32 %s1925_s9, 4  ;;  %v1484_v42 = vld [vmem:[%s1916_s1 + $0xd0] ss:$8 sps:$4 sm:$0xff]  }
  0x1b   : > { %883 = vmatpush1.bf16.msra.mxu1 %v1443_v15  ;;  %801 = vmatprep.subr.bf16.mxu0 %v1444_v16  ;;  %v1485_v43 = vld [vmem:[%s1916_s1 + $0x1d0] ss:$8 sps:$4 sm:$0xff]   ;;  %v1486_v44 = vld [vmem:[%s1916_s1 + $0xc4] ss:$8 sps:$4 sm:$0xff]   ;;  %s1757_s24 = scalar_lea.vmem %s1915_s0, %s1384_s12  ;;  %v1490_v46 = vld [vmem:[%s1916_s1 + $0xc0] ss:$8 sps:$4 sm:$0xff]  }
  0x1c   : > { %884 = vmatprep.subr.bf16.mxu1 %v1446_v17  ;;  %v1488_v45 = vld [vmem:[%s1916_s1 + $0x1c4] ss:$8 sps:$4 sm:$0xff]   ;;  %v1491_v47 = vld [vmem:[%s1916_s1 + $0x1c0] ss:$8 sps:$4 sm:$0xff]   ;;  %v1492_v48 = vld [vmem:[%s1916_s1 + $0xb4] ss:$8 sps:$4 sm:$0xff]  }
  0x1d   : > { %v1518_v49 = vld [vmem:[%s1757_s24 + $0x4] ss:$16 sps:$4 sm:$0xff]   ;;  %v1521_v51 = vld [vmem:[%s1757_s24 + $0xc] ss:$16 sps:$4 sm:$0xff]   ;;  %v1496_v52 = vld [vmem:[%s1916_s1 + $0xb0] ss:$8 sps:$4 sm:$0xff]  }
  0x1e   : > { %802 = vmatpush1.bf16.msra.mxu0 %v1448_v18  ;;  %v1494_v50 = vld [vmem:[%s1916_s1 + $0x1b4] ss:$8 sps:$4 sm:$0xff]   ;;  %825 = vmatprep.mubr.bf16.mxu0 %v1518_v49  ;;  %v1497_v53 = vld [vmem:[%s1916_s1 + $0x1b0] ss:$8 sps:$4 sm:$0xff]   ;;  %v1498_v54 = vld [vmem:[%s1916_s1 + $0xa4] ss:$8 sps:$4 sm:$0xff]  }
  0x1f   : > { %885 = vmatpush1.bf16.msra.mxu1 %v1449_v19  ;;  %803 = vmatprep.subr.bf16.mxu0 %v1450_v20  ;;  %v1500_v55 = vld [vmem:[%s1916_s1 + $0x1a4] ss:$8 sps:$4 sm:$0xff]   ;;  %v1502_v56 = vld [vmem:[%s1916_s1 + $0xa0] ss:$8 sps:$4 sm:$0xff]   ;;  %v1504_v58 = vld [vmem:[%s1916_s1 + $0x94] ss:$8 sps:$4 sm:$0xff]   ;;  %v962_v20 = vlaneseq }
  0x20   : > { %886 = vmatprep.subr.bf16.mxu1 %v1452_v21  ;;  %908 = vmatprep.mubr.bf16.mxu1 %v1521_v51  ;;  %v1503_v57 = vld [vmem:[%s1916_s1 + $0x1a0] ss:$8 sps:$4 sm:$0xff]   ;;  %v1506_v59 = vld [vmem:[%s1916_s1 + $0x194] ss:$8 sps:$4 sm:$0xff]   ;;  %v1508_v60 = vld [vmem:[%s1916_s1 + $0x90] ss:$8 sps:$4 sm:$0xff]  }
  0x21   : > { %v1509_v61 = vld [vmem:[%s1916_s1 + $0x190] ss:$8 sps:$4 sm:$0xff]   ;;  %v1510_v62 = vld [vmem:[%s1916_s1 + $0x84] ss:$8 sps:$4 sm:$0xff]   ;;  %v1514_v0 = vld [vmem:[%s1916_s1 + $0x80] ss:$8 sps:$4 sm:$0xff]  }
  0x22   : > { %804 = vmatpush1.bf16.msra.mxu0 %v1454_v22  ;;  %v1512_v63 = vld [vmem:[%s1916_s1 + $0x184] ss:$8 sps:$4 sm:$0xff]   ;;  %v1515_v1 = vld [vmem:[%s1916_s1 + $0x180] ss:$8 sps:$4 sm:$0xff]   ;;  %v963_v21 = vshrl.u32 %v962_v20, 7 }
  0x23   : > { %887 = vmatpush1.bf16.msra.mxu1 %v1455_v23  ;;  %805 = vmatprep.subr.bf16.mxu0 %v1456_v24  ;;  %v1516_v2 = vld [vmem:[%s1757_s24] ss:$16 sps:$4 sm:$0xff]   ;;  %v1519_v3 = vld [vmem:[%s1757_s24 + $0x8] ss:$16 sps:$4 sm:$0xff]   ;;  %v1522_v4 = vld [vmem:[%s1757_s24 + $0x24] ss:$16 sps:$4 sm:$0xff]  }
  0x24   : > { %888 = vmatprep.subr.bf16.mxu1 %v1458_v25  ;;  %v1524_v5 = vld [vmem:[%s1757_s24 + $0x2c] ss:$16 sps:$4 sm:$0xff]   ;;  %v1526_v6 = vld [vmem:[%s1757_s24 + $0x20] ss:$16 sps:$4 sm:$0xff]   ;;  %v1527_v7 = vld [vmem:[%s1757_s24 + $0x28] ss:$16 sps:$4 sm:$0xff]  }
  0x25   : > { %v1528_v8 = vld [vmem:[%s1757_s24 + $0x44] ss:$16 sps:$4 sm:$0xff]   ;;  %v1530_v9 = vld [vmem:[%s1757_s24 + $0x4c] ss:$16 sps:$4 sm:$0xff]   ;;  %v1532_v10 = vld [vmem:[%s1757_s24 + $0x40] ss:$16 sps:$4 sm:$0xff]  }
  0x26   : > { %806 = vmatpush1.bf16.msra.mxu0 %v1460_v26  ;;  %v1533_v11 = vld [vmem:[%s1757_s24 + $0x48] ss:$16 sps:$4 sm:$0xff]   ;;  %v1534_v12 = vld [vmem:[%s1757_s24 + $0x64] ss:$16 sps:$4 sm:$0xff]   ;;  %v1536_v13 = vld [vmem:[%s1757_s24 + $0x6c] ss:$16 sps:$4 sm:$0xff]  }
  0x27   : > { %889 = vmatpush1.bf16.msra.mxu1 %v1461_v27  ;;  %807 = vmatprep.subr.bf16.mxu0 %v1462_v28  ;;  %v1538_v14 = vld [vmem:[%s1757_s24 + $0x60] ss:$16 sps:$4 sm:$0xff]   ;;  %v1539_v15 = vld [vmem:[%s1757_s24 + $0x68] ss:$16 sps:$4 sm:$0xff]   ;;  %v1540_v16 = vld [vmem:[%s1757_s24 + $0x84] ss:$16 sps:$4 sm:$0xff]  }
  0x28   : > { %890 = vmatprep.subr.bf16.mxu1 %v1464_v29  ;;  %v1542_v17 = vld [vmem:[%s1757_s24 + $0x8c] ss:$16 sps:$4 sm:$0xff]   ;;  %v1544_v18 = vld [vmem:[%s1757_s24 + $0x80] ss:$16 sps:$4 sm:$0xff]   ;;  %v1545_v19 = vld [vmem:[%s1757_s24 + $0x88] ss:$16 sps:$4 sm:$0xff]  }
  0x29   : > { %v964_v22 = vsub.s32 0, %v963_v21  ;;  %v959_v23 = vld [vmem:[%s1917_s2] sm:$0x3]  ;;  %v968_v24 = vsub.s32 1, %v963_v21  ;;  %s1385_s24 = sshll.u32 %s1925_s9, 3 }
  0x2a   : > { %808 = vmatpush1.bf16.msra.mxu0 %v1466_v30  ;;  %v960_v25 = vld [vmem:[%s1918_s3] sm:$0x3]  ;;  %s1861_s27 = scalar_lea.vmem %s1919_s4, %s1385_s24 }
  0x2b   : > { %891 = vmatpush1.bf16.msra.mxu1 %v1467_v31  ;;  %809 = vmatprep.subr.bf16.mxu0 %v1468_v32  ;;  %v1842_v26 = vrot.slane %v959_v23, %v964_v22  ;;  %v1844_v30 = vrot.slane %v960_v25, %v964_v22  ;;  %v1846_v31 = vrot.slane %v959_v23, %v968_v24 }
  0x2c   : > { %892 = vmatprep.subr.bf16.mxu1 %v1470_v33 }
  0x2e   : > { %810 = vmatpush2.bf16.msra.mxu0 %v1472_v34 }
  0x2f   : > { %893 = vmatpush2.bf16.msra.mxu1 %v1473_v35  ;;  %811 = vmatprep.subr.bf16.mxu0 %v1474_v36  ;;  %v1849_v36 = vrot.slane %v960_v25, %v968_v24 }
  0x30   : > { %894 = vmatprep.subr.bf16.mxu1 %v1476_v37 }
  0x32   : > { %812 = vmatpush2.bf16.msra.mxu0 %v1478_v38 }
  0x33   : > { %895 = vmatpush2.bf16.msra.mxu1 %v1479_v39  ;;  %813 = vmatprep.subr.bf16.mxu0 %v1480_v40 }
  0x34   : > { %896 = vmatprep.subr.bf16.mxu1 %v1482_v41 }
  0x36   : > { %814 = vmatpush2.bf16.msra.mxu0 %v1484_v42 }
  0x37   : > { %897 = vmatpush2.bf16.msra.mxu1 %v1485_v43  ;;  %815 = vmatprep.subr.bf16.mxu0 %v1486_v44 }
  0x38   : > { %898 = vmatprep.subr.bf16.mxu1 %v1488_v45 }
  0x3a   : > { %816 = vmatpush2.bf16.msra.mxu0 %v1490_v46 }
  0x3b   : > { %899 = vmatpush2.bf16.msra.mxu1 %v1491_v47  ;;  %817 = vmatprep.subr.bf16.mxu0 %v1492_v48 }
  0x3c   : > { %900 = vmatprep.subr.bf16.mxu1 %v1494_v50 }
  0x3e   : > { %818 = vmatpush2.bf16.msra.mxu0 %v1496_v52 }
  0x3f   : > { %901 = vmatpush2.bf16.msra.mxu1 %v1497_v53  ;;  %819 = vmatprep.subr.bf16.mxu0 %v1498_v54 }
  0x40   : > { %902 = vmatprep.subr.bf16.mxu1 %v1500_v55 }
  0x42   : > { %820 = vmatpush2.bf16.msra.mxu0 %v1502_v56 }
  0x43   : > { %903 = vmatpush2.bf16.msra.mxu1 %v1503_v57  ;;  %821 = vmatprep.subr.bf16.mxu0 %v1504_v58 }
  0x44   : > { %904 = vmatprep.subr.bf16.mxu1 %v1506_v59 }
  0x46   : > { %822 = vmatpush2.bf16.msra.mxu0 %v1508_v60 }
  0x47   : > { %905 = vmatpush2.bf16.msra.mxu1 %v1509_v61  ;;  %823 = vmatprep.subr.bf16.mxu0 %v1510_v62 }
  0x48   : > { %906 = vmatprep.subr.bf16.mxu1 %v1512_v63 }
  0x4a   : > { %824 = vmatpush2.bf16.msra.mxu0 %v1514_v0 }
  0x4b   : > { %907 = vmatpush2.bf16.msra.mxu1 %v1515_v1 }
  0x4d   : > { %826 = vmatmul.mubr.bf16.vlgmr.msra.gmra.mxu0 %v1516_v2 }
  0x4e   : > { %909 = vmatmul.mubr.bf16.vlgmr.msra.gmra.mxu1 %v1519_v3  ;;  %835 = vmatprep.mubr.bf16.mxu0 %v1522_v4 }
  0x4f   : > { %918 = vmatprep.mubr.bf16.mxu1 %v1524_v5 }
  0x55   : > { %836 = vmatmul.mubr.bf16.gmra.mxu0 %v1526_v6 }
  0x56   : > { %919 = vmatmul.mubr.bf16.gmra.mxu1 %v1527_v7  ;;  %845 = vmatprep.mubr.bf16.mxu0 %v1528_v8 }
  0x57   : > { %928 = vmatprep.mubr.bf16.mxu1 %v1530_v9 }
  0x5d   : > { %846 = vmatmul.mubr.bf16.gmra.mxu0 %v1532_v10 }
  0x5e   : > { %929 = vmatmul.mubr.bf16.gmra.mxu1 %v1533_v11  ;;  %855 = vmatprep.mubr.bf16.mxu0 %v1534_v12 }
  0x5f   : > { %938 = vmatprep.mubr.bf16.mxu1 %v1536_v13 }
  0x65   : > { %856 = vmatmul.mubr.bf16.gmra.mxu0 %v1538_v14 }
  0x66   : > { %939 = vmatmul.mubr.bf16.gmra.mxu1 %v1539_v15  ;;  %865 = vmatprep.mubr.bf16.mxu0 %v1540_v16 }
  0x67   : > { %948 = vmatprep.mubr.bf16.mxu1 %v1542_v17 }
  0x6d   : > { %866 = vmatmul.mubr.bf16.gmra.mxu0 %v1544_v18 }
  0x6e   : > { %949 = vmatmul.mubr.bf16.gmra.mxu1 %v1545_v19 }
 0x10d   : > { %v827_v27 = vpop.f32.mrf.mxu0 }
 0x10e   : > { %v910_v28 = vpop.f32.mrf.mxu1 }
 0x10f   : > { %v911_v29 = vadd.f32 %v910_v28, %v827_v27  ;;  %v829_v32 = vpop.f32.mrf.mxu0 }
 0x110   : > { %v912_v33 = vpop.f32.mrf.mxu1 }
 0x111   : > { %v972_v34 = vmul.f32 %v1842_v26, %v911_v29  ;;  %v913_v35 = vadd.f32 %v912_v33, %v829_v32  ;;  %v831_v37 = vpop.f32.mrf.mxu0 }
 0x112   : > { %v914_v38 = vpop.f32.mrf.mxu1 }
 0x113   : > { %v1003_v39 = vadd.f32 %v1844_v30, %v972_v34  ;;  %v973_v40 = vmul.f32 %v1846_v31, %v913_v35  ;;  %v915_v41 = vadd.f32 %v914_v38, %v831_v37  ;;  %v833_v42 = vpop.f32.mrf.mxu0 }
 0x114   : > { %v916_v43 = vpop.f32.mrf.mxu1 }
 0x115   : > { %v1043_v44 = vmul.f32 0.01, %v1003_v39  ;;  %v1004_v45 = vadd.f32 %v1849_v36, %v973_v40  ;;  %v974_v46 = vmul.f32 %v1842_v26, %v915_v41  ;;  %vm1023_vm0 = vcmp.ge.f32.partialorder %v1003_v39, 0.0  ;;  %v837_v48 = vpop.f32.mrf.mxu0 }
 0x116   : > { %v917_v47 = vadd.f32 %v916_v43, %v833_v42  ;;  %v920_v49 = vpop.f32.mrf.mxu1 }
 0x117   : > { %vm1024_vm1 = vcmp.ge.f32.partialorder %v1004_v45, 0.0  ;;  %v1044_v50 = vmul.f32 0.01, %v1004_v45  ;;  %v1005_v51 = vadd.f32 %v1844_v30, %v974_v46  ;;  %v921_v53 = vadd.f32 %v920_v49, %v837_v48  ;;  %v839_v54 = vpop.f32.mrf.mxu0 }
 0x118   : > { %v975_v52 = vmul.f32 %v1846_v31, %v917_v47  ;;  %v922_v55 = vpop.f32.mrf.mxu1  ;;  %v1063_v56 = vsel %vm1023_vm0, %v1003_v39, %v1043_v44 }
 0x119   : > { %v1064_v57 = vsel %vm1024_vm1, %v1004_v45, %v1044_v50  ;;  %v923_v58 = vadd.f32 %v922_v55, %v839_v54  ;;  %v1045_v60 = vmul.f32 0.01, %v1005_v51  ;;  %v976_v62 = vmul.f32 %v1842_v26, %v921_v53  ;;  %v841_v63 = vpop.f32.mrf.mxu0 }
 0x11a   : > { %v1386_v59 = vpack.c.bf16 %v1064_v57, %v1063_v56  ;;  %v1006_v61 = vadd.f32 %v1849_v36, %v975_v52  ;;  %v924_v0 = vpop.f32.mrf.mxu1  ;;  %vm1025_vm2 = vcmp.ge.f32.partialorder %v1005_v51, 0.0 }
 0x11b   : > { %v977_v1 = vmul.f32 %v1846_v31, %v923_v58  ;;  %v925_v2 = vadd.f32 %v924_v0, %v841_v63  ;;  %v1007_v4 = vadd.f32 %v1844_v30, %v976_v62  ;;  %v843_v5 = vpop.f32.mrf.mxu0  ;;  %v1065_v10 = vsel %vm1025_vm2, %v1005_v51, %v1045_v60 }
 0x11c   : > { %1143 = vst [vmem:[%s1861_s27] sm:$0xff] %v1386_v59  ;;  %vm1026_vm3 = vcmp.ge.f32.partialorder %v1006_v61, 0.0  ;;  %v1046_v3 = vmul.f32 0.01, %v1006_v61  ;;  %v926_v6 = vpop.f32.mrf.mxu1 }
 0x11d   : > { %v1008_v7 = vadd.f32 %v1849_v36, %v977_v1  ;;  %v978_v8 = vmul.f32 %v1842_v26, %v925_v2  ;;  %v927_v9 = vadd.f32 %v926_v6, %v843_v5  ;;  %vm1027_vm4 = vcmp.ge.f32.partialorder %v1007_v4, 0.0  ;;  %v847_v13 = vpop.f32.mrf.mxu0 }
 0x11e   : > { %v1066_v11 = vsel %vm1026_vm3, %v1006_v61, %v1046_v3  ;;  %v1047_v12 = vmul.f32 0.01, %v1007_v4  ;;  %v930_v14 = vpop.f32.mrf.mxu1 }
 0x11f   : > { %v1387_v15 = vpack.c.bf16 %v1066_v11, %v1065_v10  ;;  %vm1028_vm5 = vcmp.ge.f32.partialorder %v1008_v7, 0.0  ;;  %v1048_v16 = vmul.f32 0.01, %v1008_v7  ;;  %v1009_v17 = vadd.f32 %v1844_v30, %v978_v8  ;;  %v849_v20 = vpop.f32.mrf.mxu0 }
 0x120   : > { %v979_v18 = vmul.f32 %v1846_v31, %v927_v9  ;;  %v931_v19 = vadd.f32 %v930_v14, %v847_v13  ;;  %v932_v21 = vpop.f32.mrf.mxu1  ;;  %v1067_v22 = vsel %vm1027_vm4, %v1007_v4, %v1047_v12 }
 0x121   : > { %1144 = vst [vmem:[%s1861_s27 + $0x8] sm:$0xff] %v1387_v15  ;;  %v1068_v23 = vsel %vm1028_vm5, %v1008_v7, %v1048_v16  ;;  %v933_v24 = vadd.f32 %v932_v21, %v849_v20  ;;  %v1049_v27 = vmul.f32 0.01, %v1009_v17  ;;  %v851_v32 = vpop.f32.mrf.mxu0  ;;  %vm1029_vm6 = vcmp.ge.f32.partialorder %v1009_v17, 0.0 }
 0x122   : > { %v1388_v25 = vpack.c.bf16 %v1068_v23, %v1067_v22  ;;  %v1010_v28 = vadd.f32 %v1849_v36, %v979_v18  ;;  %v980_v29 = vmul.f32 %v1842_v26, %v931_v19  ;;  %v934_v33 = vpop.f32.mrf.mxu1 }
 0x123   : > { %v981_v34 = vmul.f32 %v1846_v31, %v933_v24  ;;  %v935_v35 = vadd.f32 %v934_v33, %v851_v32  ;;  %v853_v39 = vpop.f32.mrf.mxu0  ;;  %v1069_v44 = vsel %vm1029_vm6, %v1009_v17, %v1049_v27 }
 0x124   : > { %1145 = vst [vmem:[%s1861_s27 + $0x10] sm:$0xff] %v1388_v25  ;;  %vm1030_vm7 = vcmp.ge.f32.partialorder %v1010_v28, 0.0  ;;  %v1050_v37 = vmul.f32 0.01, %v1010_v28  ;;  %v1011_v38 = vadd.f32 %v1844_v30, %v980_v29  ;;  %v936_v40 = vpop.f32.mrf.mxu1 }
 0x125   : > { %v1012_v41 = vadd.f32 %v1849_v36, %v981_v34  ;;  %v982_v42 = vmul.f32 %v1842_v26, %v935_v35  ;;  %v937_v43 = vadd.f32 %v936_v40, %v853_v39  ;;  %v857_v47 = vpop.f32.mrf.mxu0 }
 0x126   : > { %v1070_v45 = vsel %vm1030_vm7, %v1010_v28, %v1050_v37  ;;  %vm1031_vm8 = vcmp.ge.f32.partialorder %v1011_v38, 0.0  ;;  %v1051_v46 = vmul.f32 0.01, %v1011_v38  ;;  %v940_v48 = vpop.f32.mrf.mxu1 }
 0x127   : > { %v1389_v49 = vpack.c.bf16 %v1070_v45, %v1069_v44  ;;  %vm1032_vm9 = vcmp.ge.f32.partialorder %v1012_v41, 0.0  ;;  %v1052_v50 = vmul.f32 0.01, %v1012_v41  ;;  %v1013_v51 = vadd.f32 %v1844_v30, %v982_v42  ;;  %v859_v54 = vpop.f32.mrf.mxu0 }
 0x128   : > { %v983_v52 = vmul.f32 %v1846_v31, %v937_v43  ;;  %v941_v53 = vadd.f32 %v940_v48, %v857_v47  ;;  %v942_v55 = vpop.f32.mrf.mxu1  ;;  %v1071_v56 = vsel %vm1031_vm8, %v1011_v38, %v1051_v46 }
 0x129   : > { %1146 = vst [vmem:[%s1861_s27 + $0x18] sm:$0xff] %v1389_v49  ;;  %v1072_v57 = vsel %vm1032_vm9, %v1012_v41, %v1052_v50  ;;  %v943_v58 = vadd.f32 %v942_v55, %v859_v54  ;;  %v1053_v60 = vmul.f32 0.01, %v1013_v51  ;;  %v861_v63 = vpop.f32.mrf.mxu0  ;;  %vm1033_vm10 = vcmp.ge.f32.partialorder %v1013_v51, 0.0 }
 0x12a   : > { %v1390_v59 = vpack.c.bf16 %v1072_v57, %v1071_v56  ;;  %v1014_v61 = vadd.f32 %v1849_v36, %v983_v52  ;;  %v984_v62 = vmul.f32 %v1842_v26, %v941_v53  ;;  %v944_v0 = vpop.f32.mrf.mxu1 }
 0x12b   : > { %v985_v1 = vmul.f32 %v1846_v31, %v943_v58  ;;  %v945_v2 = vadd.f32 %v944_v0, %v861_v63  ;;  %v863_v5 = vpop.f32.mrf.mxu0  ;;  %v1073_v10 = vsel %vm1033_vm10, %v1013_v51, %v1053_v60 }
 0x12c   : > { %1147 = vst [vmem:[%s1861_s27 + $0x20] sm:$0xff] %v1390_v59  ;;  %vm1034_vm11 = vcmp.ge.f32.partialorder %v1014_v61, 0.0  ;;  %v1054_v3 = vmul.f32 0.01, %v1014_v61  ;;  %v1015_v4 = vadd.f32 %v1844_v30, %v984_v62  ;;  %v946_v6 = vpop.f32.mrf.mxu1 }
 0x12d   : > { %v1016_v7 = vadd.f32 %v1849_v36, %v985_v1  ;;  %v986_v8 = vmul.f32 %v1842_v26, %v945_v2  ;;  %v947_v9 = vadd.f32 %v946_v6, %v863_v5  ;;  %v867_v13 = vpop.f32.mrf.mxu0 }
 0x12e   : > { %v1074_v11 = vsel %vm1034_vm11, %v1014_v61, %v1054_v3  ;;  %vm1035_vm12 = vcmp.ge.f32.partialorder %v1015_v4, 0.0  ;;  %v1055_v12 = vmul.f32 0.01, %v1015_v4  ;;  %v950_v14 = vpop.f32.mrf.mxu1 }
 0x12f   : > { %v1391_v15 = vpack.c.bf16 %v1074_v11, %v1073_v10  ;;  %vm1036_vm13 = vcmp.ge.f32.partialorder %v1016_v7, 0.0  ;;  %v1056_v16 = vmul.f32 0.01, %v1016_v7  ;;  %v1017_v17 = vadd.f32 %v1844_v30, %v986_v8  ;;  %v869_v20 = vpop.f32.mrf.mxu0 }
 0x130   : > { %v987_v18 = vmul.f32 %v1846_v31, %v947_v9  ;;  %v951_v19 = vadd.f32 %v950_v14, %v867_v13  ;;  %v952_v21 = vpop.f32.mrf.mxu1  ;;  %v1075_v22 = vsel %vm1035_vm12, %v1015_v4, %v1055_v12 }
 0x131   : > { %1148 = vst [vmem:[%s1861_s27 + $0x28] sm:$0xff] %v1391_v15  ;;  %v1076_v23 = vsel %vm1036_vm13, %v1016_v7, %v1056_v16  ;;  %v953_v24 = vadd.f32 %v952_v21, %v869_v20  ;;  %v1057_v27 = vmul.f32 0.01, %v1017_v17  ;;  %v871_v32 = vpop.f32.mrf.mxu0  ;;  %vm1037_vm14 = vcmp.ge.f32.partialorder %v1017_v17, 0.0 }
 0x132   : > { %v1392_v25 = vpack.c.bf16 %v1076_v23, %v1075_v22  ;;  %v1018_v28 = vadd.f32 %v1849_v36, %v987_v18  ;;  %v988_v29 = vmul.f32 %v1842_v26, %v951_v19  ;;  %v954_v33 = vpop.f32.mrf.mxu1 }
 0x133   : > { %v989_v34 = vmul.f32 %v1846_v31, %v953_v24  ;;  %v955_v35 = vadd.f32 %v954_v33, %v871_v32  ;;  %v873_v39 = vpop.f32.mrf.mxu0  ;;  %v1077_v44 = vsel %vm1037_vm14, %v1017_v17, %v1057_v27 }
 0x134   : > { %1149 = vst [vmem:[%s1861_s27 + $0x30] sm:$0xff] %v1392_v25  ;;  %vm1038_vm15 = vcmp.ge.f32.partialorder %v1018_v28, 0.0  ;;  %v1058_v37 = vmul.f32 0.01, %v1018_v28  ;;  %v1019_v38 = vadd.f32 %v1844_v30, %v988_v29  ;;  %v956_v40 = vpop.f32.mrf.mxu1 }
 0x135   : > { %v1020_v41 = vadd.f32 %v1849_v36, %v989_v34  ;;  %v990_v42 = vmul.f32 %v1842_v26, %v955_v35  ;;  %v957_v43 = vadd.f32 %v956_v40, %v873_v39 }
 0x136   : > { %v1078_v45 = vsel %vm1038_vm15, %v1018_v28, %v1058_v37  ;;  %vm1039_vm0 = vcmp.ge.f32.partialorder %v1019_v38, 0.0  ;;  %v1059_v46 = vmul.f32 0.01, %v1019_v38 }
 0x137   : > { %v1393_v47 = vpack.c.bf16 %v1078_v45, %v1077_v44  ;;  %vm1040_vm1 = vcmp.ge.f32.partialorder %v1020_v41, 0.0  ;;  %v1060_v48 = vmul.f32 0.01, %v1020_v41  ;;  %v1021_v49 = vadd.f32 %v1844_v30, %v990_v42 }
 0x138   : > { %v991_v50 = vmul.f32 %v1846_v31, %v957_v43  ;;  %v1079_v51 = vsel %vm1039_vm0, %v1019_v38, %v1059_v46 }
 0x139   : > { %1150 = vst [vmem:[%s1861_s27 + $0x38] sm:$0xff] %v1393_v47  ;;  %v1080_v52 = vsel %vm1040_vm1, %v1020_v41, %v1060_v48  ;;  %v1061_v54 = vmul.f32 0.01, %v1021_v49  ;;  %vm1041_vm2 = vcmp.ge.f32.partialorder %v1021_v49, 0.0 }
 0x13a   : > { %v1394_v53 = vpack.c.bf16 %v1080_v52, %v1079_v51  ;;  %v1022_v26 = vadd.f32 %v1849_v36, %v991_v50 }
 0x13b   : > { %v1081_v56 = vsel %vm1041_vm2, %v1021_v49, %v1061_v54 }
 0x13c   : > { %1151 = vst [vmem:[%s1861_s27 + $0x40] sm:$0xff] %v1394_v53  ;;  %vm1042_vm3 = vcmp.ge.f32.partialorder %v1022_v26, 0.0  ;;  %v1062_v55 = vmul.f32 0.01, %v1022_v26 }
 0x13e   : > { %v1082_v57 = vsel %vm1042_vm3, %v1022_v26, %v1062_v55 }
 0x13f   : > { %v1395_v58 = vpack.c.bf16 %v1082_v57, %v1081_v56 }
 0x141   : > { %1152 = vst [vmem:[%s1861_s27 + $0x48] sm:$0xff] %v1395_v58 }
 0x142 PF: > { %s14_s17 = sadd.s32 1, %s1568_s17   ;;  %s1920_s15 = smov %s1564_s16 }
 0x143   : > { %p11_p5 = scmp.ge.s32.totalorder %s14_s17, 4   ;;  %s1921_s16 = smov %s1923_s18 }
 0x145   :  { %13 = sbr.rel (!%p11_p5) target bundleno = 2 (0x2), region = 75 }

// kernel: vae_forward.14
= control target key start
LH: loop header
LB: loop body
LE: loop exit
PB: predicated region body
PF: predicated region fallthrough
CT: control target
= control target key end

     0   :  { %s3462_s15 = smov 0   ;;  %s3464_s16 = smov 0   ;;  %s4433_s0 = inlined_call_operand.vmem [shape: bf16[1280,256], index: 0, kind: input, shape index: {}]   ;;  %s4434_s1 = inlined_call_operand.vmem [shape: bf16[256,256], index: 1, kind: input, shape index: {}]   ;;  %s4435_s2 = inlined_call_operand.vmem [shape: f32[1,256], index: 2, kind: input, shape index: {}]   ;;  %s4436_s3 = inlined_call_operand.vmem [shape: f32[1,256], index: 3, kind: input, shape index: {}]   ;;  %s4437_s4 = inlined_call_operand.vmem [shape: bf16[1280,256], index: 4, kind: output, shape index: {}]  }
   0x1   :  { %s3466_s17 = smov 0  }
   0x2 LB: > { %s26_s18 = sadd.s32 1, %s3431_s16  ;;  %p2908_p0 = scmp.ge.s32.totalorder %s3435_s17, 1  ;;  %s3435_s17 = sphi %s3466_s17, %s14_s17   ;;  %s3431_s16 = sphi %s3464_s16, %s4439_s16   ;;  %s3427_s15 = sphi %s3462_s15, %s4438_s15  }
   0x3   : > { %p28_p1 = scmp.ge.s32.totalorder %s26_s18, 2  ;;  %p209_p2 = scmp.lt.s32.totalorder %s3435_s17, 3 }
   0x5   : > { %s4441_s18 = smov (%p28_p1, %s26_s18), 0  ;;  %p210_p3 = pnand %p2908_p0, %p209_p2 }
   0x6   : > { %s254_s29 = smul.u32 (!%p210_p3), 80, %s3427_s15 }
   0x7   : > { %213 = sbr.rel (%p210_p3) target bundleno = 498 (0x1f2), region = 36 }
   0x8   : > { %p255_p4 = scmp.lt.s32.totalorder (!%p210_p3), %s254_s29, 159 }
   0xc   : > { %v3245_v0 = vld [vmem:[%s4434_s1 + $0x74] ss:$8 sps:$4 sm:$0xff]   ;;  %v3247_v1 = vld [vmem:[%s4434_s1 + $0x70] ss:$8 sps:$4 sm:$0xff]   ;;  %v3248_v2 = vld [vmem:[%s4434_s1 + $0x64] ss:$8 sps:$4 sm:$0xff]  }
   0xd   : > { %961 = vmatprep.subr.bf16.mxu0 %v3245_v0  ;;  %3189 = vmatprep.subr.bf16.mxu1 %v3245_v0  ;;  %v3250_v3 = vld [vmem:[%s4434_s1 + $0x60] ss:$8 sps:$4 sm:$0xff]   ;;  %v3251_v4 = vld [vmem:[%s4434_s1 + $0x54] ss:$8 sps:$4 sm:$0xff]   ;;  %v3253_v5 = vld [vmem:[%s4434_s1 + $0x50] ss:$8 sps:$4 sm:$0xff]  }
   0xe   : > { %962 = vmatpush1.bf16.msra.mxu0 %v3247_v1  ;;  %3205 = vmatpush1.bf16.msra.mxu1 %v3247_v1  ;;  %v3254_v6 = vld [vmem:[%s4434_s1 + $0x44] ss:$8 sps:$4 sm:$0xff]   ;;  %v3256_v7 = vld [vmem:[%s4434_s1 + $0x40] ss:$8 sps:$4 sm:$0xff]   ;;  %v3257_v8 = vld [vmem:[%s4434_s1 + $0x34] ss:$8 sps:$4 sm:$0xff]  }
   0xf   : > { %963 = vmatprep.subr.bf16.mxu0 %v3248_v2  ;;  %3190 = vmatprep.subr.bf16.mxu1 %v3248_v2  ;;  %s4443_s29 = smov (!%p255_p4, %s254_s29), 159  ;;  %v3259_v9 = vld [vmem:[%s4434_s1 + $0x30] ss:$8 sps:$4 sm:$0xff]   ;;  %v3260_v10 = vld [vmem:[%s4434_s1 + $0x24] ss:$8 sps:$4 sm:$0xff]  }
  0x10   : > { %s3107_s19 = sshll.u32 %s4443_s29, 3  ;;  %v3262_v11 = vld [vmem:[%s4434_s1 + $0x20] ss:$8 sps:$4 sm:$0xff]   ;;  %v3263_v12 = vld [vmem:[%s4434_s1 + $0x14] ss:$8 sps:$4 sm:$0xff]  }
  0x11   : > { %s3527_s24 = scalar_lea.vmem %s4433_s0, %s3107_s19  ;;  %v3265_v14 = vld [vmem:[%s4434_s1 + $0x10] ss:$8 sps:$4 sm:$0xff]   ;;  %v3266_v16 = vld [vmem:[%s4434_s1 + $0x4] ss:$8 sps:$4 sm:$0xff]   ;;  %v3268_v17 = vld [vmem:[%s4434_s1] ss:$8 sps:$4 sm:$0xff]   ;;  %s3704_s5 = scalar_lea.vmem %s4437_s4, %s3107_s19 }
  0x12   : > { %964 = vmatpush1.bf16.msra.mxu0 %v3250_v3  ;;  %3206 = vmatpush1.bf16.msra.mxu1 %v3250_v3  ;;  %v3295_v13 = vld [vmem:[%s3527_s24 + $0x4] ss:$8 sps:$4 sm:$0xff]   ;;  %v3269_v18 = vld [vmem:[%s4434_s1 + $0xf4] ss:$8 sps:$4 sm:$0xff]   ;;  %v3271_v19 = vld [vmem:[%s4434_s1 + $0xf0] ss:$8 sps:$4 sm:$0xff]  }
  0x13   : > { %965 = vmatprep.subr.bf16.mxu0 %v3251_v4  ;;  %3191 = vmatprep.subr.bf16.mxu1 %v3251_v4  ;;  %v3298_v15 = vld [vmem:[%s3527_s24 + $0x144] ss:$8 sps:$4 sm:$0xff]   ;;  %v3274_v21 = vld [vmem:[%s4434_s1 + $0xe0] ss:$8 sps:$4 sm:$0xff]   ;;  %v3275_v22 = vld [vmem:[%s4434_s1 + $0xd4] ss:$8 sps:$4 sm:$0xff]  }
  0x14   : > { %993 = vmatprep.mubr.bf16.mxu0 %v3295_v13  ;;  %1193 = vmatprep.mubr.bf16.mxu1 %v3298_v15  ;;  %v3272_v20 = vld [vmem:[%s4434_s1 + $0xe4] ss:$8 sps:$4 sm:$0xff]   ;;  %v3277_v23 = vld [vmem:[%s4434_s1 + $0xd0] ss:$8 sps:$4 sm:$0xff]   ;;  %v3280_v25 = vld [vmem:[%s4434_s1 + $0xc0] ss:$8 sps:$4 sm:$0xff]  }
  0x15   : > { %v3278_v24 = vld [vmem:[%s4434_s1 + $0xc4] ss:$8 sps:$4 sm:$0xff]   ;;  %v3281_v26 = vld [vmem:[%s4434_s1 + $0xb4] ss:$8 sps:$4 sm:$0xff]   ;;  %v3283_v27 = vld [vmem:[%s4434_s1 + $0xb0] ss:$8 sps:$4 sm:$0xff]  }
  0x16   : > { %966 = vmatpush1.bf16.msra.mxu0 %v3253_v5  ;;  %3207 = vmatpush1.bf16.msra.mxu1 %v3253_v5  ;;  %v3284_v28 = vld [vmem:[%s4434_s1 + $0xa4] ss:$8 sps:$4 sm:$0xff]   ;;  %v3286_v29 = vld [vmem:[%s4434_s1 + $0xa0] ss:$8 sps:$4 sm:$0xff]   ;;  %v3287_v30 = vld [vmem:[%s4434_s1 + $0x94] ss:$8 sps:$4 sm:$0xff]  }
  0x17   : > { %967 = vmatprep.subr.bf16.mxu0 %v3254_v6  ;;  %3192 = vmatprep.subr.bf16.mxu1 %v3254_v6  ;;  %v3289_v31 = vld [vmem:[%s4434_s1 + $0x90] ss:$8 sps:$4 sm:$0xff]   ;;  %v3290_v32 = vld [vmem:[%s4434_s1 + $0x84] ss:$8 sps:$4 sm:$0xff]   ;;  %v3292_v33 = vld [vmem:[%s4434_s1 + $0x80] ss:$8 sps:$4 sm:$0xff]  }
  0x18   : > { %v3293_v34 = vld [vmem:[%s3527_s24] ss:$8 sps:$4 sm:$0xff]   ;;  %v3299_v36 = vld [vmem:[%s3527_s24 + $0x14] ss:$8 sps:$4 sm:$0xff]   ;;  %v3303_v38 = vld [vmem:[%s3527_s24 + $0x10] ss:$8 sps:$4 sm:$0xff]  }
  0x19   : > { %v3296_v35 = vld [vmem:[%s3527_s24 + $0x140] ss:$8 sps:$4 sm:$0xff]   ;;  %v3301_v37 = vld [vmem:[%s3527_s24 + $0x154] ss:$8 sps:$4 sm:$0xff]   ;;  %v3304_v39 = vld [vmem:[%s3527_s24 + $0x150] ss:$8 sps:$4 sm:$0xff]  }
  0x1a   : > { %968 = vmatpush1.bf16.msra.mxu0 %v3256_v7  ;;  %3208 = vmatpush1.bf16.msra.mxu1 %v3256_v7  ;;  %v3305_v40 = vld [vmem:[%s3527_s24 + $0x24] ss:$8 sps:$4 sm:$0xff]   ;;  %v3309_v42 = vld [vmem:[%s3527_s24 + $0x20] ss:$8 sps:$4 sm:$0xff]   ;;  %v3311_v44 = vld [vmem:[%s3527_s24 + $0x34] ss:$8 sps:$4 sm:$0xff]  }
  0x1b   : > { %969 = vmatprep.subr.bf16.mxu0 %v3257_v8  ;;  %3193 = vmatprep.subr.bf16.mxu1 %v3257_v8  ;;  %v3307_v41 = vld [vmem:[%s3527_s24 + $0x164] ss:$8 sps:$4 sm:$0xff]   ;;  %v3310_v43 = vld [vmem:[%s3527_s24 + $0x160] ss:$8 sps:$4 sm:$0xff]   ;;  %v3313_v45 = vld [vmem:[%s3527_s24 + $0x174] ss:$8 sps:$4 sm:$0xff]  }
  0x1c   : > { %v3315_v46 = vld [vmem:[%s3527_s24 + $0x30] ss:$8 sps:$4 sm:$0xff]   ;;  %v3317_v48 = vld [vmem:[%s3527_s24 + $0x44] ss:$8 sps:$4 sm:$0xff]   ;;  %v3321_v50 = vld [vmem:[%s3527_s24 + $0x40] ss:$8 sps:$4 sm:$0xff]  }
  0x1d   : > { %v3316_v47 = vld [vmem:[%s3527_s24 + $0x170] ss:$8 sps:$4 sm:$0xff]   ;;  %v3319_v49 = vld [vmem:[%s3527_s24 + $0x184] ss:$8 sps:$4 sm:$0xff]   ;;  %v3322_v51 = vld [vmem:[%s3527_s24 + $0x180] ss:$8 sps:$4 sm:$0xff]  }
  0x1e   : > { %970 = vmatpush1.bf16.msra.mxu0 %v3259_v9  ;;  %3209 = vmatpush1.bf16.msra.mxu1 %v3259_v9  ;;  %v3323_v52 = vld [vmem:[%s3527_s24 + $0x54] ss:$8 sps:$4 sm:$0xff]   ;;  %v3327_v54 = vld [vmem:[%s3527_s24 + $0x50] ss:$8 sps:$4 sm:$0xff]   ;;  %v3329_v56 = vld [vmem:[%s3527_s24 + $0x64] ss:$8 sps:$4 sm:$0xff]  }
  0x1f   : > { %971 = vmatprep.subr.bf16.mxu0 %v3260_v10  ;;  %3194 = vmatprep.subr.bf16.mxu1 %v3260_v10  ;;  %v3325_v53 = vld [vmem:[%s3527_s24 + $0x194] ss:$8 sps:$4 sm:$0xff]   ;;  %v3328_v55 = vld [vmem:[%s3527_s24 + $0x190] ss:$8 sps:$4 sm:$0xff]   ;;  %v3331_v57 = vld [vmem:[%s3527_s24 + $0x1a4] ss:$8 sps:$4 sm:$0xff]  }
  0x20   : > { %v3333_v58 = vld [vmem:[%s3527_s24 + $0x60] ss:$8 sps:$4 sm:$0xff]   ;;  %v3335_v60 = vld [vmem:[%s3527_s24 + $0x74] ss:$8 sps:$4 sm:$0xff]   ;;  %v3339_v62 = vld [vmem:[%s3527_s24 + $0x70] ss:$8 sps:$4 sm:$0xff]  }
  0x21   : > { %v3334_v59 = vld [vmem:[%s3527_s24 + $0x1a0] ss:$8 sps:$4 sm:$0xff]   ;;  %v3337_v61 = vld [vmem:[%s3527_s24 + $0x1b4] ss:$8 sps:$4 sm:$0xff]   ;;  %v3340_v63 = vld [vmem:[%s3527_s24 + $0x1b0] ss:$8 sps:$4 sm:$0xff]  }
  0x22   : > { %972 = vmatpush1.bf16.msra.mxu0 %v3262_v11  ;;  %3210 = vmatpush1.bf16.msra.mxu1 %v3262_v11  ;;  %v3341_v0 = vld [vmem:[%s3527_s24 + $0x84] ss:$8 sps:$4 sm:$0xff]   ;;  %v3345_v2 = vld [vmem:[%s3527_s24 + $0x80] ss:$8 sps:$4 sm:$0xff]   ;;  %v3347_v4 = vld [vmem:[%s3527_s24 + $0x94] ss:$8 sps:$4 sm:$0xff]  }
  0x23   : > { %973 = vmatprep.subr.bf16.mxu0 %v3263_v12  ;;  %3195 = vmatprep.subr.bf16.mxu1 %v3263_v12  ;;  %v3343_v1 = vld [vmem:[%s3527_s24 + $0x1c4] ss:$8 sps:$4 sm:$0xff]   ;;  %v3346_v3 = vld [vmem:[%s3527_s24 + $0x1c0] ss:$8 sps:$4 sm:$0xff]   ;;  %v3349_v5 = vld [vmem:[%s3527_s24 + $0x1d4] ss:$8 sps:$4 sm:$0xff]  }
  0x24   : > { %v3351_v6 = vld [vmem:[%s3527_s24 + $0x90] ss:$8 sps:$4 sm:$0xff]   ;;  %v3353_v8 = vld [vmem:[%s3527_s24 + $0xa4] ss:$8 sps:$4 sm:$0xff]   ;;  %v3357_v10 = vld [vmem:[%s3527_s24 + $0xa0] ss:$8 sps:$4 sm:$0xff]  }
  0x25   : > { %v3352_v7 = vld [vmem:[%s3527_s24 + $0x1d0] ss:$8 sps:$4 sm:$0xff]   ;;  %v3355_v9 = vld [vmem:[%s3527_s24 + $0x1e4] ss:$8 sps:$4 sm:$0xff]   ;;  %v3358_v11 = vld [vmem:[%s3527_s24 + $0x1e0] ss:$8 sps:$4 sm:$0xff]  }
  0x26   : > { %974 = vmatpush1.bf16.msra.mxu0 %v3265_v14  ;;  %3211 = vmatpush1.bf16.msra.mxu1 %v3265_v14  ;;  %v3359_v12 = vld [vmem:[%s3527_s24 + $0xb4] ss:$8 sps:$4 sm:$0xff]   ;;  %v3363_v14 = vld [vmem:[%s3527_s24 + $0xb0] ss:$8 sps:$4 sm:$0xff]  }
  0x27   : > { %975 = vmatprep.subr.bf16.mxu0 %v3266_v16  ;;  %3196 = vmatprep.subr.bf16.mxu1 %v3266_v16  ;;  %v3361_v13 = vld [vmem:[%s3527_s24 + $0x1f4] ss:$8 sps:$4 sm:$0xff]   ;;  %v3364_v15 = vld [vmem:[%s3527_s24 + $0x1f0] ss:$8 sps:$4 sm:$0xff]   ;;  %v3365_v16 = vld [vmem:[%s3527_s24 + $0xc4] ss:$8 sps:$4 sm:$0xff]  }
  0x2a   : > { %976 = vmatpush1.bf16.msra.mxu0 %v3268_v17  ;;  %3212 = vmatpush1.bf16.msra.mxu1 %v3268_v17  ;;  %v3367_v17 = vld [vmem:[%s3527_s24 + $0x204] ss:$8 sps:$4 sm:$0xff]  }
  0x2b   : > { %977 = vmatprep.subr.bf16.mxu0 %v3269_v18  ;;  %3197 = vmatprep.subr.bf16.mxu1 %v3269_v18  ;;  %v3369_v18 = vld [vmem:[%s3527_s24 + $0xc0] ss:$8 sps:$4 sm:$0xff]  }
  0x2e   : > { %978 = vmatpush2.bf16.msra.mxu0 %v3271_v19  ;;  %3213 = vmatpush2.bf16.msra.mxu1 %v3271_v19  ;;  %v3370_v19 = vld [vmem:[%s3527_s24 + $0x200] ss:$8 sps:$4 sm:$0xff]  }
  0x2f   : > { %979 = vmatprep.subr.bf16.mxu0 %v3272_v20  ;;  %3198 = vmatprep.subr.bf16.mxu1 %v3272_v20  ;;  %v3371_v20 = vld [vmem:[%s3527_s24 + $0xd4] ss:$8 sps:$4 sm:$0xff]  }
  0x32   : > { %980 = vmatpush2.bf16.msra.mxu0 %v3274_v21  ;;  %3214 = vmatpush2.bf16.msra.mxu1 %v3274_v21  ;;  %v3373_v21 = vld [vmem:[%s3527_s24 + $0x214] ss:$8 sps:$4 sm:$0xff]  }
  0x33   : > { %981 = vmatprep.subr.bf16.mxu0 %v3275_v22  ;;  %3199 = vmatprep.subr.bf16.mxu1 %v3275_v22  ;;  %v3375_v22 = vld [vmem:[%s3527_s24 + $0xd0] ss:$8 sps:$4 sm:$0xff]  }
  0x36   : > { %982 = vmatpush2.bf16.msra.mxu0 %v3277_v23  ;;  %3215 = vmatpush2.bf16.msra.mxu1 %v3277_v23  ;;  %v3376_v23 = vld [vmem:[%s3527_s24 + $0x210] ss:$8 sps:$4 sm:$0xff]  }
  0x37   : > { %983 = vmatprep.subr.bf16.mxu0 %v3278_v24  ;;  %3200 = vmatprep.subr.bf16.mxu1 %v3278_v24  ;;  %v3377_v24 = vld [vmem:[%s3527_s24 + $0xe4] ss:$8 sps:$4 sm:$0xff]  }
  0x3a   : > { %984 = vmatpush2.bf16.msra.mxu0 %v3280_v25  ;;  %3216 = vmatpush2.bf16.msra.mxu1 %v3280_v25  ;;  %v3379_v25 = vld [vmem:[%s3527_s24 + $0x224] ss:$8 sps:$4 sm:$0xff]  }
  0x3b   : > { %985 = vmatprep.subr.bf16.mxu0 %v3281_v26  ;;  %3201 = vmatprep.subr.bf16.mxu1 %v3281_v26  ;;  %v3381_v26 = vld [vmem:[%s3527_s24 + $0xe0] ss:$8 sps:$4 sm:$0xff]  }
  0x3e   : > { %986 = vmatpush2.bf16.msra.mxu0 %v3283_v27  ;;  %3217 = vmatpush2.bf16.msra.mxu1 %v3283_v27  ;;  %v3382_v27 = vld [vmem:[%s3527_s24 + $0x220] ss:$8 sps:$4 sm:$0xff]  }
  0x3f   : > { %987 = vmatprep.subr.bf16.mxu0 %v3284_v28  ;;  %3202 = vmatprep.subr.bf16.mxu1 %v3284_v28  ;;  %v3383_v28 = vld [vmem:[%s3527_s24 + $0xf4] ss:$8 sps:$4 sm:$0xff]  }
  0x42   : > { %988 = vmatpush2.bf16.msra.mxu0 %v3286_v29  ;;  %3218 = vmatpush2.bf16.msra.mxu1 %v3286_v29  ;;  %v3385_v29 = vld [vmem:[%s3527_s24 + $0x234] ss:$8 sps:$4 sm:$0xff]  }
  0x43   : > { %989 = vmatprep.subr.bf16.mxu0 %v3287_v30  ;;  %3203 = vmatprep.subr.bf16.mxu1 %v3287_v30  ;;  %v3387_v30 = vld [vmem:[%s3527_s24 + $0xf0] ss:$8 sps:$4 sm:$0xff]  }
  0x46   : > { %990 = vmatpush2.bf16.msra.mxu0 %v3289_v31  ;;  %3219 = vmatpush2.bf16.msra.mxu1 %v3289_v31  ;;  %v3388_v31 = vld [vmem:[%s3527_s24 + $0x230] ss:$8 sps:$4 sm:$0xff]  }
  0x47   : > { %991 = vmatprep.subr.bf16.mxu0 %v3290_v32  ;;  %3204 = vmatprep.subr.bf16.mxu1 %v3290_v32  ;;  %v3389_v32 = vld [vmem:[%s3527_s24 + $0x104] ss:$8 sps:$4 sm:$0xff]  }
  0x4a   : > { %992 = vmatpush2.bf16.msra.mxu0 %v3292_v33  ;;  %3220 = vmatpush2.bf16.msra.mxu1 %v3292_v33  ;;  %v3391_v33 = vld [vmem:[%s3527_s24 + $0x244] ss:$8 sps:$4 sm:$0xff]  }
  0x4d   : > { %994 = vmatmul.mubr.bf16.vlgmr.msra.gmra.mxu0 %v3293_v34  ;;  %1194 = vmatmul.mubr.bf16.vlgmr.msra.gmra.mxu1 %v3296_v35  ;;  %v3393_v34 = vld [vmem:[%s3527_s24 + $0x100] ss:$8 sps:$4 sm:$0xff]  }
  0x4e   : > { %1003 = vmatprep.mubr.bf16.mxu0 %v3299_v36  ;;  %1203 = vmatprep.mubr.bf16.mxu1 %v3301_v37  ;;  %v3394_v35 = vld [vmem:[%s3527_s24 + $0x240] ss:$8 sps:$4 sm:$0xff]   ;;  %v3395_v36 = vld [vmem:[%s3527_s24 + $0x114] ss:$8 sps:$4 sm:$0xff]  }
  0x4f   : > { %v3397_v37 = vld [vmem:[%s3527_s24 + $0x254] ss:$8 sps:$4 sm:$0xff]  }
  0x55   : > { %1004 = vmatmul.mubr.bf16.gmra.mxu0 %v3303_v38  ;;  %1204 = vmatmul.mubr.bf16.gmra.mxu1 %v3304_v39  ;;  %v3399_v38 = vld [vmem:[%s3527_s24 + $0x110] ss:$8 sps:$4 sm:$0xff]  }
  0x56   : > { %1013 = vmatprep.mubr.bf16.mxu0 %v3305_v40  ;;  %1213 = vmatprep.mubr.bf16.mxu1 %v3307_v41  ;;  %v3400_v39 = vld [vmem:[%s3527_s24 + $0x250] ss:$8 sps:$4 sm:$0xff]   ;;  %v3401_v40 = vld [vmem:[%s3527_s24 + $0x124] ss:$8 sps:$4 sm:$0xff]  }
  0x57   : > { %v3403_v41 = vld [vmem:[%s3527_s24 + $0x264] ss:$8 sps:$4 sm:$0xff]  }
  0x5d   : > { %1014 = vmatmul.mubr.bf16.gmra.mxu0 %v3309_v42  ;;  %1214 = vmatmul.mubr.bf16.gmra.mxu1 %v3310_v43  ;;  %v3405_v42 = vld [vmem:[%s3527_s24 + $0x120] ss:$8 sps:$4 sm:$0xff]  }
  0x5e   : > { %1023 = vmatprep.mubr.bf16.mxu0 %v3311_v44  ;;  %1223 = vmatprep.mubr.bf16.mxu1 %v3313_v45  ;;  %v3406_v43 = vld [vmem:[%s3527_s24 + $0x260] ss:$8 sps:$4 sm:$0xff]   ;;  %v3407_v44 = vld [vmem:[%s3527_s24 + $0x134] ss:$8 sps:$4 sm:$0xff]  }
  0x5f   : > { %v3409_v45 = vld [vmem:[%s3527_s24 + $0x274] ss:$8 sps:$4 sm:$0xff]  }
  0x65   : > { %1024 = vmatmul.mubr.bf16.gmra.mxu0 %v3315_v46  ;;  %1224 = vmatmul.mubr.bf16.gmra.mxu1 %v3316_v47  ;;  %v3411_v46 = vld [vmem:[%s3527_s24 + $0x130] ss:$8 sps:$4 sm:$0xff]  }
  0x66   : > { %1033 = vmatprep.mubr.bf16.mxu0 %v3317_v48  ;;  %1233 = vmatprep.mubr.bf16.mxu1 %v3319_v49  ;;  %v3412_v47 = vld [vmem:[%s3527_s24 + $0x270] ss:$8 sps:$4 sm:$0xff]   ;;  %v1397_v48 = vlaneseq }
  0x68   : > { %v1398_v49 = vshrl.u32 %v1397_v48, 7 }
  0x6d   : > { %1034 = vmatmul.mubr.bf16.gmra.mxu0 %v3321_v50  ;;  %1234 = vmatmul.mubr.bf16.gmra.mxu1 %v3322_v51  ;;  %v1399_v50 = vsub.s32 0, %v1398_v49  ;;  %v1394_v51 = vld [vmem:[%s4435_s2] sm:$0x3] }
  0x6e   : > { %1043 = vmatprep.mubr.bf16.mxu0 %v3323_v52  ;;  %1243 = vmatprep.mubr.bf16.mxu1 %v3325_v53  ;;  %v1403_v52 = vsub.s32 1, %v1398_v49  ;;  %v1395_v53 = vld [vmem:[%s4436_s3] sm:$0x3] }
  0x75   : > { %1044 = vmatmul.mubr.bf16.gmra.mxu0 %v3327_v54  ;;  %1244 = vmatmul.mubr.bf16.gmra.mxu1 %v3328_v55  ;;  %v3675_v54 = vrot.slane %v1394_v51, %v1399_v50  ;;  %v3677_v55 = vrot.slane %v1395_v53, %v1399_v50 }
  0x76   : > { %1053 = vmatprep.mubr.bf16.mxu0 %v3329_v56  ;;  %1253 = vmatprep.mubr.bf16.mxu1 %v3331_v57  ;;  %v3679_v56 = vrot.slane %v1394_v51, %v1403_v52 }
  0x7d   : > { %1054 = vmatmul.mubr.bf16.gmra.mxu0 %v3333_v58  ;;  %1254 = vmatmul.mubr.bf16.gmra.mxu1 %v3334_v59 }
  0x7e   : > { %1063 = vmatprep.mubr.bf16.mxu0 %v3335_v60  ;;  %1263 = vmatprep.mubr.bf16.mxu1 %v3337_v61 }
  0x85   : > { %1064 = vmatmul.mubr.bf16.gmra.mxu0 %v3339_v62  ;;  %1264 = vmatmul.mubr.bf16.gmra.mxu1 %v3340_v63  ;;  %v3683_v62 = vrot.slane %v1395_v53, %v1403_v52 }
  0x86   : > { %1073 = vmatprep.mubr.bf16.mxu0 %v3341_v0  ;;  %1273 = vmatprep.mubr.bf16.mxu1 %v3343_v1 }
  0x8d   : > { %1074 = vmatmul.mubr.bf16.gmra.mxu0 %v3345_v2  ;;  %1274 = vmatmul.mubr.bf16.gmra.mxu1 %v3346_v3 }
  0x8e   : > { %1083 = vmatprep.mubr.bf16.mxu0 %v3347_v4  ;;  %1283 = vmatprep.mubr.bf16.mxu1 %v3349_v5 }
  0x95   : > { %1084 = vmatmul.mubr.bf16.gmra.mxu0 %v3351_v6  ;;  %1284 = vmatmul.mubr.bf16.gmra.mxu1 %v3352_v7 }
  0x96   : > { %1093 = vmatprep.mubr.bf16.mxu0 %v3353_v8  ;;  %1293 = vmatprep.mubr.bf16.mxu1 %v3355_v9 }
  0x9d   : > { %1094 = vmatmul.mubr.bf16.gmra.mxu0 %v3357_v10  ;;  %1294 = vmatmul.mubr.bf16.gmra.mxu1 %v3358_v11 }
  0x9e   : > { %1103 = vmatprep.mubr.bf16.mxu0 %v3359_v12  ;;  %1303 = vmatprep.mubr.bf16.mxu1 %v3361_v13 }
  0xa5   : > { %1104 = vmatmul.mubr.bf16.gmra.mxu0 %v3363_v14  ;;  %1304 = vmatmul.mubr.bf16.gmra.mxu1 %v3364_v15 }
  0xa6   : > { %1113 = vmatprep.mubr.bf16.mxu0 %v3365_v16  ;;  %1313 = vmatprep.mubr.bf16.mxu1 %v3367_v17 }
  0xad   : > { %1114 = vmatmul.mubr.bf16.gmra.mxu0 %v3369_v18  ;;  %1314 = vmatmul.mubr.bf16.gmra.mxu1 %v3370_v19 }
  0xae   : > { %1123 = vmatprep.mubr.bf16.mxu0 %v3371_v20  ;;  %1323 = vmatprep.mubr.bf16.mxu1 %v3373_v21 }
  0xb5   : > { %1124 = vmatmul.mubr.bf16.gmra.mxu0 %v3375_v22  ;;  %1324 = vmatmul.mubr.bf16.gmra.mxu1 %v3376_v23 }
  0xb6   : > { %1133 = vmatprep.mubr.bf16.mxu0 %v3377_v24  ;;  %1333 = vmatprep.mubr.bf16.mxu1 %v3379_v25 }
  0xbd   : > { %1134 = vmatmul.mubr.bf16.gmra.mxu0 %v3381_v26  ;;  %1334 = vmatmul.mubr.bf16.gmra.mxu1 %v3382_v27 }
  0xbe   : > { %1143 = vmatprep.mubr.bf16.mxu0 %v3383_v28  ;;  %1343 = vmatprep.mubr.bf16.mxu1 %v3385_v29 }
  0xc5   : > { %1144 = vmatmul.mubr.bf16.gmra.mxu0 %v3387_v30  ;;  %1344 = vmatmul.mubr.bf16.gmra.mxu1 %v3388_v31 }
  0xc6   : > { %1153 = vmatprep.mubr.bf16.mxu0 %v3389_v32  ;;  %1353 = vmatprep.mubr.bf16.mxu1 %v3391_v33 }
  0xcd   : > { %1154 = vmatmul.mubr.bf16.gmra.mxu0 %v3393_v34  ;;  %1354 = vmatmul.mubr.bf16.gmra.mxu1 %v3394_v35 }
  0xce   : > { %1163 = vmatprep.mubr.bf16.mxu0 %v3395_v36  ;;  %1363 = vmatprep.mubr.bf16.mxu1 %v3397_v37 }
  0xd5   : > { %1164 = vmatmul.mubr.bf16.gmra.mxu0 %v3399_v38  ;;  %1364 = vmatmul.mubr.bf16.gmra.mxu1 %v3400_v39 }
  0xd6   : > { %1173 = vmatprep.mubr.bf16.mxu0 %v3401_v40  ;;  %1373 = vmatprep.mubr.bf16.mxu1 %v3403_v41 }
  0xdd   : > { %1174 = vmatmul.mubr.bf16.gmra.mxu0 %v3405_v42  ;;  %1374 = vmatmul.mubr.bf16.gmra.mxu1 %v3406_v43 }
  0xde   : > { %1183 = vmatprep.mubr.bf16.mxu0 %v3407_v44  ;;  %1383 = vmatprep.mubr.bf16.mxu1 %v3409_v45 }
  0xe5   : > { %1184 = vmatmul.mubr.bf16.gmra.mxu0 %v3411_v46  ;;  %1384 = vmatmul.mubr.bf16.gmra.mxu1 %v3412_v47 }
 0x10d   : > { %v995_v57 = vpop.f32.mrf.mxu0  ;;  %v1195_v58 = vpop.f32.mrf.mxu1 }
 0x10e   : > { %v1407_v59 = vmul.f32 %v3675_v54, %v995_v57  ;;  %v1487_v60 = vmul.f32 %v3675_v54, %v1195_v58 }
 0x10f   : > { %v997_v61 = vpop.f32.mrf.mxu0  ;;  %v1197_v63 = vpop.f32.mrf.mxu1 }
 0x110   : > { %v1578_v0 = vadd.f32 %v3677_v55, %v1407_v59  ;;  %v1658_v1 = vadd.f32 %v3677_v55, %v1487_v60  ;;  %v1408_v2 = vmul.f32 %v3679_v56, %v997_v61  ;;  %v1488_v3 = vmul.f32 %v3679_v56, %v1197_v63 }
 0x111   : > { %v999_v4 = vpop.f32.mrf.mxu0  ;;  %v1199_v5 = vpop.f32.mrf.mxu1 }
 0x112   : > { %vm1738_vm0 = vcmp.ge.f32.partialorder %v1578_v0, 0.0  ;;  %v1898_v6 = vmul.f32 0.01, %v1578_v0  ;;  %vm1818_vm1 = vcmp.ge.f32.partialorder %v1658_v1, 0.0  ;;  %v1978_v7 = vmul.f32 0.01, %v1658_v1 }
 0x113   : > { %v1579_v8 = vadd.f32 %v3683_v62, %v1408_v2  ;;  %v1659_v9 = vadd.f32 %v3683_v62, %v1488_v3  ;;  %v1409_v10 = vmul.f32 %v3675_v54, %v999_v4  ;;  %v1489_v11 = vmul.f32 %v3675_v54, %v1199_v5  ;;  %v1001_v12 = vpop.f32.mrf.mxu0  ;;  %v1201_v13 = vpop.f32.mrf.mxu1 }
 0x114   : > { %v2058_v14 = vsel %vm1738_vm0, %v1578_v0, %v1898_v6  ;;  %v2138_v15 = vsel %vm1818_vm1, %v1658_v1, %v1978_v7  ;;  %v1410_v16 = vmul.f32 %v3679_v56, %v1001_v12  ;;  %v1490_v17 = vmul.f32 %v3679_v56, %v1201_v13 }
 0x115   : > { %vm1739_vm2 = vcmp.ge.f32.partialorder %v1579_v8, 0.0  ;;  %v1899_v18 = vmul.f32 0.01, %v1579_v8  ;;  %vm1819_vm3 = vcmp.ge.f32.partialorder %v1659_v9, 0.0  ;;  %v1979_v19 = vmul.f32 0.01, %v1659_v9  ;;  %v1005_v20 = vpop.f32.mrf.mxu0  ;;  %v1205_v21 = vpop.f32.mrf.mxu1 }
 0x116   : > { %v1580_v22 = vadd.f32 %v3677_v55, %v1409_v10  ;;  %v1660_v23 = vadd.f32 %v3677_v55, %v1489_v11  ;;  %v1581_v24 = vadd.f32 %v3683_v62, %v1410_v16  ;;  %v1661_v25 = vadd.f32 %v3683_v62, %v1490_v17 }
 0x117   : > { %v2059_v26 = vsel %vm1739_vm2, %v1579_v8, %v1899_v18  ;;  %v2139_v27 = vsel %vm1819_vm3, %v1659_v9, %v1979_v19  ;;  %v1411_v28 = vmul.f32 %v3675_v54, %v1005_v20  ;;  %v1491_v29 = vmul.f32 %v3675_v54, %v1205_v21  ;;  %v1007_v30 = vpop.f32.mrf.mxu0  ;;  %v1207_v31 = vpop.f32.mrf.mxu1 }
 0x118   : > { %v3109_v32 = vpack.c.bf16 %v2059_v26, %v2058_v14  ;;  %v3149_v33 = vpack.c.bf16 %v2139_v27, %v2138_v15  ;;  %vm1740_vm4 = vcmp.ge.f32.partialorder %v1580_v22, 0.0  ;;  %v1900_v34 = vmul.f32 0.01, %v1580_v22 }
 0x119   : > { %vm1820_vm5 = vcmp.ge.f32.partialorder %v1660_v23, 0.0  ;;  %v1980_v35 = vmul.f32 0.01, %v1660_v23  ;;  %vm1741_vm6 = vcmp.ge.f32.partialorder %v1581_v24, 0.0  ;;  %v1901_v36 = vmul.f32 0.01, %v1581_v24  ;;  %v1009_v37 = vpop.f32.mrf.mxu0  ;;  %v1209_v38 = vpop.f32.mrf.mxu1 }
 0x11a   : > { %2698 = vst [vmem:[%s3704_s5] sm:$0xff] %v3109_v32  ;;  %2738 = vst [vmem:[%s3704_s5 + $0x140] sm:$0xff] %v3149_v33  ;;  %v2060_v39 = vsel %vm1740_vm4, %v1580_v22, %v1900_v34  ;;  %vm1821_vm7 = vcmp.ge.f32.partialorder %v1661_v25, 0.0  ;;  %v1981_v40 = vmul.f32 0.01, %v1661_v25  ;;  %v1582_v41 = vadd.f32 %v3677_v55, %v1411_v28 }
 0x11b   : > { %v2140_v42 = vsel %vm1820_vm5, %v1660_v23, %v1980_v35  ;;  %v2061_v43 = vsel %vm1741_vm6, %v1581_v24, %v1901_v36  ;;  %v1662_v44 = vadd.f32 %v3677_v55, %v1491_v29  ;;  %v1412_v45 = vmul.f32 %v3679_v56, %v1007_v30  ;;  %v1011_v46 = vpop.f32.mrf.mxu0  ;;  %v1211_v47 = vpop.f32.mrf.mxu1 }
 0x11c   : > { %v3110_v48 = vpack.c.bf16 %v2061_v43, %v2060_v39  ;;  %v2141_v49 = vsel %vm1821_vm7, %v1661_v25, %v1981_v40  ;;  %vm1742_vm8 = vcmp.ge.f32.partialorder %v1582_v41, 0.0  ;;  %v1902_v50 = vmul.f32 0.01, %v1582_v41 }
 0x11d   : > { %v3150_v51 = vpack.c.bf16 %v2141_v49, %v2140_v42  ;;  %vm1822_vm9 = vcmp.ge.f32.partialorder %v1662_v44, 0.0  ;;  %v1982_v52 = vmul.f32 0.01, %v1662_v44  ;;  %v1583_v53 = vadd.f32 %v3683_v62, %v1412_v45  ;;  %v1015_v57 = vpop.f32.mrf.mxu0  ;;  %v1215_v58 = vpop.f32.mrf.mxu1 }
 0x11e   : > { %2699 = vst [vmem:[%s3704_s5 + $0x8] sm:$0xff] %v3110_v48  ;;  %v2062_v59 = vsel %vm1742_vm8, %v1582_v41, %v1902_v50  ;;  %v1492_v60 = vmul.f32 %v3679_v56, %v1207_v31  ;;  %v1413_v61 = vmul.f32 %v3675_v54, %v1009_v37  ;;  %v1493_v63 = vmul.f32 %v3675_v54, %v1209_v38 }
 0x11f   : > { %2739 = vst [vmem:[%s3704_s5 + $0x148] sm:$0xff] %v3150_v51  ;;  %v2142_v0 = vsel %vm1822_vm9, %v1662_v44, %v1982_v52  ;;  %vm1743_vm10 = vcmp.ge.f32.partialorder %v1583_v53, 0.0  ;;  %v1903_v1 = vmul.f32 0.01, %v1583_v53  ;;  %v1414_v2 = vmul.f32 %v3679_v56, %v1011_v46  ;;  %v1017_v3 = vpop.f32.mrf.mxu0  ;;  %v1217_v4 = vpop.f32.mrf.mxu1 }
 0x120   : > { %v1663_v5 = vadd.f32 %v3683_v62, %v1492_v60  ;;  %v1584_v6 = vadd.f32 %v3677_v55, %v1413_v61  ;;  %v1664_v7 = vadd.f32 %v3677_v55, %v1493_v63  ;;  %v1494_v8 = vmul.f32 %v3679_v56, %v1211_v47 }
 0x121   : > { %v2063_v9 = vsel %vm1743_vm10, %v1583_v53, %v1903_v1  ;;  %v1585_v10 = vadd.f32 %v3683_v62, %v1414_v2  ;;  %v1415_v11 = vmul.f32 %v3675_v54, %v1015_v57  ;;  %v1495_v12 = vmul.f32 %v3675_v54, %v1215_v58  ;;  %v1019_v13 = vpop.f32.mrf.mxu0  ;;  %v1219_v14 = vpop.f32.mrf.mxu1 }
 0x122   : > { %v3111_v15 = vpack.c.bf16 %v2063_v9, %v2062_v59  ;;  %vm1823_vm11 = vcmp.ge.f32.partialorder %v1663_v5, 0.0  ;;  %v1983_v16 = vmul.f32 0.01, %v1663_v5  ;;  %vm1744_vm12 = vcmp.ge.f32.partialorder %v1584_v6, 0.0 }
 0x123   : > { %v1904_v17 = vmul.f32 0.01, %v1584_v6  ;;  %vm1824_vm13 = vcmp.ge.f32.partialorder %v1664_v7, 0.0  ;;  %v1984_v18 = vmul.f32 0.01, %v1664_v7  ;;  %vm1745_vm14 = vcmp.ge.f32.partialorder %v1585_v10, 0.0  ;;  %v1021_v19 = vpop.f32.mrf.mxu0  ;;  %v1221_v20 = vpop.f32.mrf.mxu1 }
 0x124   : > { %2700 = vst [vmem:[%s3704_s5 + $0x10] sm:$0xff] %v3111_v15  ;;  %v2143_v21 = vsel %vm1823_vm11, %v1663_v5, %v1983_v16  ;;  %v1905_v22 = vmul.f32 0.01, %v1585_v10  ;;  %v1665_v23 = vadd.f32 %v3683_v62, %v1494_v8  ;;  %v1586_v24 = vadd.f32 %v3677_v55, %v1415_v11 }
 0x125   : > { %v3151_v25 = vpack.c.bf16 %v2143_v21, %v2142_v0  ;;  %v2064_v26 = vsel %vm1744_vm12, %v1584_v6, %v1904_v17  ;;  %v2144_v27 = vsel %vm1824_vm13, %v1664_v7, %v1984_v18  ;;  %v1666_v28 = vadd.f32 %v3677_v55, %v1495_v12  ;;  %v1025_v29 = vpop.f32.mrf.mxu0  ;;  %v1225_v30 = vpop.f32.mrf.mxu1 }
 0x126   : > { %v2065_v31 = vsel %vm1745_vm14, %v1585_v10, %v1905_v22  ;;  %vm1825_vm15 = vcmp.ge.f32.partialorder %v1665_v23, 0.0  ;;  %v1985_v32 = vmul.f32 0.01, %v1665_v23  ;;  %vm1746_vm0 = vcmp.ge.f32.partialorder %v1586_v24, 0.0 }
 0x127   : > { %2740 = vst [vmem:[%s3704_s5 + $0x150] sm:$0xff] %v3151_v25  ;;  %v3112_v33 = vpack.c.bf16 %v2065_v31, %v2064_v26  ;;  %v1906_v34 = vmul.f32 0.01, %v1586_v24  ;;  %vm1826_vm1 = vcmp.ge.f32.partialorder %v1666_v28, 0.0  ;;  %v1986_v35 = vmul.f32 0.01, %v1666_v28  ;;  %v1027_v36 = vpop.f32.mrf.mxu0  ;;  %v1227_v37 = vpop.f32.mrf.mxu1 }
 0x128   : > { %v2145_v38 = vsel %vm1825_vm15, %v1665_v23, %v1985_v32  ;;  %v1416_v39 = vmul.f32 %v3679_v56, %v1017_v3  ;;  %v1496_v40 = vmul.f32 %v3679_v56, %v1217_v4  ;;  %v1417_v41 = vmul.f32 %v3675_v54, %v1019_v13 }
 0x129   : > { %2701 = vst [vmem:[%s3704_s5 + $0x18] sm:$0xff] %v3112_v33  ;;  %v3152_v42 = vpack.c.bf16 %v2145_v38, %v2144_v27  ;;  %v2066_v43 = vsel %vm1746_vm0, %v1586_v24, %v1906_v34  ;;  %v2146_v44 = vsel %vm1826_vm1, %v1666_v28, %v1986_v35  ;;  %v1497_v45 = vmul.f32 %v3675_v54, %v1219_v14  ;;  %v1029_v46 = vpop.f32.mrf.mxu0  ;;  %v1229_v47 = vpop.f32.mrf.mxu1 }
 0x12a   : > { %v1587_v48 = vadd.f32 %v3683_v62, %v1416_v39  ;;  %v1667_v49 = vadd.f32 %v3683_v62, %v1496_v40  ;;  %v1588_v50 = vadd.f32 %v3677_v55, %v1417_v41  ;;  %v1418_v51 = vmul.f32 %v3679_v56, %v1021_v19 }
 0x12b   : > { %2741 = vst [vmem:[%s3704_s5 + $0x158] sm:$0xff] %v3152_v42  ;;  %v1668_v52 = vadd.f32 %v3677_v55, %v1497_v45  ;;  %v1498_v53 = vmul.f32 %v3679_v56, %v1221_v20  ;;  %v1419_v57 = vmul.f32 %v3675_v54, %v1025_v29  ;;  %v1499_v58 = vmul.f32 %v3675_v54, %v1225_v30  ;;  %v1031_v59 = vpop.f32.mrf.mxu0  ;;  %v3746_v60 = vpop.f32.mrf.mxu1 }
 0x12c   : > { %vm1747_vm2 = vcmp.ge.f32.partialorder %v1587_v48, 0.0  ;;  %v1907_v61 = vmul.f32 0.01, %v1587_v48  ;;  %vm1827_vm3 = vcmp.ge.f32.partialorder %v1667_v49, 0.0  ;;  %v1987_v63 = vmul.f32 0.01, %v1667_v49 }
 0x12d   : > { %vm1748_vm4 = vcmp.ge.f32.partialorder %v1588_v50, 0.0  ;;  %v1908_v0 = vmul.f32 0.01, %v1588_v50  ;;  %vm1828_vm5 = vcmp.ge.f32.partialorder %v1668_v52, 0.0  ;;  %v1988_v1 = vmul.f32 0.01, %v1668_v52  ;;  %v3748_v2 = vpop.f32.mrf.mxu0  ;;  %v3750_v3 = vpop.f32.mrf.mxu1 }
 0x12e   : > { %v2067_v4 = vsel %vm1747_vm2, %v1587_v48, %v1907_v61  ;;  %v2147_v5 = vsel %vm1827_vm3, %v1667_v49, %v1987_v63  ;;  %v1589_v6 = vadd.f32 %v3683_v62, %v1418_v51  ;;  %v1669_v7 = vadd.f32 %v3683_v62, %v1498_v53 }
 0x12f   : > { %v3113_v8 = vpack.c.bf16 %v2067_v4, %v2066_v43  ;;  %v3153_v9 = vpack.c.bf16 %v2147_v5, %v2146_v44  ;;  %v2068_v10 = vsel %vm1748_vm4, %v1588_v50, %v1908_v0  ;;  %v2148_v11 = vsel %vm1828_vm5, %v1668_v52, %v1988_v1  ;;  %v3754_v12 = vpop.f32.mrf.mxu0  ;;  %v3756_v13 = vpop.f32.mrf.mxu1 }
 0x130   : > { %vm1749_vm6 = vcmp.ge.f32.partialorder %v1589_v6, 0.0  ;;  %v1909_v14 = vmul.f32 0.01, %v1589_v6  ;;  %vm1829_vm7 = vcmp.ge.f32.partialorder %v1669_v7, 0.0  ;;  %v1989_v15 = vmul.f32 0.01, %v1669_v7 }
 0x131   : > { %2702 = vst [vmem:[%s3704_s5 + $0x20] sm:$0xff] %v3113_v8  ;;  %2742 = vst [vmem:[%s3704_s5 + $0x160] sm:$0xff] %v3153_v9  ;;  %v1590_v16 = vadd.f32 %v3677_v55, %v1419_v57  ;;  %v1670_v17 = vadd.f32 %v3677_v55, %v1499_v58  ;;  %v1420_v18 = vmul.f32 %v3679_v56, %v1027_v36  ;;  %v1039_v20 = vpop.f32.mrf.mxu0  ;;  %v1239_v21 = vpop.f32.mrf.mxu1 }
 0x132   : > { %v1500_v19 = vmul.f32 %v3679_v56, %v1227_v37  ;;  %v2069_v22 = vsel %vm1749_vm6, %v1589_v6, %v1909_v14  ;;  %v2149_v23 = vsel %vm1829_vm7, %v1669_v7, %v1989_v15  ;;  %v1421_v24 = vmul.f32 %v3675_v54, %v1029_v46 }
 0x133   : > { %v1501_v25 = vmul.f32 %v3675_v54, %v1229_v47  ;;  %v3114_v26 = vpack.c.bf16 %v2069_v22, %v2068_v10  ;;  %v3154_v27 = vpack.c.bf16 %v2149_v23, %v2148_v11  ;;  %vm1750_vm8 = vcmp.ge.f32.partialorder %v1590_v16, 0.0  ;;  %v3766_v29 = vpop.f32.mrf.mxu0  ;;  %v3768_v30 = vpop.f32.mrf.mxu1 }
 0x134   : > { %v1910_v28 = vmul.f32 0.01, %v1590_v16  ;;  %vm1830_vm9 = vcmp.ge.f32.partialorder %v1670_v17, 0.0  ;;  %v1990_v31 = vmul.f32 0.01, %v1670_v17  ;;  %v1591_v32 = vadd.f32 %v3683_v62, %v1420_v18 }
 0x135   : > { %v1671_v33 = vadd.f32 %v3683_v62, %v1500_v19  ;;  %2703 = vst [vmem:[%s3704_s5 + $0x28] sm:$0xff] %v3114_v26  ;;  %2743 = vst [vmem:[%s3704_s5 + $0x168] sm:$0xff] %v3154_v27  ;;  %v1592_v35 = vadd.f32 %v3677_v55, %v1421_v24  ;;  %v1672_v36 = vadd.f32 %v3677_v55, %v1501_v25  ;;  %v3777_v38 = vpop.f32.mrf.mxu0  ;;  %v3779_v39 = vpop.f32.mrf.mxu1 }
 0x136   : > { %v2070_v34 = vsel %vm1750_vm8, %v1590_v16, %v1910_v28  ;;  %v1422_v37 = vmul.f32 %v3679_v56, %v1031_v59  ;;  %v2150_v40 = vsel %vm1830_vm9, %v1670_v17, %v1990_v31  ;;  %vm1751_vm10 = vcmp.ge.f32.partialorder %v1591_v32, 0.0 }
 0x137   : > { %v1911_v41 = vmul.f32 0.01, %v1591_v32  ;;  %vm1831_vm11 = vcmp.ge.f32.partialorder %v1671_v33, 0.0  ;;  %v1991_v42 = vmul.f32 0.01, %v1671_v33  ;;  %vm1752_vm12 = vcmp.ge.f32.partialorder %v1592_v35, 0.0  ;;  %v3781_v44 = vpop.f32.mrf.mxu0  ;;  %v3783_v45 = vpop.f32.mrf.mxu1 }
 0x138   : > { %v1912_v43 = vmul.f32 0.01, %v1592_v35  ;;  %vm1832_vm13 = vcmp.ge.f32.partialorder %v1672_v36, 0.0  ;;  %v1992_v47 = vmul.f32 0.01, %v1672_v36  ;;  %v1593_v48 = vadd.f32 %v3683_v62, %v1422_v37 }
 0x139   : > { %v2071_v46 = vsel %vm1751_vm10, %v1591_v32, %v1911_v41  ;;  %v1502_v49 = vmul.f32 %v3679_v56, %v3746_v60  ;;  %v2151_v51 = vsel %vm1831_vm11, %v1671_v33, %v1991_v42  ;;  %v1423_v53 = vmul.f32 %v3675_v54, %v3748_v2  ;;  %v3790_v57 = vpop.f32.mrf.mxu0  ;;  %v3792_v58 = vpop.f32.mrf.mxu1 }
 0x13a   : > { %v3115_v50 = vpack.c.bf16 %v2071_v46, %v2070_v34  ;;  %v2072_v52 = vsel %vm1752_vm12, %v1592_v35, %v1912_v43  ;;  %v3155_v59 = vpack.c.bf16 %v2151_v51, %v2150_v40  ;;  %v2152_v61 = vsel %vm1832_vm13, %v1672_v36, %v1992_v47 }
 0x13b   : > { %vm1753_vm14 = vcmp.ge.f32.partialorder %v1593_v48, 0.0  ;;  %v1913_v63 = vmul.f32 0.01, %v1593_v48  ;;  %v1673_v0 = vadd.f32 %v3683_v62, %v1502_v49  ;;  %v1594_v60 = vadd.f32 %v3677_v55, %v1423_v53  ;;  %v3801_v2 = vpop.f32.mrf.mxu0  ;;  %v3803_v5 = vpop.f32.mrf.mxu1 }
 0x13c   : > { %2704 = vst [vmem:[%s3704_s5 + $0x30] sm:$0xff] %v3115_v50  ;;  %v1503_v1 = vmul.f32 %v3675_v54, %v3750_v3  ;;  %v1424_v4 = vmul.f32 %v3679_v56, %v3754_v12  ;;  %2744 = vst [vmem:[%s3704_s5 + $0x170] sm:$0xff] %v3155_v59  ;;  %v1504_v7 = vmul.f32 %v3679_v56, %v3756_v13 }
 0x13d   : > { %v2073_v6 = vsel %vm1753_vm14, %v1593_v48, %v1913_v63  ;;  %v1425_v8 = vmul.f32 %v3675_v54, %v1039_v20  ;;  %v1505_v9 = vmul.f32 %v3675_v54, %v1239_v21  ;;  %vm1833_vm15 = vcmp.ge.f32.partialorder %v1673_v0, 0.0  ;;  %v3810_v11 = vpop.f32.mrf.mxu0  ;;  %v3812_v12 = vpop.f32.mrf.mxu1 }
 0x13e   : > { %v3116_v10 = vpack.c.bf16 %v2073_v6, %v2072_v52  ;;  %v1993_v3 = vmul.f32 0.01, %v1673_v0  ;;  %vm1754_vm0 = vcmp.ge.f32.partialorder %v1594_v60, 0.0  ;;  %v1914_v14 = vmul.f32 0.01, %v1594_v60 }
 0x13f   : > { %v1674_v15 = vadd.f32 %v3677_v55, %v1503_v1  ;;  %v1595_v16 = vadd.f32 %v3683_v62, %v1424_v4  ;;  %v1675_v17 = vadd.f32 %v3683_v62, %v1504_v7  ;;  %v1596_v18 = vadd.f32 %v3677_v55, %v1425_v8  ;;  %v3822_v21 = vpop.f32.mrf.mxu0  ;;  %v3824_v22 = vpop.f32.mrf.mxu1 }
 0x140   : > { %2705 = vst [vmem:[%s3704_s5 + $0x38] sm:$0xff] %v3116_v10  ;;  %v2153_v13 = vsel %vm1833_vm15, %v1673_v0, %v1993_v3  ;;  %v1676_v19 = vadd.f32 %v3677_v55, %v1505_v9  ;;  %v1426_v20 = vmul.f32 %v3679_v56, %v3766_v29  ;;  %v2074_v24 = vsel %vm1754_vm0, %v1594_v60, %v1914_v14 }
 0x141   : > { %v3156_v23 = vpack.c.bf16 %v2153_v13, %v2152_v61  ;;  %vm1834_vm1 = vcmp.ge.f32.partialorder %v1674_v15, 0.0  ;;  %v1994_v25 = vmul.f32 0.01, %v1674_v15  ;;  %vm1755_vm2 = vcmp.ge.f32.partialorder %v1595_v16, 0.0  ;;  %v3826_v28 = vpop.f32.mrf.mxu0  ;;  %v3828_v31 = vpop.f32.mrf.mxu1 }
 0x142   : > { %v1915_v26 = vmul.f32 0.01, %v1595_v16  ;;  %vm1835_vm3 = vcmp.ge.f32.partialorder %v1675_v17, 0.0  ;;  %v1995_v27 = vmul.f32 0.01, %v1675_v17  ;;  %vm1756_vm4 = vcmp.ge.f32.partialorder %v1596_v18, 0.0 }
 0x143   : > { %2745 = vst [vmem:[%s3704_s5 + $0x178] sm:$0xff] %v3156_v23  ;;  %v2154_v32 = vsel %vm1834_vm1, %v1674_v15, %v1994_v25  ;;  %v1916_v29 = vmul.f32 0.01, %v1596_v18  ;;  %vm1836_vm5 = vcmp.ge.f32.partialorder %v1676_v19, 0.0  ;;  %v1996_v35 = vmul.f32 0.01, %v1676_v19  ;;  %v3832_v37 = vpop.f32.mrf.mxu0  ;;  %v3834_v40 = vpop.f32.mrf.mxu1 }
 0x144   : > { %v2075_v33 = vsel %vm1755_vm2, %v1595_v16, %v1915_v26  ;;  %v2155_v34 = vsel %vm1835_vm3, %v1675_v17, %v1995_v27  ;;  %v1597_v36 = vadd.f32 %v3683_v62, %v1426_v20  ;;  %v1506_v46 = vmul.f32 %v3679_v56, %v3768_v30 }
 0x145   : > { %v3117_v41 = vpack.c.bf16 %v2075_v33, %v2074_v24  ;;  %v3157_v42 = vpack.c.bf16 %v2155_v34, %v2154_v32  ;;  %v2076_v43 = vsel %vm1756_vm4, %v1596_v18, %v1916_v29  ;;  %v2156_v47 = vsel %vm1836_vm5, %v1676_v19, %v1996_v35  ;;  %v3840_v50 = vpop.f32.mrf.mxu0  ;;  %v3842_v51 = vpop.f32.mrf.mxu1 }
 0x146   : > { %vm1757_vm6 = vcmp.ge.f32.partialorder %v1597_v36, 0.0  ;;  %v1917_v48 = vmul.f32 0.01, %v1597_v36  ;;  %v1427_v49 = vmul.f32 %v3675_v54, %v3777_v38  ;;  %v1677_v52 = vadd.f32 %v3683_v62, %v1506_v46 }
 0x147   : > { %2706 = vst [vmem:[%s3704_s5 + $0x40] sm:$0xff] %v3117_v41  ;;  %2746 = vst [vmem:[%s3704_s5 + $0x180] sm:$0xff] %v3157_v42  ;;  %v1507_v53 = vmul.f32 %v3675_v54, %v3779_v39  ;;  %v1428_v30 = vmul.f32 %v3679_v56, %v3781_v44  ;;  %v1508_v59 = vmul.f32 %v3679_v56, %v3783_v45  ;;  %v3858_v60 = vpop.f32.mrf.mxu0  ;;  %v3860_v1 = vpop.f32.mrf.mxu1 }
 0x148   : > { %v2077_v61 = vsel %vm1757_vm6, %v1597_v36, %v1917_v48  ;;  %v1598_v38 = vadd.f32 %v3677_v55, %v1427_v49  ;;  %v1429_v63 = vmul.f32 %v3675_v54, %v3790_v57  ;;  %v1509_v0 = vmul.f32 %v3675_v54, %v3792_v58 }
 0x149   : > { %v3118_v39 = vpack.c.bf16 %v2077_v61, %v2076_v43  ;;  %vm1837_vm7 = vcmp.ge.f32.partialorder %v1677_v52, 0.0  ;;  %v1997_v44 = vmul.f32 0.01, %v1677_v52  ;;  %v1678_v4 = vadd.f32 %v3677_v55, %v1507_v53  ;;  %v3865_v8 = vpop.f32.mrf.mxu0  ;;  %v3867_v57 = vpop.f32.mrf.mxu1 }
 0x14a   : > { %vm1758_vm8 = vcmp.ge.f32.partialorder %v1598_v38, 0.0  ;;  %v1918_v45 = vmul.f32 0.01, %v1598_v38  ;;  %v1599_v6 = vadd.f32 %v3683_v62, %v1428_v30  ;;  %v1679_v7 = vadd.f32 %v3683_v62, %v1508_v59 }
 0x14b   : > { %2707 = vst [vmem:[%s3704_s5 + $0x48] sm:$0xff] %v3118_v39  ;;  %v2157_v58 = vsel %vm1837_vm7, %v1677_v52, %v1997_v44  ;;  %vm1838_vm9 = vcmp.ge.f32.partialorder %v1678_v4, 0.0  ;;  %v1998_v9 = vmul.f32 0.01, %v1678_v4  ;;  %v1600_v10 = vadd.f32 %v3677_v55, %v1429_v63  ;;  %v3871_v16 = vpop.f32.mrf.mxu0  ;;  %v3873_v17 = vpop.f32.mrf.mxu1 }
 0x14c   : > { %v3158_v3 = vpack.c.bf16 %v2157_v58, %v2156_v47  ;;  %v2078_v14 = vsel %vm1758_vm8, %v1598_v38, %v1918_v45  ;;  %vm1759_vm10 = vcmp.ge.f32.partialorder %v1599_v6, 0.0  ;;  %v1919_v15 = vmul.f32 0.01, %v1599_v6 }
 0x14d   : > { %v2158_v13 = vsel %vm1838_vm9, %v1678_v4, %v1998_v9  ;;  %vm1839_vm11 = vcmp.ge.f32.partialorder %v1679_v7, 0.0  ;;  %v1999_v18 = vmul.f32 0.01, %v1679_v7  ;;  %vm1760_vm12 = vcmp.ge.f32.partialorder %v1600_v10, 0.0  ;;  %v3879_v25 = vpop.f32.mrf.mxu0  ;;  %v3881_v26 = vpop.f32.mrf.mxu1 }
 0x14e   : > { %2747 = vst [vmem:[%s3704_s5 + $0x188] sm:$0xff] %v3158_v3  ;;  %v2079_v19 = vsel %vm1759_vm10, %v1599_v6, %v1919_v15  ;;  %v1920_v20 = vmul.f32 0.01, %v1600_v10  ;;  %v1680_v23 = vadd.f32 %v3677_v55, %v1509_v0  ;;  %v1430_v24 = vmul.f32 %v3679_v56, %v3801_v2 }
 0x14f   : > { %v3119_v27 = vpack.c.bf16 %v2079_v19, %v2078_v14  ;;  %v2159_v32 = vsel %vm1839_vm11, %v1679_v7, %v1999_v18  ;;  %v1510_v29 = vmul.f32 %v3679_v56, %v3803_v5  ;;  %v1431_v33 = vmul.f32 %v3675_v54, %v3810_v11  ;;  %v3887_v41 = vpop.f32.mrf.mxu0  ;;  %v3889_v2 = vpop.f32.mrf.mxu1 }
 0x150   : > { %v3159_v34 = vpack.c.bf16 %v2159_v32, %v2158_v13  ;;  %v2080_v35 = vsel %vm1760_vm12, %v1600_v10, %v1920_v20  ;;  %vm1840_vm13 = vcmp.ge.f32.partialorder %v1680_v23, 0.0  ;;  %v2000_v36 = vmul.f32 0.01, %v1680_v23 }
 0x151   : > { %2708 = vst [vmem:[%s3704_s5 + $0x50] sm:$0xff] %v3119_v27  ;;  %v1601_v42 = vadd.f32 %v3683_v62, %v1430_v24  ;;  %v1681_v43 = vadd.f32 %v3683_v62, %v1510_v29  ;;  %v1602_v46 = vadd.f32 %v3677_v55, %v1431_v33  ;;  %v1511_v5 = vmul.f32 %v3675_v54, %v3812_v12  ;;  %v3904_v52 = vpop.f32.mrf.mxu0  ;;  %v3906_v53 = vpop.f32.mrf.mxu1 }
 0x152   : > { %2748 = vst [vmem:[%s3704_s5 + $0x190] sm:$0xff] %v3159_v34  ;;  %v2160_v11 = vsel %vm1840_vm13, %v1680_v23, %v2000_v36  ;;  %v1432_v47 = vmul.f32 %v3679_v56, %v3822_v21  ;;  %v1512_v48 = vmul.f32 %v3679_v56, %v3824_v22  ;;  %v1433_v49 = vmul.f32 %v3675_v54, %v3826_v28 }
 0x153   : > { %vm1761_vm14 = vcmp.ge.f32.partialorder %v1601_v42, 0.0  ;;  %v1921_v30 = vmul.f32 0.01, %v1601_v42  ;;  %vm1841_vm15 = vcmp.ge.f32.partialorder %v1681_v43, 0.0  ;;  %v2001_v59 = vmul.f32 0.01, %v1681_v43  ;;  %v3910_v38 = vpop.f32.mrf.mxu0  ;;  %v3912_v22 = vpop.f32.mrf.mxu1 }
 0x154   : > { %vm1762_vm0 = vcmp.ge.f32.partialorder %v1602_v46, 0.0  ;;  %v1922_v12 = vmul.f32 0.01, %v1602_v46  ;;  %v1682_v61 = vadd.f32 %v3677_v55, %v1511_v5  ;;  %v1603_v21 = vadd.f32 %v3683_v62, %v1432_v47 }
 0x155   : > { %v2081_v28 = vsel %vm1761_vm14, %v1601_v42, %v1921_v30  ;;  %v2161_v63 = vsel %vm1841_vm15, %v1681_v43, %v2001_v59  ;;  %v1683_v0 = vadd.f32 %v3683_v62, %v1512_v48  ;;  %v1604_v39 = vadd.f32 %v3677_v55, %v1433_v49  ;;  %v3916_v6 = vpop.f32.mrf.mxu0  ;;  %v3918_v7 = vpop.f32.mrf.mxu1 }
 0x156   : > { %v3120_v44 = vpack.c.bf16 %v2081_v28, %v2080_v35  ;;  %v3160_v4 = vpack.c.bf16 %v2161_v63, %v2160_v11  ;;  %v2082_v45 = vsel %vm1762_vm0, %v1602_v46, %v1922_v12  ;;  %vm1842_vm1 = vcmp.ge.f32.partialorder %v1682_v61, 0.0 }
 0x157   : > { %v2002_v58 = vmul.f32 0.01, %v1682_v61  ;;  %vm1763_vm2 = vcmp.ge.f32.partialorder %v1603_v21, 0.0  ;;  %v1923_v9 = vmul.f32 0.01, %v1603_v21  ;;  %vm1843_vm3 = vcmp.ge.f32.partialorder %v1683_v0, 0.0  ;;  %v3924_v15 = vpop.f32.mrf.mxu0  ;;  %v3926_v13 = vpop.f32.mrf.mxu1 }
 0x158   : > { %2709 = vst [vmem:[%s3704_s5 + $0x58] sm:$0xff] %v3120_v44  ;;  %2749 = vst [vmem:[%s3704_s5 + $0x198] sm:$0xff] %v3160_v4  ;;  %v2003_v10 = vmul.f32 0.01, %v1683_v0  ;;  %vm1764_vm4 = vcmp.ge.f32.partialorder %v1604_v39, 0.0  ;;  %v1513_v14 = vmul.f32 %v3675_v54, %v3828_v31  ;;  %v1434_v20 = vmul.f32 %v3679_v56, %v3832_v37 }
 0x159   : > { %v1924_v3 = vmul.f32 0.01, %v1604_v39  ;;  %v2162_v18 = vsel %vm1842_vm1, %v1682_v61, %v2002_v58  ;;  %v2083_v19 = vsel %vm1763_vm2, %v1603_v21, %v1923_v9  ;;  %v1514_v23 = vmul.f32 %v3679_v56, %v3834_v40  ;;  %v3933_v31 = vpop.f32.mrf.mxu0  ;;  %v3935_v33 = vpop.f32.mrf.mxu1 }
 0x15a   : > { %v3121_v24 = vpack.c.bf16 %v2083_v19, %v2082_v45  ;;  %v2163_v27 = vsel %vm1843_vm3, %v1683_v0, %v2003_v10  ;;  %v1684_v29 = vadd.f32 %v3677_v55, %v1513_v14  ;;  %v1605_v35 = vadd.f32 %v3683_v62, %v1434_v20 }
 0x15b   : > { %v2084_v32 = vsel %vm1764_vm4, %v1604_v39, %v1924_v3  ;;  %v3161_v34 = vpack.c.bf16 %v2163_v27, %v2162_v18  ;;  %v1685_v36 = vadd.f32 %v3683_v62, %v1514_v23  ;;  %v1435_v37 = vmul.f32 %v3675_v54, %v3840_v50  ;;  %v3946_v46 = vpop.f32.mrf.mxu0  ;;  %v3948_v5 = vpop.f32.mrf.mxu1 }
 0x15c   : > { %2710 = vst [vmem:[%s3704_s5 + $0x60] sm:$0xff] %v3121_v24  ;;  %vm1844_vm5 = vcmp.ge.f32.partialorder %v1684_v29, 0.0  ;;  %v2004_v40 = vmul.f32 0.01, %v1684_v29  ;;  %v1515_v42 = vmul.f32 %v3675_v54, %v3842_v51  ;;  %v1436_v43 = vmul.f32 %v3679_v56, %v3858_v60 }
 0x15d   : > { %2750 = vst [vmem:[%s3704_s5 + $0x1a0] sm:$0xff] %v3161_v34  ;;  %vm1765_vm6 = vcmp.ge.f32.partialorder %v1605_v35, 0.0  ;;  %v1925_v11 = vmul.f32 0.01, %v1605_v35  ;;  %vm1845_vm7 = vcmp.ge.f32.partialorder %v1685_v36, 0.0  ;;  %v1606_v50 = vadd.f32 %v3677_v55, %v1435_v37  ;;  %v3954_v51 = vpop.f32.mrf.mxu0  ;;  %v3956_v60 = vpop.f32.mrf.mxu1 }
 0x15e   : > { %v2005_v47 = vmul.f32 0.01, %v1685_v36  ;;  %v2164_v48 = vsel %vm1844_vm5, %v1684_v29, %v2004_v40  ;;  %v1686_v49 = vadd.f32 %v3677_v55, %v1515_v42  ;;  %v1607_v30 = vadd.f32 %v3683_v62, %v1436_v43 }
 0x15f   : > { %v2085_v59 = vsel %vm1765_vm6, %v1605_v35, %v1925_v11  ;;  %v1516_v61 = vmul.f32 %v3679_v56, %v3860_v1  ;;  %v1437_v21 = vmul.f32 %v3675_v54, %v3865_v8  ;;  %vm1766_vm8 = vcmp.ge.f32.partialorder %v1606_v50, 0.0  ;;  %v3962_v39 = vpop.f32.mrf.mxu0  ;;  %v3964_v44 = vpop.f32.mrf.mxu1 }
 0x160   : > { %v2165_v12 = vsel %vm1845_vm7, %v1685_v36, %v2005_v47  ;;  %v3122_v28 = vpack.c.bf16 %v2085_v59, %v2084_v32  ;;  %v1926_v0 = vmul.f32 0.01, %v1606_v50  ;;  %vm1846_vm9 = vcmp.ge.f32.partialorder %v1686_v49, 0.0 }
 0x161   : > { %v3162_v63 = vpack.c.bf16 %v2165_v12, %v2164_v48  ;;  %v2006_v4 = vmul.f32 0.01, %v1686_v49  ;;  %vm1767_vm10 = vcmp.ge.f32.partialorder %v1607_v30, 0.0  ;;  %v1927_v45 = vmul.f32 0.01, %v1607_v30  ;;  %v3972_v10 = vpop.f32.mrf.mxu0  ;;  %v3974_v3 = vpop.f32.mrf.mxu1 }
 0x162   : > { %2711 = vst [vmem:[%s3704_s5 + $0x68] sm:$0xff] %v3122_v28  ;;  %v2086_v58 = vsel %vm1766_vm8, %v1606_v50, %v1926_v0  ;;  %v1687_v1 = vadd.f32 %v3683_v62, %v1516_v61  ;;  %v1608_v9 = vadd.f32 %v3677_v55, %v1437_v21  ;;  %v1517_v8 = vmul.f32 %v3675_v54, %v3867_v57 }
 0x163   : > { %2751 = vst [vmem:[%s3704_s5 + $0x1a8] sm:$0xff] %v3162_v63  ;;  %v2166_v14 = vsel %vm1846_vm9, %v1686_v49, %v2006_v4  ;;  %v2087_v18 = vsel %vm1767_vm10, %v1607_v30, %v1927_v45  ;;  %v1438_v19 = vmul.f32 %v3679_v56, %v3871_v16  ;;  %v1518_v20 = vmul.f32 %v3679_v56, %v3873_v17  ;;  %v3980_v27 = vpop.f32.mrf.mxu0  ;;  %v3982_v57 = vpop.f32.mrf.mxu1 }
 0x164   : > { %v3123_v23 = vpack.c.bf16 %v2087_v18, %v2086_v58  ;;  %vm1847_vm11 = vcmp.ge.f32.partialorder %v1687_v1, 0.0  ;;  %v2007_v24 = vmul.f32 0.01, %v1687_v1  ;;  %vm1768_vm12 = vcmp.ge.f32.partialorder %v1608_v9, 0.0 }
 0x165   : > { %v1928_v32 = vmul.f32 0.01, %v1608_v9  ;;  %v1688_v29 = vadd.f32 %v3677_v55, %v1517_v8  ;;  %v1609_v34 = vadd.f32 %v3683_v62, %v1438_v19  ;;  %v1689_v35 = vadd.f32 %v3683_v62, %v1518_v20  ;;  %v3994_v40 = vpop.f32.mrf.mxu0  ;;  %v3996_v42 = vpop.f32.mrf.mxu1 }
 0x166   : > { %2712 = vst [vmem:[%s3704_s5 + $0x70] sm:$0xff] %v3123_v23  ;;  %v2167_v16 = vsel %vm1847_vm11, %v1687_v1, %v2007_v24  ;;  %v1439_v17 = vmul.f32 %v3675_v54, %v3879_v25  ;;  %v1519_v36 = vmul.f32 %v3675_v54, %v3881_v26  ;;  %v1440_v37 = vmul.f32 %v3679_v56, %v3887_v41 }
 0x167   : > { %v3163_v43 = vpack.c.bf16 %v2167_v16, %v2166_v14  ;;  %v2088_v11 = vsel %vm1768_vm12, %v1608_v9, %v1928_v32  ;;  %vm1848_vm13 = vcmp.ge.f32.partialorder %v1688_v29, 0.0  ;;  %v2008_v47 = vmul.f32 0.01, %v1688_v29  ;;  %v3998_v49 = vpop.f32.mrf.mxu0  ;;  %v4000_v25 = vpop.f32.mrf.mxu1 }
 0x168   : > { %vm1769_vm14 = vcmp.ge.f32.partialorder %v1609_v34, 0.0  ;;  %v1929_v48 = vmul.f32 0.01, %v1609_v34  ;;  %vm1849_vm15 = vcmp.ge.f32.partialorder %v1689_v35, 0.0  ;;  %v2009_v50 = vmul.f32 0.01, %v1689_v35 }
 0x169   : > { %2752 = vst [vmem:[%s3704_s5 + $0x1b0] sm:$0xff] %v3163_v43  ;;  %v2168_v26 = vsel %vm1848_vm13, %v1688_v29, %v2008_v47  ;;  %v1610_v41 = vadd.f32 %v3677_v55, %v1439_v17  ;;  %v1690_v30 = vadd.f32 %v3677_v55, %v1519_v36  ;;  %v1611_v59 = vadd.f32 %v3683_v62, %v1440_v37  ;;  %v4010_v63 = vpop.f32.mrf.mxu0  ;;  %v4012_v0 = vpop.f32.mrf.mxu1 }
 0x16a   : > { %v2089_v12 = vsel %vm1769_vm14, %v1609_v34, %v1929_v48  ;;  %v2169_v61 = vsel %vm1849_vm15, %v1689_v35, %v2009_v50  ;;  %v1520_v21 = vmul.f32 %v3679_v56, %v3889_v2  ;;  %v1441_v28 = vmul.f32 %v3675_v54, %v3904_v52 }
 0x16b   : > { %v3124_v4 = vpack.c.bf16 %v2089_v12, %v2088_v11  ;;  %v3164_v45 = vpack.c.bf16 %v2169_v61, %v2168_v26  ;;  %vm1770_vm0 = vcmp.ge.f32.partialorder %v1610_v41, 0.0  ;;  %v1930_v58 = vmul.f32 0.01, %v1610_v41  ;;  %v4014_v8 = vpop.f32.mrf.mxu0  ;;  %v4016_v14 = vpop.f32.mrf.mxu1 }
 0x16c   : > { %vm1850_vm1 = vcmp.ge.f32.partialorder %v1690_v30, 0.0  ;;  %v2010_v1 = vmul.f32 0.01, %v1690_v30  ;;  %vm1771_vm2 = vcmp.ge.f32.partialorder %v1611_v59, 0.0  ;;  %v1931_v9 = vmul.f32 0.01, %v1611_v59 }
 0x16d   : > { %2713 = vst [vmem:[%s3704_s5 + $0x78] sm:$0xff] %v3124_v4  ;;  %2753 = vst [vmem:[%s3704_s5 + $0x1b8] sm:$0xff] %v3164_v45  ;;  %v2090_v2 = vsel %vm1770_vm0, %v1610_v41, %v1930_v58  ;;  %v1691_v52 = vadd.f32 %v3683_v62, %v1520_v21  ;;  %v1612_v18 = vadd.f32 %v3677_v55, %v1441_v28  ;;  %v4028_v29 = vpop.f32.mrf.mxu0  ;;  %v4030_v34 = vpop.f32.mrf.mxu1 }
 0x16e   : > { %v1521_v19 = vmul.f32 %v3675_v54, %v3906_v53  ;;  %v2170_v20 = vsel %vm1850_vm1, %v1690_v30, %v2010_v1  ;;  %v2091_v23 = vsel %vm1771_vm2, %v1611_v59, %v1931_v9  ;;  %v1442_v24 = vmul.f32 %v3679_v56, %v3910_v38 }
 0x16f   : > { %v1522_v32 = vmul.f32 %v3679_v56, %v3912_v22  ;;  %v3125_v35 = vpack.c.bf16 %v2091_v23, %v2090_v2  ;;  %vm1851_vm3 = vcmp.ge.f32.partialorder %v1691_v52, 0.0  ;;  %v2011_v16 = vmul.f32 0.01, %v1691_v52  ;;  %v4035_v43 = vpop.f32.mrf.mxu0  ;;  %v4037_v38 = vpop.f32.mrf.mxu1 }
 0x170   : > { %vm1772_vm4 = vcmp.ge.f32.partialorder %v1612_v18, 0.0  ;;  %v1932_v17 = vmul.f32 0.01, %v1612_v18  ;;  %v1692_v53 = vadd.f32 %v3677_v55, %v1521_v19  ;;  %v1613_v36 = vadd.f32 %v3683_v62, %v1442_v24 }
 0x171   : > { %v1693_v37 = vadd.f32 %v3683_v62, %v1522_v32  ;;  %2714 = vst [vmem:[%s3704_s5 + $0x80] sm:$0xff] %v3125_v35  ;;  %v2171_v22 = vsel %vm1851_vm3, %v1691_v52, %v2011_v16  ;;  %v1443_v11 = vmul.f32 %v3675_v54, %v3916_v6  ;;  %v1523_v47 = vmul.f32 %v3675_v54, %v3918_v7  ;;  %v4046_v30 = vpop.f32.mrf.mxu0  ;;  %v4048_v59 = vpop.f32.mrf.mxu1 }
 0x172   : > { %v1444_v48 = vmul.f32 %v3679_v56, %v3924_v15  ;;  %v3165_v50 = vpack.c.bf16 %v2171_v22, %v2170_v20  ;;  %v2092_v26 = vsel %vm1772_vm4, %v1612_v18, %v1932_v17  ;;  %vm1852_vm5 = vcmp.ge.f32.partialorder %v1692_v53, 0.0 }
 0x173   : > { %v2012_v41 = vmul.f32 0.01, %v1692_v53  ;;  %vm1773_vm6 = vcmp.ge.f32.partialorder %v1613_v36, 0.0  ;;  %v1933_v12 = vmul.f32 0.01, %v1613_v36  ;;  %vm1853_vm7 = vcmp.ge.f32.partialorder %v1693_v37, 0.0  ;;  %v4054_v28 = vpop.f32.mrf.mxu0  ;;  %v4056_v4 = vpop.f32.mrf.mxu1 }
 0x174   : > { %v2013_v61 = vmul.f32 0.01, %v1693_v37  ;;  %2754 = vst [vmem:[%s3704_s5 + $0x1c0] sm:$0xff] %v3165_v50  ;;  %v1614_v21 = vadd.f32 %v3677_v55, %v1443_v11  ;;  %v1694_v7 = vadd.f32 %v3677_v55, %v1523_v47  ;;  %v1615_v15 = vadd.f32 %v3683_v62, %v1444_v48 }
 0x175   : > { %v2172_v6 = vsel %vm1852_vm5, %v1692_v53, %v2012_v41  ;;  %v2093_v45 = vsel %vm1773_vm6, %v1613_v36, %v1933_v12  ;;  %v1524_v1 = vmul.f32 %v3679_v56, %v3926_v13  ;;  %v1445_v9 = vmul.f32 %v3675_v54, %v3933_v31  ;;  %v4068_v31 = vpop.f32.mrf.mxu0  ;;  %v4070_v35 = vpop.f32.mrf.mxu1 }
 0x176   : > { %v2173_v58 = vsel %vm1853_vm7, %v1693_v37, %v2013_v61  ;;  %v3126_v2 = vpack.c.bf16 %v2093_v45, %v2092_v26  ;;  %vm1774_vm8 = vcmp.ge.f32.partialorder %v1614_v21, 0.0  ;;  %v1934_v18 = vmul.f32 0.01, %v1614_v21 }
 0x177   : > { %v3166_v52 = vpack.c.bf16 %v2173_v58, %v2172_v6  ;;  %vm1854_vm9 = vcmp.ge.f32.partialorder %v1694_v7, 0.0  ;;  %v2014_v19 = vmul.f32 0.01, %v1694_v7  ;;  %vm1775_vm10 = vcmp.ge.f32.partialorder %v1615_v15, 0.0  ;;  %v4086_v41 = vpop.f32.mrf.mxu0  ;;  %v4088_v12 = vpop.f32.mrf.mxu1 }
 0x178   : > { %v1935_v20 = vmul.f32 0.01, %v1615_v15  ;;  %2715 = vst [vmem:[%s3704_s5 + $0x88] sm:$0xff] %v3126_v2  ;;  %v2094_v23 = vsel %vm1774_vm8, %v1614_v21, %v1934_v18  ;;  %v1695_v24 = vadd.f32 %v3683_v62, %v1524_v1  ;;  %v1616_v32 = vadd.f32 %v3677_v55, %v1445_v9 }
 0x179   : > { %2755 = vst [vmem:[%s3704_s5 + $0x1c8] sm:$0xff] %v3166_v52  ;;  %v1525_v13 = vmul.f32 %v3675_v54, %v3935_v33  ;;  %v2174_v16 = vsel %vm1854_vm9, %v1694_v7, %v2014_v19  ;;  %v1446_v53 = vmul.f32 %v3679_v56, %v3946_v46  ;;  %v1526_v36 = vmul.f32 %v3679_v56, %v3948_v5  ;;  %v4098_v52 = vpop.f32.mrf.mxu0  ;;  %v4100_v18 = vpop.f32.mrf.mxu1 }
 0x17a   : > { %v2095_v17 = vsel %vm1775_vm10, %v1615_v15, %v1935_v20  ;;  %vm1855_vm11 = vcmp.ge.f32.partialorder %v1695_v24, 0.0  ;;  %v2015_v22 = vmul.f32 0.01, %v1695_v24  ;;  %vm1776_vm12 = vcmp.ge.f32.partialorder %v1616_v32, 0.0 }
 0x17b   : > { %v3127_v37 = vpack.c.bf16 %v2095_v17, %v2094_v23  ;;  %v1936_v11 = vmul.f32 0.01, %v1616_v32  ;;  %v1696_v47 = vadd.f32 %v3677_v55, %v1525_v13  ;;  %v1617_v33 = vadd.f32 %v3683_v62, %v1446_v53 }
 0x17c   : > { %v1697_v48 = vadd.f32 %v3683_v62, %v1526_v36  ;;  %v2175_v50 = vsel %vm1855_vm11, %v1695_v24, %v2015_v22  ;;  %v1447_v46 = vmul.f32 %v3675_v54, %v3954_v51  ;;  %v1527_v5 = vmul.f32 %v3675_v54, %v3956_v60  ;;  %v4112_v22 = vpop.f32.mrf.mxu0 }
 0x17d   : > { %2716 = vst [vmem:[%s3704_s5 + $0x90] sm:$0xff] %v3127_v37  ;;  %v1448_v26 = vmul.f32 %v3679_v56, %v3962_v39  ;;  %v3167_v61 = vpack.c.bf16 %v2175_v50, %v2174_v16  ;;  %v2096_v6 = vsel %vm1776_vm12, %v1616_v32, %v1936_v11  ;;  %vm1856_vm13 = vcmp.ge.f32.partialorder %v1696_v47, 0.0  ;;  %v4114_v11 = vpop.f32.mrf.mxu1 }
 0x17e   : > { %v2016_v21 = vmul.f32 0.01, %v1696_v47  ;;  %vm1777_vm14 = vcmp.ge.f32.partialorder %v1617_v33, 0.0  ;;  %v1937_v7 = vmul.f32 0.01, %v1617_v33  ;;  %vm1857_vm15 = vcmp.ge.f32.partialorder %v1697_v48, 0.0 }
 0x17f   : > { %v2017_v15 = vmul.f32 0.01, %v1697_v48  ;;  %2756 = vst [vmem:[%s3704_s5 + $0x1d0] sm:$0xff] %v3167_v61  ;;  %v1618_v45 = vadd.f32 %v3677_v55, %v1447_v46  ;;  %v1698_v60 = vadd.f32 %v3677_v55, %v1527_v5  ;;  %v1619_v39 = vadd.f32 %v3683_v62, %v1448_v26 }
 0x180   : > { %v2176_v51 = vsel %vm1856_vm13, %v1696_v47, %v2016_v21  ;;  %v2097_v58 = vsel %vm1777_vm14, %v1617_v33, %v1937_v7  ;;  %v1528_v9 = vmul.f32 %v3679_v56, %v3964_v44  ;;  %v1449_v2 = vmul.f32 %v3675_v54, %v3972_v10  ;;  %v4126_v7 = vpop.f32.mrf.mxu0 }
 0x181   : > { %v2177_v1 = vsel %vm1857_vm15, %v1697_v48, %v2017_v15  ;;  %v3128_v19 = vpack.c.bf16 %v2097_v58, %v2096_v6  ;;  %vm1778_vm0 = vcmp.ge.f32.partialorder %v1618_v45, 0.0  ;;  %v1938_v23 = vmul.f32 0.01, %v1618_v45  ;;  %v4128_v15 = vpop.f32.mrf.mxu1 }
 0x182   : > { %v3168_v20 = vpack.c.bf16 %v2177_v1, %v2176_v51  ;;  %vm1858_vm1 = vcmp.ge.f32.partialorder %v1698_v60, 0.0  ;;  %v2018_v24 = vmul.f32 0.01, %v1698_v60  ;;  %vm1779_vm2 = vcmp.ge.f32.partialorder %v1619_v39, 0.0 }
 0x183   : > { %v1939_v32 = vmul.f32 0.01, %v1619_v39  ;;  %2717 = vst [vmem:[%s3704_s5 + $0x98] sm:$0xff] %v3128_v19  ;;  %v2098_v13 = vsel %vm1778_vm0, %v1618_v45, %v1938_v23  ;;  %v1699_v44 = vadd.f32 %v3683_v62, %v1528_v9  ;;  %v1620_v16 = vadd.f32 %v3677_v55, %v1449_v2  ;;  %v4138_v23 = vpop.f32.mrf.mxu0 }
 0x184   : > { %2757 = vst [vmem:[%s3704_s5 + $0x1d8] sm:$0xff] %v3168_v20  ;;  %v1529_v10 = vmul.f32 %v3675_v54, %v3974_v3  ;;  %v2178_v17 = vsel %vm1858_vm1, %v1698_v60, %v2018_v24  ;;  %v1450_v36 = vmul.f32 %v3679_v56, %v3980_v27  ;;  %v1530_v37 = vmul.f32 %v3679_v56, %v3982_v57  ;;  %v4140_v24 = vpop.f32.mrf.mxu1 }
 0x185   : > { %v2099_v53 = vsel %vm1779_vm2, %v1619_v39, %v1939_v32  ;;  %vm1859_vm3 = vcmp.ge.f32.partialorder %v1699_v44, 0.0  ;;  %v2019_v33 = vmul.f32 0.01, %v1699_v44  ;;  %vm1780_vm4 = vcmp.ge.f32.partialorder %v1620_v16, 0.0 }
 0x186   : > { %v3129_v47 = vpack.c.bf16 %v2099_v53, %v2098_v13  ;;  %v1940_v48 = vmul.f32 0.01, %v1620_v16  ;;  %v1700_v50 = vadd.f32 %v3677_v55, %v1529_v10  ;;  %v1621_v3 = vadd.f32 %v3683_v62, %v1450_v36 }
 0x187   : > { %v1701_v46 = vadd.f32 %v3683_v62, %v1530_v37  ;;  %v2179_v27 = vsel %vm1859_vm3, %v1699_v44, %v2019_v33  ;;  %v1451_v57 = vmul.f32 %v3675_v54, %v3994_v40  ;;  %v1531_v5 = vmul.f32 %v3675_v54, %v3996_v42  ;;  %v4152_v33 = vpop.f32.mrf.mxu0 }
 0x188   : > { %2718 = vst [vmem:[%s3704_s5 + $0xa0] sm:$0xff] %v3129_v47  ;;  %v1452_v26 = vmul.f32 %v3679_v56, %v3998_v49  ;;  %v3169_v61 = vpack.c.bf16 %v2179_v27, %v2178_v17  ;;  %v2100_v6 = vsel %vm1780_vm4, %v1620_v16, %v1940_v48  ;;  %vm1860_vm5 = vcmp.ge.f32.partialorder %v1700_v50, 0.0  ;;  %v4154_v48 = vpop.f32.mrf.mxu1 }
 0x189   : > { %v2020_v21 = vmul.f32 0.01, %v1700_v50  ;;  %vm1781_vm6 = vcmp.ge.f32.partialorder %v1621_v3, 0.0  ;;  %v1941_v51 = vmul.f32 0.01, %v1621_v3  ;;  %vm1861_vm7 = vcmp.ge.f32.partialorder %v1701_v46, 0.0 }
 0x18a   : > { %v2021_v45 = vmul.f32 0.01, %v1701_v46  ;;  %2758 = vst [vmem:[%s3704_s5 + $0x1e0] sm:$0xff] %v3169_v61  ;;  %v1622_v60 = vadd.f32 %v3677_v55, %v1451_v57  ;;  %v1702_v42 = vadd.f32 %v3677_v55, %v1531_v5  ;;  %v1623_v49 = vadd.f32 %v3683_v62, %v1452_v26 }
 0x18b   : > { %v2180_v40 = vsel %vm1860_vm5, %v1700_v50, %v2020_v21  ;;  %v2101_v39 = vsel %vm1781_vm6, %v1621_v3, %v1941_v51  ;;  %v1532_v1 = vmul.f32 %v3679_v56, %v4000_v25  ;;  %v1453_v9 = vmul.f32 %v3675_v54, %v4010_v63  ;;  %v4166_v51 = vpop.f32.mrf.mxu0 }
 0x18c   : > { %v2181_v58 = vsel %vm1861_vm7, %v1701_v46, %v2021_v45  ;;  %v3130_v2 = vpack.c.bf16 %v2101_v39, %v2100_v6  ;;  %vm1782_vm8 = vcmp.ge.f32.partialorder %v1622_v60, 0.0  ;;  %v1942_v20 = vmul.f32 0.01, %v1622_v60  ;;  %v4168_v45 = vpop.f32.mrf.mxu1 }
 0x18d   : > { %v3170_v19 = vpack.c.bf16 %v2181_v58, %v2180_v40  ;;  %vm1862_vm9 = vcmp.ge.f32.partialorder %v1702_v42, 0.0  ;;  %v2022_v32 = vmul.f32 0.01, %v1702_v42  ;;  %vm1783_vm10 = vcmp.ge.f32.partialorder %v1623_v49, 0.0 }
 0x18e   : > { %v1943_v13 = vmul.f32 0.01, %v1623_v49  ;;  %2719 = vst [vmem:[%s3704_s5 + $0xa8] sm:$0xff] %v3130_v2  ;;  %v2102_v44 = vsel %vm1782_vm8, %v1622_v60, %v1942_v20  ;;  %v1703_v25 = vadd.f32 %v3683_v62, %v1532_v1  ;;  %v1624_v16 = vadd.f32 %v3677_v55, %v1453_v9  ;;  %v4178_v20 = vpop.f32.mrf.mxu0 }
 0x18f   : > { %2759 = vst [vmem:[%s3704_s5 + $0x1e8] sm:$0xff] %v3170_v19  ;;  %v1533_v63 = vmul.f32 %v3675_v54, %v4012_v0  ;;  %v2182_v10 = vsel %vm1862_vm9, %v1702_v42, %v2022_v32  ;;  %v1454_v53 = vmul.f32 %v3679_v56, %v4014_v8  ;;  %v1534_v36 = vmul.f32 %v3679_v56, %v4016_v14  ;;  %v4180_v32 = vpop.f32.mrf.mxu1 }
 0x190   : > { %v2103_v17 = vsel %vm1783_vm10, %v1623_v49, %v1943_v13  ;;  %vm1863_vm11 = vcmp.ge.f32.partialorder %v1703_v25, 0.0  ;;  %v2023_v47 = vmul.f32 0.01, %v1703_v25  ;;  %vm1784_vm12 = vcmp.ge.f32.partialorder %v1624_v16, 0.0 }
 0x191   : > { %v3131_v37 = vpack.c.bf16 %v2103_v17, %v2102_v44  ;;  %v1944_v50 = vmul.f32 0.01, %v1624_v16  ;;  %v1704_v3 = vadd.f32 %v3677_v55, %v1533_v63  ;;  %v1625_v0 = vadd.f32 %v3683_v62, %v1454_v53 }
 0x192   : > { %v1705_v46 = vadd.f32 %v3683_v62, %v1534_v36  ;;  %v2183_v8 = vsel %vm1863_vm11, %v1703_v25, %v2023_v47  ;;  %v1455_v14 = vmul.f32 %v3675_v54, %v4028_v29  ;;  %v1535_v27 = vmul.f32 %v3675_v54, %v4030_v34 }
 0x193   : > { %2720 = vst [vmem:[%s3704_s5 + $0xb0] sm:$0xff] %v3131_v37  ;;  %v1456_v57 = vmul.f32 %v3679_v56, %v4035_v43  ;;  %v3171_v5 = vpack.c.bf16 %v2183_v8, %v2182_v10  ;;  %v2104_v26 = vsel %vm1784_vm12, %v1624_v16, %v1944_v50  ;;  %vm1864_vm13 = vcmp.ge.f32.partialorder %v1704_v3, 0.0 }
 0x194   : > { %v2024_v61 = vmul.f32 0.01, %v1704_v3  ;;  %vm1785_vm14 = vcmp.ge.f32.partialorder %v1625_v0, 0.0  ;;  %v1945_v6 = vmul.f32 0.01, %v1625_v0  ;;  %vm1865_vm15 = vcmp.ge.f32.partialorder %v1705_v46, 0.0 }
 0x195   : > { %v2025_v21 = vmul.f32 0.01, %v1705_v46  ;;  %2760 = vst [vmem:[%s3704_s5 + $0x1f0] sm:$0xff] %v3171_v5  ;;  %v1626_v40 = vadd.f32 %v3677_v55, %v1455_v14  ;;  %v1706_v34 = vadd.f32 %v3677_v55, %v1535_v27  ;;  %v1627_v43 = vadd.f32 %v3683_v62, %v1456_v57 }
 0x196   : > { %v2184_v29 = vsel %vm1864_vm13, %v1704_v3, %v2024_v61  ;;  %v2105_v60 = vsel %vm1785_vm14, %v1625_v0, %v1945_v6  ;;  %v1536_v49 = vmul.f32 %v3679_v56, %v4037_v38  ;;  %v1457_v39 = vmul.f32 %v3675_v54, %v4046_v30  ;;  %v4197_v3 = vpop.f32.mrf.mxu1 }
 0x197   : > { %v2185_v42 = vsel %vm1865_vm15, %v1705_v46, %v2025_v21  ;;  %v3132_v58 = vpack.c.bf16 %v2105_v60, %v2104_v26  ;;  %vm1786_vm0 = vcmp.ge.f32.partialorder %v1626_v40, 0.0  ;;  %v1946_v9 = vmul.f32 0.01, %v1626_v40 }
 0x198   : > { %v3172_v1 = vpack.c.bf16 %v2185_v42, %v2184_v29  ;;  %vm1866_vm1 = vcmp.ge.f32.partialorder %v1706_v34, 0.0  ;;  %v2026_v2 = vmul.f32 0.01, %v1706_v34  ;;  %vm1787_vm2 = vcmp.ge.f32.partialorder %v1627_v43, 0.0 }
 0x199   : > { %v1947_v19 = vmul.f32 0.01, %v1627_v43  ;;  %2721 = vst [vmem:[%s3704_s5 + $0xb8] sm:$0xff] %v3132_v58  ;;  %v2106_v13 = vsel %vm1786_vm0, %v1626_v40, %v1946_v9  ;;  %v1707_v38 = vadd.f32 %v3683_v62, %v1536_v49  ;;  %v1628_v44 = vadd.f32 %v3677_v55, %v1457_v39 }
 0x19a   : > { %2761 = vst [vmem:[%s3704_s5 + $0x1f8] sm:$0xff] %v3172_v1  ;;  %v1537_v30 = vmul.f32 %v3675_v54, %v4048_v59  ;;  %v2186_v25 = vsel %vm1866_vm1, %v1706_v34, %v2026_v2  ;;  %v1458_v63 = vmul.f32 %v3679_v56, %v4054_v28  ;;  %v1538_v10 = vmul.f32 %v3679_v56, %v4056_v4  ;;  %v4195_v59 = vpop.f32.mrf.mxu0 }
 0x19b   : > { %v2107_v16 = vsel %vm1787_vm2, %v1627_v43, %v1947_v19  ;;  %vm1867_vm3 = vcmp.ge.f32.partialorder %v1707_v38, 0.0  ;;  %v2027_v53 = vmul.f32 0.01, %v1707_v38  ;;  %vm1788_vm4 = vcmp.ge.f32.partialorder %v1628_v44, 0.0 }
 0x19c   : > { %v3133_v17 = vpack.c.bf16 %v2107_v16, %v2106_v13  ;;  %v1948_v36 = vmul.f32 0.01, %v1628_v44  ;;  %v1708_v37 = vadd.f32 %v3677_v55, %v1537_v30  ;;  %v1629_v47 = vadd.f32 %v3683_v62, %v1458_v63  ;;  %v4210_v6 = vpop.f32.mrf.mxu0 }
 0x19d   : > { %v1709_v50 = vadd.f32 %v3683_v62, %v1538_v10  ;;  %v2187_v28 = vsel %vm1867_vm3, %v1707_v38, %v2027_v53  ;;  %v1459_v4 = vmul.f32 %v3675_v54, %v4068_v31  ;;  %v1539_v0 = vmul.f32 %v3675_v54, %v4070_v35 }
 0x19e   : > { %2722 = vst [vmem:[%s3704_s5 + $0xc0] sm:$0xff] %v3133_v17  ;;  %v1460_v46 = vmul.f32 %v3679_v56, %v4086_v41  ;;  %v3173_v8 = vpack.c.bf16 %v2187_v28, %v2186_v25  ;;  %v2108_v14 = vsel %vm1788_vm4, %v1628_v44, %v1948_v36  ;;  %vm1868_vm5 = vcmp.ge.f32.partialorder %v1708_v37, 0.0  ;;  %v4212_v41 = vpop.f32.mrf.mxu1 }
 0x19f   : > { %v2028_v27 = vmul.f32 0.01, %v1708_v37  ;;  %vm1789_vm6 = vcmp.ge.f32.partialorder %v1629_v47, 0.0  ;;  %v1949_v57 = vmul.f32 0.01, %v1629_v47  ;;  %vm1869_vm7 = vcmp.ge.f32.partialorder %v1709_v50, 0.0 }
 0x1a0   : > { %v2029_v5 = vmul.f32 0.01, %v1709_v50  ;;  %2762 = vst [vmem:[%s3704_s5 + $0x200] sm:$0xff] %v3173_v8  ;;  %v1630_v61 = vadd.f32 %v3677_v55, %v1459_v4  ;;  %v1710_v31 = vadd.f32 %v3677_v55, %v1539_v0  ;;  %v1631_v35 = vadd.f32 %v3683_v62, %v1460_v46  ;;  %v4226_v2 = vpop.f32.mrf.mxu1 }
 0x1a1   : > { %v2188_v26 = vsel %vm1868_vm5, %v1708_v37, %v2028_v27  ;;  %v2109_v21 = vsel %vm1789_vm6, %v1629_v47, %v1949_v57  ;;  %v1540_v40 = vmul.f32 %v3679_v56, %v4088_v12  ;;  %v1461_v34 = vmul.f32 %v3675_v54, %v4098_v52  ;;  %v4224_v52 = vpop.f32.mrf.mxu0 }
 0x1a2   : > { %v2189_v29 = vsel %vm1869_vm7, %v1709_v50, %v2029_v5  ;;  %v3134_v43 = vpack.c.bf16 %v2109_v21, %v2108_v14  ;;  %vm1790_vm8 = vcmp.ge.f32.partialorder %v1630_v61, 0.0  ;;  %v1950_v42 = vmul.f32 0.01, %v1630_v61  ;;  %v4244_v37 = vpop.f32.mrf.mxu1 }
 0x1a3   : > { %v3174_v60 = vpack.c.bf16 %v2189_v29, %v2188_v26  ;;  %vm1870_vm9 = vcmp.ge.f32.partialorder %v1710_v31, 0.0  ;;  %v2030_v49 = vmul.f32 0.01, %v1710_v31  ;;  %vm1791_vm10 = vcmp.ge.f32.partialorder %v1631_v35, 0.0  ;;  %v4242_v36 = vpop.f32.mrf.mxu0 }
 0x1a4   : > { %v1951_v39 = vmul.f32 0.01, %v1631_v35  ;;  %2723 = vst [vmem:[%s3704_s5 + $0xc8] sm:$0xff] %v3134_v43  ;;  %v2110_v58 = vsel %vm1790_vm8, %v1630_v61, %v1950_v42  ;;  %v1711_v1 = vadd.f32 %v3683_v62, %v1540_v40  ;;  %v1632_v9 = vadd.f32 %v3677_v55, %v1461_v34  ;;  %v4256_v26 = vpop.f32.mrf.mxu1 }
 0x1a5   : > { %2763 = vst [vmem:[%s3704_s5 + $0x208] sm:$0xff] %v3174_v60  ;;  %v1541_v12 = vmul.f32 %v3675_v54, %v4100_v18  ;;  %v2190_v19 = vsel %vm1870_vm9, %v1710_v31, %v2030_v49  ;;  %v1462_v38 = vmul.f32 %v3679_v56, %v4112_v22  ;;  %v1542_v44 = vmul.f32 %v3679_v56, %v4114_v11  ;;  %v4254_v5 = vpop.f32.mrf.mxu0 }
 0x1a6   : > { %v2111_v13 = vsel %vm1791_vm10, %v1631_v35, %v1951_v39  ;;  %vm1871_vm11 = vcmp.ge.f32.partialorder %v1711_v1, 0.0  ;;  %v2031_v25 = vmul.f32 0.01, %v1711_v1  ;;  %vm1792_vm12 = vcmp.ge.f32.partialorder %v1632_v9, 0.0 }
 0x1a7   : > { %v3135_v30 = vpack.c.bf16 %v2111_v13, %v2110_v58  ;;  %v1952_v16 = vmul.f32 0.01, %v1632_v9  ;;  %v1712_v63 = vadd.f32 %v3677_v55, %v1541_v12  ;;  %v1633_v18 = vadd.f32 %v3683_v62, %v1462_v38  ;;  %v4268_v39 = vpop.f32.mrf.mxu0  ;;  %v4270_v58 = vpop.f32.mrf.mxu1 }
 0x1a8   : > { %v1713_v10 = vadd.f32 %v3683_v62, %v1542_v44  ;;  %v2191_v17 = vsel %vm1871_vm11, %v1711_v1, %v2031_v25  ;;  %v1463_v22 = vmul.f32 %v3675_v54, %v4126_v7  ;;  %v1543_v11 = vmul.f32 %v3675_v54, %v4128_v15 }
 0x1a9   : > { %2724 = vst [vmem:[%s3704_s5 + $0xd0] sm:$0xff] %v3135_v30  ;;  %v1464_v53 = vmul.f32 %v3679_v56, %v4138_v23  ;;  %v3175_v47 = vpack.c.bf16 %v2191_v17, %v2190_v19  ;;  %v2112_v50 = vsel %vm1792_vm12, %v1632_v9, %v1952_v16  ;;  %vm1872_vm13 = vcmp.ge.f32.partialorder %v1712_v63, 0.0 }
 0x1aa   : > { %v2032_v28 = vmul.f32 0.01, %v1712_v63  ;;  %vm1793_vm14 = vcmp.ge.f32.partialorder %v1633_v18, 0.0  ;;  %v1953_v4 = vmul.f32 0.01, %v1633_v18  ;;  %vm1873_vm15 = vcmp.ge.f32.partialorder %v1713_v10, 0.0 }
 0x1ab   : > { %v2033_v0 = vmul.f32 0.01, %v1713_v10  ;;  %2764 = vst [vmem:[%s3704_s5 + $0x210] sm:$0xff] %v3175_v47  ;;  %v1634_v46 = vadd.f32 %v3677_v55, %v1463_v22  ;;  %v1714_v15 = vadd.f32 %v3677_v55, %v1543_v11  ;;  %v1635_v23 = vadd.f32 %v3683_v62, %v1464_v53 }
 0x1ac   : > { %v2192_v7 = vsel %vm1872_vm13, %v1712_v63, %v2032_v28  ;;  %v2113_v8 = vsel %vm1793_vm14, %v1633_v18, %v1953_v4  ;;  %v1544_v27 = vmul.f32 %v3679_v56, %v4140_v24  ;;  %v1465_v57 = vmul.f32 %v3675_v54, %v4152_v33  ;;  %v4282_v63 = vpop.f32.mrf.mxu0  ;;  %v4284_v18 = vpop.f32.mrf.mxu1 }
 0x1ad   : > { %v2193_v14 = vsel %vm1873_vm15, %v1713_v10, %v2033_v0  ;;  %v3136_v61 = vpack.c.bf16 %v2113_v8, %v2112_v50  ;;  %vm1794_vm0 = vcmp.ge.f32.partialorder %v1634_v46, 0.0  ;;  %v1954_v35 = vmul.f32 0.01, %v1634_v46 }
 0x1ae   : > { %v3176_v31 = vpack.c.bf16 %v2193_v14, %v2192_v7  ;;  %vm1874_vm1 = vcmp.ge.f32.partialorder %v1714_v15, 0.0  ;;  %v2034_v21 = vmul.f32 0.01, %v1714_v15  ;;  %vm1795_vm2 = vcmp.ge.f32.partialorder %v1635_v23, 0.0  ;;  %v4294_v7 = vpop.f32.mrf.mxu0 }
 0x1af   : > { %v1955_v29 = vmul.f32 0.01, %v1635_v23  ;;  %2725 = vst [vmem:[%s3704_s5 + $0xd8] sm:$0xff] %v3136_v61  ;;  %v2114_v40 = vsel %vm1794_vm0, %v1634_v46, %v1954_v35  ;;  %v1715_v24 = vadd.f32 %v3683_v62, %v1544_v27  ;;  %v1636_v34 = vadd.f32 %v3677_v55, %v1465_v57  ;;  %v4296_v46 = vpop.f32.mrf.mxu1 }
 0x1b0   : > { %2765 = vst [vmem:[%s3704_s5 + $0x218] sm:$0xff] %v3176_v31  ;;  %v1545_v33 = vmul.f32 %v3675_v54, %v4154_v48  ;;  %v2194_v43 = vsel %vm1874_vm1, %v1714_v15, %v2034_v21  ;;  %v1466_v42 = vmul.f32 %v3679_v56, %v4166_v51  ;;  %v1546_v49 = vmul.f32 %v3679_v56, %v4168_v45 }
 0x1b1   : > { %v2115_v60 = vsel %vm1795_vm2, %v1635_v23, %v1955_v29  ;;  %vm1875_vm3 = vcmp.ge.f32.partialorder %v1715_v24, 0.0  ;;  %v2035_v9 = vmul.f32 0.01, %v1715_v24  ;;  %vm1796_vm4 = vcmp.ge.f32.partialorder %v1636_v34, 0.0  ;;  %v4308_v29 = vpop.f32.mrf.mxu0 }
 0x1b2   : > { %v3137_v1 = vpack.c.bf16 %v2115_v60, %v2114_v40  ;;  %v1956_v12 = vmul.f32 0.01, %v1636_v34  ;;  %v1716_v19 = vadd.f32 %v3677_v55, %v1545_v33  ;;  %v1637_v48 = vadd.f32 %v3683_v62, %v1466_v42  ;;  %v4310_v40 = vpop.f32.mrf.mxu1 }
 0x1b3   : > { %v1717_v13 = vadd.f32 %v3683_v62, %v1546_v49  ;;  %v2195_v51 = vsel %vm1875_vm3, %v1715_v24, %v2035_v9  ;;  %v1467_v45 = vmul.f32 %v3675_v54, %v4178_v20  ;;  %v1547_v38 = vmul.f32 %v3675_v54, %v4180_v32 }
 0x1b4   : > { %2726 = vst [vmem:[%s3704_s5 + $0xe0] sm:$0xff] %v3137_v1  ;;  %v1468_v44 = vmul.f32 %v3679_v56, %v4195_v59  ;;  %v3177_v30 = vpack.c.bf16 %v2195_v51, %v2194_v43  ;;  %v2116_v25 = vsel %vm1796_vm4, %v1636_v34, %v1956_v12  ;;  %vm1876_vm5 = vcmp.ge.f32.partialorder %v1716_v19, 0.0 }
 0x1b5   : > { %v2036_v16 = vmul.f32 0.01, %v1716_v19  ;;  %vm1797_vm6 = vcmp.ge.f32.partialorder %v1637_v48, 0.0  ;;  %v1957_v10 = vmul.f32 0.01, %v1637_v48  ;;  %vm1877_vm7 = vcmp.ge.f32.partialorder %v1717_v13, 0.0 }
 0x1b6   : > { %v2037_v17 = vmul.f32 0.01, %v1717_v13  ;;  %2766 = vst [vmem:[%s3704_s5 + $0x220] sm:$0xff] %v3177_v30  ;;  %v1638_v22 = vadd.f32 %v3677_v55, %v1467_v45  ;;  %v1718_v32 = vadd.f32 %v3677_v55, %v1547_v38  ;;  %v1639_v59 = vadd.f32 %v3683_v62, %v1468_v44 }
 0x1b7   : > { %v2196_v20 = vsel %vm1876_vm5, %v1716_v19, %v2036_v16  ;;  %v2117_v11 = vsel %vm1797_vm6, %v1637_v48, %v1957_v10  ;;  %v1548_v47 = vmul.f32 %v3679_v56, %v4197_v3  ;;  %v1469_v50 = vmul.f32 %v3675_v54, %v4210_v6  ;;  %v4322_v19 = vpop.f32.mrf.mxu0  ;;  %v4324_v48 = vpop.f32.mrf.mxu1 }
 0x1b8   : > { %v2197_v53 = vsel %vm1877_vm7, %v1717_v13, %v2037_v17  ;;  %v3138_v28 = vpack.c.bf16 %v2117_v11, %v2116_v25  ;;  %vm1798_vm8 = vcmp.ge.f32.partialorder %v1638_v22, 0.0  ;;  %v1958_v0 = vmul.f32 0.01, %v1638_v22 }
 0x1b9   : > { %v3178_v4 = vpack.c.bf16 %v2197_v53, %v2196_v20  ;;  %vm1878_vm9 = vcmp.ge.f32.partialorder %v1718_v32, 0.0  ;;  %v2038_v15 = vmul.f32 0.01, %v1718_v32  ;;  %vm1799_vm10 = vcmp.ge.f32.partialorder %v1639_v59, 0.0  ;;  %v4334_v20 = vpop.f32.mrf.mxu0 }
 0x1ba   : > { %v1959_v23 = vmul.f32 0.01, %v1639_v59  ;;  %2727 = vst [vmem:[%s3704_s5 + $0xe8] sm:$0xff] %v3138_v28  ;;  %v2118_v8 = vsel %vm1798_vm8, %v1638_v22, %v1958_v0  ;;  %v1719_v3 = vadd.f32 %v3683_v62, %v1548_v47  ;;  %v1640_v14 = vadd.f32 %v3677_v55, %v1469_v50  ;;  %v4336_v22 = vpop.f32.mrf.mxu1 }
 0x1bb   : > { %2767 = vst [vmem:[%s3704_s5 + $0x228] sm:$0xff] %v3178_v4  ;;  %v1549_v6 = vmul.f32 %v3675_v54, %v4212_v41  ;;  %v2198_v27 = vsel %vm1878_vm9, %v1718_v32, %v2038_v15  ;;  %v1470_v61 = vmul.f32 %v3679_v56, %v4224_v52  ;;  %v1550_v31 = vmul.f32 %v3679_v56, %v4226_v2 }
 0x1bc   : > { %v2119_v57 = vsel %vm1799_vm10, %v1639_v59, %v1959_v23  ;;  %vm1879_vm11 = vcmp.ge.f32.partialorder %v1719_v3, 0.0  ;;  %v2039_v21 = vmul.f32 0.01, %v1719_v3  ;;  %vm1800_vm12 = vcmp.ge.f32.partialorder %v1640_v14, 0.0 }
 0x1bd   : > { %v3139_v35 = vpack.c.bf16 %v2119_v57, %v2118_v8  ;;  %v1960_v24 = vmul.f32 0.01, %v1640_v14  ;;  %v1720_v34 = vadd.f32 %v3677_v55, %v1549_v6  ;;  %v1641_v41 = vadd.f32 %v3683_v62, %v1470_v61 }
 0x1be   : > { %v1721_v33 = vadd.f32 %v3683_v62, %v1550_v31  ;;  %v2199_v52 = vsel %vm1879_vm11, %v1719_v3, %v2039_v21  ;;  %v1471_v2 = vmul.f32 %v3675_v54, %v4242_v36  ;;  %v1551_v43 = vmul.f32 %v3675_v54, %v4244_v37  ;;  %v1375_v3 = vpop.f32.mrf.mxu1 }
 0x1bf   : > { %2728 = vst [vmem:[%s3704_s5 + $0xf0] sm:$0xff] %v3139_v35  ;;  %v1472_v60 = vmul.f32 %v3679_v56, %v4254_v5  ;;  %v3179_v42 = vpack.c.bf16 %v2199_v52, %v2198_v27  ;;  %v2120_v49 = vsel %vm1800_vm12, %v1640_v14, %v1960_v24  ;;  %vm1880_vm13 = vcmp.ge.f32.partialorder %v1720_v34, 0.0 }
 0x1c0   : > { %v2040_v1 = vmul.f32 0.01, %v1720_v34  ;;  %vm1801_vm14 = vcmp.ge.f32.partialorder %v1641_v41, 0.0  ;;  %v1961_v9 = vmul.f32 0.01, %v1641_v41  ;;  %vm1881_vm15 = vcmp.ge.f32.partialorder %v1721_v33, 0.0 }
 0x1c1   : > { %v2041_v12 = vmul.f32 0.01, %v1721_v33  ;;  %2768 = vst [vmem:[%s3704_s5 + $0x230] sm:$0xff] %v3179_v42  ;;  %v1642_v13 = vadd.f32 %v3677_v55, %v1471_v2  ;;  %v1722_v37 = vadd.f32 %v3677_v55, %v1551_v43  ;;  %v1643_v5 = vadd.f32 %v3683_v62, %v1472_v60 }
 0x1c2   : > { %v2200_v36 = vsel %vm1880_vm13, %v1720_v34, %v2040_v1  ;;  %v2121_v51 = vsel %vm1801_vm14, %v1641_v41, %v1961_v9  ;;  %v1552_v38 = vmul.f32 %v3679_v56, %v4256_v26  ;;  %v1473_v44 = vmul.f32 %v3675_v54, %v4268_v39 }
 0x1c3   : > { %v2201_v45 = vsel %vm1881_vm15, %v1721_v33, %v2041_v12  ;;  %v3140_v30 = vpack.c.bf16 %v2121_v51, %v2120_v49  ;;  %vm1802_vm0 = vcmp.ge.f32.partialorder %v1642_v13, 0.0  ;;  %v1962_v16 = vmul.f32 0.01, %v1642_v13 }
 0x1c4   : > { %v3180_v25 = vpack.c.bf16 %v2201_v45, %v2200_v36  ;;  %vm1882_vm1 = vcmp.ge.f32.partialorder %v1722_v37, 0.0  ;;  %v2042_v10 = vmul.f32 0.01, %v1722_v37  ;;  %vm1803_vm2 = vcmp.ge.f32.partialorder %v1643_v5, 0.0 }
 0x1c5   : > { %v1963_v17 = vmul.f32 0.01, %v1643_v5  ;;  %2729 = vst [vmem:[%s3704_s5 + $0xf8] sm:$0xff] %v3140_v30  ;;  %v2122_v32 = vsel %vm1802_vm0, %v1642_v13, %v1962_v16  ;;  %v1723_v26 = vadd.f32 %v3683_v62, %v1552_v38  ;;  %v1644_v59 = vadd.f32 %v3677_v55, %v1473_v44 }
 0x1c6   : > { %2769 = vst [vmem:[%s3704_s5 + $0x238] sm:$0xff] %v3180_v25  ;;  %v1553_v39 = vmul.f32 %v3675_v54, %v4270_v58  ;;  %v2202_v11 = vsel %vm1882_vm1, %v1722_v37, %v2042_v10  ;;  %v1474_v47 = vmul.f32 %v3679_v56, %v4282_v63  ;;  %v1554_v50 = vmul.f32 %v3679_v56, %v4284_v18  ;;  %v1175_v58 = vpop.f32.mrf.mxu0 }
 0x1c7   : > { %v2123_v53 = vsel %vm1803_vm2, %v1643_v5, %v1963_v17  ;;  %vm1883_vm3 = vcmp.ge.f32.partialorder %v1723_v26, 0.0  ;;  %v2043_v4 = vmul.f32 0.01, %v1723_v26  ;;  %vm1804_vm4 = vcmp.ge.f32.partialorder %v1644_v59, 0.0 }
 0x1c8   : > { %v3141_v28 = vpack.c.bf16 %v2123_v53, %v2122_v32  ;;  %v1964_v0 = vmul.f32 0.01, %v1644_v59  ;;  %v1724_v15 = vadd.f32 %v3677_v55, %v1553_v39  ;;  %v1645_v23 = vadd.f32 %v3683_v62, %v1474_v47  ;;  %v1177_v34 = vpop.f32.mrf.mxu0 }
 0x1c9   : > { %v1725_v8 = vadd.f32 %v3683_v62, %v1554_v50  ;;  %v2203_v14 = vsel %vm1883_vm3, %v1723_v26, %v2043_v4  ;;  %v1475_v63 = vmul.f32 %v3675_v54, %v4294_v7  ;;  %v1555_v18 = vmul.f32 %v3675_v54, %v4296_v46 }
 0x1ca   : > { %2730 = vst [vmem:[%s3704_s5 + $0x100] sm:$0xff] %v3141_v28  ;;  %v1476_v6 = vmul.f32 %v3679_v56, %v4308_v29  ;;  %v3181_v27 = vpack.c.bf16 %v2203_v14, %v2202_v11  ;;  %v2124_v57 = vsel %vm1804_vm4, %v1644_v59, %v1964_v0  ;;  %vm1884_vm5 = vcmp.ge.f32.partialorder %v1724_v15, 0.0  ;;  %v1377_v29 = vpop.f32.mrf.mxu1 }
 0x1cb   : > { %v2044_v61 = vmul.f32 0.01, %v1724_v15  ;;  %vm1805_vm6 = vcmp.ge.f32.partialorder %v1645_v23, 0.0  ;;  %v1965_v31 = vmul.f32 0.01, %v1645_v23  ;;  %vm1885_vm7 = vcmp.ge.f32.partialorder %v1725_v8, 0.0 }
 0x1cc   : > { %v2045_v35 = vmul.f32 0.01, %v1725_v8  ;;  %2770 = vst [vmem:[%s3704_s5 + $0x240] sm:$0xff] %v3181_v27  ;;  %v1646_v24 = vadd.f32 %v3677_v55, %v1475_v63  ;;  %v1726_v7 = vadd.f32 %v3677_v55, %v1555_v18  ;;  %v1647_v46 = vadd.f32 %v3683_v62, %v1476_v6  ;;  %v1379_v13 = vpop.f32.mrf.mxu1 }
 0x1cd   : > { %v2204_v21 = vsel %vm1884_vm5, %v1724_v15, %v2044_v61  ;;  %v2125_v41 = vsel %vm1805_vm6, %v1645_v23, %v1965_v31  ;;  %v1556_v52 = vmul.f32 %v3679_v56, %v4310_v40  ;;  %v1477_v2 = vmul.f32 %v3675_v54, %v4322_v19  ;;  %v1179_v19 = vpop.f32.mrf.mxu0 }
 0x1ce   : > { %v2205_v33 = vsel %vm1885_vm7, %v1725_v8, %v2045_v35  ;;  %v3142_v43 = vpack.c.bf16 %v2125_v41, %v2124_v57  ;;  %vm1806_vm8 = vcmp.ge.f32.partialorder %v1646_v24, 0.0  ;;  %v1966_v42 = vmul.f32 0.01, %v1646_v24  ;;  %v1381_v26 = vpop.f32.mrf.mxu1 }
 0x1cf   : > { %v3182_v60 = vpack.c.bf16 %v2205_v33, %v2204_v21  ;;  %vm1886_vm9 = vcmp.ge.f32.partialorder %v1726_v7, 0.0  ;;  %v2046_v49 = vmul.f32 0.01, %v1726_v7  ;;  %vm1807_vm10 = vcmp.ge.f32.partialorder %v1647_v46, 0.0  ;;  %v1181_v32 = vpop.f32.mrf.mxu0 }
 0x1d0   : > { %v1967_v1 = vmul.f32 0.01, %v1647_v46  ;;  %2731 = vst [vmem:[%s3704_s5 + $0x108] sm:$0xff] %v3142_v43  ;;  %v2126_v9 = vsel %vm1806_vm8, %v1646_v24, %v1966_v42  ;;  %v1727_v12 = vadd.f32 %v3683_v62, %v1556_v52  ;;  %v1648_v36 = vadd.f32 %v3677_v55, %v1477_v2  ;;  %v1385_v14 = vpop.f32.mrf.mxu1 }
 0x1d1   : > { %2771 = vst [vmem:[%s3704_s5 + $0x248] sm:$0xff] %v3182_v60  ;;  %v1557_v40 = vmul.f32 %v3675_v54, %v4324_v48  ;;  %v2206_v37 = vsel %vm1886_vm9, %v1726_v7, %v2046_v49  ;;  %v1478_v51 = vmul.f32 %v3679_v56, %v4334_v20  ;;  %v1558_v45 = vmul.f32 %v3679_v56, %v4336_v22 }
 0x1d2   : > { %v2127_v5 = vsel %vm1807_vm10, %v1647_v46, %v1967_v1  ;;  %vm1887_vm11 = vcmp.ge.f32.partialorder %v1727_v12, 0.0  ;;  %v2047_v44 = vmul.f32 0.01, %v1727_v12  ;;  %vm1808_vm12 = vcmp.ge.f32.partialorder %v1648_v36, 0.0  ;;  %v1387_v41 = vpop.f32.mrf.mxu1 }
 0x1d3   : > { %v3143_v38 = vpack.c.bf16 %v2127_v5, %v2126_v9  ;;  %v1968_v30 = vmul.f32 0.01, %v1648_v36  ;;  %v1728_v25 = vadd.f32 %v3677_v55, %v1557_v40  ;;  %v1649_v16 = vadd.f32 %v3683_v62, %v1478_v51 }
 0x1d4   : > { %v1729_v48 = vadd.f32 %v3683_v62, %v1558_v45  ;;  %v2207_v10 = vsel %vm1887_vm11, %v1727_v12, %v2047_v44  ;;  %v1479_v17 = vmul.f32 %v3675_v54, %v1175_v58  ;;  %v1559_v20 = vmul.f32 %v3675_v54, %v1375_v3  ;;  %v1185_v3 = vpop.f32.mrf.mxu0 }
 0x1d5   : > { %2732 = vst [vmem:[%s3704_s5 + $0x110] sm:$0xff] %v3143_v38  ;;  %v1480_v22 = vmul.f32 %v3679_v56, %v1177_v34  ;;  %v3183_v59 = vpack.c.bf16 %v2207_v10, %v2206_v37  ;;  %v2128_v39 = vsel %vm1808_vm12, %v1648_v36, %v1968_v30  ;;  %vm1888_vm13 = vcmp.ge.f32.partialorder %v1728_v25, 0.0  ;;  %v1389_v37 = vpop.f32.mrf.mxu1 }
 0x1d6   : > { %v2048_v11 = vmul.f32 0.01, %v1728_v25  ;;  %vm1809_vm14 = vcmp.ge.f32.partialorder %v1649_v16, 0.0  ;;  %v1969_v53 = vmul.f32 0.01, %v1649_v16  ;;  %vm1889_vm15 = vcmp.ge.f32.partialorder %v1729_v48, 0.0 }
 0x1d7   : > { %v2049_v47 = vmul.f32 0.01, %v1729_v48  ;;  %2772 = vst [vmem:[%s3704_s5 + $0x250] sm:$0xff] %v3183_v59  ;;  %v1650_v28 = vadd.f32 %v3677_v55, %v1479_v17  ;;  %v1730_v4 = vadd.f32 %v3677_v55, %v1559_v20  ;;  %v1651_v0 = vadd.f32 %v3683_v62, %v1480_v22 }
 0x1d8   : > { %v2208_v50 = vsel %vm1888_vm13, %v1728_v25, %v2048_v11  ;;  %v2129_v15 = vsel %vm1809_vm14, %v1649_v16, %v1969_v53  ;;  %v1560_v8 = vmul.f32 %v3679_v56, %v1377_v29  ;;  %v1481_v58 = vmul.f32 %v3675_v54, %v1179_v19  ;;  %v1187_v29 = vpop.f32.mrf.mxu0 }
 0x1d9   : > { %v2209_v23 = vsel %vm1889_vm15, %v1729_v48, %v2049_v47  ;;  %v3144_v63 = vpack.c.bf16 %v2129_v15, %v2128_v39  ;;  %vm1810_vm0 = vcmp.ge.f32.partialorder %v1650_v28, 0.0  ;;  %v1970_v6 = vmul.f32 0.01, %v1650_v28 }
 0x1da   : > { %v3184_v18 = vpack.c.bf16 %v2209_v23, %v2208_v50  ;;  %vm1890_vm1 = vcmp.ge.f32.partialorder %v1730_v4, 0.0  ;;  %v2050_v27 = vmul.f32 0.01, %v1730_v4  ;;  %vm1811_vm2 = vcmp.ge.f32.partialorder %v1651_v0, 0.0 }
 0x1db   : > { %v1971_v57 = vmul.f32 0.01, %v1651_v0  ;;  %2733 = vst [vmem:[%s3704_s5 + $0x118] sm:$0xff] %v3144_v63  ;;  %v2130_v61 = vsel %vm1810_vm0, %v1650_v28, %v1970_v6  ;;  %v1731_v31 = vadd.f32 %v3683_v62, %v1560_v8  ;;  %v1652_v35 = vadd.f32 %v3677_v55, %v1481_v58 }
 0x1dc   : > { %2773 = vst [vmem:[%s3704_s5 + $0x258] sm:$0xff] %v3184_v18  ;;  %v1561_v21 = vmul.f32 %v3675_v54, %v1379_v13  ;;  %v2210_v24 = vsel %vm1890_vm1, %v1730_v4, %v2050_v27  ;;  %v1482_v46 = vmul.f32 %v3679_v56, %v1181_v32  ;;  %v1562_v34 = vmul.f32 %v3679_v56, %v1381_v26  ;;  %v1189_v13 = vpop.f32.mrf.mxu0  ;;  %v1391_v26 = vpop.f32.mrf.mxu1 }
 0x1dd   : > { %v2131_v7 = vsel %vm1811_vm2, %v1651_v0, %v1971_v57  ;;  %vm1891_vm3 = vcmp.ge.f32.partialorder %v1731_v31, 0.0  ;;  %v2051_v52 = vmul.f32 0.01, %v1731_v31  ;;  %vm1812_vm4 = vcmp.ge.f32.partialorder %v1652_v35, 0.0 }
 0x1de   : > { %v3145_v33 = vpack.c.bf16 %v2131_v7, %v2130_v61  ;;  %v1972_v2 = vmul.f32 0.01, %v1652_v35  ;;  %v1732_v43 = vadd.f32 %v3677_v55, %v1561_v21  ;;  %v1653_v60 = vadd.f32 %v3683_v62, %v1482_v46  ;;  %v1191_v32 = vpop.f32.mrf.mxu0 }
 0x1df   : > { %v1733_v42 = vadd.f32 %v3683_v62, %v1562_v34  ;;  %v2211_v49 = vsel %vm1891_vm3, %v1731_v31, %v2051_v52  ;;  %v1483_v1 = vmul.f32 %v3675_v54, %v1185_v3  ;;  %v1563_v9 = vmul.f32 %v3675_v54, %v1385_v14 }
 0x1e0   : > { %2734 = vst [vmem:[%s3704_s5 + $0x120] sm:$0xff] %v3145_v33  ;;  %v1484_v12 = vmul.f32 %v3679_v56, %v1187_v29  ;;  %v3185_v36 = vpack.c.bf16 %v2211_v49, %v2210_v24  ;;  %v2132_v40 = vsel %vm1812_vm4, %v1652_v35, %v1972_v2  ;;  %vm1892_vm5 = vcmp.ge.f32.partialorder %v1732_v43, 0.0 }
 0x1e1   : > { %v2052_v19 = vmul.f32 0.01, %v1732_v43  ;;  %vm1813_vm6 = vcmp.ge.f32.partialorder %v1653_v60, 0.0  ;;  %v1973_v5 = vmul.f32 0.01, %v1653_v60  ;;  %vm1893_vm7 = vcmp.ge.f32.partialorder %v1733_v42, 0.0 }
 0x1e2   : > { %v2053_v51 = vmul.f32 0.01, %v1733_v42  ;;  %2774 = vst [vmem:[%s3704_s5 + $0x260] sm:$0xff] %v3185_v36  ;;  %v1654_v38 = vadd.f32 %v3677_v55, %v1483_v1  ;;  %v1734_v44 = vadd.f32 %v3677_v55, %v1563_v9  ;;  %v1655_v30 = vadd.f32 %v3683_v62, %v1484_v12 }
 0x1e3   : > { %v2212_v45 = vsel %vm1892_vm5, %v1732_v43, %v2052_v19  ;;  %v2133_v25 = vsel %vm1813_vm6, %v1653_v60, %v1973_v5  ;;  %v1564_v48 = vmul.f32 %v3679_v56, %v1387_v41  ;;  %v1485_v10 = vmul.f32 %v3675_v54, %v1189_v13 }
 0x1e4   : > { %v2213_v16 = vsel %vm1893_vm7, %v1733_v42, %v2053_v51  ;;  %v3146_v17 = vpack.c.bf16 %v2133_v25, %v2132_v40  ;;  %vm1814_vm8 = vcmp.ge.f32.partialorder %v1654_v38, 0.0  ;;  %v1974_v22 = vmul.f32 0.01, %v1654_v38 }
 0x1e5   : > { %v3186_v20 = vpack.c.bf16 %v2213_v16, %v2212_v45  ;;  %vm1894_vm9 = vcmp.ge.f32.partialorder %v1734_v44, 0.0  ;;  %vm1815_vm10 = vcmp.ge.f32.partialorder %v1655_v30, 0.0  ;;  %v1975_v59 = vmul.f32 0.01, %v1655_v30 }
 0x1e6   : > { %2735 = vst [vmem:[%s3704_s5 + $0x128] sm:$0xff] %v3146_v17  ;;  %v2054_v39 = vmul.f32 0.01, %v1734_v44  ;;  %v1735_v11 = vadd.f32 %v3683_v62, %v1564_v48  ;;  %v1656_v53 = vadd.f32 %v3677_v55, %v1485_v10  ;;  %v1565_v47 = vmul.f32 %v3675_v54, %v1389_v37 }
 0x1e7   : > { %2775 = vst [vmem:[%s3704_s5 + $0x268] sm:$0xff] %v3186_v20  ;;  %v2134_v50 = vsel %vm1814_vm8, %v1654_v38, %v1974_v22  ;;  %v2135_v28 = vsel %vm1815_vm10, %v1655_v30, %v1975_v59  ;;  %v1486_v4 = vmul.f32 %v3679_v56, %v1191_v32  ;;  %v1566_v0 = vmul.f32 %v3679_v56, %v1391_v26 }
 0x1e8   : > { %v3147_v15 = vpack.c.bf16 %v2135_v28, %v2134_v50  ;;  %vm1895_vm11 = vcmp.ge.f32.partialorder %v1735_v11, 0.0  ;;  %v2055_v23 = vmul.f32 0.01, %v1735_v11  ;;  %v1736_v8 = vadd.f32 %v3677_v55, %v1565_v47 }
 0x1e9   : > { %v1657_v58 = vadd.f32 %v3683_v62, %v1486_v4  ;;  %v1737_v3 = vadd.f32 %v3683_v62, %v1566_v0  ;;  %v2214_v14 = vsel %vm1894_vm9, %v1734_v44, %v2054_v39  ;;  %v1976_v63 = vmul.f32 0.01, %v1656_v53 }
 0x1ea   : > { %2736 = vst [vmem:[%s3704_s5 + $0x130] sm:$0xff] %v3147_v15  ;;  %v2215_v54 = vsel %vm1895_vm11, %v1735_v11, %v2055_v23  ;;  %vm1816_vm12 = vcmp.ge.f32.partialorder %v1656_v53, 0.0  ;;  %vm1896_vm13 = vcmp.ge.f32.partialorder %v1736_v8, 0.0  ;;  %v2056_v56 = vmul.f32 0.01, %v1736_v8 }
 0x1eb   : > { %v3187_v18 = vpack.c.bf16 %v2215_v54, %v2214_v14  ;;  %vm1817_vm14 = vcmp.ge.f32.partialorder %v1657_v58, 0.0  ;;  %v1977_v6 = vmul.f32 0.01, %v1657_v58  ;;  %vm1897_vm15 = vcmp.ge.f32.partialorder %v1737_v3, 0.0 }
 0x1ec   : > { %v2057_v27 = vmul.f32 0.01, %v1737_v3  ;;  %v2136_v55 = vsel %vm1816_vm12, %v1656_v53, %v1976_v63  ;;  %v2216_v57 = vsel %vm1896_vm13, %v1736_v8, %v2056_v56 }
 0x1ed   : > { %2776 = vst [vmem:[%s3704_s5 + $0x270] sm:$0xff] %v3187_v18  ;;  %v2137_v61 = vsel %vm1817_vm14, %v1657_v58, %v1977_v6 }
 0x1ee   : > { %v2217_v62 = vsel %vm1897_vm15, %v1737_v3, %v2057_v27  ;;  %v3148_v31 = vpack.c.bf16 %v2137_v61, %v2136_v55 }
 0x1ef   : > { %v3188_v35 = vpack.c.bf16 %v2217_v62, %v2216_v57 }
 0x1f0   : > { %2737 = vst [vmem:[%s3704_s5 + $0x138] sm:$0xff] %v3148_v31 }
 0x1f1   : > { %2777 = vst [vmem:[%s3704_s5 + $0x278] sm:$0xff] %v3188_v35 }
 0x1f2 PF: > { %s14_s17 = sadd.s32 1, %s3435_s17   ;;  %s4438_s15 = smov %s3431_s16 }
 0x1f3   : > { %p11_p5 = scmp.ge.s32.totalorder %s14_s17, 4   ;;  %s4439_s16 = smov %s4441_s18 }
 0x1f5   :  { %13 = sbr.rel (!%p11_p5) target bundleno = 2 (0x2), region = 75 }

// kernel: vae_forward.15
= control target key start
LH: loop header
LB: loop body
LE: loop exit
PB: predicated region body
PF: predicated region fallthrough
CT: control target
= control target key end

     0   :  { %9 = vsyncpa [#allocation3], 0  ;;  %s5233_s0 = inlined_call_operand.vmem [shape: bf16[10240,128], index: 0, kind: input, shape index: {}]   ;;  %s5234_s1 = inlined_call_operand.vmem [shape: bf16[128,128], index: 1, kind: input, shape index: {}]   ;;  %s5235_s2 = inlined_call_operand.vmem [shape: f32[1,128], index: 2, kind: input, shape index: {}]   ;;  %s5236_s3 = inlined_call_operand.vmem [shape: f32[1,128], index: 3, kind: input, shape index: {}]   ;;  %s5237_s4 = inlined_call_operand.hbm [shape: f32[10240,128], index: 4, kind: output, shape index: {}]  }
   0x1   :  { %11 = vsyncpa [#allocation3 + $0x1], 0  ;;  %s4194_s15 = smov 0   ;;  %s4196_s16 = smov 0  }
   0x2   :  { %s4198_s17 = smov 0   ;;  %s4200_s18 = smov 0  }
   0x3   :  { %s4202_s19 = smov 0   ;;  %s4204_s20 = smov 0  }
   0x4 LB: > { %s3312_s21 = sadd.s32 4294967295, %s4164_s20   ;;  %s3313_s22 = sadd.s32 4294967294, %s4164_s20   ;;  %s4164_s20 = sphi %s4204_s20, %s17_s20   ;;  %s4160_s19 = sphi %s4202_s19, %s5244_s19   ;;  %s4156_s18 = sphi %s4200_s18, %s5243_s18   ;;  %s4152_s17 = sphi %s4198_s17, %s5242_s17   ;;  %s4148_s16 = sphi %s4196_s16, %s5241_s16   ;;  %s4144_s15 = sphi %s4194_s15, %s5240_s15  }
   0x5   : > { %s29_s23 = sadd.s32 1, %s4160_s19  ;;  %s142_s24 = sadd.s32 1, %s4152_s17 }
   0x6   : > { %p31_p0 = scmp.ge.s32.totalorder %s29_s23, 5  ;;  %p152_p1 = scmp.ne.s32.totalorder %s4152_s17, %s4148_s16 }
   0x7   : > { %p153_p2 = scmp.eq.s32.totalorder %s3312_s21, 4  ;;  %p158_p3 = scmp.ne.s32.totalorder %s4148_s16, %s4144_s15 }
   0x8   : > { %s5246_s23 = smov (%p31_p0, %s29_s23), 0  ;;  %p159_p5 = scmp.eq.s32.totalorder %s3313_s22, 4 }
   0x9   : > { %p4234_p4 = por %p153_p2, %p152_p1  ;;  %s137_s26 = ssub.s32 %s4160_s19, %s5246_s23 }
   0xa   : > { %p3319_p6 = scmp.ge.s32.totalorder %s4164_s20, 1  ;;  %p140_p7 = scmp.eq.s32.totalorder %s137_s26, 0 }
   0xb   : > { %p4241_p8 = por %p159_p5, %p158_p3  ;;  %p205_p9 = scmp.lt.s32.totalorder %s4164_s20, 6 }
   0xc   : > { %s4247_s28 = scalar_select %p140_p7, %s4152_s17, %s142_s24  }
   0xd   : > { %p206_p10 = pnand %p3319_p6, %p205_p9 }
   0xe   : > { %s3321_s5 = sshll.u32 (!%p206_p10), %s4156_s18, 8  ;;  %s238_s8 = sand.u32 (!%p206_p10), 1, %s4148_s16  }
   0xf   : > { %209 = sbr.rel (%p206_p10) target bundleno = 518 (0x206), region = 36  ;;  %p242_p11 = scmp.lt.s32.totalorder (!%p206_p10), %s3321_s5, 1279 }
  0x10   : > { %s3320_s11 = sshll.u32 (!%p206_p10), %s238_s8, 11  ;;  %s3466_s7 = sshll.u32 (!%p206_p10), %s4156_s18, 15 }
  0x11   : > { %s4402_s21 = scalar_lea.vmem (!%p206_p10), [#allocation2], %s3320_s11  ;;  %s5178_s12 = scalar_lea.hbm (!%p206_p10), %s5237_s4, %s3466_s7 }
  0x12   : > { %s3201_s9 = sshll.u32 (!%p206_p10), %s4402_s21, 4  ;;  %s5188_s18 = scalar_lea.sflag (!%p206_p10), [#allocation3], %s238_s8  ;;  %s5180_s9 = int_to_ptr.vmem [resolvable:$true] %s3201_s9 }
  0x13   : > { %s4088_s14 = scalar_lea.vmem (!%p206_p10), %s5180_s9, 32768 }
  0x14   : > { %v3948_v0 = vld [vmem:[%s5234_s1 + $0x38] sm:$0xff]   ;;  %v3949_v1 = vld [vmem:[%s5234_s1 + $0x30] sm:$0xff]   ;;  %s5248_s5 = smov (!%p242_p11, %s3321_s5), 1279  ;;  %v3950_v2 = vld [vmem:[%s5234_s1 + $0x28] sm:$0xff]   ;;  %p4089_p12 = scmp.ne.s32.totalorder %s5180_s9, %s4088_s14 }
  0x15   : > { %3603 = vmatprep.subr.bf16.mxu0 %v3948_v0  ;;  %3875 = vmatprep.subr.bf16.mxu1 %v3948_v0  ;;  %s3322_s10 = sshll.u32 %s5248_s5, 2  ;;  %v3951_v3 = vld [vmem:[%s5234_s1 + $0x20] sm:$0xff]   ;;  %v3952_v6 = vld [vmem:[%s5234_s1 + $0x18] sm:$0xff]   ;;  %v3953_v7 = vld [vmem:[%s5234_s1 + $0x10] sm:$0xff]  }
  0x16   : > { %3604 = vmatpush3.bf16.msra.mxu0 %v3948_v0  ;;  %3883 = vmatpush3.bf16.msra.mxu1 %v3948_v0  ;;  %s4262_s13 = scalar_lea.vmem %s5233_s0, %s3322_s10  ;;  %v3954_v8 = vld [vmem:[%s5234_s1 + $0x8] sm:$0xff]   ;;  %v3955_v9 = vld [vmem:[%s5234_s1] sm:$0xff]   ;;  %p4090_p13 = pnand %p4089_p12, %p4234_p4 }
  0x17   : > { %3605 = vmatprep.subr.bf16.mxu0 %v3949_v1  ;;  %3876 = vmatprep.subr.bf16.mxu1 %v3949_v1  ;;  %v3956_v4 = vld [vmem:[%s4262_s13] sm:$0xff]   ;;  %v3958_v10 = vld [vmem:[%s4262_s13 + $0x8] sm:$0xff]   ;;  %v3960_v12 = vld [vmem:[%s4262_s13 + $0x10] sm:$0xff]  }
  0x18   : > { %v3957_v5 = vld [vmem:[%s4262_s13 + $0x200] sm:$0xff]   ;;  %3619 = vmatprep.mubr.bf16.mxu0 %v3956_v4  ;;  %v3959_v11 = vld [vmem:[%s4262_s13 + $0x208] sm:$0xff]   ;;  %v3961_v13 = vld [vmem:[%s4262_s13 + $0x210] sm:$0xff]   ;;  %p4091_p0 = pneg %p4090_p13 }
  0x19   : > { %3747 = vmatprep.mubr.bf16.mxu1 %v3957_v5  ;;  %v3962_v14 = vld [vmem:[%s4262_s13 + $0x18] sm:$0xff]   ;;  %v3964_v16 = vld [vmem:[%s4262_s13 + $0x20] sm:$0xff]   ;;  %v3966_v18 = vld [vmem:[%s4262_s13 + $0x28] sm:$0xff]  }
  0x1a   : > { %3606 = vmatpush3.bf16.msra.mxu0 %v3949_v1  ;;  %3884 = vmatpush3.bf16.msra.mxu1 %v3949_v1  ;;  %v3963_v15 = vld [vmem:[%s4262_s13 + $0x218] sm:$0xff]   ;;  %v3965_v17 = vld [vmem:[%s4262_s13 + $0x220] sm:$0xff]   ;;  %v3967_v19 = vld [vmem:[%s4262_s13 + $0x228] sm:$0xff]  }
  0x1b   : > { %3607 = vmatprep.subr.bf16.mxu0 %v3950_v2  ;;  %3877 = vmatprep.subr.bf16.mxu1 %v3950_v2  ;;  %v3968_v20 = vld [vmem:[%s4262_s13 + $0x30] sm:$0xff]   ;;  %v3970_v22 = vld [vmem:[%s4262_s13 + $0x38] sm:$0xff]   ;;  %v3972_v24 = vld [vmem:[%s4262_s13 + $0x40] sm:$0xff]  }
  0x1c   : > { %v3969_v21 = vld [vmem:[%s4262_s13 + $0x230] sm:$0xff]   ;;  %v3971_v23 = vld [vmem:[%s4262_s13 + $0x238] sm:$0xff]   ;;  %v3973_v25 = vld [vmem:[%s4262_s13 + $0x240] sm:$0xff]  }
  0x1d   : > { %v3974_v26 = vld [vmem:[%s4262_s13 + $0x48] sm:$0xff]   ;;  %v3976_v28 = vld [vmem:[%s4262_s13 + $0x50] sm:$0xff]   ;;  %v3978_v30 = vld [vmem:[%s4262_s13 + $0x58] sm:$0xff]  }
  0x1e   : > { %3608 = vmatpush3.bf16.msra.mxu0 %v3950_v2  ;;  %3885 = vmatpush3.bf16.msra.mxu1 %v3950_v2  ;;  %v3975_v27 = vld [vmem:[%s4262_s13 + $0x248] sm:$0xff]   ;;  %v3977_v29 = vld [vmem:[%s4262_s13 + $0x250] sm:$0xff]   ;;  %v3979_v31 = vld [vmem:[%s4262_s13 + $0x258] sm:$0xff]  }
  0x1f   : > { %3609 = vmatprep.subr.bf16.mxu0 %v3951_v3  ;;  %3878 = vmatprep.subr.bf16.mxu1 %v3951_v3  ;;  %v3980_v32 = vld [vmem:[%s4262_s13 + $0x60] sm:$0xff]   ;;  %v3982_v34 = vld [vmem:[%s4262_s13 + $0x68] sm:$0xff]   ;;  %v3984_v36 = vld [vmem:[%s4262_s13 + $0x70] sm:$0xff]  }
  0x20   : > { %v3981_v33 = vld [vmem:[%s4262_s13 + $0x260] sm:$0xff]   ;;  %v3983_v35 = vld [vmem:[%s4262_s13 + $0x268] sm:$0xff]   ;;  %v3985_v37 = vld [vmem:[%s4262_s13 + $0x270] sm:$0xff]  }
  0x21   : > { %v3986_v38 = vld [vmem:[%s4262_s13 + $0x78] sm:$0xff]   ;;  %v3988_v40 = vld [vmem:[%s4262_s13 + $0x80] sm:$0xff]   ;;  %v3990_v42 = vld [vmem:[%s4262_s13 + $0x88] sm:$0xff]  }
  0x22   : > { %3610 = vmatpush3.bf16.msra.mxu0 %v3951_v3  ;;  %3886 = vmatpush3.bf16.msra.mxu1 %v3951_v3  ;;  %v3987_v39 = vld [vmem:[%s4262_s13 + $0x278] sm:$0xff]   ;;  %v3989_v41 = vld [vmem:[%s4262_s13 + $0x280] sm:$0xff]   ;;  %v3991_v43 = vld [vmem:[%s4262_s13 + $0x288] sm:$0xff]  }
  0x23   : > { %3611 = vmatprep.subr.bf16.mxu0 %v3952_v6  ;;  %3879 = vmatprep.subr.bf16.mxu1 %v3952_v6  ;;  %v3992_v44 = vld [vmem:[%s4262_s13 + $0x90] sm:$0xff]   ;;  %v3994_v46 = vld [vmem:[%s4262_s13 + $0x98] sm:$0xff]   ;;  %v3996_v48 = vld [vmem:[%s4262_s13 + $0xa0] sm:$0xff]  }
  0x24   : > { %v3993_v45 = vld [vmem:[%s4262_s13 + $0x290] sm:$0xff]   ;;  %v3995_v47 = vld [vmem:[%s4262_s13 + $0x298] sm:$0xff]   ;;  %v3997_v49 = vld [vmem:[%s4262_s13 + $0x2a0] sm:$0xff]  }
  0x25   : > { %v3998_v50 = vld [vmem:[%s4262_s13 + $0xa8] sm:$0xff]   ;;  %v4000_v52 = vld [vmem:[%s4262_s13 + $0xb0] sm:$0xff]   ;;  %v4002_v54 = vld [vmem:[%s4262_s13 + $0xb8] sm:$0xff]  }
  0x26   : > { %3612 = vmatpush3.bf16.msra.mxu0 %v3952_v6  ;;  %3887 = vmatpush3.bf16.msra.mxu1 %v3952_v6  ;;  %v3999_v51 = vld [vmem:[%s4262_s13 + $0x2a8] sm:$0xff]   ;;  %v4001_v53 = vld [vmem:[%s4262_s13 + $0x2b0] sm:$0xff]   ;;  %v4003_v55 = vld [vmem:[%s4262_s13 + $0x2b8] sm:$0xff]  }
  0x27   : > { %3613 = vmatprep.subr.bf16.mxu0 %v3953_v7  ;;  %3880 = vmatprep.subr.bf16.mxu1 %v3953_v7  ;;  %v4004_v56 = vld [vmem:[%s4262_s13 + $0xc0] sm:$0xff]   ;;  %v4006_v58 = vld [vmem:[%s4262_s13 + $0xc8] sm:$0xff]   ;;  %v4008_v60 = vld [vmem:[%s4262_s13 + $0xd0] sm:$0xff]  }
  0x28   : > { %v4005_v57 = vld [vmem:[%s4262_s13 + $0x2c0] sm:$0xff]   ;;  %v4007_v59 = vld [vmem:[%s4262_s13 + $0x2c8] sm:$0xff]   ;;  %v4009_v61 = vld [vmem:[%s4262_s13 + $0x2d0] sm:$0xff]  }
  0x29   : > { %v4010_v62 = vld [vmem:[%s4262_s13 + $0xd8] sm:$0xff]   ;;  %v4012_v0 = vld [vmem:[%s4262_s13 + $0xe0] sm:$0xff]   ;;  %v4014_v2 = vld [vmem:[%s4262_s13 + $0xe8] sm:$0xff]  }
  0x2a   : > { %3614 = vmatpush3.bf16.msra.mxu0 %v3953_v7  ;;  %3888 = vmatpush3.bf16.msra.mxu1 %v3953_v7  ;;  %v4011_v63 = vld [vmem:[%s4262_s13 + $0x2d8] sm:$0xff]   ;;  %v4013_v1 = vld [vmem:[%s4262_s13 + $0x2e0] sm:$0xff]   ;;  %v4015_v3 = vld [vmem:[%s4262_s13 + $0x2e8] sm:$0xff]  }
  0x2b   : > { %3615 = vmatprep.subr.bf16.mxu0 %v3954_v8  ;;  %3881 = vmatprep.subr.bf16.mxu1 %v3954_v8  ;;  %v4016_v4 = vld [vmem:[%s4262_s13 + $0xf0] sm:$0xff]   ;;  %v4018_v6 = vld [vmem:[%s4262_s13 + $0xf8] sm:$0xff]  }
  0x2c   : > { %v4017_v5 = vld [vmem:[%s4262_s13 + $0x2f0] sm:$0xff]   ;;  %v4019_v7 = vld [vmem:[%s4262_s13 + $0x2f8] sm:$0xff]  }
  0x2e   : > { %3616 = vmatpush3.bf16.msra.mxu0 %v3954_v8  ;;  %3889 = vmatpush3.bf16.msra.mxu1 %v3954_v8  ;;  %v4020_v8 = vld [vmem:[%s4262_s13 + $0x100] sm:$0xff]  }
  0x2f   : > { %3617 = vmatprep.subr.bf16.mxu0 %v3955_v9  ;;  %3882 = vmatprep.subr.bf16.mxu1 %v3955_v9 }
  0x32   : > { %3618 = vmatpush3.bf16.msra.mxu0 %v3955_v9  ;;  %3890 = vmatpush3.bf16.msra.mxu1 %v3955_v9  ;;  %v4021_v9 = vld [vmem:[%s4262_s13 + $0x300] sm:$0xff]  }
  0x35   : > { %3620 = vmatmul.mubr.bf16.vlgmr.msra.gmra.mxu0 %v3958_v10  ;;  %3748 = vmatmul.mubr.bf16.vlgmr.msra.gmra.mxu1 %v3959_v11  ;;  %v4022_v10 = vld [vmem:[%s4262_s13 + $0x108] sm:$0xff]  }
  0x36   : > { %3623 = vmatprep.mubr.bf16.mxu0 %v3960_v12  ;;  %3751 = vmatprep.mubr.bf16.mxu1 %v3961_v13  ;;  %v4023_v11 = vld [vmem:[%s4262_s13 + $0x308] sm:$0xff]   ;;  %v4024_v12 = vld [vmem:[%s4262_s13 + $0x110] sm:$0xff]  }
  0x37   : > { %v4025_v13 = vld [vmem:[%s4262_s13 + $0x310] sm:$0xff]  }
  0x3d   : > { %3624 = vmatmul.mubr.bf16.gmra.mxu0 %v3962_v14  ;;  %3752 = vmatmul.mubr.bf16.gmra.mxu1 %v3963_v15  ;;  %v4026_v14 = vld [vmem:[%s4262_s13 + $0x118] sm:$0xff]  }
  0x3e   : > { %3627 = vmatprep.mubr.bf16.mxu0 %v3964_v16  ;;  %3755 = vmatprep.mubr.bf16.mxu1 %v3965_v17  ;;  %v4027_v15 = vld [vmem:[%s4262_s13 + $0x318] sm:$0xff]   ;;  %v4028_v16 = vld [vmem:[%s4262_s13 + $0x120] sm:$0xff]  }
  0x3f   : > { %v4029_v17 = vld [vmem:[%s4262_s13 + $0x320] sm:$0xff]  }
  0x45   : > { %3628 = vmatmul.mubr.bf16.gmra.mxu0 %v3966_v18  ;;  %3756 = vmatmul.mubr.bf16.gmra.mxu1 %v3967_v19  ;;  %v4030_v18 = vld [vmem:[%s4262_s13 + $0x128] sm:$0xff]  }
  0x46   : > { %3631 = vmatprep.mubr.bf16.mxu0 %v3968_v20  ;;  %3759 = vmatprep.mubr.bf16.mxu1 %v3969_v21  ;;  %v4031_v19 = vld [vmem:[%s4262_s13 + $0x328] sm:$0xff]   ;;  %v4032_v20 = vld [vmem:[%s4262_s13 + $0x130] sm:$0xff]  }
  0x47   : > { %v4033_v21 = vld [vmem:[%s4262_s13 + $0x330] sm:$0xff]  }
  0x4d   : > { %3632 = vmatmul.mubr.bf16.gmra.mxu0 %v3970_v22  ;;  %3760 = vmatmul.mubr.bf16.gmra.mxu1 %v3971_v23  ;;  %v4034_v22 = vld [vmem:[%s4262_s13 + $0x138] sm:$0xff]  }
  0x4e   : > { %3635 = vmatprep.mubr.bf16.mxu0 %v3972_v24  ;;  %3763 = vmatprep.mubr.bf16.mxu1 %v3973_v25  ;;  %v4035_v23 = vld [vmem:[%s4262_s13 + $0x338] sm:$0xff]   ;;  %v4036_v24 = vld [vmem:[%s4262_s13 + $0x140] sm:$0xff]  }
  0x4f   : > { %v4037_v25 = vld [vmem:[%s4262_s13 + $0x340] sm:$0xff]  }
  0x55   : > { %3636 = vmatmul.mubr.bf16.gmra.mxu0 %v3974_v26  ;;  %3764 = vmatmul.mubr.bf16.gmra.mxu1 %v3975_v27  ;;  %v4038_v26 = vld [vmem:[%s4262_s13 + $0x148] sm:$0xff]  }
  0x56   : > { %3639 = vmatprep.mubr.bf16.mxu0 %v3976_v28  ;;  %3767 = vmatprep.mubr.bf16.mxu1 %v3977_v29  ;;  %v4039_v27 = vld [vmem:[%s4262_s13 + $0x348] sm:$0xff]   ;;  %v4040_v28 = vld [vmem:[%s4262_s13 + $0x150] sm:$0xff]  }
  0x57   : > { %v4041_v29 = vld [vmem:[%s4262_s13 + $0x350] sm:$0xff]  }
  0x5d   : > { %3640 = vmatmul.mubr.bf16.gmra.mxu0 %v3978_v30  ;;  %3768 = vmatmul.mubr.bf16.gmra.mxu1 %v3979_v31  ;;  %v4042_v30 = vld [vmem:[%s4262_s13 + $0x158] sm:$0xff]  }
  0x5e   : > { %3643 = vmatprep.mubr.bf16.mxu0 %v3980_v32  ;;  %3771 = vmatprep.mubr.bf16.mxu1 %v3981_v33  ;;  %v4043_v31 = vld [vmem:[%s4262_s13 + $0x358] sm:$0xff]   ;;  %v4044_v32 = vld [vmem:[%s4262_s13 + $0x160] sm:$0xff]  }
  0x5f   : > { %v4045_v33 = vld [vmem:[%s4262_s13 + $0x360] sm:$0xff]  }
  0x65   : > { %3644 = vmatmul.mubr.bf16.gmra.mxu0 %v3982_v34  ;;  %3772 = vmatmul.mubr.bf16.gmra.mxu1 %v3983_v35  ;;  %v4046_v34 = vld [vmem:[%s4262_s13 + $0x168] sm:$0xff]  }
  0x66   : > { %3647 = vmatprep.mubr.bf16.mxu0 %v3984_v36  ;;  %3775 = vmatprep.mubr.bf16.mxu1 %v3985_v37  ;;  %v4047_v35 = vld [vmem:[%s4262_s13 + $0x368] sm:$0xff]   ;;  %v4048_v36 = vld [vmem:[%s4262_s13 + $0x170] sm:$0xff]  }
  0x67   : > { %v4049_v37 = vld [vmem:[%s4262_s13 + $0x370] sm:$0xff]  }
  0x6d   : > { %3648 = vmatmul.mubr.bf16.gmra.mxu0 %v3986_v38  ;;  %3776 = vmatmul.mubr.bf16.gmra.mxu1 %v3987_v39  ;;  %v4050_v38 = vld [vmem:[%s4262_s13 + $0x178] sm:$0xff]  }
  0x6e   : > { %3651 = vmatprep.mubr.bf16.mxu0 %v3988_v40  ;;  %3779 = vmatprep.mubr.bf16.mxu1 %v3989_v41  ;;  %v4051_v39 = vld [vmem:[%s4262_s13 + $0x378] sm:$0xff]   ;;  %v4052_v40 = vld [vmem:[%s4262_s13 + $0x180] sm:$0xff]  }
  0x6f   : > { %v4053_v41 = vld [vmem:[%s4262_s13 + $0x380] sm:$0xff]  }
  0x75   : > { %3652 = vmatmul.mubr.bf16.gmra.mxu0 %v3990_v42  ;;  %3780 = vmatmul.mubr.bf16.gmra.mxu1 %v3991_v43  ;;  %v4054_v42 = vld [vmem:[%s4262_s13 + $0x188] sm:$0xff]  }
  0x76   : > { %3655 = vmatprep.mubr.bf16.mxu0 %v3992_v44  ;;  %3783 = vmatprep.mubr.bf16.mxu1 %v3993_v45  ;;  %v4055_v43 = vld [vmem:[%s4262_s13 + $0x388] sm:$0xff]   ;;  %v4056_v44 = vld [vmem:[%s4262_s13 + $0x190] sm:$0xff]  }
  0x77   : > { %v4057_v45 = vld [vmem:[%s4262_s13 + $0x390] sm:$0xff]  }
  0x7d   : > { %3656 = vmatmul.mubr.bf16.gmra.mxu0 %v3994_v46  ;;  %3784 = vmatmul.mubr.bf16.gmra.mxu1 %v3995_v47  ;;  %v4385_v46 = vld [vmem:[%s5235_s2] ss:$0 sm:$0xff] }
  0x7e   : > { %3659 = vmatprep.mubr.bf16.mxu0 %v3996_v48  ;;  %3787 = vmatprep.mubr.bf16.mxu1 %v3997_v49  ;;  %v4392_v48 = vld [vmem:[%s5236_s3] ss:$0 sm:$0xff] }
  0x85   : > { %3660 = vmatmul.mubr.bf16.gmra.mxu0 %v3998_v50  ;;  %3788 = vmatmul.mubr.bf16.gmra.mxu1 %v3999_v51 }
  0x86   : > { %3663 = vmatprep.mubr.bf16.mxu0 %v4000_v52  ;;  %3791 = vmatprep.mubr.bf16.mxu1 %v4001_v53 }
  0x8d   : > { %3664 = vmatmul.mubr.bf16.gmra.mxu0 %v4002_v54  ;;  %3792 = vmatmul.mubr.bf16.gmra.mxu1 %v4003_v55 }
  0x8e   : > { %3667 = vmatprep.mubr.bf16.mxu0 %v4004_v56  ;;  %3795 = vmatprep.mubr.bf16.mxu1 %v4005_v57 }
  0x95   : > { %3668 = vmatmul.mubr.bf16.gmra.mxu0 %v4006_v58  ;;  %3796 = vmatmul.mubr.bf16.gmra.mxu1 %v4007_v59 }
  0x96   : > { %3671 = vmatprep.mubr.bf16.mxu0 %v4008_v60  ;;  %3799 = vmatprep.mubr.bf16.mxu1 %v4009_v61  ;;  %v4058_v60 = vld [vmem:[%s4262_s13 + $0x198] sm:$0xff]  }
  0x97   : > { %v4059_v61 = vld [vmem:[%s4262_s13 + $0x398] sm:$0xff]  }
  0x9d   : > { %3672 = vmatmul.mubr.bf16.gmra.mxu0 %v4010_v62  ;;  %3800 = vmatmul.mubr.bf16.gmra.mxu1 %v4011_v63 }
  0x9e   : > { %3675 = vmatprep.mubr.bf16.mxu0 %v4012_v0  ;;  %3803 = vmatprep.mubr.bf16.mxu1 %v4013_v1 }
  0xa5   : > { %3676 = vmatmul.mubr.bf16.gmra.mxu0 %v4014_v2  ;;  %3804 = vmatmul.mubr.bf16.gmra.mxu1 %v4015_v3  ;;  %v4060_v2 = vld [vmem:[%s4262_s13 + $0x1a0] sm:$0xff]  }
  0xa6   : > { %3679 = vmatprep.mubr.bf16.mxu0 %v4016_v4  ;;  %3807 = vmatprep.mubr.bf16.mxu1 %v4017_v5  ;;  %v4061_v5 = vld [vmem:[%s4262_s13 + $0x3a0] sm:$0xff]  }
  0xad   : > { %3680 = vmatmul.mubr.bf16.gmra.mxu0 %v4018_v6  ;;  %3808 = vmatmul.mubr.bf16.gmra.mxu1 %v4019_v7 }
  0xae   : > { %3683 = vmatprep.mubr.bf16.mxu0 %v4020_v8  ;;  %3811 = vmatprep.mubr.bf16.mxu1 %v4021_v9 }
  0xb5   : > { %3684 = vmatmul.mubr.bf16.gmra.mxu0 %v4022_v10  ;;  %3812 = vmatmul.mubr.bf16.gmra.mxu1 %v4023_v11 }
  0xb6   : > { %3687 = vmatprep.mubr.bf16.mxu0 %v4024_v12  ;;  %3815 = vmatprep.mubr.bf16.mxu1 %v4025_v13 }
  0xbd   : > { %3688 = vmatmul.mubr.bf16.gmra.mxu0 %v4026_v14  ;;  %3816 = vmatmul.mubr.bf16.gmra.mxu1 %v4027_v15 }
  0xbe   : > { %3691 = vmatprep.mubr.bf16.mxu0 %v4028_v16  ;;  %3819 = vmatprep.mubr.bf16.mxu1 %v4029_v17 }
  0xc5   : > { %3692 = vmatmul.mubr.bf16.gmra.mxu0 %v4030_v18  ;;  %3820 = vmatmul.mubr.bf16.gmra.mxu1 %v4031_v19 }
  0xc6   : > { %3695 = vmatprep.mubr.bf16.mxu0 %v4032_v20  ;;  %3823 = vmatprep.mubr.bf16.mxu1 %v4033_v21 }
  0xcd   : > { %3696 = vmatmul.mubr.bf16.gmra.mxu0 %v4034_v22  ;;  %3824 = vmatmul.mubr.bf16.gmra.mxu1 %v4035_v23 }
  0xce   : > { %3699 = vmatprep.mubr.bf16.mxu0 %v4036_v24  ;;  %3827 = vmatprep.mubr.bf16.mxu1 %v4037_v25  ;;  %v4062_v24 = vld [vmem:[%s4262_s13 + $0x1a8] sm:$0xff]  }
  0xcf   : > { %v4063_v25 = vld [vmem:[%s4262_s13 + $0x3a8] sm:$0xff]  }
  0xd5   : > { %3700 = vmatmul.mubr.bf16.gmra.mxu0 %v4038_v26  ;;  %3828 = vmatmul.mubr.bf16.gmra.mxu1 %v4039_v27 }
  0xd6   : > { %3703 = vmatprep.mubr.bf16.mxu0 %v4040_v28  ;;  %3831 = vmatprep.mubr.bf16.mxu1 %v4041_v29 }
  0xdd   : > { %3704 = vmatmul.mubr.bf16.gmra.mxu0 %v4042_v30  ;;  %3832 = vmatmul.mubr.bf16.gmra.mxu1 %v4043_v31  ;;  %v4064_v30 = vld [vmem:[%s4262_s13 + $0x1b0] sm:$0xff]  }
  0xde   : > { %3707 = vmatprep.mubr.bf16.mxu0 %v4044_v32  ;;  %3835 = vmatprep.mubr.bf16.mxu1 %v4045_v33  ;;  %v4065_v33 = vld [vmem:[%s4262_s13 + $0x3b0] sm:$0xff]  }
  0xe5   : > { %3708 = vmatmul.mubr.bf16.gmra.mxu0 %v4046_v34  ;;  %3836 = vmatmul.mubr.bf16.gmra.mxu1 %v4047_v35 }
  0xe6   : > { %3711 = vmatprep.mubr.bf16.mxu0 %v4048_v36  ;;  %3839 = vmatprep.mubr.bf16.mxu1 %v4049_v37 }
  0xed   : > { %3712 = vmatmul.mubr.bf16.gmra.mxu0 %v4050_v38  ;;  %3840 = vmatmul.mubr.bf16.gmra.mxu1 %v4051_v39 }
  0xee   : > { %3715 = vmatprep.mubr.bf16.mxu0 %v4052_v40  ;;  %3843 = vmatprep.mubr.bf16.mxu1 %v4053_v41 }
  0xf5   : > { %v3621_v47 = vpop.f32.mrf.mxu0  ;;  %3716 = vmatmul.mubr.bf16.gmra.mxu0 %v4054_v42  ;;  %v3749_v49 = vpop.f32.mrf.mxu1  ;;  %3844 = vmatmul.mubr.bf16.gmra.mxu1 %v4055_v43 }
  0xf6   : > { %v2414_v50 = vmul.f32 %v3621_v47, %v4385_v46  ;;  %v2542_v51 = vmul.f32 %v3749_v49, %v4385_v46  ;;  %3719 = vmatprep.mubr.bf16.mxu0 %v4056_v44  ;;  %3847 = vmatprep.mubr.bf16.mxu1 %v4057_v45 }
  0xf7   : > { %v1381_v52 = vpop.f32.mrf.mxu0  ;;  %v1893_v53 = vpop.f32.mrf.mxu1 }
  0xf8   : > { %v2676_v54 = vadd.f32 %v4392_v48, %v2414_v50  ;;  %v2804_v55 = vadd.f32 %v4392_v48, %v2542_v51  ;;  %v2412_v56 = vmul.f32 %v4385_v46, %v1381_v52  ;;  %v2540_v57 = vmul.f32 %v4385_v46, %v1893_v53 }
  0xf9   : > { %v3622_v58 = vpop.f32.mrf.mxu0  ;;  %v3750_v59 = vpop.f32.mrf.mxu1 }
  0xfa   : > { %2932 = vst [vmem:[%s4402_s21 + $0x10] sm:$0xff] %v2676_v54  ;;  %3060 = vst [vmem:[%s4402_s21 + $0x410] sm:$0xff] %v2804_v55  ;;  %v2674_v62 = vadd.f32 %v4392_v48, %v2412_v56  ;;  %v2802_v63 = vadd.f32 %v4392_v48, %v2540_v57  ;;  %v2415_v0 = vmul.f32 %v3622_v58, %v4385_v46  ;;  %v4066_v54 = vld [vmem:[%s4262_s13 + $0x1b8] sm:$0xff]  }
  0xfb   : > { %v2543_v1 = vmul.f32 %v3750_v59, %v4385_v46  ;;  %v1384_v3 = vpop.f32.mrf.mxu0  ;;  %v1896_v4 = vpop.f32.mrf.mxu1  ;;  %v4067_v55 = vld [vmem:[%s4262_s13 + $0x3b8] sm:$0xff]  }
  0xfc   : > { %2930 = vst [vmem:[%s4402_s21] sm:$0xff] %v2674_v62  ;;  %3058 = vst [vmem:[%s4402_s21 + $0x400] sm:$0xff] %v2802_v63  ;;  %v2677_v6 = vadd.f32 %v4392_v48, %v2415_v0  ;;  %v2413_v8 = vmul.f32 %v4385_v46, %v1384_v3  ;;  %v2541_v9 = vmul.f32 %v4385_v46, %v1896_v4  ;;  %v4069_v63 = vld [vmem:[%s4262_s13 + $0x3c0] sm:$0xff]  }
  0xfd   : > { %v2805_v7 = vadd.f32 %v4392_v48, %v2543_v1  ;;  %v3625_v10 = vpop.f32.mrf.mxu0  ;;  %3720 = vmatmul.mubr.bf16.gmra.mxu0 %v4058_v60  ;;  %v3753_v11 = vpop.f32.mrf.mxu1  ;;  %3848 = vmatmul.mubr.bf16.gmra.mxu1 %v4059_v61  ;;  %v4068_v60 = vld [vmem:[%s4262_s13 + $0x1c0] sm:$0xff]  }
  0xfe   : > { %2933 = vst [vmem:[%s4402_s21 + $0x18] sm:$0xff] %v2677_v6  ;;  %v2675_v12 = vadd.f32 %v4392_v48, %v2413_v8  ;;  %v2803_v13 = vadd.f32 %v4392_v48, %v2541_v9  ;;  %v2418_v14 = vmul.f32 %v3625_v10, %v4385_v46  ;;  %v2546_v15 = vmul.f32 %v3753_v11, %v4385_v46 }
  0xff   : > { %3061 = vst [vmem:[%s4402_s21 + $0x418] sm:$0xff] %v2805_v7  ;;  %3723 = vmatprep.mubr.bf16.mxu0 %v4060_v2  ;;  %v1397_v16 = vpop.f32.mrf.mxu0  ;;  %v1909_v17 = vpop.f32.mrf.mxu1  ;;  %3851 = vmatprep.mubr.bf16.mxu1 %v4061_v5 }
 0x100   : > { %2931 = vst [vmem:[%s4402_s21 + $0x8] sm:$0xff] %v2675_v12  ;;  %3059 = vst [vmem:[%s4402_s21 + $0x408] sm:$0xff] %v2803_v13  ;;  %v2680_v18 = vadd.f32 %v4392_v48, %v2418_v14  ;;  %v2808_v19 = vadd.f32 %v4392_v48, %v2546_v15  ;;  %v2416_v20 = vmul.f32 %v4385_v46, %v1397_v16 }
 0x101   : > { %v2544_v21 = vmul.f32 %v4385_v46, %v1909_v17  ;;  %v3626_v22 = vpop.f32.mrf.mxu0  ;;  %v3754_v23 = vpop.f32.mrf.mxu1 }
 0x102   : > { %2936 = vst [vmem:[%s4402_s21 + $0x30] sm:$0xff] %v2680_v18  ;;  %3064 = vst [vmem:[%s4402_s21 + $0x430] sm:$0xff] %v2808_v19  ;;  %v2678_v26 = vadd.f32 %v4392_v48, %v2416_v20  ;;  %v2419_v28 = vmul.f32 %v3626_v22, %v4385_v46  ;;  %v2547_v29 = vmul.f32 %v3754_v23, %v4385_v46  ;;  %v4070_v18 = vld [vmem:[%s4262_s13 + $0x1c8] sm:$0xff]  }
 0x103   : > { %v2806_v27 = vadd.f32 %v4392_v48, %v2544_v21  ;;  %v1400_v31 = vpop.f32.mrf.mxu0  ;;  %v1912_v32 = vpop.f32.mrf.mxu1  ;;  %v4071_v19 = vld [vmem:[%s4262_s13 + $0x3c8] sm:$0xff]  }
 0x104   : > { %2934 = vst [vmem:[%s4402_s21 + $0x20] sm:$0xff] %v2678_v26  ;;  %v2681_v34 = vadd.f32 %v4392_v48, %v2419_v28  ;;  %v2809_v35 = vadd.f32 %v4392_v48, %v2547_v29  ;;  %v2417_v36 = vmul.f32 %v4385_v46, %v1400_v31  ;;  %v2545_v37 = vmul.f32 %v4385_v46, %v1912_v32 }
 0x105   : > { %3062 = vst [vmem:[%s4402_s21 + $0x420] sm:$0xff] %v2806_v27  ;;  %v3629_v38 = vpop.f32.mrf.mxu0  ;;  %3724 = vmatmul.mubr.bf16.gmra.mxu0 %v4062_v24  ;;  %v3757_v39 = vpop.f32.mrf.mxu1  ;;  %3852 = vmatmul.mubr.bf16.gmra.mxu1 %v4063_v25  ;;  %v4072_v24 = vld [vmem:[%s4262_s13 + $0x1d0] sm:$0xff]  }
 0x106   : > { %2937 = vst [vmem:[%s4402_s21 + $0x38] sm:$0xff] %v2681_v34  ;;  %3065 = vst [vmem:[%s4402_s21 + $0x438] sm:$0xff] %v2809_v35  ;;  %v2679_v40 = vadd.f32 %v4392_v48, %v2417_v36  ;;  %v2807_v41 = vadd.f32 %v4392_v48, %v2545_v37  ;;  %v2422_v42 = vmul.f32 %v3629_v38, %v4385_v46  ;;  %3727 = vmatprep.mubr.bf16.mxu0 %v4064_v30  ;;  %v4073_v27 = vld [vmem:[%s4262_s13 + $0x3d0] sm:$0xff]  }
 0x107   : > { %v2550_v43 = vmul.f32 %v3757_v39, %v4385_v46  ;;  %v1413_v44 = vpop.f32.mrf.mxu0  ;;  %v1925_v45 = vpop.f32.mrf.mxu1  ;;  %3855 = vmatprep.mubr.bf16.mxu1 %v4065_v33 }
 0x108   : > { %2935 = vst [vmem:[%s4402_s21 + $0x28] sm:$0xff] %v2679_v40  ;;  %3063 = vst [vmem:[%s4402_s21 + $0x428] sm:$0xff] %v2807_v41  ;;  %v2684_v47 = vadd.f32 %v4392_v48, %v2422_v42  ;;  %v2420_v50 = vmul.f32 %v4385_v46, %v1413_v44  ;;  %v2548_v51 = vmul.f32 %v4385_v46, %v1925_v45 }
 0x109   : > { %v2812_v49 = vadd.f32 %v4392_v48, %v2550_v43  ;;  %v3630_v52 = vpop.f32.mrf.mxu0  ;;  %v3758_v53 = vpop.f32.mrf.mxu1 }
 0x10a   : > { %2940 = vst [vmem:[%s4402_s21 + $0x50] sm:$0xff] %v2684_v47  ;;  %v2682_v56 = vadd.f32 %v4392_v48, %v2420_v50  ;;  %v2810_v57 = vadd.f32 %v4392_v48, %v2548_v51  ;;  %v2423_v58 = vmul.f32 %v3630_v52, %v4385_v46  ;;  %v2551_v59 = vmul.f32 %v3758_v53, %v4385_v46  ;;  %v4074_v47 = vld [vmem:[%s4262_s13 + $0x1d8] sm:$0xff]  }
 0x10b   : > { %3068 = vst [vmem:[%s4402_s21 + $0x450] sm:$0xff] %v2812_v49  ;;  %v1416_v61 = vpop.f32.mrf.mxu0  ;;  %v1928_v62 = vpop.f32.mrf.mxu1  ;;  %v4075_v49 = vld [vmem:[%s4262_s13 + $0x3d8] sm:$0xff]  }
 0x10c   : > { %2938 = vst [vmem:[%s4402_s21 + $0x40] sm:$0xff] %v2682_v56  ;;  %3066 = vst [vmem:[%s4402_s21 + $0x440] sm:$0xff] %v2810_v57  ;;  %v2685_v0 = vadd.f32 %v4392_v48, %v2423_v58  ;;  %v2813_v1 = vadd.f32 %v4392_v48, %v2551_v59  ;;  %v2421_v2 = vmul.f32 %v4385_v46, %v1416_v61  ;;  %v4077_v57 = vld [vmem:[%s4262_s13 + $0x3e0] sm:$0xff]  }
 0x10d   : > { %v2549_v3 = vmul.f32 %v4385_v46, %v1928_v62  ;;  %v3633_v4 = vpop.f32.mrf.mxu0  ;;  %3728 = vmatmul.mubr.bf16.gmra.mxu0 %v4066_v54  ;;  %v3761_v5 = vpop.f32.mrf.mxu1  ;;  %3856 = vmatmul.mubr.bf16.gmra.mxu1 %v4067_v55  ;;  %v4076_v54 = vld [vmem:[%s4262_s13 + $0x1e0] sm:$0xff]  }
 0x10e   : > { %2941 = vst [vmem:[%s4402_s21 + $0x58] sm:$0xff] %v2685_v0  ;;  %3069 = vst [vmem:[%s4402_s21 + $0x458] sm:$0xff] %v2813_v1  ;;  %v2683_v6 = vadd.f32 %v4392_v48, %v2421_v2  ;;  %v2426_v8 = vmul.f32 %v3633_v4, %v4385_v46  ;;  %v2554_v9 = vmul.f32 %v3761_v5, %v4385_v46  ;;  %3731 = vmatprep.mubr.bf16.mxu0 %v4068_v60 }
 0x10f   : > { %v2811_v7 = vadd.f32 %v4392_v48, %v2549_v3  ;;  %v1429_v10 = vpop.f32.mrf.mxu0  ;;  %v1941_v11 = vpop.f32.mrf.mxu1  ;;  %3859 = vmatprep.mubr.bf16.mxu1 %v4069_v63 }
 0x110   : > { %2939 = vst [vmem:[%s4402_s21 + $0x48] sm:$0xff] %v2683_v6  ;;  %v2688_v12 = vadd.f32 %v4392_v48, %v2426_v8  ;;  %v2816_v13 = vadd.f32 %v4392_v48, %v2554_v9  ;;  %v2424_v14 = vmul.f32 %v4385_v46, %v1429_v10  ;;  %v2552_v15 = vmul.f32 %v4385_v46, %v1941_v11 }
 0x111   : > { %3067 = vst [vmem:[%s4402_s21 + $0x448] sm:$0xff] %v2811_v7  ;;  %v3634_v16 = vpop.f32.mrf.mxu0  ;;  %v3762_v17 = vpop.f32.mrf.mxu1 }
 0x112   : > { %2944 = vst [vmem:[%s4402_s21 + $0x70] sm:$0xff] %v2688_v12  ;;  %3072 = vst [vmem:[%s4402_s21 + $0x470] sm:$0xff] %v2816_v13  ;;  %v2686_v20 = vadd.f32 %v4392_v48, %v2424_v14  ;;  %v2814_v21 = vadd.f32 %v4392_v48, %v2552_v15  ;;  %v2427_v22 = vmul.f32 %v3634_v16, %v4385_v46  ;;  %v4078_v12 = vld [vmem:[%s4262_s13 + $0x1e8] sm:$0xff]  }
 0x113   : > { %v2555_v23 = vmul.f32 %v3762_v17, %v4385_v46  ;;  %v1432_v25 = vpop.f32.mrf.mxu0  ;;  %v1944_v26 = vpop.f32.mrf.mxu1  ;;  %v4079_v13 = vld [vmem:[%s4262_s13 + $0x3e8] sm:$0xff]  }
 0x114   : > { %2942 = vst [vmem:[%s4402_s21 + $0x60] sm:$0xff] %v2686_v20  ;;  %3070 = vst [vmem:[%s4402_s21 + $0x460] sm:$0xff] %v2814_v21  ;;  %v2689_v28 = vadd.f32 %v4392_v48, %v2427_v22  ;;  %v2425_v30 = vmul.f32 %v4385_v46, %v1432_v25  ;;  %v2553_v31 = vmul.f32 %v4385_v46, %v1944_v26  ;;  %v4081_v21 = vld [vmem:[%s4262_s13 + $0x3f0] sm:$0xff]  }
 0x115   : > { %v2817_v29 = vadd.f32 %v4392_v48, %v2555_v23  ;;  %v3637_v32 = vpop.f32.mrf.mxu0  ;;  %3732 = vmatmul.mubr.bf16.gmra.mxu0 %v4070_v18  ;;  %v3765_v33 = vpop.f32.mrf.mxu1  ;;  %3860 = vmatmul.mubr.bf16.gmra.mxu1 %v4071_v19  ;;  %v4080_v18 = vld [vmem:[%s4262_s13 + $0x1f0] sm:$0xff]  }
 0x116   : > { %2945 = vst [vmem:[%s4402_s21 + $0x78] sm:$0xff] %v2689_v28  ;;  %v2687_v34 = vadd.f32 %v4392_v48, %v2425_v30  ;;  %v2815_v35 = vadd.f32 %v4392_v48, %v2553_v31  ;;  %v2430_v36 = vmul.f32 %v3637_v32, %v4385_v46  ;;  %v2558_v37 = vmul.f32 %v3765_v33, %v4385_v46 }
 0x117   : > { %3073 = vst [vmem:[%s4402_s21 + $0x478] sm:$0xff] %v2817_v29  ;;  %3735 = vmatprep.mubr.bf16.mxu0 %v4072_v24  ;;  %v1445_v38 = vpop.f32.mrf.mxu0  ;;  %v1957_v39 = vpop.f32.mrf.mxu1  ;;  %3863 = vmatprep.mubr.bf16.mxu1 %v4073_v27 }
 0x118   : > { %2943 = vst [vmem:[%s4402_s21 + $0x68] sm:$0xff] %v2687_v34  ;;  %3071 = vst [vmem:[%s4402_s21 + $0x468] sm:$0xff] %v2815_v35  ;;  %v2692_v40 = vadd.f32 %v4392_v48, %v2430_v36  ;;  %v2820_v41 = vadd.f32 %v4392_v48, %v2558_v37  ;;  %v2428_v42 = vmul.f32 %v4385_v46, %v1445_v38 }
 0x119   : > { %v2556_v43 = vmul.f32 %v4385_v46, %v1957_v39  ;;  %v3638_v44 = vpop.f32.mrf.mxu0  ;;  %v3766_v45 = vpop.f32.mrf.mxu1 }
 0x11a   : > { %2948 = vst [vmem:[%s4402_s21 + $0x90] sm:$0xff] %v2692_v40  ;;  %3076 = vst [vmem:[%s4402_s21 + $0x490] sm:$0xff] %v2820_v41  ;;  %v2690_v50 = vadd.f32 %v4392_v48, %v2428_v42  ;;  %v2431_v52 = vmul.f32 %v3638_v44, %v4385_v46  ;;  %v2559_v53 = vmul.f32 %v3766_v45, %v4385_v46  ;;  %v4082_v40 = vld [vmem:[%s4262_s13 + $0x1f8] sm:$0xff]  }
 0x11b   : > { %v2818_v51 = vadd.f32 %v4392_v48, %v2556_v43  ;;  %v1448_v55 = vpop.f32.mrf.mxu0  ;;  %v1960_v56 = vpop.f32.mrf.mxu1  ;;  %v4083_v41 = vld [vmem:[%s4262_s13 + $0x3f8] sm:$0xff]   ;;  %s4166_s13 = smov [#allocation2]  }
 0x11c   : > { %2946 = vst [vmem:[%s4402_s21 + $0x80] sm:$0xff] %v2690_v50  ;;  %v2693_v58 = vadd.f32 %v4392_v48, %v2431_v52  ;;  %v2821_v59 = vadd.f32 %v4392_v48, %v2559_v53  ;;  %v2429_v60 = vmul.f32 %v4385_v46, %v1448_v55  ;;  %v2557_v61 = vmul.f32 %v4385_v46, %v1960_v56  ;;  %s4092_s22 = sshll.u32 %s4166_s13, 4  ;;  %s4093_s22 = int_to_ptr.vmem [resolvable:$false] %s4092_s22 }
 0x11d   : > { %3074 = vst [vmem:[%s4402_s21 + $0x480] sm:$0xff] %v2818_v51  ;;  %v3641_v62 = vpop.f32.mrf.mxu0  ;;  %3736 = vmatmul.mubr.bf16.gmra.mxu0 %v4074_v47  ;;  %v3769_v63 = vpop.f32.mrf.mxu1  ;;  %3864 = vmatmul.mubr.bf16.gmra.mxu1 %v4075_v49  ;;  %s4094_s24 = scalar_lea.vmem %s4093_s22, 65536  ;;  %p4095_p1 = scmp.lt.s32.totalorder %s5180_s9, %s4093_s22 }
 0x11e   : > { %2949 = vst [vmem:[%s4402_s21 + $0x98] sm:$0xff] %v2693_v58  ;;  %3077 = vst [vmem:[%s4402_s21 + $0x498] sm:$0xff] %v2821_v59  ;;  %v2691_v0 = vadd.f32 %v4392_v48, %v2429_v60  ;;  %v2819_v1 = vadd.f32 %v4392_v48, %v2557_v61  ;;  %v2434_v2 = vmul.f32 %v3641_v62, %v4385_v46  ;;  %3739 = vmatprep.mubr.bf16.mxu0 %v4076_v54  ;;  %p4096_p2 = scmp.lt.s32.totalorder %s4094_s24, %s4088_s14 }
 0x11f   : > { %v2562_v3 = vmul.f32 %v3769_v63, %v4385_v46  ;;  %v1461_v4 = vpop.f32.mrf.mxu0  ;;  %v1973_v5 = vpop.f32.mrf.mxu1  ;;  %3867 = vmatprep.mubr.bf16.mxu1 %v4077_v57 }
 0x120   : > { %2947 = vst [vmem:[%s4402_s21 + $0x88] sm:$0xff] %v2691_v0  ;;  %3075 = vst [vmem:[%s4402_s21 + $0x488] sm:$0xff] %v2819_v1  ;;  %v2696_v6 = vadd.f32 %v4392_v48, %v2434_v2  ;;  %v2432_v8 = vmul.f32 %v4385_v46, %v1461_v4  ;;  %v2560_v9 = vmul.f32 %v4385_v46, %v1973_v5  ;;  %p4097_p3 = por %p4096_p2, %p4095_p1 }
 0x121   : > { %v2824_v7 = vadd.f32 %v4392_v48, %v2562_v3  ;;  %v3642_v10 = vpop.f32.mrf.mxu0  ;;  %v3770_v11 = vpop.f32.mrf.mxu1 }
 0x122   : > { %2952 = vst [vmem:[%s4402_s21 + $0xb0] sm:$0xff] %v2696_v6  ;;  %v2694_v14 = vadd.f32 %v4392_v48, %v2432_v8  ;;  %v2822_v15 = vadd.f32 %v4392_v48, %v2560_v9  ;;  %v2435_v16 = vmul.f32 %v3642_v10, %v4385_v46  ;;  %v2563_v17 = vmul.f32 %v3770_v11, %v4385_v46  ;;  %p4098_p5 = pnand %p4097_p3, %p4091_p0 }
 0x123   : > { %3080 = vst [vmem:[%s4402_s21 + $0x4b0] sm:$0xff] %v2824_v7  ;;  %v1464_v19 = vpop.f32.mrf.mxu0  ;;  %v1976_v20 = vpop.f32.mrf.mxu1 }
 0x124   : > { %2950 = vst [vmem:[%s4402_s21 + $0xa0] sm:$0xff] %v2694_v14  ;;  %3078 = vst [vmem:[%s4402_s21 + $0x4a0] sm:$0xff] %v2822_v15  ;;  %v2697_v22 = vadd.f32 %v4392_v48, %v2435_v16  ;;  %v2825_v23 = vadd.f32 %v4392_v48, %v2563_v17  ;;  %v2433_v24 = vmul.f32 %v4385_v46, %v1464_v19 }
 0x125   : > { %v2561_v25 = vmul.f32 %v4385_v46, %v1976_v20  ;;  %v3645_v26 = vpop.f32.mrf.mxu0  ;;  %3740 = vmatmul.mubr.bf16.gmra.mxu0 %v4078_v12  ;;  %v3773_v27 = vpop.f32.mrf.mxu1  ;;  %3868 = vmatmul.mubr.bf16.gmra.mxu1 %v4079_v13 }
 0x126   : > { %2953 = vst [vmem:[%s4402_s21 + $0xb8] sm:$0xff] %v2697_v22  ;;  %3081 = vst [vmem:[%s4402_s21 + $0x4b8] sm:$0xff] %v2825_v23  ;;  %v2695_v28 = vadd.f32 %v4392_v48, %v2433_v24  ;;  %v2438_v30 = vmul.f32 %v3645_v26, %v4385_v46  ;;  %v2566_v31 = vmul.f32 %v3773_v27, %v4385_v46  ;;  %3743 = vmatprep.mubr.bf16.mxu0 %v4080_v18 }
 0x127   : > { %v2823_v29 = vadd.f32 %v4392_v48, %v2561_v25  ;;  %v1477_v32 = vpop.f32.mrf.mxu0  ;;  %v1989_v33 = vpop.f32.mrf.mxu1  ;;  %3871 = vmatprep.mubr.bf16.mxu1 %v4081_v21 }
 0x128   : > { %2951 = vst [vmem:[%s4402_s21 + $0xa8] sm:$0xff] %v2695_v28  ;;  %v2700_v34 = vadd.f32 %v4392_v48, %v2438_v30  ;;  %v2828_v35 = vadd.f32 %v4392_v48, %v2566_v31  ;;  %v2436_v36 = vmul.f32 %v4385_v46, %v1477_v32  ;;  %v2564_v37 = vmul.f32 %v4385_v46, %v1989_v33 }
 0x129   : > { %3079 = vst [vmem:[%s4402_s21 + $0x4a8] sm:$0xff] %v2823_v29  ;;  %v3646_v38 = vpop.f32.mrf.mxu0  ;;  %v3774_v39 = vpop.f32.mrf.mxu1 }
 0x12a   : > { %2956 = vst [vmem:[%s4402_s21 + $0xd0] sm:$0xff] %v2700_v34  ;;  %3084 = vst [vmem:[%s4402_s21 + $0x4d0] sm:$0xff] %v2828_v35  ;;  %v2698_v42 = vadd.f32 %v4392_v48, %v2436_v36  ;;  %v2826_v43 = vadd.f32 %v4392_v48, %v2564_v37  ;;  %v2439_v44 = vmul.f32 %v3646_v38, %v4385_v46 }
 0x12b   : > { %v2567_v45 = vmul.f32 %v3774_v39, %v4385_v46  ;;  %v1480_v47 = vpop.f32.mrf.mxu0  ;;  %v1992_v49 = vpop.f32.mrf.mxu1 }
 0x12c   : > { %2954 = vst [vmem:[%s4402_s21 + $0xc0] sm:$0xff] %v2698_v42  ;;  %3082 = vst [vmem:[%s4402_s21 + $0x4c0] sm:$0xff] %v2826_v43  ;;  %v2701_v50 = vadd.f32 %v4392_v48, %v2439_v44  ;;  %v2437_v52 = vmul.f32 %v4385_v46, %v1480_v47  ;;  %v2565_v53 = vmul.f32 %v4385_v46, %v1992_v49 }
 0x12d   : > { %v2829_v51 = vadd.f32 %v4392_v48, %v2567_v45  ;;  %v3649_v54 = vpop.f32.mrf.mxu0  ;;  %3744 = vmatmul.mubr.bf16.gmra.mxu0 %v4082_v40  ;;  %v3777_v55 = vpop.f32.mrf.mxu1  ;;  %3872 = vmatmul.mubr.bf16.gmra.mxu1 %v4083_v41 }
 0x12e   : > { %2957 = vst [vmem:[%s4402_s21 + $0xd8] sm:$0xff] %v2701_v50  ;;  %v2699_v56 = vadd.f32 %v4392_v48, %v2437_v52  ;;  %v2827_v57 = vadd.f32 %v4392_v48, %v2565_v53  ;;  %v2442_v58 = vmul.f32 %v3649_v54, %v4385_v46  ;;  %v2570_v59 = vmul.f32 %v3777_v55, %v4385_v46 }
 0x12f   : > { %3085 = vst [vmem:[%s4402_s21 + $0x4d8] sm:$0xff] %v2829_v51  ;;  %v1493_v60 = vpop.f32.mrf.mxu0  ;;  %v2005_v61 = vpop.f32.mrf.mxu1 }
 0x130   : > { %2955 = vst [vmem:[%s4402_s21 + $0xc8] sm:$0xff] %v2699_v56  ;;  %3083 = vst [vmem:[%s4402_s21 + $0x4c8] sm:$0xff] %v2827_v57  ;;  %v2704_v62 = vadd.f32 %v4392_v48, %v2442_v58  ;;  %v2832_v63 = vadd.f32 %v4392_v48, %v2570_v59  ;;  %v2440_v0 = vmul.f32 %v4385_v46, %v1493_v60 }
 0x131   : > { %v2568_v1 = vmul.f32 %v4385_v46, %v2005_v61  ;;  %v3650_v2 = vpop.f32.mrf.mxu0  ;;  %v3778_v3 = vpop.f32.mrf.mxu1 }
 0x132   : > { %2960 = vst [vmem:[%s4402_s21 + $0xf0] sm:$0xff] %v2704_v62  ;;  %3088 = vst [vmem:[%s4402_s21 + $0x4f0] sm:$0xff] %v2832_v63  ;;  %v2702_v4 = vadd.f32 %v4392_v48, %v2440_v0  ;;  %v2443_v6 = vmul.f32 %v3650_v2, %v4385_v46  ;;  %v2571_v7 = vmul.f32 %v3778_v3, %v4385_v46 }
 0x133   : > { %v2830_v5 = vadd.f32 %v4392_v48, %v2568_v1  ;;  %v1496_v8 = vpop.f32.mrf.mxu0  ;;  %v2008_v9 = vpop.f32.mrf.mxu1 }
 0x134   : > { %2958 = vst [vmem:[%s4402_s21 + $0xe0] sm:$0xff] %v2702_v4  ;;  %v2705_v10 = vadd.f32 %v4392_v48, %v2443_v6  ;;  %v2833_v11 = vadd.f32 %v4392_v48, %v2571_v7  ;;  %v2441_v12 = vmul.f32 %v4385_v46, %v1496_v8  ;;  %v2569_v13 = vmul.f32 %v4385_v46, %v2008_v9 }
 0x135   : > { %3086 = vst [vmem:[%s4402_s21 + $0x4e0] sm:$0xff] %v2830_v5  ;;  %v3653_v14 = vpop.f32.mrf.mxu0  ;;  %v3781_v15 = vpop.f32.mrf.mxu1 }
 0x136   : > { %2961 = vst [vmem:[%s4402_s21 + $0xf8] sm:$0xff] %v2705_v10  ;;  %3089 = vst [vmem:[%s4402_s21 + $0x4f8] sm:$0xff] %v2833_v11  ;;  %v2703_v16 = vadd.f32 %v4392_v48, %v2441_v12  ;;  %v2831_v17 = vadd.f32 %v4392_v48, %v2569_v13  ;;  %v2446_v18 = vmul.f32 %v3653_v14, %v4385_v46 }
 0x137   : > { %v2574_v19 = vmul.f32 %v3781_v15, %v4385_v46  ;;  %v1509_v20 = vpop.f32.mrf.mxu0  ;;  %v2021_v21 = vpop.f32.mrf.mxu1 }
 0x138   : > { %2959 = vst [vmem:[%s4402_s21 + $0xe8] sm:$0xff] %v2703_v16  ;;  %3087 = vst [vmem:[%s4402_s21 + $0x4e8] sm:$0xff] %v2831_v17  ;;  %v2708_v22 = vadd.f32 %v4392_v48, %v2446_v18  ;;  %v2444_v24 = vmul.f32 %v4385_v46, %v1509_v20  ;;  %v2572_v25 = vmul.f32 %v4385_v46, %v2021_v21 }
 0x139   : > { %v2836_v23 = vadd.f32 %v4392_v48, %v2574_v19  ;;  %v3654_v26 = vpop.f32.mrf.mxu0  ;;  %v3782_v27 = vpop.f32.mrf.mxu1 }
 0x13a   : > { %2964 = vst [vmem:[%s4402_s21 + $0x110] sm:$0xff] %v2708_v22  ;;  %v2706_v28 = vadd.f32 %v4392_v48, %v2444_v24  ;;  %v2834_v29 = vadd.f32 %v4392_v48, %v2572_v25  ;;  %v2447_v30 = vmul.f32 %v3654_v26, %v4385_v46  ;;  %v2575_v31 = vmul.f32 %v3782_v27, %v4385_v46 }
 0x13b   : > { %3092 = vst [vmem:[%s4402_s21 + $0x510] sm:$0xff] %v2836_v23  ;;  %v1512_v32 = vpop.f32.mrf.mxu0  ;;  %v2024_v33 = vpop.f32.mrf.mxu1 }
 0x13c   : > { %2962 = vst [vmem:[%s4402_s21 + $0x100] sm:$0xff] %v2706_v28  ;;  %3090 = vst [vmem:[%s4402_s21 + $0x500] sm:$0xff] %v2834_v29  ;;  %v2709_v34 = vadd.f32 %v4392_v48, %v2447_v30  ;;  %v2837_v35 = vadd.f32 %v4392_v48, %v2575_v31  ;;  %v2445_v36 = vmul.f32 %v4385_v46, %v1512_v32 }
 0x13d   : > { %v2573_v37 = vmul.f32 %v4385_v46, %v2024_v33  ;;  %v3657_v38 = vpop.f32.mrf.mxu0  ;;  %v3785_v39 = vpop.f32.mrf.mxu1 }
 0x13e   : > { %2965 = vst [vmem:[%s4402_s21 + $0x118] sm:$0xff] %v2709_v34  ;;  %3093 = vst [vmem:[%s4402_s21 + $0x518] sm:$0xff] %v2837_v35  ;;  %v2707_v40 = vadd.f32 %v4392_v48, %v2445_v36  ;;  %v2450_v42 = vmul.f32 %v3657_v38, %v4385_v46  ;;  %v2578_v43 = vmul.f32 %v3785_v39, %v4385_v46 }
 0x13f   : > { %v2835_v41 = vadd.f32 %v4392_v48, %v2573_v37  ;;  %v1525_v44 = vpop.f32.mrf.mxu0  ;;  %v2037_v45 = vpop.f32.mrf.mxu1 }
 0x140   : > { %2963 = vst [vmem:[%s4402_s21 + $0x108] sm:$0xff] %v2707_v40  ;;  %v2712_v47 = vadd.f32 %v4392_v48, %v2450_v42  ;;  %v2840_v49 = vadd.f32 %v4392_v48, %v2578_v43  ;;  %v2448_v50 = vmul.f32 %v4385_v46, %v1525_v44  ;;  %v2576_v51 = vmul.f32 %v4385_v46, %v2037_v45 }
 0x141   : > { %3091 = vst [vmem:[%s4402_s21 + $0x508] sm:$0xff] %v2835_v41  ;;  %v3658_v52 = vpop.f32.mrf.mxu0  ;;  %v3786_v53 = vpop.f32.mrf.mxu1 }
 0x142   : > { %2968 = vst [vmem:[%s4402_s21 + $0x130] sm:$0xff] %v2712_v47  ;;  %3096 = vst [vmem:[%s4402_s21 + $0x530] sm:$0xff] %v2840_v49  ;;  %v2710_v54 = vadd.f32 %v4392_v48, %v2448_v50  ;;  %v2838_v55 = vadd.f32 %v4392_v48, %v2576_v51  ;;  %v2451_v56 = vmul.f32 %v3658_v52, %v4385_v46 }
 0x143   : > { %v2579_v57 = vmul.f32 %v3786_v53, %v4385_v46  ;;  %v1528_v58 = vpop.f32.mrf.mxu0  ;;  %v2040_v59 = vpop.f32.mrf.mxu1 }
 0x144   : > { %2966 = vst [vmem:[%s4402_s21 + $0x120] sm:$0xff] %v2710_v54  ;;  %3094 = vst [vmem:[%s4402_s21 + $0x520] sm:$0xff] %v2838_v55  ;;  %v2713_v60 = vadd.f32 %v4392_v48, %v2451_v56  ;;  %v2449_v62 = vmul.f32 %v4385_v46, %v1528_v58  ;;  %v2577_v63 = vmul.f32 %v4385_v46, %v2040_v59 }
 0x145   : > { %v2841_v61 = vadd.f32 %v4392_v48, %v2579_v57  ;;  %v3661_v0 = vpop.f32.mrf.mxu0  ;;  %v3789_v1 = vpop.f32.mrf.mxu1 }
 0x146   : > { %2969 = vst [vmem:[%s4402_s21 + $0x138] sm:$0xff] %v2713_v60  ;;  %v2711_v2 = vadd.f32 %v4392_v48, %v2449_v62  ;;  %v2839_v3 = vadd.f32 %v4392_v48, %v2577_v63  ;;  %v2454_v4 = vmul.f32 %v3661_v0, %v4385_v46  ;;  %v2582_v5 = vmul.f32 %v3789_v1, %v4385_v46 }
 0x147   : > { %3097 = vst [vmem:[%s4402_s21 + $0x538] sm:$0xff] %v2841_v61  ;;  %v1541_v6 = vpop.f32.mrf.mxu0  ;;  %v2053_v7 = vpop.f32.mrf.mxu1 }
 0x148   : > { %2967 = vst [vmem:[%s4402_s21 + $0x128] sm:$0xff] %v2711_v2  ;;  %3095 = vst [vmem:[%s4402_s21 + $0x528] sm:$0xff] %v2839_v3  ;;  %v2716_v8 = vadd.f32 %v4392_v48, %v2454_v4  ;;  %v2844_v9 = vadd.f32 %v4392_v48, %v2582_v5  ;;  %v2452_v10 = vmul.f32 %v4385_v46, %v1541_v6 }
 0x149   : > { %v2580_v11 = vmul.f32 %v4385_v46, %v2053_v7  ;;  %v3662_v12 = vpop.f32.mrf.mxu0  ;;  %v3790_v13 = vpop.f32.mrf.mxu1 }
 0x14a   : > { %2972 = vst [vmem:[%s4402_s21 + $0x150] sm:$0xff] %v2716_v8  ;;  %3100 = vst [vmem:[%s4402_s21 + $0x550] sm:$0xff] %v2844_v9  ;;  %v2714_v14 = vadd.f32 %v4392_v48, %v2452_v10  ;;  %v2455_v16 = vmul.f32 %v3662_v12, %v4385_v46  ;;  %v2583_v17 = vmul.f32 %v3790_v13, %v4385_v46 }
 0x14b   : > { %v2842_v15 = vadd.f32 %v4392_v48, %v2580_v11  ;;  %v1544_v18 = vpop.f32.mrf.mxu0  ;;  %v2056_v19 = vpop.f32.mrf.mxu1 }
 0x14c   : > { %2970 = vst [vmem:[%s4402_s21 + $0x140] sm:$0xff] %v2714_v14  ;;  %v2717_v20 = vadd.f32 %v4392_v48, %v2455_v16  ;;  %v2845_v21 = vadd.f32 %v4392_v48, %v2583_v17  ;;  %v2453_v22 = vmul.f32 %v4385_v46, %v1544_v18  ;;  %v2581_v23 = vmul.f32 %v4385_v46, %v2056_v19 }
 0x14d   : > { %3098 = vst [vmem:[%s4402_s21 + $0x540] sm:$0xff] %v2842_v15  ;;  %v3665_v24 = vpop.f32.mrf.mxu0  ;;  %v3793_v25 = vpop.f32.mrf.mxu1 }
 0x14e   : > { %2973 = vst [vmem:[%s4402_s21 + $0x158] sm:$0xff] %v2717_v20  ;;  %3101 = vst [vmem:[%s4402_s21 + $0x558] sm:$0xff] %v2845_v21  ;;  %v2715_v26 = vadd.f32 %v4392_v48, %v2453_v22  ;;  %v2843_v27 = vadd.f32 %v4392_v48, %v2581_v23  ;;  %v2458_v28 = vmul.f32 %v3665_v24, %v4385_v46 }
 0x14f   : > { %v2586_v29 = vmul.f32 %v3793_v25, %v4385_v46  ;;  %v1557_v30 = vpop.f32.mrf.mxu0  ;;  %v2069_v31 = vpop.f32.mrf.mxu1 }
 0x150   : > { %2971 = vst [vmem:[%s4402_s21 + $0x148] sm:$0xff] %v2715_v26  ;;  %3099 = vst [vmem:[%s4402_s21 + $0x548] sm:$0xff] %v2843_v27  ;;  %v2720_v32 = vadd.f32 %v4392_v48, %v2458_v28  ;;  %v2456_v34 = vmul.f32 %v4385_v46, %v1557_v30  ;;  %v2584_v35 = vmul.f32 %v4385_v46, %v2069_v31 }
 0x151   : > { %v2848_v33 = vadd.f32 %v4392_v48, %v2586_v29  ;;  %v3666_v36 = vpop.f32.mrf.mxu0  ;;  %v3794_v37 = vpop.f32.mrf.mxu1 }
 0x152   : > { %2976 = vst [vmem:[%s4402_s21 + $0x170] sm:$0xff] %v2720_v32  ;;  %v2718_v38 = vadd.f32 %v4392_v48, %v2456_v34  ;;  %v2846_v39 = vadd.f32 %v4392_v48, %v2584_v35  ;;  %v2459_v40 = vmul.f32 %v3666_v36, %v4385_v46  ;;  %v2587_v41 = vmul.f32 %v3794_v37, %v4385_v46 }
 0x153   : > { %3104 = vst [vmem:[%s4402_s21 + $0x570] sm:$0xff] %v2848_v33  ;;  %v1560_v42 = vpop.f32.mrf.mxu0  ;;  %v2072_v43 = vpop.f32.mrf.mxu1 }
 0x154   : > { %2974 = vst [vmem:[%s4402_s21 + $0x160] sm:$0xff] %v2718_v38  ;;  %3102 = vst [vmem:[%s4402_s21 + $0x560] sm:$0xff] %v2846_v39  ;;  %v2721_v44 = vadd.f32 %v4392_v48, %v2459_v40  ;;  %v2849_v45 = vadd.f32 %v4392_v48, %v2587_v41  ;;  %v2457_v47 = vmul.f32 %v4385_v46, %v1560_v42 }
 0x155   : > { %v2585_v49 = vmul.f32 %v4385_v46, %v2072_v43  ;;  %v3669_v50 = vpop.f32.mrf.mxu0  ;;  %v3797_v51 = vpop.f32.mrf.mxu1  ;;  %v4764_v43 = vld [vmem:[%s5236_s3] ss:$0 sm:$0xff] }
 0x156   : > { %2977 = vst [vmem:[%s4402_s21 + $0x178] sm:$0xff] %v2721_v44  ;;  %3105 = vst [vmem:[%s4402_s21 + $0x578] sm:$0xff] %v2849_v45  ;;  %v2719_v52 = vadd.f32 %v4392_v48, %v2457_v47  ;;  %v2462_v54 = vmul.f32 %v3669_v50, %v4385_v46  ;;  %v2590_v55 = vmul.f32 %v3797_v51, %v4385_v46  ;;  %v4770_v45 = vld [vmem:[%s5235_s2] ss:$0 sm:$0xff] }
 0x157   : > { %v2847_v53 = vadd.f32 %v4392_v48, %v2585_v49  ;;  %v1573_v56 = vpop.f32.mrf.mxu0  ;;  %v2085_v57 = vpop.f32.mrf.mxu1 }
 0x158   : > { %2975 = vst [vmem:[%s4402_s21 + $0x168] sm:$0xff] %v2719_v52  ;;  %v2724_v58 = vadd.f32 %v4392_v48, %v2462_v54  ;;  %v2852_v59 = vadd.f32 %v4392_v48, %v2590_v55  ;;  %v2460_v60 = vmul.f32 %v4385_v46, %v1573_v56  ;;  %v2588_v61 = vmul.f32 %v4385_v46, %v2085_v57 }
 0x159   : > { %3103 = vst [vmem:[%s4402_s21 + $0x568] sm:$0xff] %v2847_v53  ;;  %v3670_v62 = vpop.f32.mrf.mxu0  ;;  %v3798_v63 = vpop.f32.mrf.mxu1 }
 0x15a   : > { %2980 = vst [vmem:[%s4402_s21 + $0x190] sm:$0xff] %v2724_v58  ;;  %3108 = vst [vmem:[%s4402_s21 + $0x590] sm:$0xff] %v2852_v59  ;;  %v2722_v0 = vadd.f32 %v4392_v48, %v2460_v60  ;;  %v2850_v1 = vadd.f32 %v4392_v48, %v2588_v61  ;;  %v2463_v2 = vmul.f32 %v3670_v62, %v4385_v46 }
 0x15b   : > { %v2591_v3 = vmul.f32 %v3798_v63, %v4385_v46  ;;  %v1576_v4 = vpop.f32.mrf.mxu0  ;;  %v2088_v5 = vpop.f32.mrf.mxu1 }
 0x15c   : > { %2978 = vst [vmem:[%s4402_s21 + $0x180] sm:$0xff] %v2722_v0  ;;  %3106 = vst [vmem:[%s4402_s21 + $0x580] sm:$0xff] %v2850_v1  ;;  %v2725_v6 = vadd.f32 %v4392_v48, %v2463_v2  ;;  %v2461_v8 = vmul.f32 %v4385_v46, %v1576_v4  ;;  %v2589_v9 = vmul.f32 %v4385_v46, %v2088_v5 }
 0x15d   : > { %v2853_v7 = vadd.f32 %v4392_v48, %v2591_v3  ;;  %v3673_v10 = vpop.f32.mrf.mxu0  ;;  %v3801_v11 = vpop.f32.mrf.mxu1 }
 0x15e   : > { %2981 = vst [vmem:[%s4402_s21 + $0x198] sm:$0xff] %v2725_v6  ;;  %v2723_v12 = vadd.f32 %v4392_v48, %v2461_v8  ;;  %v2851_v13 = vadd.f32 %v4392_v48, %v2589_v9  ;;  %v2466_v14 = vmul.f32 %v3673_v10, %v4385_v46  ;;  %v2594_v15 = vmul.f32 %v3801_v11, %v4385_v46 }
 0x15f   : > { %3109 = vst [vmem:[%s4402_s21 + $0x598] sm:$0xff] %v2853_v7  ;;  %v1589_v16 = vpop.f32.mrf.mxu0  ;;  %v2101_v17 = vpop.f32.mrf.mxu1 }
 0x160   : > { %2979 = vst [vmem:[%s4402_s21 + $0x188] sm:$0xff] %v2723_v12  ;;  %3107 = vst [vmem:[%s4402_s21 + $0x588] sm:$0xff] %v2851_v13  ;;  %v2728_v18 = vadd.f32 %v4392_v48, %v2466_v14  ;;  %v2856_v19 = vadd.f32 %v4392_v48, %v2594_v15  ;;  %v2464_v20 = vmul.f32 %v4385_v46, %v1589_v16 }
 0x161   : > { %v2592_v21 = vmul.f32 %v4385_v46, %v2101_v17  ;;  %v3674_v22 = vpop.f32.mrf.mxu0  ;;  %v3802_v23 = vpop.f32.mrf.mxu1 }
 0x162   : > { %2984 = vst [vmem:[%s4402_s21 + $0x1b0] sm:$0xff] %v2728_v18  ;;  %3112 = vst [vmem:[%s4402_s21 + $0x5b0] sm:$0xff] %v2856_v19  ;;  %v2726_v24 = vadd.f32 %v4392_v48, %v2464_v20  ;;  %v2467_v26 = vmul.f32 %v3674_v22, %v4385_v46  ;;  %v2595_v27 = vmul.f32 %v3802_v23, %v4385_v46 }
 0x163   : > { %v2854_v25 = vadd.f32 %v4392_v48, %v2592_v21  ;;  %v1592_v28 = vpop.f32.mrf.mxu0  ;;  %v2104_v29 = vpop.f32.mrf.mxu1 }
 0x164   : > { %2982 = vst [vmem:[%s4402_s21 + $0x1a0] sm:$0xff] %v2726_v24  ;;  %v2729_v30 = vadd.f32 %v4392_v48, %v2467_v26  ;;  %v2857_v31 = vadd.f32 %v4392_v48, %v2595_v27  ;;  %v2465_v32 = vmul.f32 %v4385_v46, %v1592_v28  ;;  %v2593_v33 = vmul.f32 %v4385_v46, %v2104_v29 }
 0x165   : > { %3110 = vst [vmem:[%s4402_s21 + $0x5a0] sm:$0xff] %v2854_v25  ;;  %v3677_v34 = vpop.f32.mrf.mxu0  ;;  %v3805_v35 = vpop.f32.mrf.mxu1 }
 0x166   : > { %2985 = vst [vmem:[%s4402_s21 + $0x1b8] sm:$0xff] %v2729_v30  ;;  %3113 = vst [vmem:[%s4402_s21 + $0x5b8] sm:$0xff] %v2857_v31  ;;  %v2727_v36 = vadd.f32 %v4392_v48, %v2465_v32  ;;  %v2855_v37 = vadd.f32 %v4392_v48, %v2593_v33  ;;  %v2470_v38 = vmul.f32 %v3677_v34, %v4385_v46 }
 0x167   : > { %v2598_v39 = vmul.f32 %v3805_v35, %v4385_v46  ;;  %v1605_v40 = vpop.f32.mrf.mxu0  ;;  %v2117_v41 = vpop.f32.mrf.mxu1 }
 0x168   : > { %2983 = vst [vmem:[%s4402_s21 + $0x1a8] sm:$0xff] %v2727_v36  ;;  %3111 = vst [vmem:[%s4402_s21 + $0x5a8] sm:$0xff] %v2855_v37  ;;  %v2732_v42 = vadd.f32 %v4392_v48, %v2470_v38  ;;  %v2468_v46 = vmul.f32 %v4770_v45, %v1605_v40  ;;  %v2596_v47 = vmul.f32 %v4770_v45, %v2117_v41 }
 0x169   : > { %v2860_v44 = vadd.f32 %v4764_v43, %v2598_v39  ;;  %v3678_v49 = vpop.f32.mrf.mxu0  ;;  %v3806_v48 = vpop.f32.mrf.mxu1 }
 0x16a   : > { %2988 = vst [vmem:[%s4402_s21 + $0x1d0] sm:$0xff] %v2732_v42  ;;  %v2730_v50 = vadd.f32 %v4764_v43, %v2468_v46  ;;  %v2858_v51 = vadd.f32 %v4764_v43, %v2596_v47  ;;  %v2471_v52 = vmul.f32 %v4770_v45, %v3678_v49  ;;  %v2599_v53 = vmul.f32 %v4770_v45, %v3806_v48 }
 0x16b   : > { %3116 = vst [vmem:[%s4402_s21 + $0x5d0] sm:$0xff] %v2860_v44  ;;  %v1608_v54 = vpop.f32.mrf.mxu0  ;;  %v2120_v55 = vpop.f32.mrf.mxu1 }
 0x16c   : > { %2986 = vst [vmem:[%s4402_s21 + $0x1c0] sm:$0xff] %v2730_v50  ;;  %3114 = vst [vmem:[%s4402_s21 + $0x5c0] sm:$0xff] %v2858_v51  ;;  %v2733_v56 = vadd.f32 %v4764_v43, %v2471_v52  ;;  %v2861_v57 = vadd.f32 %v4764_v43, %v2599_v53  ;;  %v2469_v58 = vmul.f32 %v4770_v45, %v1608_v54 }
 0x16d   : > { %v2597_v59 = vmul.f32 %v4770_v45, %v2120_v55  ;;  %v3681_v60 = vpop.f32.mrf.mxu0  ;;  %v3809_v61 = vpop.f32.mrf.mxu1 }
 0x16e   : > { %2989 = vst [vmem:[%s4402_s21 + $0x1d8] sm:$0xff] %v2733_v56  ;;  %3117 = vst [vmem:[%s4402_s21 + $0x5d8] sm:$0xff] %v2861_v57  ;;  %v2731_v62 = vadd.f32 %v4764_v43, %v2469_v58  ;;  %v2474_v0 = vmul.f32 %v4770_v45, %v3681_v60  ;;  %v2602_v1 = vmul.f32 %v4770_v45, %v3809_v61 }
 0x16f   : > { %v2859_v63 = vadd.f32 %v4764_v43, %v2597_v59  ;;  %v1621_v2 = vpop.f32.mrf.mxu0  ;;  %v2133_v3 = vpop.f32.mrf.mxu1 }
 0x170   : > { %2987 = vst [vmem:[%s4402_s21 + $0x1c8] sm:$0xff] %v2731_v62  ;;  %v2736_v4 = vadd.f32 %v4764_v43, %v2474_v0  ;;  %v2864_v5 = vadd.f32 %v4764_v43, %v2602_v1  ;;  %v2472_v6 = vmul.f32 %v4770_v45, %v1621_v2  ;;  %v2600_v7 = vmul.f32 %v4770_v45, %v2133_v3 }
 0x171   : > { %3115 = vst [vmem:[%s4402_s21 + $0x5c8] sm:$0xff] %v2859_v63  ;;  %v3682_v8 = vpop.f32.mrf.mxu0  ;;  %v3810_v9 = vpop.f32.mrf.mxu1 }
 0x172   : > { %2992 = vst [vmem:[%s4402_s21 + $0x1f0] sm:$0xff] %v2736_v4  ;;  %3120 = vst [vmem:[%s4402_s21 + $0x5f0] sm:$0xff] %v2864_v5  ;;  %v2734_v10 = vadd.f32 %v4764_v43, %v2472_v6  ;;  %v2862_v11 = vadd.f32 %v4764_v43, %v2600_v7  ;;  %v2475_v12 = vmul.f32 %v4770_v45, %v3682_v8 }
 0x173   : > { %v2603_v13 = vmul.f32 %v4770_v45, %v3810_v9  ;;  %v1624_v14 = vpop.f32.mrf.mxu0  ;;  %v2136_v15 = vpop.f32.mrf.mxu1 }
 0x174   : > { %2990 = vst [vmem:[%s4402_s21 + $0x1e0] sm:$0xff] %v2734_v10  ;;  %3118 = vst [vmem:[%s4402_s21 + $0x5e0] sm:$0xff] %v2862_v11  ;;  %v2737_v16 = vadd.f32 %v4764_v43, %v2475_v12  ;;  %v2473_v18 = vmul.f32 %v4770_v45, %v1624_v14  ;;  %v2601_v19 = vmul.f32 %v4770_v45, %v2136_v15 }
 0x175   : > { %v2865_v17 = vadd.f32 %v4764_v43, %v2603_v13  ;;  %v3685_v20 = vpop.f32.mrf.mxu0  ;;  %v3813_v21 = vpop.f32.mrf.mxu1 }
 0x176   : > { %2993 = vst [vmem:[%s4402_s21 + $0x1f8] sm:$0xff] %v2737_v16  ;;  %v2735_v22 = vadd.f32 %v4764_v43, %v2473_v18  ;;  %v2863_v23 = vadd.f32 %v4764_v43, %v2601_v19  ;;  %v2478_v24 = vmul.f32 %v4770_v45, %v3685_v20  ;;  %v2606_v25 = vmul.f32 %v4770_v45, %v3813_v21 }
 0x177   : > { %3121 = vst [vmem:[%s4402_s21 + $0x5f8] sm:$0xff] %v2865_v17  ;;  %v1637_v26 = vpop.f32.mrf.mxu0  ;;  %v2149_v27 = vpop.f32.mrf.mxu1 }
 0x178   : > { %2991 = vst [vmem:[%s4402_s21 + $0x1e8] sm:$0xff] %v2735_v22  ;;  %3119 = vst [vmem:[%s4402_s21 + $0x5e8] sm:$0xff] %v2863_v23  ;;  %v2740_v28 = vadd.f32 %v4764_v43, %v2478_v24  ;;  %v2868_v29 = vadd.f32 %v4764_v43, %v2606_v25  ;;  %v2476_v30 = vmul.f32 %v4770_v45, %v1637_v26 }
 0x179   : > { %v2604_v31 = vmul.f32 %v4770_v45, %v2149_v27  ;;  %v3686_v32 = vpop.f32.mrf.mxu0  ;;  %v3814_v33 = vpop.f32.mrf.mxu1 }
 0x17a   : > { %2996 = vst [vmem:[%s4402_s21 + $0x210] sm:$0xff] %v2740_v28  ;;  %3124 = vst [vmem:[%s4402_s21 + $0x610] sm:$0xff] %v2868_v29  ;;  %v2738_v34 = vadd.f32 %v4764_v43, %v2476_v30  ;;  %v2479_v36 = vmul.f32 %v4770_v45, %v3686_v32  ;;  %v2607_v37 = vmul.f32 %v4770_v45, %v3814_v33 }
 0x17b   : > { %v2866_v35 = vadd.f32 %v4764_v43, %v2604_v31  ;;  %v1640_v38 = vpop.f32.mrf.mxu0  ;;  %v2152_v39 = vpop.f32.mrf.mxu1 }
 0x17c   : > { %2994 = vst [vmem:[%s4402_s21 + $0x200] sm:$0xff] %v2738_v34  ;;  %v2741_v40 = vadd.f32 %v4764_v43, %v2479_v36  ;;  %v2869_v41 = vadd.f32 %v4764_v43, %v2607_v37  ;;  %v2477_v42 = vmul.f32 %v4770_v45, %v1640_v38  ;;  %v2605_v44 = vmul.f32 %v4770_v45, %v2152_v39 }
 0x17d   : > { %3122 = vst [vmem:[%s4402_s21 + $0x600] sm:$0xff] %v2866_v35  ;;  %v3689_v46 = vpop.f32.mrf.mxu0  ;;  %v3817_v47 = vpop.f32.mrf.mxu1 }
 0x17e   : > { %2997 = vst [vmem:[%s4402_s21 + $0x218] sm:$0xff] %v2741_v40  ;;  %3125 = vst [vmem:[%s4402_s21 + $0x618] sm:$0xff] %v2869_v41  ;;  %v2739_v49 = vadd.f32 %v4764_v43, %v2477_v42  ;;  %v2867_v48 = vadd.f32 %v4764_v43, %v2605_v44  ;;  %v2482_v50 = vmul.f32 %v4770_v45, %v3689_v46 }
 0x17f   : > { %v2610_v51 = vmul.f32 %v4770_v45, %v3817_v47  ;;  %v1653_v52 = vpop.f32.mrf.mxu0  ;;  %v2165_v53 = vpop.f32.mrf.mxu1 }
 0x180   : > { %2995 = vst [vmem:[%s4402_s21 + $0x208] sm:$0xff] %v2739_v49  ;;  %3123 = vst [vmem:[%s4402_s21 + $0x608] sm:$0xff] %v2867_v48  ;;  %v2744_v54 = vadd.f32 %v4764_v43, %v2482_v50  ;;  %v2480_v56 = vmul.f32 %v4770_v45, %v1653_v52  ;;  %v2608_v57 = vmul.f32 %v4770_v45, %v2165_v53 }
 0x181   : > { %v2872_v55 = vadd.f32 %v4764_v43, %v2610_v51  ;;  %v3690_v58 = vpop.f32.mrf.mxu0  ;;  %v3818_v59 = vpop.f32.mrf.mxu1 }
 0x182   : > { %3000 = vst [vmem:[%s4402_s21 + $0x230] sm:$0xff] %v2744_v54  ;;  %v2742_v60 = vadd.f32 %v4764_v43, %v2480_v56  ;;  %v2870_v61 = vadd.f32 %v4764_v43, %v2608_v57  ;;  %v2483_v62 = vmul.f32 %v4770_v45, %v3690_v58  ;;  %v2611_v63 = vmul.f32 %v4770_v45, %v3818_v59 }
 0x183   : > { %3128 = vst [vmem:[%s4402_s21 + $0x630] sm:$0xff] %v2872_v55  ;;  %v1656_v0 = vpop.f32.mrf.mxu0  ;;  %v2168_v1 = vpop.f32.mrf.mxu1 }
 0x184   : > { %2998 = vst [vmem:[%s4402_s21 + $0x220] sm:$0xff] %v2742_v60  ;;  %3126 = vst [vmem:[%s4402_s21 + $0x620] sm:$0xff] %v2870_v61  ;;  %v2745_v2 = vadd.f32 %v4764_v43, %v2483_v62  ;;  %v2873_v3 = vadd.f32 %v4764_v43, %v2611_v63  ;;  %v2481_v4 = vmul.f32 %v4770_v45, %v1656_v0 }
 0x185   : > { %v2609_v5 = vmul.f32 %v4770_v45, %v2168_v1  ;;  %v3693_v6 = vpop.f32.mrf.mxu0  ;;  %v3821_v7 = vpop.f32.mrf.mxu1 }
 0x186   : > { %3001 = vst [vmem:[%s4402_s21 + $0x238] sm:$0xff] %v2745_v2  ;;  %3129 = vst [vmem:[%s4402_s21 + $0x638] sm:$0xff] %v2873_v3  ;;  %v2743_v8 = vadd.f32 %v4764_v43, %v2481_v4  ;;  %v2486_v10 = vmul.f32 %v4770_v45, %v3693_v6  ;;  %v2614_v11 = vmul.f32 %v4770_v45, %v3821_v7 }
 0x187   : > { %v2871_v9 = vadd.f32 %v4764_v43, %v2609_v5  ;;  %v1669_v12 = vpop.f32.mrf.mxu0  ;;  %v2181_v13 = vpop.f32.mrf.mxu1 }
 0x188   : > { %2999 = vst [vmem:[%s4402_s21 + $0x228] sm:$0xff] %v2743_v8  ;;  %v2748_v14 = vadd.f32 %v4764_v43, %v2486_v10  ;;  %v2876_v15 = vadd.f32 %v4764_v43, %v2614_v11  ;;  %v2484_v16 = vmul.f32 %v4770_v45, %v1669_v12  ;;  %v2612_v17 = vmul.f32 %v4770_v45, %v2181_v13 }
 0x189   : > { %3127 = vst [vmem:[%s4402_s21 + $0x628] sm:$0xff] %v2871_v9  ;;  %v3694_v18 = vpop.f32.mrf.mxu0  ;;  %v3822_v19 = vpop.f32.mrf.mxu1 }
 0x18a   : > { %3004 = vst [vmem:[%s4402_s21 + $0x250] sm:$0xff] %v2748_v14  ;;  %3132 = vst [vmem:[%s4402_s21 + $0x650] sm:$0xff] %v2876_v15  ;;  %v2746_v20 = vadd.f32 %v4764_v43, %v2484_v16  ;;  %v2874_v21 = vadd.f32 %v4764_v43, %v2612_v17  ;;  %v2487_v22 = vmul.f32 %v4770_v45, %v3694_v18 }
 0x18b   : > { %v2615_v23 = vmul.f32 %v4770_v45, %v3822_v19  ;;  %v1672_v24 = vpop.f32.mrf.mxu0  ;;  %v2184_v25 = vpop.f32.mrf.mxu1 }
 0x18c   : > { %3002 = vst [vmem:[%s4402_s21 + $0x240] sm:$0xff] %v2746_v20  ;;  %3130 = vst [vmem:[%s4402_s21 + $0x640] sm:$0xff] %v2874_v21  ;;  %v2749_v26 = vadd.f32 %v4764_v43, %v2487_v22  ;;  %v2485_v28 = vmul.f32 %v4770_v45, %v1672_v24  ;;  %v2613_v29 = vmul.f32 %v4770_v45, %v2184_v25 }
 0x18d   : > { %v2877_v27 = vadd.f32 %v4764_v43, %v2615_v23  ;;  %v3697_v30 = vpop.f32.mrf.mxu0  ;;  %v3825_v31 = vpop.f32.mrf.mxu1 }
 0x18e   : > { %3005 = vst [vmem:[%s4402_s21 + $0x258] sm:$0xff] %v2749_v26  ;;  %v2747_v32 = vadd.f32 %v4764_v43, %v2485_v28  ;;  %v2875_v33 = vadd.f32 %v4764_v43, %v2613_v29  ;;  %v2490_v34 = vmul.f32 %v4770_v45, %v3697_v30  ;;  %v2618_v35 = vmul.f32 %v4770_v45, %v3825_v31 }
 0x18f   : > { %3133 = vst [vmem:[%s4402_s21 + $0x658] sm:$0xff] %v2877_v27  ;;  %v1685_v36 = vpop.f32.mrf.mxu0  ;;  %v2197_v37 = vpop.f32.mrf.mxu1 }
 0x190   : > { %3003 = vst [vmem:[%s4402_s21 + $0x248] sm:$0xff] %v2747_v32  ;;  %3131 = vst [vmem:[%s4402_s21 + $0x648] sm:$0xff] %v2875_v33  ;;  %v2752_v38 = vadd.f32 %v4764_v43, %v2490_v34  ;;  %v2880_v39 = vadd.f32 %v4764_v43, %v2618_v35  ;;  %v2488_v40 = vmul.f32 %v4770_v45, %v1685_v36 }
 0x191   : > { %v2616_v41 = vmul.f32 %v4770_v45, %v2197_v37  ;;  %v3698_v42 = vpop.f32.mrf.mxu0  ;;  %v3826_v44 = vpop.f32.mrf.mxu1 }
 0x192   : > { %3008 = vst [vmem:[%s4402_s21 + $0x270] sm:$0xff] %v2752_v38  ;;  %3136 = vst [vmem:[%s4402_s21 + $0x670] sm:$0xff] %v2880_v39  ;;  %v2750_v46 = vadd.f32 %v4764_v43, %v2488_v40  ;;  %v2491_v49 = vmul.f32 %v4770_v45, %v3698_v42  ;;  %v2619_v48 = vmul.f32 %v4770_v45, %v3826_v44 }
 0x193   : > { %v2878_v47 = vadd.f32 %v4764_v43, %v2616_v41  ;;  %v1688_v50 = vpop.f32.mrf.mxu0  ;;  %v2200_v51 = vpop.f32.mrf.mxu1 }
 0x194   : > { %3006 = vst [vmem:[%s4402_s21 + $0x260] sm:$0xff] %v2750_v46  ;;  %v2753_v52 = vadd.f32 %v4764_v43, %v2491_v49  ;;  %v2881_v53 = vadd.f32 %v4764_v43, %v2619_v48  ;;  %v2489_v54 = vmul.f32 %v4770_v45, %v1688_v50  ;;  %v2617_v55 = vmul.f32 %v4770_v45, %v2200_v51 }
 0x195   : > { %3134 = vst [vmem:[%s4402_s21 + $0x660] sm:$0xff] %v2878_v47  ;;  %v3701_v56 = vpop.f32.mrf.mxu0  ;;  %v3829_v57 = vpop.f32.mrf.mxu1 }
 0x196   : > { %3009 = vst [vmem:[%s4402_s21 + $0x278] sm:$0xff] %v2753_v52  ;;  %3137 = vst [vmem:[%s4402_s21 + $0x678] sm:$0xff] %v2881_v53  ;;  %v2751_v58 = vadd.f32 %v4764_v43, %v2489_v54  ;;  %v2879_v59 = vadd.f32 %v4764_v43, %v2617_v55  ;;  %v2494_v60 = vmul.f32 %v4770_v45, %v3701_v56 }
 0x197   : > { %v2622_v61 = vmul.f32 %v4770_v45, %v3829_v57  ;;  %v1701_v62 = vpop.f32.mrf.mxu0  ;;  %v2213_v63 = vpop.f32.mrf.mxu1 }
 0x198   : > { %3007 = vst [vmem:[%s4402_s21 + $0x268] sm:$0xff] %v2751_v58  ;;  %3135 = vst [vmem:[%s4402_s21 + $0x668] sm:$0xff] %v2879_v59  ;;  %v2756_v0 = vadd.f32 %v4764_v43, %v2494_v60  ;;  %v2492_v2 = vmul.f32 %v4770_v45, %v1701_v62  ;;  %v2620_v3 = vmul.f32 %v4770_v45, %v2213_v63 }
 0x199   : > { %v2884_v1 = vadd.f32 %v4764_v43, %v2622_v61  ;;  %v3702_v4 = vpop.f32.mrf.mxu0  ;;  %v3830_v5 = vpop.f32.mrf.mxu1 }
 0x19a   : > { %3012 = vst [vmem:[%s4402_s21 + $0x290] sm:$0xff] %v2756_v0  ;;  %v2754_v6 = vadd.f32 %v4764_v43, %v2492_v2  ;;  %v2882_v7 = vadd.f32 %v4764_v43, %v2620_v3  ;;  %v2495_v8 = vmul.f32 %v4770_v45, %v3702_v4  ;;  %v2623_v9 = vmul.f32 %v4770_v45, %v3830_v5 }
 0x19b   : > { %3140 = vst [vmem:[%s4402_s21 + $0x690] sm:$0xff] %v2884_v1  ;;  %v1704_v10 = vpop.f32.mrf.mxu0  ;;  %v2216_v11 = vpop.f32.mrf.mxu1 }
 0x19c   : > { %3010 = vst [vmem:[%s4402_s21 + $0x280] sm:$0xff] %v2754_v6  ;;  %3138 = vst [vmem:[%s4402_s21 + $0x680] sm:$0xff] %v2882_v7  ;;  %v2757_v12 = vadd.f32 %v4764_v43, %v2495_v8  ;;  %v2885_v13 = vadd.f32 %v4764_v43, %v2623_v9  ;;  %v2493_v14 = vmul.f32 %v4770_v45, %v1704_v10 }
 0x19d   : > { %v2621_v15 = vmul.f32 %v4770_v45, %v2216_v11  ;;  %v3705_v16 = vpop.f32.mrf.mxu0  ;;  %v3833_v17 = vpop.f32.mrf.mxu1 }
 0x19e   : > { %3013 = vst [vmem:[%s4402_s21 + $0x298] sm:$0xff] %v2757_v12  ;;  %3141 = vst [vmem:[%s4402_s21 + $0x698] sm:$0xff] %v2885_v13  ;;  %v2755_v18 = vadd.f32 %v4764_v43, %v2493_v14  ;;  %v2498_v20 = vmul.f32 %v4770_v45, %v3705_v16  ;;  %v2626_v21 = vmul.f32 %v4770_v45, %v3833_v17 }
 0x19f   : > { %v2883_v19 = vadd.f32 %v4764_v43, %v2621_v15  ;;  %v1717_v22 = vpop.f32.mrf.mxu0  ;;  %v2229_v23 = vpop.f32.mrf.mxu1 }
 0x1a0   : > { %3011 = vst [vmem:[%s4402_s21 + $0x288] sm:$0xff] %v2755_v18  ;;  %v2760_v24 = vadd.f32 %v4764_v43, %v2498_v20  ;;  %v2888_v25 = vadd.f32 %v4764_v43, %v2626_v21  ;;  %v2496_v26 = vmul.f32 %v4770_v45, %v1717_v22  ;;  %v2624_v27 = vmul.f32 %v4770_v45, %v2229_v23 }
 0x1a1   : > { %3139 = vst [vmem:[%s4402_s21 + $0x688] sm:$0xff] %v2883_v19  ;;  %v3706_v28 = vpop.f32.mrf.mxu0  ;;  %v3834_v29 = vpop.f32.mrf.mxu1 }
 0x1a2   : > { %3016 = vst [vmem:[%s4402_s21 + $0x2b0] sm:$0xff] %v2760_v24  ;;  %3144 = vst [vmem:[%s4402_s21 + $0x6b0] sm:$0xff] %v2888_v25  ;;  %v2758_v30 = vadd.f32 %v4764_v43, %v2496_v26  ;;  %v2886_v31 = vadd.f32 %v4764_v43, %v2624_v27  ;;  %v2499_v32 = vmul.f32 %v4770_v45, %v3706_v28 }
 0x1a3   : > { %v2627_v33 = vmul.f32 %v4770_v45, %v3834_v29  ;;  %v1720_v34 = vpop.f32.mrf.mxu0  ;;  %v2232_v35 = vpop.f32.mrf.mxu1 }
 0x1a4   : > { %3014 = vst [vmem:[%s4402_s21 + $0x2a0] sm:$0xff] %v2758_v30  ;;  %3142 = vst [vmem:[%s4402_s21 + $0x6a0] sm:$0xff] %v2886_v31  ;;  %v2761_v36 = vadd.f32 %v4764_v43, %v2499_v32  ;;  %v2497_v38 = vmul.f32 %v4770_v45, %v1720_v34  ;;  %v2625_v39 = vmul.f32 %v4770_v45, %v2232_v35 }
 0x1a5   : > { %v2889_v37 = vadd.f32 %v4764_v43, %v2627_v33  ;;  %v3709_v40 = vpop.f32.mrf.mxu0  ;;  %v3837_v41 = vpop.f32.mrf.mxu1 }
 0x1a6   : > { %3017 = vst [vmem:[%s4402_s21 + $0x2b8] sm:$0xff] %v2761_v36  ;;  %v2759_v42 = vadd.f32 %v4764_v43, %v2497_v38  ;;  %v2887_v44 = vadd.f32 %v4764_v43, %v2625_v39  ;;  %v2502_v46 = vmul.f32 %v4770_v45, %v3709_v40  ;;  %v2630_v47 = vmul.f32 %v4770_v45, %v3837_v41 }
 0x1a7   : > { %3145 = vst [vmem:[%s4402_s21 + $0x6b8] sm:$0xff] %v2889_v37  ;;  %v1733_v49 = vpop.f32.mrf.mxu0  ;;  %v2245_v48 = vpop.f32.mrf.mxu1 }
 0x1a8   : > { %3015 = vst [vmem:[%s4402_s21 + $0x2a8] sm:$0xff] %v2759_v42  ;;  %3143 = vst [vmem:[%s4402_s21 + $0x6a8] sm:$0xff] %v2887_v44  ;;  %v2764_v50 = vadd.f32 %v4764_v43, %v2502_v46  ;;  %v2892_v51 = vadd.f32 %v4764_v43, %v2630_v47  ;;  %v2500_v52 = vmul.f32 %v4770_v45, %v1733_v49 }
 0x1a9   : > { %v2628_v53 = vmul.f32 %v4770_v45, %v2245_v48  ;;  %v3710_v54 = vpop.f32.mrf.mxu0  ;;  %v3838_v55 = vpop.f32.mrf.mxu1 }
 0x1aa   : > { %3020 = vst [vmem:[%s4402_s21 + $0x2d0] sm:$0xff] %v2764_v50  ;;  %3148 = vst [vmem:[%s4402_s21 + $0x6d0] sm:$0xff] %v2892_v51  ;;  %v2762_v56 = vadd.f32 %v4764_v43, %v2500_v52  ;;  %v2503_v58 = vmul.f32 %v4770_v45, %v3710_v54  ;;  %v2631_v59 = vmul.f32 %v4770_v45, %v3838_v55 }
 0x1ab   : > { %v2890_v57 = vadd.f32 %v4764_v43, %v2628_v53  ;;  %v1736_v60 = vpop.f32.mrf.mxu0  ;;  %v2248_v61 = vpop.f32.mrf.mxu1 }
 0x1ac   : > { %3018 = vst [vmem:[%s4402_s21 + $0x2c0] sm:$0xff] %v2762_v56  ;;  %v2765_v62 = vadd.f32 %v4764_v43, %v2503_v58  ;;  %v2893_v63 = vadd.f32 %v4764_v43, %v2631_v59  ;;  %v2501_v0 = vmul.f32 %v4770_v45, %v1736_v60  ;;  %v2629_v1 = vmul.f32 %v4770_v45, %v2248_v61 }
 0x1ad   : > { %3146 = vst [vmem:[%s4402_s21 + $0x6c0] sm:$0xff] %v2890_v57  ;;  %v3713_v2 = vpop.f32.mrf.mxu0  ;;  %v3841_v3 = vpop.f32.mrf.mxu1 }
 0x1ae   : > { %3021 = vst [vmem:[%s4402_s21 + $0x2d8] sm:$0xff] %v2765_v62  ;;  %3149 = vst [vmem:[%s4402_s21 + $0x6d8] sm:$0xff] %v2893_v63  ;;  %v2763_v4 = vadd.f32 %v4764_v43, %v2501_v0  ;;  %v2891_v5 = vadd.f32 %v4764_v43, %v2629_v1  ;;  %v2506_v6 = vmul.f32 %v4770_v45, %v3713_v2 }
 0x1af   : > { %v2634_v7 = vmul.f32 %v4770_v45, %v3841_v3  ;;  %v1749_v8 = vpop.f32.mrf.mxu0  ;;  %v2261_v9 = vpop.f32.mrf.mxu1 }
 0x1b0   : > { %3019 = vst [vmem:[%s4402_s21 + $0x2c8] sm:$0xff] %v2763_v4  ;;  %3147 = vst [vmem:[%s4402_s21 + $0x6c8] sm:$0xff] %v2891_v5  ;;  %v2768_v10 = vadd.f32 %v4764_v43, %v2506_v6  ;;  %v2504_v12 = vmul.f32 %v4770_v45, %v1749_v8  ;;  %v2632_v13 = vmul.f32 %v4770_v45, %v2261_v9 }
 0x1b1   : > { %v2896_v11 = vadd.f32 %v4764_v43, %v2634_v7  ;;  %v3714_v14 = vpop.f32.mrf.mxu0  ;;  %v3842_v15 = vpop.f32.mrf.mxu1 }
 0x1b2   : > { %3024 = vst [vmem:[%s4402_s21 + $0x2f0] sm:$0xff] %v2768_v10  ;;  %v2766_v16 = vadd.f32 %v4764_v43, %v2504_v12  ;;  %v2894_v17 = vadd.f32 %v4764_v43, %v2632_v13  ;;  %v2507_v18 = vmul.f32 %v4770_v45, %v3714_v14  ;;  %v2635_v19 = vmul.f32 %v4770_v45, %v3842_v15 }
 0x1b3   : > { %3152 = vst [vmem:[%s4402_s21 + $0x6f0] sm:$0xff] %v2896_v11  ;;  %v1752_v20 = vpop.f32.mrf.mxu0  ;;  %v2264_v21 = vpop.f32.mrf.mxu1 }
 0x1b4   : > { %3022 = vst [vmem:[%s4402_s21 + $0x2e0] sm:$0xff] %v2766_v16  ;;  %3150 = vst [vmem:[%s4402_s21 + $0x6e0] sm:$0xff] %v2894_v17  ;;  %v2769_v22 = vadd.f32 %v4764_v43, %v2507_v18  ;;  %v2897_v23 = vadd.f32 %v4764_v43, %v2635_v19  ;;  %v2505_v24 = vmul.f32 %v4770_v45, %v1752_v20 }
 0x1b5   : > { %v2633_v25 = vmul.f32 %v4770_v45, %v2264_v21  ;;  %v3717_v26 = vpop.f32.mrf.mxu0  ;;  %v3845_v27 = vpop.f32.mrf.mxu1 }
 0x1b6   : > { %3025 = vst [vmem:[%s4402_s21 + $0x2f8] sm:$0xff] %v2769_v22  ;;  %3153 = vst [vmem:[%s4402_s21 + $0x6f8] sm:$0xff] %v2897_v23  ;;  %v2767_v28 = vadd.f32 %v4764_v43, %v2505_v24  ;;  %v2510_v30 = vmul.f32 %v4770_v45, %v3717_v26  ;;  %v2638_v31 = vmul.f32 %v4770_v45, %v3845_v27 }
 0x1b7   : > { %v2895_v29 = vadd.f32 %v4764_v43, %v2633_v25  ;;  %v1765_v32 = vpop.f32.mrf.mxu0  ;;  %v2277_v33 = vpop.f32.mrf.mxu1 }
 0x1b8   : > { %3023 = vst [vmem:[%s4402_s21 + $0x2e8] sm:$0xff] %v2767_v28  ;;  %v2772_v34 = vadd.f32 %v4764_v43, %v2510_v30  ;;  %v2900_v35 = vadd.f32 %v4764_v43, %v2638_v31  ;;  %v2508_v36 = vmul.f32 %v4770_v45, %v1765_v32  ;;  %v2636_v37 = vmul.f32 %v4770_v45, %v2277_v33 }
 0x1b9   : > { %3151 = vst [vmem:[%s4402_s21 + $0x6e8] sm:$0xff] %v2895_v29  ;;  %v3718_v38 = vpop.f32.mrf.mxu0  ;;  %v3846_v39 = vpop.f32.mrf.mxu1 }
 0x1ba   : > { %3028 = vst [vmem:[%s4402_s21 + $0x310] sm:$0xff] %v2772_v34  ;;  %3156 = vst [vmem:[%s4402_s21 + $0x710] sm:$0xff] %v2900_v35  ;;  %v2770_v40 = vadd.f32 %v4764_v43, %v2508_v36  ;;  %v2898_v41 = vadd.f32 %v4764_v43, %v2636_v37  ;;  %v2511_v42 = vmul.f32 %v4770_v45, %v3718_v38 }
 0x1bb   : > { %v2639_v44 = vmul.f32 %v4770_v45, %v3846_v39  ;;  %v1768_v46 = vpop.f32.mrf.mxu0  ;;  %v2280_v47 = vpop.f32.mrf.mxu1 }
 0x1bc   : > { %3026 = vst [vmem:[%s4402_s21 + $0x300] sm:$0xff] %v2770_v40  ;;  %3154 = vst [vmem:[%s4402_s21 + $0x700] sm:$0xff] %v2898_v41  ;;  %v2773_v49 = vadd.f32 %v4764_v43, %v2511_v42  ;;  %v2509_v50 = vmul.f32 %v4770_v45, %v1768_v46  ;;  %v2637_v51 = vmul.f32 %v4770_v45, %v2280_v47 }
 0x1bd   : > { %v2901_v48 = vadd.f32 %v4764_v43, %v2639_v44  ;;  %v3721_v52 = vpop.f32.mrf.mxu0  ;;  %v3849_v53 = vpop.f32.mrf.mxu1 }
 0x1be   : > { %3029 = vst [vmem:[%s4402_s21 + $0x318] sm:$0xff] %v2773_v49  ;;  %v2771_v54 = vadd.f32 %v4764_v43, %v2509_v50  ;;  %v2899_v55 = vadd.f32 %v4764_v43, %v2637_v51  ;;  %v2514_v56 = vmul.f32 %v4770_v45, %v3721_v52  ;;  %v2642_v57 = vmul.f32 %v4770_v45, %v3849_v53 }
 0x1bf   : > { %3157 = vst [vmem:[%s4402_s21 + $0x718] sm:$0xff] %v2901_v48  ;;  %v1781_v58 = vpop.f32.mrf.mxu0  ;;  %v2293_v59 = vpop.f32.mrf.mxu1 }
 0x1c0   : > { %3027 = vst [vmem:[%s4402_s21 + $0x308] sm:$0xff] %v2771_v54  ;;  %3155 = vst [vmem:[%s4402_s21 + $0x708] sm:$0xff] %v2899_v55  ;;  %v2776_v60 = vadd.f32 %v4764_v43, %v2514_v56  ;;  %v2904_v61 = vadd.f32 %v4764_v43, %v2642_v57  ;;  %v2512_v62 = vmul.f32 %v4770_v45, %v1781_v58 }
 0x1c1   : > { %v2640_v63 = vmul.f32 %v4770_v45, %v2293_v59  ;;  %v3722_v0 = vpop.f32.mrf.mxu0  ;;  %v3850_v1 = vpop.f32.mrf.mxu1 }
 0x1c2   : > { %3032 = vst [vmem:[%s4402_s21 + $0x330] sm:$0xff] %v2776_v60  ;;  %3160 = vst [vmem:[%s4402_s21 + $0x730] sm:$0xff] %v2904_v61  ;;  %v2774_v2 = vadd.f32 %v4764_v43, %v2512_v62  ;;  %v2515_v4 = vmul.f32 %v4770_v45, %v3722_v0  ;;  %v2643_v5 = vmul.f32 %v4770_v45, %v3850_v1 }
 0x1c3   : > { %v2902_v3 = vadd.f32 %v4764_v43, %v2640_v63  ;;  %v1784_v6 = vpop.f32.mrf.mxu0  ;;  %v2296_v7 = vpop.f32.mrf.mxu1 }
 0x1c4   : > { %3030 = vst [vmem:[%s4402_s21 + $0x320] sm:$0xff] %v2774_v2  ;;  %v2777_v8 = vadd.f32 %v4764_v43, %v2515_v4  ;;  %v2905_v9 = vadd.f32 %v4764_v43, %v2643_v5  ;;  %v2513_v10 = vmul.f32 %v4770_v45, %v1784_v6  ;;  %v2641_v11 = vmul.f32 %v4770_v45, %v2296_v7 }
 0x1c5   : > { %3158 = vst [vmem:[%s4402_s21 + $0x720] sm:$0xff] %v2902_v3  ;;  %v3725_v12 = vpop.f32.mrf.mxu0  ;;  %v3853_v13 = vpop.f32.mrf.mxu1 }
 0x1c6   : > { %3033 = vst [vmem:[%s4402_s21 + $0x338] sm:$0xff] %v2777_v8  ;;  %3161 = vst [vmem:[%s4402_s21 + $0x738] sm:$0xff] %v2905_v9  ;;  %v2775_v14 = vadd.f32 %v4764_v43, %v2513_v10  ;;  %v2903_v15 = vadd.f32 %v4764_v43, %v2641_v11  ;;  %v2518_v16 = vmul.f32 %v4770_v45, %v3725_v12 }
 0x1c7   : > { %v2646_v17 = vmul.f32 %v4770_v45, %v3853_v13  ;;  %v1797_v18 = vpop.f32.mrf.mxu0  ;;  %v2309_v19 = vpop.f32.mrf.mxu1 }
 0x1c8   : > { %3031 = vst [vmem:[%s4402_s21 + $0x328] sm:$0xff] %v2775_v14  ;;  %3159 = vst [vmem:[%s4402_s21 + $0x728] sm:$0xff] %v2903_v15  ;;  %v2780_v20 = vadd.f32 %v4764_v43, %v2518_v16  ;;  %v2516_v22 = vmul.f32 %v4770_v45, %v1797_v18  ;;  %v2644_v23 = vmul.f32 %v4770_v45, %v2309_v19 }
 0x1c9   : > { %v2908_v21 = vadd.f32 %v4764_v43, %v2646_v17  ;;  %v3726_v24 = vpop.f32.mrf.mxu0  ;;  %v3854_v25 = vpop.f32.mrf.mxu1 }
 0x1ca   : > { %3036 = vst [vmem:[%s4402_s21 + $0x350] sm:$0xff] %v2780_v20  ;;  %v2778_v26 = vadd.f32 %v4764_v43, %v2516_v22  ;;  %v2906_v27 = vadd.f32 %v4764_v43, %v2644_v23  ;;  %v2519_v28 = vmul.f32 %v4770_v45, %v3726_v24  ;;  %v2647_v29 = vmul.f32 %v4770_v45, %v3854_v25 }
 0x1cb   : > { %3164 = vst [vmem:[%s4402_s21 + $0x750] sm:$0xff] %v2908_v21  ;;  %v1800_v30 = vpop.f32.mrf.mxu0  ;;  %v2312_v31 = vpop.f32.mrf.mxu1 }
 0x1cc   : > { %3034 = vst [vmem:[%s4402_s21 + $0x340] sm:$0xff] %v2778_v26  ;;  %3162 = vst [vmem:[%s4402_s21 + $0x740] sm:$0xff] %v2906_v27  ;;  %v2781_v32 = vadd.f32 %v4764_v43, %v2519_v28  ;;  %v2909_v33 = vadd.f32 %v4764_v43, %v2647_v29  ;;  %v2517_v34 = vmul.f32 %v4770_v45, %v1800_v30 }
 0x1cd   : > { %v2645_v35 = vmul.f32 %v4770_v45, %v2312_v31  ;;  %v3729_v36 = vpop.f32.mrf.mxu0  ;;  %v3857_v37 = vpop.f32.mrf.mxu1 }
 0x1ce   : > { %3037 = vst [vmem:[%s4402_s21 + $0x358] sm:$0xff] %v2781_v32  ;;  %3165 = vst [vmem:[%s4402_s21 + $0x758] sm:$0xff] %v2909_v33  ;;  %v2779_v38 = vadd.f32 %v4764_v43, %v2517_v34  ;;  %v2522_v40 = vmul.f32 %v4770_v45, %v3729_v36  ;;  %v2650_v41 = vmul.f32 %v4770_v45, %v3857_v37 }
 0x1cf   : > { %v2907_v39 = vadd.f32 %v4764_v43, %v2645_v35  ;;  %v1813_v42 = vpop.f32.mrf.mxu0  ;;  %v2325_v44 = vpop.f32.mrf.mxu1 }
 0x1d0   : > { %3035 = vst [vmem:[%s4402_s21 + $0x348] sm:$0xff] %v2779_v38  ;;  %v2784_v46 = vadd.f32 %v4764_v43, %v2522_v40  ;;  %v2912_v47 = vadd.f32 %v4764_v43, %v2650_v41  ;;  %v2520_v49 = vmul.f32 %v4770_v45, %v1813_v42  ;;  %v2648_v48 = vmul.f32 %v4770_v45, %v2325_v44 }
 0x1d1   : > { %3163 = vst [vmem:[%s4402_s21 + $0x748] sm:$0xff] %v2907_v39  ;;  %v3730_v50 = vpop.f32.mrf.mxu0  ;;  %v3858_v51 = vpop.f32.mrf.mxu1 }
 0x1d2   : > { %3040 = vst [vmem:[%s4402_s21 + $0x370] sm:$0xff] %v2784_v46  ;;  %3168 = vst [vmem:[%s4402_s21 + $0x770] sm:$0xff] %v2912_v47  ;;  %v2782_v52 = vadd.f32 %v4764_v43, %v2520_v49  ;;  %v2910_v53 = vadd.f32 %v4764_v43, %v2648_v48  ;;  %v2523_v54 = vmul.f32 %v4770_v45, %v3730_v50 }
 0x1d3   : > { %v2651_v55 = vmul.f32 %v4770_v45, %v3858_v51  ;;  %v1816_v56 = vpop.f32.mrf.mxu0  ;;  %v2328_v57 = vpop.f32.mrf.mxu1 }
 0x1d4   : > { %3038 = vst [vmem:[%s4402_s21 + $0x360] sm:$0xff] %v2782_v52  ;;  %3166 = vst [vmem:[%s4402_s21 + $0x760] sm:$0xff] %v2910_v53  ;;  %v2785_v58 = vadd.f32 %v4764_v43, %v2523_v54  ;;  %v2521_v60 = vmul.f32 %v4770_v45, %v1816_v56  ;;  %v2649_v61 = vmul.f32 %v4770_v45, %v2328_v57  ;;  %v4086_v57 = vld [vmem:[%s5236_s3] ss:$0 sm:$0xff] }
 0x1d5   : > { %v2913_v59 = vadd.f32 %v4764_v43, %v2651_v55  ;;  %v3733_v62 = vpop.f32.mrf.mxu0  ;;  %v3861_v63 = vpop.f32.mrf.mxu1 }
 0x1d6   : > { %3041 = vst [vmem:[%s4402_s21 + $0x378] sm:$0xff] %v2785_v58  ;;  %v2783_v0 = vadd.f32 %v4764_v43, %v2521_v60  ;;  %v2911_v1 = vadd.f32 %v4764_v43, %v2649_v61  ;;  %v2526_v2 = vmul.f32 %v4770_v45, %v3733_v62  ;;  %v2654_v3 = vmul.f32 %v4770_v45, %v3861_v63 }
 0x1d7   : > { %3169 = vst [vmem:[%s4402_s21 + $0x778] sm:$0xff] %v2913_v59  ;;  %v1829_v4 = vpop.f32.mrf.mxu0  ;;  %v2341_v5 = vpop.f32.mrf.mxu1  ;;  %v4087_v59 = vld [vmem:[%s5235_s2] ss:$0 sm:$0xff] }
 0x1d8   : > { %3039 = vst [vmem:[%s4402_s21 + $0x368] sm:$0xff] %v2783_v0  ;;  %3167 = vst [vmem:[%s4402_s21 + $0x768] sm:$0xff] %v2911_v1  ;;  %v2788_v6 = vadd.f32 %v4764_v43, %v2526_v2  ;;  %v2916_v7 = vadd.f32 %v4764_v43, %v2654_v3  ;;  %v2524_v8 = vmul.f32 %v4770_v45, %v1829_v4 }
 0x1d9   : > { %v2652_v9 = vmul.f32 %v4770_v45, %v2341_v5  ;;  %v3734_v10 = vpop.f32.mrf.mxu0  ;;  %v3862_v11 = vpop.f32.mrf.mxu1 }
 0x1da   : > { %3044 = vst [vmem:[%s4402_s21 + $0x390] sm:$0xff] %v2788_v6  ;;  %3172 = vst [vmem:[%s4402_s21 + $0x790] sm:$0xff] %v2916_v7  ;;  %v2786_v12 = vadd.f32 %v4764_v43, %v2524_v8  ;;  %v2527_v14 = vmul.f32 %v4770_v45, %v3734_v10  ;;  %v2655_v15 = vmul.f32 %v4770_v45, %v3862_v11 }
 0x1db   : > { %v2914_v13 = vadd.f32 %v4764_v43, %v2652_v9  ;;  %v1832_v16 = vpop.f32.mrf.mxu0  ;;  %v2344_v17 = vpop.f32.mrf.mxu1 }
 0x1dc   : > { %3042 = vst [vmem:[%s4402_s21 + $0x380] sm:$0xff] %v2786_v12  ;;  %v2789_v18 = vadd.f32 %v4764_v43, %v2527_v14  ;;  %v2917_v19 = vadd.f32 %v4764_v43, %v2655_v15  ;;  %v2525_v20 = vmul.f32 %v4770_v45, %v1832_v16  ;;  %v2653_v21 = vmul.f32 %v4770_v45, %v2344_v17 }
 0x1dd   : > { %3170 = vst [vmem:[%s4402_s21 + $0x780] sm:$0xff] %v2914_v13  ;;  %v3737_v22 = vpop.f32.mrf.mxu0  ;;  %v3865_v23 = vpop.f32.mrf.mxu1 }
 0x1de   : > { %3045 = vst [vmem:[%s4402_s21 + $0x398] sm:$0xff] %v2789_v18  ;;  %3173 = vst [vmem:[%s4402_s21 + $0x798] sm:$0xff] %v2917_v19  ;;  %v2787_v24 = vadd.f32 %v4764_v43, %v2525_v20  ;;  %v2915_v25 = vadd.f32 %v4764_v43, %v2653_v21  ;;  %v2530_v26 = vmul.f32 %v4770_v45, %v3737_v22 }
 0x1df   : > { %v2658_v27 = vmul.f32 %v4770_v45, %v3865_v23  ;;  %v1845_v28 = vpop.f32.mrf.mxu0  ;;  %v2357_v29 = vpop.f32.mrf.mxu1 }
 0x1e0   : > { %3043 = vst [vmem:[%s4402_s21 + $0x388] sm:$0xff] %v2787_v24  ;;  %3171 = vst [vmem:[%s4402_s21 + $0x788] sm:$0xff] %v2915_v25  ;;  %v2792_v30 = vadd.f32 %v4764_v43, %v2530_v26  ;;  %v2528_v32 = vmul.f32 %v4770_v45, %v1845_v28  ;;  %v2656_v33 = vmul.f32 %v4770_v45, %v2357_v29 }
 0x1e1   : > { %v2920_v31 = vadd.f32 %v4764_v43, %v2658_v27  ;;  %v3738_v34 = vpop.f32.mrf.mxu0  ;;  %v3866_v35 = vpop.f32.mrf.mxu1 }
 0x1e2   : > { %3048 = vst [vmem:[%s4402_s21 + $0x3b0] sm:$0xff] %v2792_v30  ;;  %v2790_v36 = vadd.f32 %v4764_v43, %v2528_v32  ;;  %v2918_v37 = vadd.f32 %v4764_v43, %v2656_v33  ;;  %v2531_v38 = vmul.f32 %v4770_v45, %v3738_v34  ;;  %v2659_v39 = vmul.f32 %v4770_v45, %v3866_v35 }
 0x1e3   : > { %3176 = vst [vmem:[%s4402_s21 + $0x7b0] sm:$0xff] %v2920_v31  ;;  %v1848_v40 = vpop.f32.mrf.mxu0  ;;  %v2360_v41 = vpop.f32.mrf.mxu1 }
 0x1e4   : > { %3046 = vst [vmem:[%s4402_s21 + $0x3a0] sm:$0xff] %v2790_v36  ;;  %3174 = vst [vmem:[%s4402_s21 + $0x7a0] sm:$0xff] %v2918_v37  ;;  %v2793_v42 = vadd.f32 %v4764_v43, %v2531_v38  ;;  %v2921_v44 = vadd.f32 %v4764_v43, %v2659_v39  ;;  %v2529_v46 = vmul.f32 %v4770_v45, %v1848_v40 }
 0x1e5   : > { %v2657_v47 = vmul.f32 %v4770_v45, %v2360_v41  ;;  %v3741_v49 = vpop.f32.mrf.mxu0  ;;  %v3869_v48 = vpop.f32.mrf.mxu1 }
 0x1e6   : > { %3049 = vst [vmem:[%s4402_s21 + $0x3b8] sm:$0xff] %v2793_v42  ;;  %3177 = vst [vmem:[%s4402_s21 + $0x7b8] sm:$0xff] %v2921_v44  ;;  %v2791_v50 = vadd.f32 %v4764_v43, %v2529_v46  ;;  %v2534_v52 = vmul.f32 %v4770_v45, %v3741_v49  ;;  %v2662_v53 = vmul.f32 %v4770_v45, %v3869_v48 }
 0x1e7   : > { %v2919_v51 = vadd.f32 %v4764_v43, %v2657_v47  ;;  %v1861_v54 = vpop.f32.mrf.mxu0  ;;  %v2373_v55 = vpop.f32.mrf.mxu1 }
 0x1e8   : > { %3047 = vst [vmem:[%s4402_s21 + $0x3a8] sm:$0xff] %v2791_v50  ;;  %v2796_v56 = vadd.f32 %v4764_v43, %v2534_v52  ;;  %v2924_v58 = vadd.f32 %v4086_v57, %v2662_v53  ;;  %v2532_v60 = vmul.f32 %v4087_v59, %v1861_v54  ;;  %v2660_v61 = vmul.f32 %v4087_v59, %v2373_v55 }
 0x1e9   : > { %3175 = vst [vmem:[%s4402_s21 + $0x7a8] sm:$0xff] %v2919_v51  ;;  %v3742_v45 = vpop.f32.mrf.mxu0  ;;  %v3870_v62 = vpop.f32.mrf.mxu1 }
 0x1ea   : > { %3052 = vst [vmem:[%s4402_s21 + $0x3d0] sm:$0xff] %v2796_v56  ;;  %3180 = vst [vmem:[%s4402_s21 + $0x7d0] sm:$0xff] %v2924_v58  ;;  %v2794_v43 = vadd.f32 %v4086_v57, %v2532_v60  ;;  %v2922_v63 = vadd.f32 %v4086_v57, %v2660_v61  ;;  %v2535_v0 = vmul.f32 %v4087_v59, %v3742_v45 }
 0x1eb   : > { %v2663_v1 = vmul.f32 %v4087_v59, %v3870_v62  ;;  %v1864_v2 = vpop.f32.mrf.mxu0  ;;  %v2376_v3 = vpop.f32.mrf.mxu1 }
 0x1ec   : > { %3050 = vst [vmem:[%s4402_s21 + $0x3c0] sm:$0xff] %v2794_v43  ;;  %3178 = vst [vmem:[%s4402_s21 + $0x7c0] sm:$0xff] %v2922_v63  ;;  %v2797_v4 = vadd.f32 %v4086_v57, %v2535_v0  ;;  %v2533_v6 = vmul.f32 %v4087_v59, %v1864_v2  ;;  %v2661_v7 = vmul.f32 %v4087_v59, %v2376_v3 }
 0x1ed   : > { %v2925_v5 = vadd.f32 %v4086_v57, %v2663_v1  ;;  %v3745_v8 = vpop.f32.mrf.mxu0  ;;  %v3873_v9 = vpop.f32.mrf.mxu1 }
 0x1ee   : > { %3053 = vst [vmem:[%s4402_s21 + $0x3d8] sm:$0xff] %v2797_v4  ;;  %v2795_v10 = vadd.f32 %v4086_v57, %v2533_v6  ;;  %v2923_v11 = vadd.f32 %v4086_v57, %v2661_v7  ;;  %v2538_v12 = vmul.f32 %v4087_v59, %v3745_v8  ;;  %v2666_v13 = vmul.f32 %v4087_v59, %v3873_v9 }
 0x1ef   : > { %3181 = vst [vmem:[%s4402_s21 + $0x7d8] sm:$0xff] %v2925_v5  ;;  %v1877_v14 = vpop.f32.mrf.mxu0  ;;  %v2389_v15 = vpop.f32.mrf.mxu1 }
 0x1f0   : > { %3051 = vst [vmem:[%s4402_s21 + $0x3c8] sm:$0xff] %v2795_v10  ;;  %3179 = vst [vmem:[%s4402_s21 + $0x7c8] sm:$0xff] %v2923_v11  ;;  %v2800_v16 = vadd.f32 %v4086_v57, %v2538_v12  ;;  %v2928_v17 = vadd.f32 %v4086_v57, %v2666_v13  ;;  %v2536_v18 = vmul.f32 %v4087_v59, %v1877_v14 }
 0x1f1   : > { %v2664_v19 = vmul.f32 %v4087_v59, %v2389_v15  ;;  %v3746_v20 = vpop.f32.mrf.mxu0  ;;  %v3874_v21 = vpop.f32.mrf.mxu1 }
 0x1f2   : > { %3056 = vst [vmem:[%s4402_s21 + $0x3f0] sm:$0xff] %v2800_v16  ;;  %3184 = vst [vmem:[%s4402_s21 + $0x7f0] sm:$0xff] %v2928_v17  ;;  %v2798_v22 = vadd.f32 %v4086_v57, %v2536_v18  ;;  %v2539_v24 = vmul.f32 %v4087_v59, %v3746_v20  ;;  %v2667_v25 = vmul.f32 %v4087_v59, %v3874_v21 }
 0x1f3   : > { %v2926_v23 = vadd.f32 %v4086_v57, %v2664_v19  ;;  %v1880_v26 = vpop.f32.mrf.mxu0  ;;  %v2392_v27 = vpop.f32.mrf.mxu1 }
 0x1f4   : > { %3054 = vst [vmem:[%s4402_s21 + $0x3e0] sm:$0xff] %v2798_v22  ;;  %v2801_v28 = vadd.f32 %v4086_v57, %v2539_v24  ;;  %v2929_v29 = vadd.f32 %v4086_v57, %v2667_v25  ;;  %v2537_v30 = vmul.f32 %v4087_v59, %v1880_v26  ;;  %v2665_v31 = vmul.f32 %v4087_v59, %v2392_v27 }
 0x1f5   : > { %3182 = vst [vmem:[%s4402_s21 + $0x7e0] sm:$0xff] %v2926_v23 }
 0x1f6   : > { %3057 = vst [vmem:[%s4402_s21 + $0x3f8] sm:$0xff] %v2801_v28  ;;  %3185 = vst [vmem:[%s4402_s21 + $0x7f8] sm:$0xff] %v2929_v29  ;;  %v2799_v32 = vadd.f32 %v4086_v57, %v2537_v30  ;;  %v2927_v33 = vadd.f32 %v4086_v57, %v2665_v31 }
 0x1f8   : > { %3055 = vst [vmem:[%s4402_s21 + $0x3e8] sm:$0xff] %v2799_v32  ;;  %3183 = vst [vmem:[%s4402_s21 + $0x7e8] sm:$0xff] %v2927_v33 }
 0x1f9   : > { %4101 = shalt.err (!%p4098_p5)
}
 0x1fa   : > { %s4102_s8 = scalar_lea.hbm %s5178_s12, 32768  ;;  %s4106_s29 = scalar_lea.hbm %s5237_s4, 163840 }
 0x1fb   : > { %p4103_p6 = scmp.ne.s32.totalorder %s5178_s12, %s4102_s8  ;;  %p4107_p10 = scmp.lt.s32.totalorder %s5178_s12, %s5237_s4 }
 0x1fc   : > { %p4108_p11 = scmp.lt.s32.totalorder %s4106_s29, %s4102_s8 }
 0x1fd   : > { %p4104_p7 = pnand %p4103_p6, %p4234_p4 }
 0x1fe   : > { %p4109_p12 = por %p4108_p11, %p4107_p10 }
 0x1ff   : > { %p4105_p9 = pneg %p4104_p7 }
 0x201   : > { %p4110_p13 = pnand %p4109_p12, %p4105_p9 }
 0x203   : > { %4113 = shalt.err (!%p4110_p13)
}
 0x204   : > { %s4167_s6 = smov 128   ;;  %s4168_s7 = smov 8  }
 0x205   : > { %3891 = dma.vmem_to_hbm [thread:$0]  (%p4234_p4), %s5180_s9, 32768, %s5178_s12, %s5188_s18, %s4167_s6, %s4167_s6, %s4168_s7  }
 0x206 PF: > { %p3897_p0 = scmp.ge.s32.totalorder %s4164_s20, 2  ;;  %s3216_s10 = sand.u32 1, %s4144_s15  }
 0x207   : > { %s3217_s11 = scalar_lea.sflag [#allocation3], %s3216_s10 }
 0x208   : > { %p3894_p1 = pnand %p3897_p0, %p4241_p8 }
 0x20a   : > { %p3895_p2 = pneg %p3894_p1 }
 0x20c   : > { %4139 = dma.done.wait (%p3895_p2), %s3217_s11, 32768  }
 0x20d   : > { %4141 = vsyncadd (%p3895_p2), %s3217_s11, 4294934528  ;;  %s17_s20 = sadd.s32 1, %s4164_s20   ;;  %s5240_s15 = smov %s4148_s16 }
 0x20e   : > { %p14_p3 = scmp.ge.s32.totalorder %s17_s20, 7   ;;  %s5241_s16 = smov %s4152_s17 }
 0x20f   : > { %s5242_s17 = smov %s4247_s28  ;;  %s5243_s18 = smov %s4160_s19 }
 0x210   : > { %s5244_s19 = smov %s5246_s23  ;;  %16 = sbr.rel (!%p14_p3) target bundleno = 4 (0x4), region = 80 }
 0x215   :  { %3222 = vsyncpa [#allocation3], 1 }
 0x216   :  { %3224 = vsyncpa [#allocation3 + $0x1], 1 }

</bundles_post_ra>
